<compile_context>
chip_gen: v6e
topology: v6e:2x2x1
jax: 0.10.0
libtpu: 0.0.40
codegen_flags: <defaults>
</compile_context>

<pallas_src>
import functools

import jax
import jax.numpy as jnp
from jax.experimental import pallas as pl
from jax.experimental.pallas import tpu as pltpu

_BN_EPS = 1e-5                      # PyTorch BatchNorm2d default
_TARGET_TILE_ROWS = 1024            # ~rows of flattened (h*w) per grid step
_VMEM_LIMIT = 48 * 1024 * 1024      # fits v5e/v6e (128 MiB) and v7x (64 MiB)


def _largest_divisor_leq(n, target):
    target = max(1, min(int(n), int(target)))
    for d in range(target, 0, -1):
        if n % d == 0:
            return d
    return 1


# ---------------------------------------------------------------------------
# Kernel 1: ConvTranspose2d(k=2, s=2) as a tiled matmul; scatter fused into the
# output layout (N, H, 2, W, 2*Cout) -> contiguous reshape to (N, 2H, 2W, Cout).
# ---------------------------------------------------------------------------
def _upconv_kernel(x_ref, w_ref, b_ref, o_ref, *, bh, W, Cin, Cout2):
    x2d = x_ref[0, :, :, :].reshape(bh * W, Cin)
    for kh in range(2):
        y = jnp.dot(x2d, w_ref[kh, :, :], preferred_element_type=jnp.float32)
        y = y + b_ref[...]
        o_ref[0, :, kh, :, :] = y.reshape(bh, W, Cout2)


def conv_transpose2x2_stride2(x_nhwc, w_t, b, compute_dtype=jnp.float32):
    """ConvTranspose2d(kernel=2, stride=2). w_t is torch layout (Cin, Cout, 2, 2)."""
    N, H, W, Cin = x_nhwc.shape
    Cout = w_t.shape[1]
    bh = _largest_divisor_leq(H, max(1, _TARGET_TILE_ROWS // max(W, 1)))
    nb = H // bh
    # (Cin, Cout, kh, kw) -> (kh, Cin, kw*Cout); output column = kw*Cout + co
    wk = jnp.transpose(w_t, (2, 0, 3, 1)).reshape(2, Cin, 2 * Cout).astype(compute_dtype)
    bk = jnp.tile(b, 2).reshape(1, 2 * Cout).astype(jnp.float32)
    kern = functools.partial(_upconv_kernel, bh=bh, W=W, Cin=Cin, Cout2=2 * Cout)
    out = pl.pallas_call(
        kern,
        out_shape=jax.ShapeDtypeStruct((N, H, 2, W, 2 * Cout), jnp.float32),
        grid_spec=pltpu.PrefetchScalarGridSpec(
            num_scalar_prefetch=0,
            grid=(N, nb),
            in_specs=[
                pl.BlockSpec((1, bh, W, Cin), lambda n, hb: (n, hb, 0, 0)),
                pl.BlockSpec((2, Cin, 2 * Cout), lambda n, hb: (0, 0, 0)),
                pl.BlockSpec((1, 2 * Cout), lambda n, hb: (0, 0)),
            ],
            out_specs=pl.BlockSpec((1, bh, 2, W, 2 * Cout),
                                   lambda n, hb: (n, hb, 0, 0, 0)),
        ),
        compiler_params=pltpu.CompilerParams(
            dimension_semantics=("parallel", "parallel"),
            vmem_limit_bytes=_VMEM_LIMIT),
    )(x_nhwc.astype(compute_dtype), wk, bk)
    # (N, H, 2, W, 2*Cout) -> (N, 2H, 2W, Cout): contiguous (free) reshape.
    return out.reshape(N, 2 * H, 2 * W, Cout)


# ---------------------------------------------------------------------------
# Kernel 2: 3x3 'same' conv over the (virtual) channel-concat of input "parts",
# with per-row-block im2col + single MXU matmul, fused optional input
# (BN affine + ReLU), and per-tile BatchNorm partial statistics.
# ---------------------------------------------------------------------------
def _conv3x3_kernel(*refs, n_parts, part_channels, apply_act, bh, H, W, Cout, Ktot):
    it = iter(refs)
    x_refs = [next(it) for _ in range(n_parts)]
    act_refs = []
    for p in range(n_parts):
        act_refs.append((next(it), next(it)) if apply_act[p] else None)
    w_ref = next(it)
    b_ref = next(it)
    o_ref = next(it)
    st_ref = next(it)
    xpad_refs = [next(it) for _ in range(n_parts)]
    col_ref = next(it)

    hb = pl.program_id(1)

    # Once per image: stage zero-padded (and, for chained convs, BN+ReLU
    # activated) copies of the inputs into VMEM scratch. Replaces the XLA-side
    # jnp.pad / jnp.concatenate HBM round trips.
    @pl.when(hb == 0)
    def _():
        for p in range(n_parts):
            xp = xpad_refs[p]
            xp[...] = jnp.zeros(xp.shape, xp.dtype)
            xv = x_refs[p][0, :, :, :].astype(jnp.float32)
            if apply_act[p]:
                sc_ref, sh_ref = act_refs[p]
                xv = jnp.maximum(xv * sc_ref[...] + sh_ref[...], 0.0)
            xp[1:H + 1, 1:W + 1, :] = xv.astype(xp.dtype)

    # im2col for this row block: (bh, W, 9*Cin_total) patches in VMEM, then ONE
    # matmul with K = 9*Cin_total (feeds the MXU far better than 9 K=Cin dots).
    r0 = pl.multiple_of(hb * bh, bh)
    base = 0
    for p in range(n_parts):
        Cp = part_channels[p]
        xp = xpad_refs[p]
        for kh in range(3):
            for kw in range(3):
                off = base + (kh * 3 + kw) * Cp
                col_ref[:, :, off:off + Cp] = xp[pl.ds(r0 + kh, bh), kw:kw + W, :]
        base += 9 * Cp

    col2d = col_ref[...].reshape(bh * W, Ktot)
    acc = jnp.dot(col2d, w_ref[...], preferred_element_type=jnp.float32)
    acc = acc + b_ref[...]

    o_ref[0, :, :, :] = acc.reshape(bh, W, Cout)
    # Per-tile partial BatchNorm statistics (sum, sum-of-squares) in f32.
    s1 = jnp.sum(acc, axis=0, keepdims=True)
    s2 = jnp.sum(acc * acc, axis=0, keepdims=True)
    st_ref[0, 0, :, :] = jnp.concatenate([s1, s2], axis=0)


def conv3x3_bn_stats(parts, w_parts, bias, in_act, compute_dtype=jnp.float32):
    """Conv3x3(pad=1) over cat(parts, channel) without materializing the concat
    (weight split along Cin). `in_act[p]` is either None or (scale, shift) — a
    fused per-channel affine + ReLU applied to part p while staging it (used to
    fuse the previous layer's BatchNorm+ReLU). Returns (pre-BN conv out, stats).
    """
    # TODO(synk): for very large feature maps, halo-DMA row tiles of the inputs
    # (pl.ANY + make_async_copy) instead of keeping one whole image per batch
    # element resident in VMEM.
    N, H, W, _ = parts[0].shape
    Cout = int(w_parts[0].shape[-1])
    part_channels = tuple(int(p.shape[-1]) for p in parts)
    Ktot = 9 * sum(part_channels)
    bh = _largest_divisor_leq(H, max(1, _TARGET_TILE_ROWS // max(W, 1)))
    nb = H // bh
    n_parts = len(parts)
    apply_act = tuple(a is not None for a in in_act)

    wmat = jnp.concatenate(
        [w.reshape(9 * c, Cout) for w, c in zip(w_parts, part_channels)],
        axis=0).astype(compute_dtype)
    bmat = bias.reshape(1, Cout).astype(jnp.float32)

    inputs, in_specs = [], []
    for p, x in enumerate(parts):
        inputs.append(x)
        in_specs.append(pl.BlockSpec((1, H, W, part_channels[p]),
                                     lambda n, hb: (n, 0, 0, 0)))
    for p in range(n_parts):
        if apply_act[p]:
            sc, sh = in_act[p]
            cp = part_channels[p]
            inputs.append(sc.reshape(1, 1, cp).astype(jnp.float32))
            in_specs.append(pl.BlockSpec((1, 1, cp), lambda n, hb: (0, 0, 0)))
            inputs.append(sh.reshape(1, 1, cp).astype(jnp.float32))
            in_specs.append(pl.BlockSpec((1, 1, cp), lambda n, hb: (0, 0, 0)))
    inputs.append(wmat)
    in_specs.append(pl.BlockSpec((Ktot, Cout), lambda n, hb: (0, 0)))
    inputs.append(bmat)
    in_specs.append(pl.BlockSpec((1, Cout), lambda n, hb: (0, 0)))

    kern = functools.partial(
        _conv3x3_kernel, n_parts=n_parts, part_channels=part_channels,
        apply_act=apply_act, bh=bh, H=H, W=W, Cout=Cout, Ktot=Ktot)

    scratch = [pltpu.VMEM((H + 2, W + 2, c), compute_dtype) for c in part_channels]
    scratch.append(pltpu.VMEM((bh, W, Ktot), compute_dtype))

    conv_out, stats = pl.pallas_call(
        kern,
        out_shape=(jax.ShapeDtypeStruct((N, H, W, Cout), jnp.float32),
                   jax.ShapeDtypeStruct((N, nb, 2, Cout), jnp.float32)),
        grid_spec=pltpu.PrefetchScalarGridSpec(
            num_scalar_prefetch=0,
            grid=(N, nb),
            in_specs=in_specs,
            out_specs=(pl.BlockSpec((1, bh, W, Cout), lambda n, hb: (n, hb, 0, 0)),
                       pl.BlockSpec((1, 1, 2, Cout), lambda n, hb: (n, hb, 0, 0))),
            scratch_shapes=scratch,
        ),
        compiler_params=pltpu.CompilerParams(
            # Batch axis parallel (megacore on v7x); row-block axis sequential so
            # the once-per-image padded-input staging (hb == 0) runs first.
            dimension_semantics=("parallel", "arbitrary"),
            vmem_limit_bytes=_VMEM_LIMIT),
    )(*inputs)
    return conv_out, stats


# ---------------------------------------------------------------------------
# Kernel 3: final BatchNorm(affine) + ReLU, tiled elementwise.
# ---------------------------------------------------------------------------
def _bn_relu_kernel(x_ref, sc_ref, sh_ref, o_ref):
    o_ref[...] = jnp.maximum(x_ref[...] * sc_ref[...] + sh_ref[...], 0.0)


def bn_relu(x_nhwc, scale, shift):
    N, H, W, C = x_nhwc.shape
    bh = _largest_divisor_leq(H, max(1, _TARGET_TILE_ROWS // max(W, 1)))
    nb = H // bh
    return pl.pallas_call(
        _bn_relu_kernel,
        out_shape=jax.ShapeDtypeStruct((N, H, W, C), jnp.float32),
        grid_spec=pltpu.PrefetchScalarGridSpec(
            num_scalar_prefetch=0,
            grid=(N, nb),
            in_specs=[pl.BlockSpec((1, bh, W, C), lambda n, hb: (n, hb, 0, 0)),
                      pl.BlockSpec((1, C), lambda n, hb: (0, 0)),
                      pl.BlockSpec((1, C), lambda n, hb: (0, 0))],
            out_specs=pl.BlockSpec((1, bh, W, C), lambda n, hb: (n, hb, 0, 0)),
        ),
        compiler_params=pltpu.CompilerParams(
            dimension_semantics=("parallel", "parallel"),
            vmem_limit_bytes=_VMEM_LIMIT),
    )(x_nhwc, scale.reshape(1, C), shift.reshape(1, C))


# ---------------------------------------------------------------------------
# Tiny XLA glue
# ---------------------------------------------------------------------------
def _bn_affine_from_stats(stats, gamma, beta, count):
    """Training-mode BN affine (biased variance) from per-tile (sum, sumsq)."""
    s = jnp.sum(stats, axis=(0, 1))                     # (2, C)
    mean = s[0] / count
    var = jnp.maximum(s[1] / count - mean * mean, 0.0)  # biased variance, f32
    scale = gamma * jax.lax.rsqrt(var + _BN_EPS)
    shift = beta - mean * scale
    return scale, shift


def _resize_matrix(n_in, n_out):
    if n_in == n_out:
        return jnp.eye(n_in, dtype=jnp.float32)
    if n_out == 1:
        src = jnp.zeros((1,), jnp.float32)
    else:
        src = jnp.arange(n_out, dtype=jnp.float32) * (n_in - 1) / (n_out - 1)
    i0 = jnp.clip(jnp.floor(src).astype(jnp.int32), 0, n_in - 1)
    i1 = jnp.clip(i0 + 1, 0, n_in - 1)
    w = src - i0.astype(jnp.float32)
    return (jax.nn.one_hot(i0, n_in, dtype=jnp.float32) * (1.0 - w)[:, None]
            + jax.nn.one_hot(i1, n_in, dtype=jnp.float32) * w[:, None])


def upsample_bilinear_align_corners(x_nhwc, out_h, out_w):
    """nn.UpsamplingBilinear2d (align_corners=True). Identity whenever the
    transposed-conv output already matches x2 (the standard U-Net path)."""
    N, H, W, C = x_nhwc.shape
    if (H, W) == (out_h, out_w):
        return x_nhwc
    Ah = _resize_matrix(H, out_h)
    Aw = _resize_matrix(W, out_w)
    y = jnp.einsum('oh,nhwc->nowc', Ah, x_nhwc)
    y = jnp.einsum('pw,nowc->nopc', Aw, y)
    return y


# ---------------------------------------------------------------------------
# Upconv_Block forward
# ---------------------------------------------------------------------------
def upconv_block_forward(params, x1_nchw, x2_nchw, compute_dtype=jnp.float32):
    """Upconv_Block.forward(x1, x2). Inputs/outputs NCHW (PyTorch convention)."""
    x1 = jnp.transpose(x1_nchw, (0, 2, 3, 1))  # NCHW -> NHWC (API boundary)
    x2 = jnp.transpose(x2_nchw, (0, 2, 3, 1))

    x1 = conv_transpose2x2_stride2(x1, params['upconv_w'], params['upconv_b'],
                                   compute_dtype=compute_dtype)
    x1 = upsample_bilinear_align_corners(x1, x2.shape[1], x2.shape[2])

    N, H, W, c2 = x2.shape
    count = float(N * H * W)

    # conv1 over cat([x2, x1], dim=channel): weight split along Cin, no concat.
    w1 = params['conv1_w']
    h1, st1 = conv3x3_bn_stats(
        parts=(x2, x1),
        w_parts=(w1[:, :, :c2, :], w1[:, :, c2:, :]),
        bias=params['conv1_b'],
        in_act=(None, None),
        compute_dtype=compute_dtype)
    sc1, sh1 = _bn_affine_from_stats(st1, params['bn1_g'], params['bn1_b'], count)

    # conv2: BN1 + ReLU fused into conv2's input staging.
    h2, st2 = conv3x3_bn_stats(
        parts=(h1,),
        w_parts=(params['conv2_w'],),
        bias=params['conv2_b'],
        in_act=((sc1, sh1),),
        compute_dtype=compute_dtype)
    sc2, sh2 = _bn_affine_from_stats(st2, params['bn2_g'], params['bn2_b'], count)

    out = bn_relu(h2, sc2, sh2)
    return jnp.transpose(out, (0, 3, 1, 2))    # NHWC -> NCHW


# ---------------------------------------------------------------------------
# Deterministic parameter init (synthetic; shapes from Upconv_Block.__init__)
# ---------------------------------------------------------------------------
def init_params(key, in_ch, out_ch):
    ks = jax.random.split(key, 6)
    half = in_ch // 2
    return {
        # ConvTranspose2d(in_ch, in_ch//2, 2, stride=2): torch weight (Cin, Cout, 2, 2)
        'upconv_w': 0.1 * jax.random.normal(ks[0], (in_ch, half, 2, 2), jnp.float32),
        'upconv_b': 0.1 * jax.random.normal(ks[1], (half,), jnp.float32),
        # Conv2d(in_ch, out_ch, 3, padding=1): stored as HWIO
        'conv1_w': 0.1 * jax.random.normal(ks[2], (3, 3, in_ch, out_ch), jnp.float32),
        'conv1_b': 0.1 * jax.random.normal(ks[3], (out_ch,), jnp.float32),
        'bn1_g': jnp.ones((out_ch,), jnp.float32),
        'bn1_b': jnp.zeros((out_ch,), jnp.float32),
        # Conv2d(out_ch, out_ch, 3, padding=1)
        'conv2_w': 0.1 * jax.random.normal(ks[4], (3, 3, out_ch, out_ch), jnp.float32),
        'conv2_b': 0.1 * jax.random.normal(ks[5], (out_ch,), jnp.float32),
        'bn2_g': jnp.ones((out_ch,), jnp.float32),
        'bn2_b': jnp.zeros((out_ch,), jnp.float32),
    }


if __name__ == "__main__":
    key = jax.random.PRNGKey(0)
    k1, k2, kp = jax.random.split(key, 3)

    in_ch, out_ch = 8, 4
    # x1: coarse feature map (NCHW); x2: skip connection at 2x resolution.
    x1 = jax.random.normal(k1, (2, in_ch, 8, 8), jnp.float32)
    x2 = jax.random.normal(k2, (2, in_ch // 2, 16, 16), jnp.float32)
    params = init_params(kp, in_ch, out_ch)

    fwd = jax.jit(upconv_block_forward)
    out = jax.block_until_ready(fwd(params, x1, x2))
    assert out.shape == (2, out_ch, 16, 16), out.shape
    assert bool(jnp.all(jnp.isfinite(out)))
    print("KERNEL_OK")
</pallas_src>

<mosaic_0001>
module attributes {stable_mosaic.version = 11 : i64} {
  func.func @_upconv_kernel(%arg0: i32, %arg1: i32, %arg2: memref<1x8x8x8xf32, #tpu.memory_space<vmem>>, %arg3: memref<2x8x8xf32, #tpu.memory_space<vmem>>, %arg4: memref<1x8xf32, #tpu.memory_space<vmem>>, %arg5: memref<1x8x2x8x8xf32, #tpu.memory_space<vmem>>) attributes {dimension_semantics = [#tpu.dimension_semantics<parallel>, #tpu.dimension_semantics<parallel>], iteration_bounds = array<i64: 2, 1>, scalar_prefetch = 0 : i64, scratch_operands = 0 : i64, tpu.core_type = #tpu.core_type<tc>, window_params = [{transform_indices = @transform_0, window_bounds = array<i64: 1, 8, 8, 8>}, {pipeline_mode = #tpu.pipeline_mode<synchronous>, transform_indices = @transform_1, window_bounds = array<i64: 2, 8, 8>}, {pipeline_mode = #tpu.pipeline_mode<synchronous>, transform_indices = @transform_2, window_bounds = array<i64: 1, 8>}, {transform_indices = @transform_3, window_bounds = array<i64: 1, 8, 2, 8, 8>}]} {
    %c0 = arith.constant 0 : index
    %c0_0 = arith.constant 0 : index
    %c0_1 = arith.constant 0 : index
    %c0_2 = arith.constant 0 : index
    %0 = vector.load %arg2[%c0, %c0_0, %c0_1, %c0_2] : memref<1x8x8x8xf32, #tpu.memory_space<vmem>>, vector<1x8x8x8xf32>
    %1 = vector.shape_cast %0 : vector<1x8x8x8xf32> to vector<8x8x8xf32>
    %2 = vector.shape_cast %1 : vector<8x8x8xf32> to vector<64x8xf32>
    %c0_3 = arith.constant 0 : index
    %c0_4 = arith.constant 0 : index
    %c0_5 = arith.constant 0 : index
    %3 = vector.load %arg3[%c0_3, %c0_4, %c0_5] : memref<2x8x8xf32, #tpu.memory_space<vmem>>, vector<1x8x8xf32>
    %4 = vector.shape_cast %3 : vector<1x8x8xf32> to vector<8x8xf32>
    %cst = arith.constant dense<0.000000e+00> : vector<64x8xf32>
    %5 = tpu.matmul %2, %4, %cst {dimension_numbers = #tpu.dot_dimension_numbers<[1], [0], [0], [1], [0, 0, 1, 1], [], []>} : vector<64x8xf32>, vector<8x8xf32>, vector<64x8xf32> -> vector<64x8xf32>
    %c0_6 = arith.constant 0 : index
    %c0_7 = arith.constant 0 : index
    %6 = vector.load %arg4[%c0_6, %c0_7] : memref<1x8xf32, #tpu.memory_space<vmem>>, vector<1x8xf32>
    %7 = vector.broadcast %6 : vector<1x8xf32> to vector<64x8xf32>
    %8 = arith.addf %5, %7 : vector<64x8xf32>
    %9 = vector.shape_cast %8 : vector<64x8xf32> to vector<8x8x8xf32>
    %c0_8 = arith.constant 0 : index
    %c0_9 = arith.constant 0 : index
    %c0_10 = arith.constant 0 : index
    %c0_11 = arith.constant 0 : index
    %c0_12 = arith.constant 0 : index
    %10 = vector.load %arg5[%c0_8, %c0_9, %c0_10, %c0_11, %c0_12] : memref<1x8x2x8x8xf32, #tpu.memory_space<vmem>>, vector<1x8x1x8x8xf32>
    %11 = vector.shape_cast %10 : vector<1x8x1x8x8xf32> to vector<8x8x8xf32>
    %12 = vector.shape_cast %9 : vector<8x8x8xf32> to vector<1x8x1x8x8xf32>
    tpu.vector_store %arg5[%c0_8, %c0_9, %c0_10, %c0_11, %c0_12], %12 {strides = array<i32>} : memref<1x8x2x8x8xf32, #tpu.memory_space<vmem>>, vector<1x8x1x8x8xf32>,
    %c1 = arith.constant 1 : index
    %c0_13 = arith.constant 0 : index
    %c0_14 = arith.constant 0 : index
    %13 = vector.load %arg3[%c1, %c0_13, %c0_14] : memref<2x8x8xf32, #tpu.memory_space<vmem>>, vector<1x8x8xf32>
    %14 = vector.shape_cast %13 : vector<1x8x8xf32> to vector<8x8xf32>
    %cst_15 = arith.constant dense<0.000000e+00> : vector<64x8xf32>
    %15 = tpu.matmul %2, %14, %cst_15 {dimension_numbers = #tpu.dot_dimension_numbers<[1], [0], [0], [1], [0, 0, 1, 1], [], []>} : vector<64x8xf32>, vector<8x8xf32>, vector<64x8xf32> -> vector<64x8xf32>
    %c0_16 = arith.constant 0 : index
    %c0_17 = arith.constant 0 : index
    %16 = vector.load %arg4[%c0_16, %c0_17] : memref<1x8xf32, #tpu.memory_space<vmem>>, vector<1x8xf32>
    %17 = vector.broadcast %16 : vector<1x8xf32> to vector<64x8xf32>
    %18 = arith.addf %15, %17 : vector<64x8xf32>
    %19 = vector.shape_cast %18 : vector<64x8xf32> to vector<8x8x8xf32>
    %c0_18 = arith.constant 0 : index
    %c0_19 = arith.constant 0 : index
    %c1_20 = arith.constant 1 : index
    %c0_21 = arith.constant 0 : index
    %c0_22 = arith.constant 0 : index
    %20 = vector.load %arg5[%c0_18, %c0_19, %c1_20, %c0_21, %c0_22] : memref<1x8x2x8x8xf32, #tpu.memory_space<vmem>>, vector<1x8x1x8x8xf32>
    %21 = vector.shape_cast %20 : vector<1x8x1x8x8xf32> to vector<8x8x8xf32>
    %22 = vector.shape_cast %19 : vector<8x8x8xf32> to vector<1x8x1x8x8xf32>
    tpu.vector_store %arg5[%c0_18, %c0_19, %c1_20, %c0_21, %c0_22], %22 {strides = array<i32>} : memref<1x8x2x8x8xf32, #tpu.memory_space<vmem>>, vector<1x8x1x8x8xf32>,
    return
  }
  func.func @transform_0(%arg0: i32, %arg1: i32) -> (i32, i32, i32, i32) {
    %c0_i32 = arith.constant 0 : i32
    %c0_i32_0 = arith.constant 0 : i32
    %c0_i32_1 = arith.constant 0 : i32
    return %arg0, %arg1, %c0_i32, %c0_i32_0 : i32, i32, i32, i32
  }
  func.func @transform_1(%arg0: i32, %arg1: i32) -> (i32, i32, i32) {
    %c0_i32 = arith.constant 0 : i32
    %c0_i32_0 = arith.constant 0 : i32
    %c0_i32_1 = arith.constant 0 : i32
    %c0_i32_2 = arith.constant 0 : i32
    return %c0_i32, %c0_i32_0, %c0_i32_1 : i32, i32, i32
  }
  func.func @transform_2(%arg0: i32, %arg1: i32) -> (i32, i32) {
    %c0_i32 = arith.constant 0 : i32
    %c0_i32_0 = arith.constant 0 : i32
    %c0_i32_1 = arith.constant 0 : i32
    return %c0_i32, %c0_i32_0 : i32, i32
  }
  func.func @transform_3(%arg0: i32, %arg1: i32) -> (i32, i32, i32, i32, i32) {
    %c0_i32 = arith.constant 0 : i32
    %c0_i32_0 = arith.constant 0 : i32
    %c0_i32_1 = arith.constant 0 : i32
    %c0_i32_2 = arith.constant 0 : i32
    return %arg0, %arg1, %c0_i32, %c0_i32_0, %c0_i32_1 : i32, i32, i32, i32, i32
  }
}

module attributes {stable_mosaic.version = 11 : i64} {
  func.func @_conv3x3_kernel(%arg0: i32, %arg1: i32, %arg2: memref<1x16x16x4xf32, #tpu.memory_space<vmem>>, %arg3: memref<1x16x16x4xf32, #tpu.memory_space<vmem>>, %arg4: memref<72x4xf32, #tpu.memory_space<vmem>>, %arg5: memref<1x4xf32, #tpu.memory_space<vmem>>, %arg6: memref<1x16x16x4xf32, #tpu.memory_space<vmem>>, %arg7: memref<1x1x2x4xf32, #tpu.memory_space<vmem>>, %arg8: memref<18x18x4xf32, #tpu.memory_space<vmem>>, %arg9: memref<18x18x4xf32, #tpu.memory_space<vmem>>, %arg10: memref<16x16x72xf32, #tpu.memory_space<vmem>>) attributes {dimension_semantics = [#tpu.dimension_semantics<parallel>, #tpu.dimension_semantics<arbitrary>], iteration_bounds = array<i64: 2, 1>, scalar_prefetch = 0 : i64, scratch_operands = 3 : i64, tpu.core_type = #tpu.core_type<tc>, window_params = [{transform_indices = @transform_0, window_bounds = array<i64: 1, 16, 16, 4>}, {transform_indices = @transform_1, window_bounds = array<i64: 1, 16, 16, 4>}, {pipeline_mode = #tpu.pipeline_mode<synchronous>, transform_indices = @transform_2, window_bounds = array<i64: 72, 4>}, {pipeline_mode = #tpu.pipeline_mode<synchronous>, transform_indices = @transform_3, window_bounds = array<i64: 1, 4>}, {transform_indices = @transform_4, window_bounds = array<i64: 1, 16, 16, 4>}, {transform_indices = @transform_5, window_bounds = array<i64: 1, 1, 2, 4>}]} {
    %c0_i32 = arith.constant 0 : i32
    %0 = arith.cmpi eq, %arg1, %c0_i32 : i32
    %1 = arith.extui %0 : i1 to i32
    %c0_i32_0 = arith.constant 0 : i32
    %2 = arith.cmpi ne, %1, %c0_i32_0 : i32
    scf.if %2 {
      %cst_104 = arith.constant 0.000000e+00 : f32
      %97 = vector.broadcast %cst_104 : f32 to vector<18x18x4xf32>
      %c0_105 = arith.constant 0 : index
      %c0_106 = arith.constant 0 : index
      %c0_107 = arith.constant 0 : index
      %98 = vector.load %arg8[%c0_105, %c0_106, %c0_107] : memref<18x18x4xf32, #tpu.memory_space<vmem>>, vector<18x18x4xf32>
      tpu.vector_store %arg8[%c0_105, %c0_106, %c0_107], %97 {strides = array<i32>} : memref<18x18x4xf32, #tpu.memory_space<vmem>>, vector<18x18x4xf32>,
      %c0_108 = arith.constant 0 : index
      %c0_109 = arith.constant 0 : index
      %c0_110 = arith.constant 0 : index
      %c0_111 = arith.constant 0 : index
      %99 = vector.load %arg2[%c0_108, %c0_109, %c0_110, %c0_111] : memref<1x16x16x4xf32, #tpu.memory_space<vmem>>, vector<1x16x16x4xf32>
      %100 = vector.shape_cast %99 : vector<1x16x16x4xf32> to vector<16x16x4xf32>
      %c1_112 = arith.constant 1 : index
      %c1_113 = arith.constant 1 : index
      %c0_114 = arith.constant 0 : index
      %101 = vector.load %arg8[%c1_112, %c1_113, %c0_114] : memref<18x18x4xf32, #tpu.memory_space<vmem>>, vector<16x16x4xf32>
      tpu.vector_store %arg8[%c1_112, %c1_113, %c0_114], %100 {strides = array<i32>} : memref<18x18x4xf32, #tpu.memory_space<vmem>>, vector<16x16x4xf32>,
      %cst_115 = arith.constant 0.000000e+00 : f32
      %102 = vector.broadcast %cst_115 : f32 to vector<18x18x4xf32>
      %c0_116 = arith.constant 0 : index
      %c0_117 = arith.constant 0 : index
      %c0_118 = arith.constant 0 : index
      %103 = vector.load %arg9[%c0_116, %c0_117, %c0_118] : memref<18x18x4xf32, #tpu.memory_space<vmem>>, vector<18x18x4xf32>
      tpu.vector_store %arg9[%c0_116, %c0_117, %c0_118], %102 {strides = array<i32>} : memref<18x18x4xf32, #tpu.memory_space<vmem>>, vector<18x18x4xf32>,
      %c0_119 = arith.constant 0 : index
      %c0_120 = arith.constant 0 : index
      %c0_121 = arith.constant 0 : index
      %c0_122 = arith.constant 0 : index
      %104 = vector.load %arg3[%c0_119, %c0_120, %c0_121, %c0_122] : memref<1x16x16x4xf32, #tpu.memory_space<vmem>>, vector<1x16x16x4xf32>
      %105 = vector.shape_cast %104 : vector<1x16x16x4xf32> to vector<16x16x4xf32>
      %c1_123 = arith.constant 1 : index
      %c1_124 = arith.constant 1 : index
      %c0_125 = arith.constant 0 : index
      %106 = vector.load %arg9[%c1_123, %c1_124, %c0_125] : memref<18x18x4xf32, #tpu.memory_space<vmem>>, vector<16x16x4xf32>
      tpu.vector_store %arg9[%c1_123, %c1_124, %c0_125], %105 {strides = array<i32>} : memref<18x18x4xf32, #tpu.memory_space<vmem>>, vector<16x16x4xf32>,
    } else {
    }
    %c16_i32 = arith.constant 16 : i32
    %3 = arith.muli %arg1, %c16_i32 : i32
    %4 = tpu.assume_multiple %3, 16 : i32
    %c0_i32_1 = arith.constant 0 : i32
    %5 = arith.addi %4, %c0_i32_1 : i32
    %6 = arith.index_cast %5 : i32 to index
    %c0 = arith.constant 0 : index
    %c0_2 = arith.constant 0 : index
    %7 = vector.load %arg8[%6, %c0, %c0_2] : memref<18x18x4xf32, #tpu.memory_space<vmem>>, vector<16x16x4xf32>
    %c0_3 = arith.constant 0 : index
    %c0_4 = arith.constant 0 : index
    %c0_5 = arith.constant 0 : index
    %8 = vector.load %arg10[%c0_3, %c0_4, %c0_5] : memref<16x16x72xf32, #tpu.memory_space<vmem>>, vector<16x16x4xf32>
    tpu.vector_store %arg10[%c0_3, %c0_4, %c0_5], %7 {strides = array<i32>} : memref<16x16x72xf32, #tpu.memory_space<vmem>>, vector<16x16x4xf32>,
    %c0_i32_6 = arith.constant 0 : i32
    %9 = arith.addi %4, %c0_i32_6 : i32
    %10 = arith.index_cast %9 : i32 to index
    %c1 = arith.constant 1 : index
    %c0_7 = arith.constant 0 : index
    %11 = vector.load %arg8[%10, %c1, %c0_7] : memref<18x18x4xf32, #tpu.memory_space<vmem>>, vector<16x16x4xf32>
    %c0_8 = arith.constant 0 : index
    %c0_9 = arith.constant 0 : index
    %c4 = arith.constant 4 : index
    %12 = vector.load %arg10[%c0_8, %c0_9, %c4] : memref<16x16x72xf32, #tpu.memory_space<vmem>>, vector<16x16x4xf32>
    tpu.vector_store %arg10[%c0_8, %c0_9, %c4], %11 {strides = array<i32>} : memref<16x16x72xf32, #tpu.memory_space<vmem>>, vector<16x16x4xf32>,
    %c0_i32_10 = arith.constant 0 : i32
    %13 = arith.addi %4, %c0_i32_10 : i32
    %14 = arith.index_cast %13 : i32 to index
    %c2 = arith.constant 2 : index
    %c0_11 = arith.constant 0 : index
    %15 = vector.load %arg8[%14, %c2, %c0_11] : memref<18x18x4xf32, #tpu.memory_space<vmem>>, vector<16x16x4xf32>
    %c0_12 = arith.constant 0 : index
    %c0_13 = arith.constant 0 : index
    %c8 = arith.constant 8 : index
    %16 = vector.load %arg10[%c0_12, %c0_13, %c8] : memref<16x16x72xf32, #tpu.memory_space<vmem>>, vector<16x16x4xf32>
    tpu.vector_store %arg10[%c0_12, %c0_13, %c8], %15 {strides = array<i32>} : memref<16x16x72xf32, #tpu.memory_space<vmem>>, vector<16x16x4xf32>,
    %c1_i32 = arith.constant 1 : i32
    %17 = arith.addi %4, %c1_i32 : i32
    %18 = arith.index_cast %17 : i32 to index
    %c0_14 = arith.constant 0 : index
    %c0_15 = arith.constant 0 : index
    %19 = vector.load %arg8[%18, %c0_14, %c0_15] : memref<18x18x4xf32, #tpu.memory_space<vmem>>, vector<16x16x4xf32>
    %c0_16 = arith.constant 0 : index
    %c0_17 = arith.constant 0 : index
    %c12 = arith.constant 12 : index
    %20 = vector.load %arg10[%c0_16, %c0_17, %c12] : memref<16x16x72xf32, #tpu.memory_space<vmem>>, vector<16x16x4xf32>
    tpu.vector_store %arg10[%c0_16, %c0_17, %c12], %19 {strides = array<i32>} : memref<16x16x72xf32, #tpu.memory_space<vmem>>, vector<16x16x4xf32>,
    %c1_i32_18 = arith.constant 1 : i32
    %21 = arith.addi %4, %c1_i32_18 : i32
    %22 = arith.index_cast %21 : i32 to index
    %c1_19 = arith.constant 1 : index
    %c0_20 = arith.constant 0 : index
    %23 = vector.load %arg8[%22, %c1_19, %c0_20] : memref<18x18x4xf32, #tpu.memory_space<vmem>>, vector<16x16x4xf32>
    %c0_21 = arith.constant 0 : index
    %c0_22 = arith.constant 0 : index
    %c16 = arith.constant 16 : index
    %24 = vector.load %arg10[%c0_21, %c0_22, %c16] : memref<16x16x72xf32, #tpu.memory_space<vmem>>, vector<16x16x4xf32>
    tpu.vector_store %arg10[%c0_21, %c0_22, %c16], %23 {strides = array<i32>} : memref<16x16x72xf32, #tpu.memory_space<vmem>>, vector<16x16x4xf32>,
    %c1_i32_23 = arith.constant 1 : i32
    %25 = arith.addi %4, %c1_i32_23 : i32
    %26 = arith.index_cast %25 : i32 to index
    %c2_24 = arith.constant 2 : index
    %c0_25 = arith.constant 0 : index
    %27 = vector.load %arg8[%26, %c2_24, %c0_25] : memref<18x18x4xf32, #tpu.memory_space<vmem>>, vector<16x16x4xf32>
    %c0_26 = arith.constant 0 : index
    %c0_27 = arith.constant 0 : index
    %c20 = arith.constant 20 : index
    %28 = vector.load %arg10[%c0_26, %c0_27, %c20] : memref<16x16x72xf32, #tpu.memory_space<vmem>>, vector<16x16x4xf32>
    tpu.vector_store %arg10[%c0_26, %c0_27, %c20], %27 {strides = array<i32>} : memref<16x16x72xf32, #tpu.memory_space<vmem>>, vector<16x16x4xf32>,
    %c2_i32 = arith.constant 2 : i32
    %29 = arith.addi %4, %c2_i32 : i32
    %30 = arith.index_cast %29 : i32 to index
    %c0_28 = arith.constant 0 : index
    %c0_29 = arith.constant 0 : index
    %31 = vector.load %arg8[%30, %c0_28, %c0_29] : memref<18x18x4xf32, #tpu.memory_space<vmem>>, vector<16x16x4xf32>
    %c0_30 = arith.constant 0 : index
    %c0_31 = arith.constant 0 : index
    %c24 = arith.constant 24 : index
    %32 = vector.load %arg10[%c0_30, %c0_31, %c24] : memref<16x16x72xf32, #tpu.memory_space<vmem>>, vector<16x16x4xf32>
    tpu.vector_store %arg10[%c0_30, %c0_31, %c24], %31 {strides = array<i32>} : memref<16x16x72xf32, #tpu.memory_space<vmem>>, vector<16x16x4xf32>,
    %c2_i32_32 = arith.constant 2 : i32
    %33 = arith.addi %4, %c2_i32_32 : i32
    %34 = arith.index_cast %33 : i32 to index
    %c1_33 = arith.constant 1 : index
    %c0_34 = arith.constant 0 : index
    %35 = vector.load %arg8[%34, %c1_33, %c0_34] : memref<18x18x4xf32, #tpu.memory_space<vmem>>, vector<16x16x4xf32>
    %c0_35 = arith.constant 0 : index
    %c0_36 = arith.constant 0 : index
    %c28 = arith.constant 28 : index
    %36 = vector.load %arg10[%c0_35, %c0_36, %c28] : memref<16x16x72xf32, #tpu.memory_space<vmem>>, vector<16x16x4xf32>
    tpu.vector_store %arg10[%c0_35, %c0_36, %c28], %35 {strides = array<i32>} : memref<16x16x72xf32, #tpu.memory_space<vmem>>, vector<16x16x4xf32>,
    %c2_i32_37 = arith.constant 2 : i32
    %37 = arith.addi %4, %c2_i32_37 : i32
    %38 = arith.index_cast %37 : i32 to index
    %c2_38 = arith.constant 2 : index
    %c0_39 = arith.constant 0 : index
    %39 = vector.load %arg8[%38, %c2_38, %c0_39] : memref<18x18x4xf32, #tpu.memory_space<vmem>>, vector<16x16x4xf32>
    %c0_40 = arith.constant 0 : index
    %c0_41 = arith.constant 0 : index
    %c32 = arith.constant 32 : index
    %40 = vector.load %arg10[%c0_40, %c0_41, %c32] : memref<16x16x72xf32, #tpu.memory_space<vmem>>, vector<16x16x4xf32>
    tpu.vector_store %arg10[%c0_40, %c0_41, %c32], %39 {strides = array<i32>} : memref<16x16x72xf32, #tpu.memory_space<vmem>>, vector<16x16x4xf32>,
    %c0_i32_42 = arith.constant 0 : i32
    %41 = arith.addi %4, %c0_i32_42 : i32
    %42 = arith.index_cast %41 : i32 to index
    %c0_43 = arith.constant 0 : index
    %c0_44 = arith.constant 0 : index
    %43 = vector.load %arg9[%42, %c0_43, %c0_44] : memref<18x18x4xf32, #tpu.memory_space<vmem>>, vector<16x16x4xf32>
    %c0_45 = arith.constant 0 : index
    %c0_46 = arith.constant 0 : index
    %c36 = arith.constant 36 : index
    %44 = vector.load %arg10[%c0_45, %c0_46, %c36] : memref<16x16x72xf32, #tpu.memory_space<vmem>>, vector<16x16x4xf32>
    tpu.vector_store %arg10[%c0_45, %c0_46, %c36], %43 {strides = array<i32>} : memref<16x16x72xf32, #tpu.memory_space<vmem>>, vector<16x16x4xf32>,
    %c0_i32_47 = arith.constant 0 : i32
    %45 = arith.addi %4, %c0_i32_47 : i32
    %46 = arith.index_cast %45 : i32 to index
    %c1_48 = arith.constant 1 : index
    %c0_49 = arith.constant 0 : index
    %47 = vector.load %arg9[%46, %c1_48, %c0_49] : memref<18x18x4xf32, #tpu.memory_space<vmem>>, vector<16x16x4xf32>
    %c0_50 = arith.constant 0 : index
    %c0_51 = arith.constant 0 : index
    %c40 = arith.constant 40 : index
    %48 = vector.load %arg10[%c0_50, %c0_51, %c40] : memref<16x16x72xf32, #tpu.memory_space<vmem>>, vector<16x16x4xf32>
    tpu.vector_store %arg10[%c0_50, %c0_51, %c40], %47 {strides = array<i32>} : memref<16x16x72xf32, #tpu.memory_space<vmem>>, vector<16x16x4xf32>,
    %c0_i32_52 = arith.constant 0 : i32
    %49 = arith.addi %4, %c0_i32_52 : i32
    %50 = arith.index_cast %49 : i32 to index
    %c2_53 = arith.constant 2 : index
    %c0_54 = arith.constant 0 : index
    %51 = vector.load %arg9[%50, %c2_53, %c0_54] : memref<18x18x4xf32, #tpu.memory_space<vmem>>, vector<16x16x4xf32>
    %c0_55 = arith.constant 0 : index
    %c0_56 = arith.constant 0 : index
    %c44 = arith.constant 44 : index
    %52 = vector.load %arg10[%c0_55, %c0_56, %c44] : memref<16x16x72xf32, #tpu.memory_space<vmem>>, vector<16x16x4xf32>
    tpu.vector_store %arg10[%c0_55, %c0_56, %c44], %51 {strides = array<i32>} : memref<16x16x72xf32, #tpu.memory_space<vmem>>, vector<16x16x4xf32>,
    %c1_i32_57 = arith.constant 1 : i32
    %53 = arith.addi %4, %c1_i32_57 : i32
    %54 = arith.index_cast %53 : i32 to index
    %c0_58 = arith.constant 0 : index
    %c0_59 = arith.constant 0 : index
    %55 = vector.load %arg9[%54, %c0_58, %c0_59] : memref<18x18x4xf32, #tpu.memory_space<vmem>>, vector<16x16x4xf32>
    %c0_60 = arith.constant 0 : index
    %c0_61 = arith.constant 0 : index
    %c48 = arith.constant 48 : index
    %56 = vector.load %arg10[%c0_60, %c0_61, %c48] : memref<16x16x72xf32, #tpu.memory_space<vmem>>, vector<16x16x4xf32>
    tpu.vector_store %arg10[%c0_60, %c0_61, %c48], %55 {strides = array<i32>} : memref<16x16x72xf32, #tpu.memory_space<vmem>>, vector<16x16x4xf32>,
    %c1_i32_62 = arith.constant 1 : i32
    %57 = arith.addi %4, %c1_i32_62 : i32
    %58 = arith.index_cast %57 : i32 to index
    %c1_63 = arith.constant 1 : index
    %c0_64 = arith.constant 0 : index
    %59 = vector.load %arg9[%58, %c1_63, %c0_64] : memref<18x18x4xf32, #tpu.memory_space<vmem>>, vector<16x16x4xf32>
    %c0_65 = arith.constant 0 : index
    %c0_66 = arith.constant 0 : index
    %c52 = arith.constant 52 : index
    %60 = vector.load %arg10[%c0_65, %c0_66, %c52] : memref<16x16x72xf32, #tpu.memory_space<vmem>>, vector<16x16x4xf32>
    tpu.vector_store %arg10[%c0_65, %c0_66, %c52], %59 {strides = array<i32>} : memref<16x16x72xf32, #tpu.memory_space<vmem>>, vector<16x16x4xf32>,
    %c1_i32_67 = arith.constant 1 : i32
    %61 = arith.addi %4, %c1_i32_67 : i32
    %62 = arith.index_cast %61 : i32 to index
    %c2_68 = arith.constant 2 : index
    %c0_69 = arith.constant 0 : index
    %63 = vector.load %arg9[%62, %c2_68, %c0_69] : memref<18x18x4xf32, #tpu.memory_space<vmem>>, vector<16x16x4xf32>
    %c0_70 = arith.constant 0 : index
    %c0_71 = arith.constant 0 : index
    %c56 = arith.constant 56 : index
    %64 = vector.load %arg10[%c0_70, %c0_71, %c56] : memref<16x16x72xf32, #tpu.memory_space<vmem>>, vector<16x16x4xf32>
    tpu.vector_store %arg10[%c0_70, %c0_71, %c56], %63 {strides = array<i32>} : memref<16x16x72xf32, #tpu.memory_space<vmem>>, vector<16x16x4xf32>,
    %c2_i32_72 = arith.constant 2 : i32
    %65 = arith.addi %4, %c2_i32_72 : i32
    %66 = arith.index_cast %65 : i32 to index
    %c0_73 = arith.constant 0 : index
    %c0_74 = arith.constant 0 : index
    %67 = vector.load %arg9[%66, %c0_73, %c0_74] : memref<18x18x4xf32, #tpu.memory_space<vmem>>, vector<16x16x4xf32>
    %c0_75 = arith.constant 0 : index
    %c0_76 = arith.constant 0 : index
    %c60 = arith.constant 60 : index
    %68 = vector.load %arg10[%c0_75, %c0_76, %c60] : memref<16x16x72xf32, #tpu.memory_space<vmem>>, vector<16x16x4xf32>
    tpu.vector_store %arg10[%c0_75, %c0_76, %c60], %67 {strides = array<i32>} : memref<16x16x72xf32, #tpu.memory_space<vmem>>, vector<16x16x4xf32>,
    %c2_i32_77 = arith.constant 2 : i32
    %69 = arith.addi %4, %c2_i32_77 : i32
    %70 = arith.index_cast %69 : i32 to index
    %c1_78 = arith.constant 1 : index
    %c0_79 = arith.constant 0 : index
    %71 = vector.load %arg9[%70, %c1_78, %c0_79] : memref<18x18x4xf32, #tpu.memory_space<vmem>>, vector<16x16x4xf32>
    %c0_80 = arith.constant 0 : index
    %c0_81 = arith.constant 0 : index
    %c64 = arith.constant 64 : index
    %72 = vector.load %arg10[%c0_80, %c0_81, %c64] : memref<16x16x72xf32, #tpu.memory_space<vmem>>, vector<16x16x4xf32>
    tpu.vector_store %arg10[%c0_80, %c0_81, %c64], %71 {strides = array<i32>} : memref<16x16x72xf32, #tpu.memory_space<vmem>>, vector<16x16x4xf32>,
    %c2_i32_82 = arith.constant 2 : i32
    %73 = arith.addi %4, %c2_i32_82 : i32
    %74 = arith.index_cast %73 : i32 to index
    %c2_83 = arith.constant 2 : index
    %c0_84 = arith.constant 0 : index
    %75 = vector.load %arg9[%74, %c2_83, %c0_84] : memref<18x18x4xf32, #tpu.memory_space<vmem>>, vector<16x16x4xf32>
    %c0_85 = arith.constant 0 : index
    %c0_86 = arith.constant 0 : index
    %c68 = arith.constant 68 : index
    %76 = vector.load %arg10[%c0_85, %c0_86, %c68] : memref<16x16x72xf32, #tpu.memory_space<vmem>>, vector<16x16x4xf32>
    tpu.vector_store %arg10[%c0_85, %c0_86, %c68], %75 {strides = array<i32>} : memref<16x16x72xf32, #tpu.memory_space<vmem>>, vector<16x16x4xf32>,
    %c0_87 = arith.constant 0 : index
    %c0_88 = arith.constant 0 : index
    %c0_89 = arith.constant 0 : index
    %77 = vector.load %arg10[%c0_87, %c0_88, %c0_89] : memref<16x16x72xf32, #tpu.memory_space<vmem>>, vector<16x16x72xf32>
    %78 = vector.shape_cast %77 : vector<16x16x72xf32> to vector<256x72xf32>
    %c0_90 = arith.constant 0 : index
    %c0_91 = arith.constant 0 : index
    %79 = vector.load %arg4[%c0_90, %c0_91] : memref<72x4xf32, #tpu.memory_space<vmem>>, vector<72x4xf32>
    %cst = arith.constant dense<0.000000e+00> : vector<256x4xf32>
    %80 = tpu.matmul %78, %79, %cst {dimension_numbers = #tpu.dot_dimension_numbers<[1], [0], [0], [1], [0, 0, 1, 1], [], []>} : vector<256x72xf32>, vector<72x4xf32>, vector<256x4xf32> -> vector<256x4xf32>
    %c0_92 = arith.constant 0 : index
    %c0_93 = arith.constant 0 : index
    %81 = vector.load %arg5[%c0_92, %c0_93] : memref<1x4xf32, #tpu.memory_space<vmem>>, vector<1x4xf32>
    %82 = vector.broadcast %81 : vector<1x4xf32> to vector<256x4xf32>
    %83 = arith.addf %80, %82 : vector<256x4xf32>
    %84 = vector.shape_cast %83 : vector<256x4xf32> to vector<16x16x4xf32>
    %c0_94 = arith.constant 0 : index
    %c0_95 = arith.constant 0 : index
    %c0_96 = arith.constant 0 : index
    %c0_97 = arith.constant 0 : index
    %85 = vector.load %arg6[%c0_94, %c0_95, %c0_96, %c0_97] : memref<1x16x16x4xf32, #tpu.memory_space<vmem>>, vector<1x16x16x4xf32>
    %86 = vector.shape_cast %85 : vector<1x16x16x4xf32> to vector<16x16x4xf32>
    %87 = vector.shape_cast %84 : vector<16x16x4xf32> to vector<1x16x16x4xf32>
    tpu.vector_store %arg6[%c0_94, %c0_95, %c0_96, %c0_97], %87 {strides = array<i32>} : memref<1x16x16x4xf32, #tpu.memory_space<vmem>>, vector<1x16x16x4xf32>,
    %cst_98 = arith.constant dense<0.000000e+00> : vector<4xf32>
    %88 = vector.multi_reduction <add>, %83, %cst_98 [0] : vector<256x4xf32> to vector<4xf32>
    %89 = vector.shape_cast %88 : vector<4xf32> to vector<1x4xf32>
    %90 = arith.mulf %83, %83 : vector<256x4xf32>
    %cst_99 = arith.constant dense<0.000000e+00> : vector<4xf32>
    %91 = vector.multi_reduction <add>, %90, %cst_99 [0] : vector<256x4xf32> to vector<4xf32>
    %92 = vector.shape_cast %91 : vector<4xf32> to vector<1x4xf32>
    %93 = tpu.concatenate %89, %92 in 0 : vector<1x4xf32>, vector<1x4xf32> -> vector<2x4xf32>
    %c0_100 = arith.constant 0 : index
    %c0_101 = arith.constant 0 : index
    %c0_102 = arith.constant 0 : index
    %c0_103 = arith.constant 0 : index
    %94 = vector.load %arg7[%c0_100, %c0_101, %c0_102, %c0_103] : memref<1x1x2x4xf32, #tpu.memory_space<vmem>>, vector<1x1x2x4xf32>
    %95 = vector.shape_cast %94 : vector<1x1x2x4xf32> to vector<2x4xf32>
    %96 = vector.shape_cast %93 : vector<2x4xf32> to vector<1x1x2x4xf32>
    tpu.vector_store %arg7[%c0_100, %c0_101, %c0_102, %c0_103], %96 {strides = array<i32>} : memref<1x1x2x4xf32, #tpu.memory_space<vmem>>, vector<1x1x2x4xf32>,
    return
  }
  func.func @transform_0(%arg0: i32, %arg1: i32) -> (i32, i32, i32, i32) {
    %c0_i32 = arith.constant 0 : i32
    %c0_i32_0 = arith.constant 0 : i32
    %c0_i32_1 = arith.constant 0 : i32
    %c0_i32_2 = arith.constant 0 : i32
    return %arg0, %c0_i32, %c0_i32_0, %c0_i32_1 : i32, i32, i32, i32
  }
  func.func @transform_1(%arg0: i32, %arg1: i32) -> (i32, i32, i32, i32) {
    %c0_i32 = arith.constant 0 : i32
    %c0_i32_0 = arith.constant 0 : i32
    %c0_i32_1 = arith.constant 0 : i32
    %c0_i32_2 = arith.constant 0 : i32
    return %arg0, %c0_i32, %c0_i32_0, %c0_i32_1 : i32, i32, i32, i32
  }
  func.func @transform_2(%arg0: i32, %arg1: i32) -> (i32, i32) {
    %c0_i32 = arith.constant 0 : i32
    %c0_i32_0 = arith.constant 0 : i32
    %c0_i32_1 = arith.constant 0 : i32
    return %c0_i32, %c0_i32_0 : i32, i32
  }
  func.func @transform_3(%arg0: i32, %arg1: i32) -> (i32, i32) {
    %c0_i32 = arith.constant 0 : i32
    %c0_i32_0 = arith.constant 0 : i32
    %c0_i32_1 = arith.constant 0 : i32
    return %c0_i32, %c0_i32_0 : i32, i32
  }
  func.func @transform_4(%arg0: i32, %arg1: i32) -> (i32, i32, i32, i32) {
    %c0_i32 = arith.constant 0 : i32
    %c0_i32_0 = arith.constant 0 : i32
    %c0_i32_1 = arith.constant 0 : i32
    return %arg0, %arg1, %c0_i32, %c0_i32_0 : i32, i32, i32, i32
  }
  func.func @transform_5(%arg0: i32, %arg1: i32) -> (i32, i32, i32, i32) {
    %c0_i32 = arith.constant 0 : i32
    %c0_i32_0 = arith.constant 0 : i32
    %c0_i32_1 = arith.constant 0 : i32
    return %arg0, %arg1, %c0_i32, %c0_i32_0 : i32, i32, i32, i32
  }
}

module attributes {stable_mosaic.version = 11 : i64} {
  func.func @_conv3x3_kernel(%arg0: i32, %arg1: i32, %arg2: memref<1x16x16x4xf32, #tpu.memory_space<vmem>>, %arg3: memref<1x1x4xf32, #tpu.memory_space<vmem>>, %arg4: memref<1x1x4xf32, #tpu.memory_space<vmem>>, %arg5: memref<36x4xf32, #tpu.memory_space<vmem>>, %arg6: memref<1x4xf32, #tpu.memory_space<vmem>>, %arg7: memref<1x16x16x4xf32, #tpu.memory_space<vmem>>, %arg8: memref<1x1x2x4xf32, #tpu.memory_space<vmem>>, %arg9: memref<18x18x4xf32, #tpu.memory_space<vmem>>, %arg10: memref<16x16x36xf32, #tpu.memory_space<vmem>>) attributes {dimension_semantics = [#tpu.dimension_semantics<parallel>, #tpu.dimension_semantics<arbitrary>], iteration_bounds = array<i64: 2, 1>, scalar_prefetch = 0 : i64, scratch_operands = 2 : i64, tpu.core_type = #tpu.core_type<tc>, window_params = [{transform_indices = @transform_0, window_bounds = array<i64: 1, 16, 16, 4>}, {pipeline_mode = #tpu.pipeline_mode<synchronous>, transform_indices = @transform_1, window_bounds = array<i64: 1, 1, 4>}, {pipeline_mode = #tpu.pipeline_mode<synchronous>, transform_indices = @transform_2, window_bounds = array<i64: 1, 1, 4>}, {pipeline_mode = #tpu.pipeline_mode<synchronous>, transform_indices = @transform_3, window_bounds = array<i64: 36, 4>}, {pipeline_mode = #tpu.pipeline_mode<synchronous>, transform_indices = @transform_4, window_bounds = array<i64: 1, 4>}, {transform_indices = @transform_5, window_bounds = array<i64: 1, 16, 16, 4>}, {transform_indices = @transform_6, window_bounds = array<i64: 1, 1, 2, 4>}]} {
    %c0_i32 = arith.constant 0 : i32
    %0 = arith.cmpi eq, %arg1, %c0_i32 : i32
    %1 = arith.extui %0 : i1 to i32
    %c0_i32_0 = arith.constant 0 : i32
    %2 = arith.cmpi ne, %1, %c0_i32_0 : i32
    scf.if %2 {
      %cst_59 = arith.constant 0.000000e+00 : f32
      %61 = vector.broadcast %cst_59 : f32 to vector<18x18x4xf32>
      %c0_60 = arith.constant 0 : index
      %c0_61 = arith.constant 0 : index
      %c0_62 = arith.constant 0 : index
      %62 = vector.load %arg9[%c0_60, %c0_61, %c0_62] : memref<18x18x4xf32, #tpu.memory_space<vmem>>, vector<18x18x4xf32>
      tpu.vector_store %arg9[%c0_60, %c0_61, %c0_62], %61 {strides = array<i32>} : memref<18x18x4xf32, #tpu.memory_space<vmem>>, vector<18x18x4xf32>,
      %c0_63 = arith.constant 0 : index
      %c0_64 = arith.constant 0 : index
      %c0_65 = arith.constant 0 : index
      %c0_66 = arith.constant 0 : index
      %63 = vector.load %arg2[%c0_63, %c0_64, %c0_65, %c0_66] : memref<1x16x16x4xf32, #tpu.memory_space<vmem>>, vector<1x16x16x4xf32>
      %64 = vector.shape_cast %63 : vector<1x16x16x4xf32> to vector<16x16x4xf32>
      %c0_67 = arith.constant 0 : index
      %c0_68 = arith.constant 0 : index
      %c0_69 = arith.constant 0 : index
      %65 = vector.load %arg3[%c0_67, %c0_68, %c0_69] : memref<1x1x4xf32, #tpu.memory_space<vmem>>, vector<1x1x4xf32>
      %66 = vector.broadcast %65 : vector<1x1x4xf32> to vector<16x16x4xf32>
      %67 = arith.mulf %64, %66 : vector<16x16x4xf32>
      %c0_70 = arith.constant 0 : index
      %c0_71 = arith.constant 0 : index
      %c0_72 = arith.constant 0 : index
      %68 = vector.load %arg4[%c0_70, %c0_71, %c0_72] : memref<1x1x4xf32, #tpu.memory_space<vmem>>, vector<1x1x4xf32>
      %69 = vector.broadcast %68 : vector<1x1x4xf32> to vector<16x16x4xf32>
      %70 = arith.addf %67, %69 : vector<16x16x4xf32>
      %cst_73 = arith.constant 0.000000e+00 : f32
      %71 = vector.broadcast %cst_73 : f32 to vector<16x16x4xf32>
      %72 = arith.maximumf %70, %71 : vector<16x16x4xf32>
      %c1_74 = arith.constant 1 : index
      %c1_75 = arith.constant 1 : index
      %c0_76 = arith.constant 0 : index
      %73 = vector.load %arg9[%c1_74, %c1_75, %c0_76] : memref<18x18x4xf32, #tpu.memory_space<vmem>>, vector<16x16x4xf32>
      tpu.vector_store %arg9[%c1_74, %c1_75, %c0_76], %72 {strides = array<i32>} : memref<18x18x4xf32, #tpu.memory_space<vmem>>, vector<16x16x4xf32>,
    } else {
    }
    %c16_i32 = arith.constant 16 : i32
    %3 = arith.muli %arg1, %c16_i32 : i32
    %4 = tpu.assume_multiple %3, 16 : i32
    %c0_i32_1 = arith.constant 0 : i32
    %5 = arith.addi %4, %c0_i32_1 : i32
    %6 = arith.index_cast %5 : i32 to index
    %c0 = arith.constant 0 : index
    %c0_2 = arith.constant 0 : index
    %7 = vector.load %arg9[%6, %c0, %c0_2] : memref<18x18x4xf32, #tpu.memory_space<vmem>>, vector<16x16x4xf32>
    %c0_3 = arith.constant 0 : index
    %c0_4 = arith.constant 0 : index
    %c0_5 = arith.constant 0 : index
    %8 = vector.load %arg10[%c0_3, %c0_4, %c0_5] : memref<16x16x36xf32, #tpu.memory_space<vmem>>, vector<16x16x4xf32>
    tpu.vector_store %arg10[%c0_3, %c0_4, %c0_5], %7 {strides = array<i32>} : memref<16x16x36xf32, #tpu.memory_space<vmem>>, vector<16x16x4xf32>,
    %c0_i32_6 = arith.constant 0 : i32
    %9 = arith.addi %4, %c0_i32_6 : i32
    %10 = arith.index_cast %9 : i32 to index
    %c1 = arith.constant 1 : index
    %c0_7 = arith.constant 0 : index
    %11 = vector.load %arg9[%10, %c1, %c0_7] : memref<18x18x4xf32, #tpu.memory_space<vmem>>, vector<16x16x4xf32>
    %c0_8 = arith.constant 0 : index
    %c0_9 = arith.constant 0 : index
    %c4 = arith.constant 4 : index
    %12 = vector.load %arg10[%c0_8, %c0_9, %c4] : memref<16x16x36xf32, #tpu.memory_space<vmem>>, vector<16x16x4xf32>
    tpu.vector_store %arg10[%c0_8, %c0_9, %c4], %11 {strides = array<i32>} : memref<16x16x36xf32, #tpu.memory_space<vmem>>, vector<16x16x4xf32>,
    %c0_i32_10 = arith.constant 0 : i32
    %13 = arith.addi %4, %c0_i32_10 : i32
    %14 = arith.index_cast %13 : i32 to index
    %c2 = arith.constant 2 : index
    %c0_11 = arith.constant 0 : index
    %15 = vector.load %arg9[%14, %c2, %c0_11] : memref<18x18x4xf32, #tpu.memory_space<vmem>>, vector<16x16x4xf32>
    %c0_12 = arith.constant 0 : index
    %c0_13 = arith.constant 0 : index
    %c8 = arith.constant 8 : index
    %16 = vector.load %arg10[%c0_12, %c0_13, %c8] : memref<16x16x36xf32, #tpu.memory_space<vmem>>, vector<16x16x4xf32>
    tpu.vector_store %arg10[%c0_12, %c0_13, %c8], %15 {strides = array<i32>} : memref<16x16x36xf32, #tpu.memory_space<vmem>>, vector<16x16x4xf32>,
    %c1_i32 = arith.constant 1 : i32
    %17 = arith.addi %4, %c1_i32 : i32
    %18 = arith.index_cast %17 : i32 to index
    %c0_14 = arith.constant 0 : index
    %c0_15 = arith.constant 0 : index
    %19 = vector.load %arg9[%18, %c0_14, %c0_15] : memref<18x18x4xf32, #tpu.memory_space<vmem>>, vector<16x16x4xf32>
    %c0_16 = arith.constant 0 : index
    %c0_17 = arith.constant 0 : index
    %c12 = arith.constant 12 : index
    %20 = vector.load %arg10[%c0_16, %c0_17, %c12] : memref<16x16x36xf32, #tpu.memory_space<vmem>>, vector<16x16x4xf32>
    tpu.vector_store %arg10[%c0_16, %c0_17, %c12], %19 {strides = array<i32>} : memref<16x16x36xf32, #tpu.memory_space<vmem>>, vector<16x16x4xf32>,
    %c1_i32_18 = arith.constant 1 : i32
    %21 = arith.addi %4, %c1_i32_18 : i32
    %22 = arith.index_cast %21 : i32 to index
    %c1_19 = arith.constant 1 : index
    %c0_20 = arith.constant 0 : index
    %23 = vector.load %arg9[%22, %c1_19, %c0_20] : memref<18x18x4xf32, #tpu.memory_space<vmem>>, vector<16x16x4xf32>
    %c0_21 = arith.constant 0 : index
    %c0_22 = arith.constant 0 : index
    %c16 = arith.constant 16 : index
    %24 = vector.load %arg10[%c0_21, %c0_22, %c16] : memref<16x16x36xf32, #tpu.memory_space<vmem>>, vector<16x16x4xf32>
    tpu.vector_store %arg10[%c0_21, %c0_22, %c16], %23 {strides = array<i32>} : memref<16x16x36xf32, #tpu.memory_space<vmem>>, vector<16x16x4xf32>,
    %c1_i32_23 = arith.constant 1 : i32
    %25 = arith.addi %4, %c1_i32_23 : i32
    %26 = arith.index_cast %25 : i32 to index
    %c2_24 = arith.constant 2 : index
    %c0_25 = arith.constant 0 : index
    %27 = vector.load %arg9[%26, %c2_24, %c0_25] : memref<18x18x4xf32, #tpu.memory_space<vmem>>, vector<16x16x4xf32>
    %c0_26 = arith.constant 0 : index
    %c0_27 = arith.constant 0 : index
    %c20 = arith.constant 20 : index
    %28 = vector.load %arg10[%c0_26, %c0_27, %c20] : memref<16x16x36xf32, #tpu.memory_space<vmem>>, vector<16x16x4xf32>
    tpu.vector_store %arg10[%c0_26, %c0_27, %c20], %27 {strides = array<i32>} : memref<16x16x36xf32, #tpu.memory_space<vmem>>, vector<16x16x4xf32>,
    %c2_i32 = arith.constant 2 : i32
    %29 = arith.addi %4, %c2_i32 : i32
    %30 = arith.index_cast %29 : i32 to index
    %c0_28 = arith.constant 0 : index
    %c0_29 = arith.constant 0 : index
    %31 = vector.load %arg9[%30, %c0_28, %c0_29] : memref<18x18x4xf32, #tpu.memory_space<vmem>>, vector<16x16x4xf32>
    %c0_30 = arith.constant 0 : index
    %c0_31 = arith.constant 0 : index
    %c24 = arith.constant 24 : index
    %32 = vector.load %arg10[%c0_30, %c0_31, %c24] : memref<16x16x36xf32, #tpu.memory_space<vmem>>, vector<16x16x4xf32>
    tpu.vector_store %arg10[%c0_30, %c0_31, %c24], %31 {strides = array<i32>} : memref<16x16x36xf32, #tpu.memory_space<vmem>>, vector<16x16x4xf32>,
    %c2_i32_32 = arith.constant 2 : i32
    %33 = arith.addi %4, %c2_i32_32 : i32
    %34 = arith.index_cast %33 : i32 to index
    %c1_33 = arith.constant 1 : index
    %c0_34 = arith.constant 0 : index
    %35 = vector.load %arg9[%34, %c1_33, %c0_34] : memref<18x18x4xf32, #tpu.memory_space<vmem>>, vector<16x16x4xf32>
    %c0_35 = arith.constant 0 : index
    %c0_36 = arith.constant 0 : index
    %c28 = arith.constant 28 : index
    %36 = vector.load %arg10[%c0_35, %c0_36, %c28] : memref<16x16x36xf32, #tpu.memory_space<vmem>>, vector<16x16x4xf32>
    tpu.vector_store %arg10[%c0_35, %c0_36, %c28], %35 {strides = array<i32>} : memref<16x16x36xf32, #tpu.memory_space<vmem>>, vector<16x16x4xf32>,
    %c2_i32_37 = arith.constant 2 : i32
    %37 = arith.addi %4, %c2_i32_37 : i32
    %38 = arith.index_cast %37 : i32 to index
    %c2_38 = arith.constant 2 : index
    %c0_39 = arith.constant 0 : index
    %39 = vector.load %arg9[%38, %c2_38, %c0_39] : memref<18x18x4xf32, #tpu.memory_space<vmem>>, vector<16x16x4xf32>
    %c0_40 = arith.constant 0 : index
    %c0_41 = arith.constant 0 : index
    %c32 = arith.constant 32 : index
    %40 = vector.load %arg10[%c0_40, %c0_41, %c32] : memref<16x16x36xf32, #tpu.memory_space<vmem>>, vector<16x16x4xf32>
    tpu.vector_store %arg10[%c0_40, %c0_41, %c32], %39 {strides = array<i32>} : memref<16x16x36xf32, #tpu.memory_space<vmem>>, vector<16x16x4xf32>,
    %c0_42 = arith.constant 0 : index
    %c0_43 = arith.constant 0 : index
    %c0_44 = arith.constant 0 : index
    %41 = vector.load %arg10[%c0_42, %c0_43, %c0_44] : memref<16x16x36xf32, #tpu.memory_space<vmem>>, vector<16x16x36xf32>
    %42 = vector.shape_cast %41 : vector<16x16x36xf32> to vector<256x36xf32>
    %c0_45 = arith.constant 0 : index
    %c0_46 = arith.constant 0 : index
    %43 = vector.load %arg5[%c0_45, %c0_46] : memref<36x4xf32, #tpu.memory_space<vmem>>, vector<36x4xf32>
    %cst = arith.constant dense<0.000000e+00> : vector<256x4xf32>
    %44 = tpu.matmul %42, %43, %cst {dimension_numbers = #tpu.dot_dimension_numbers<[1], [0], [0], [1], [0, 0, 1, 1], [], []>} : vector<256x36xf32>, vector<36x4xf32>, vector<256x4xf32> -> vector<256x4xf32>
    %c0_47 = arith.constant 0 : index
    %c0_48 = arith.constant 0 : index
    %45 = vector.load %arg6[%c0_47, %c0_48] : memref<1x4xf32, #tpu.memory_space<vmem>>, vector<1x4xf32>
    %46 = vector.broadcast %45 : vector<1x4xf32> to vector<256x4xf32>
    %47 = arith.addf %44, %46 : vector<256x4xf32>
    %48 = vector.shape_cast %47 : vector<256x4xf32> to vector<16x16x4xf32>
    %c0_49 = arith.constant 0 : index
    %c0_50 = arith.constant 0 : index
    %c0_51 = arith.constant 0 : index
    %c0_52 = arith.constant 0 : index
    %49 = vector.load %arg7[%c0_49, %c0_50, %c0_51, %c0_52] : memref<1x16x16x4xf32, #tpu.memory_space<vmem>>, vector<1x16x16x4xf32>
    %50 = vector.shape_cast %49 : vector<1x16x16x4xf32> to vector<16x16x4xf32>
    %51 = vector.shape_cast %48 : vector<16x16x4xf32> to vector<1x16x16x4xf32>
    tpu.vector_store %arg7[%c0_49, %c0_50, %c0_51, %c0_52], %51 {strides = array<i32>} : memref<1x16x16x4xf32, #tpu.memory_space<vmem>>, vector<1x16x16x4xf32>,
    %cst_53 = arith.constant dense<0.000000e+00> : vector<4xf32>
    %52 = vector.multi_reduction <add>, %47, %cst_53 [0] : vector<256x4xf32> to vector<4xf32>
    %53 = vector.shape_cast %52 : vector<4xf32> to vector<1x4xf32>
    %54 = arith.mulf %47, %47 : vector<256x4xf32>
    %cst_54 = arith.constant dense<0.000000e+00> : vector<4xf32>
    %55 = vector.multi_reduction <add>, %54, %cst_54 [0] : vector<256x4xf32> to vector<4xf32>
    %56 = vector.shape_cast %55 : vector<4xf32> to vector<1x4xf32>
    %57 = tpu.concatenate %53, %56 in 0 : vector<1x4xf32>, vector<1x4xf32> -> vector<2x4xf32>
    %c0_55 = arith.constant 0 : index
    %c0_56 = arith.constant 0 : index
    %c0_57 = arith.constant 0 : index
    %c0_58 = arith.constant 0 : index
    %58 = vector.load %arg8[%c0_55, %c0_56, %c0_57, %c0_58] : memref<1x1x2x4xf32, #tpu.memory_space<vmem>>, vector<1x1x2x4xf32>
    %59 = vector.shape_cast %58 : vector<1x1x2x4xf32> to vector<2x4xf32>
    %60 = vector.shape_cast %57 : vector<2x4xf32> to vector<1x1x2x4xf32>
    tpu.vector_store %arg8[%c0_55, %c0_56, %c0_57, %c0_58], %60 {strides = array<i32>} : memref<1x1x2x4xf32, #tpu.memory_space<vmem>>, vector<1x1x2x4xf32>,
    return
  }
  func.func @transform_0(%arg0: i32, %arg1: i32) -> (i32, i32, i32, i32) {
    %c0_i32 = arith.constant 0 : i32
    %c0_i32_0 = arith.constant 0 : i32
    %c0_i32_1 = arith.constant 0 : i32
    %c0_i32_2 = arith.constant 0 : i32
    return %arg0, %c0_i32, %c0_i32_0, %c0_i32_1 : i32, i32, i32, i32
  }
  func.func @transform_1(%arg0: i32, %arg1: i32) -> (i32, i32, i32) {
    %c0_i32 = arith.constant 0 : i32
    %c0_i32_0 = arith.constant 0 : i32
    %c0_i32_1 = arith.constant 0 : i32
    %c0_i32_2 = arith.constant 0 : i32
    return %c0_i32, %c0_i32_0, %c0_i32_1 : i32, i32, i32
  }
  func.func @transform_2(%arg0: i32, %arg1: i32) -> (i32, i32, i32) {
    %c0_i32 = arith.constant 0 : i32
    %c0_i32_0 = arith.constant 0 : i32
    %c0_i32_1 = arith.constant 0 : i32
    %c0_i32_2 = arith.constant 0 : i32
    return %c0_i32, %c0_i32_0, %c0_i32_1 : i32, i32, i32
  }
  func.func @transform_3(%arg0: i32, %arg1: i32) -> (i32, i32) {
    %c0_i32 = arith.constant 0 : i32
    %c0_i32_0 = arith.constant 0 : i32
    %c0_i32_1 = arith.constant 0 : i32
    return %c0_i32, %c0_i32_0 : i32, i32
  }
  func.func @transform_4(%arg0: i32, %arg1: i32) -> (i32, i32) {
    %c0_i32 = arith.constant 0 : i32
    %c0_i32_0 = arith.constant 0 : i32
    %c0_i32_1 = arith.constant 0 : i32
    return %c0_i32, %c0_i32_0 : i32, i32
  }
  func.func @transform_5(%arg0: i32, %arg1: i32) -> (i32, i32, i32, i32) {
    %c0_i32 = arith.constant 0 : i32
    %c0_i32_0 = arith.constant 0 : i32
    %c0_i32_1 = arith.constant 0 : i32
    return %arg0, %arg1, %c0_i32, %c0_i32_0 : i32, i32, i32, i32
  }
  func.func @transform_6(%arg0: i32, %arg1: i32) -> (i32, i32, i32, i32) {
    %c0_i32 = arith.constant 0 : i32
    %c0_i32_0 = arith.constant 0 : i32
    %c0_i32_1 = arith.constant 0 : i32
    return %arg0, %arg1, %c0_i32, %c0_i32_0 : i32, i32, i32, i32
  }
}

module attributes {stable_mosaic.version = 11 : i64} {
  func.func @_bn_relu_kernel(%arg0: i32, %arg1: i32, %arg2: memref<1x16x16x4xf32, #tpu.memory_space<vmem>>, %arg3: memref<1x4xf32, #tpu.memory_space<vmem>>, %arg4: memref<1x4xf32, #tpu.memory_space<vmem>>, %arg5: memref<1x16x16x4xf32, #tpu.memory_space<vmem>>) attributes {dimension_semantics = [#tpu.dimension_semantics<parallel>, #tpu.dimension_semantics<parallel>], iteration_bounds = array<i64: 2, 1>, scalar_prefetch = 0 : i64, scratch_operands = 0 : i64, tpu.core_type = #tpu.core_type<tc>, window_params = [{transform_indices = @transform_0, window_bounds = array<i64: 1, 16, 16, 4>}, {pipeline_mode = #tpu.pipeline_mode<synchronous>, transform_indices = @transform_1, window_bounds = array<i64: 1, 4>}, {pipeline_mode = #tpu.pipeline_mode<synchronous>, transform_indices = @transform_2, window_bounds = array<i64: 1, 4>}, {transform_indices = @transform_3, window_bounds = array<i64: 1, 16, 16, 4>}]} {
    %c0 = arith.constant 0 : index
    %c0_0 = arith.constant 0 : index
    %c0_1 = arith.constant 0 : index
    %c0_2 = arith.constant 0 : index
    %0 = vector.load %arg2[%c0, %c0_0, %c0_1, %c0_2] : memref<1x16x16x4xf32, #tpu.memory_space<vmem>>, vector<1x16x16x4xf32>
    %c0_3 = arith.constant 0 : index
    %c0_4 = arith.constant 0 : index
    %1 = vector.load %arg3[%c0_3, %c0_4] : memref<1x4xf32, #tpu.memory_space<vmem>>, vector<1x4xf32>
    %2 = vector.shape_cast %1 : vector<1x4xf32> to vector<1x1x1x4xf32>
    %3 = vector.broadcast %2 : vector<1x1x1x4xf32> to vector<1x16x16x4xf32>
    %4 = arith.mulf %0, %3 : vector<1x16x16x4xf32>
    %c0_5 = arith.constant 0 : index
    %c0_6 = arith.constant 0 : index
    %5 = vector.load %arg4[%c0_5, %c0_6] : memref<1x4xf32, #tpu.memory_space<vmem>>, vector<1x4xf32>
    %6 = vector.shape_cast %5 : vector<1x4xf32> to vector<1x1x1x4xf32>
    %7 = vector.broadcast %6 : vector<1x1x1x4xf32> to vector<1x16x16x4xf32>
    %8 = arith.addf %4, %7 : vector<1x16x16x4xf32>
    %cst = arith.constant 0.000000e+00 : f32
    %9 = vector.broadcast %cst : f32 to vector<1x16x16x4xf32>
    %10 = arith.maximumf %8, %9 : vector<1x16x16x4xf32>
    %c0_7 = arith.constant 0 : index
    %c0_8 = arith.constant 0 : index
    %c0_9 = arith.constant 0 : index
    %c0_10 = arith.constant 0 : index
    %11 = vector.load %arg5[%c0_7, %c0_8, %c0_9, %c0_10] : memref<1x16x16x4xf32, #tpu.memory_space<vmem>>, vector<1x16x16x4xf32>
    tpu.vector_store %arg5[%c0_7, %c0_8, %c0_9, %c0_10], %10 {strides = array<i32>} : memref<1x16x16x4xf32, #tpu.memory_space<vmem>>, vector<1x16x16x4xf32>,
    return
  }
  func.func @transform_0(%arg0: i32, %arg1: i32) -> (i32, i32, i32, i32) {
    %c0_i32 = arith.constant 0 : i32
    %c0_i32_0 = arith.constant 0 : i32
    %c0_i32_1 = arith.constant 0 : i32
    return %arg0, %arg1, %c0_i32, %c0_i32_0 : i32, i32, i32, i32
  }
  func.func @transform_1(%arg0: i32, %arg1: i32) -> (i32, i32) {
    %c0_i32 = arith.constant 0 : i32
    %c0_i32_0 = arith.constant 0 : i32
    %c0_i32_1 = arith.constant 0 : i32
    return %c0_i32, %c0_i32_0 : i32, i32
  }
  func.func @transform_2(%arg0: i32, %arg1: i32) -> (i32, i32) {
    %c0_i32 = arith.constant 0 : i32
    %c0_i32_0 = arith.constant 0 : i32
    %c0_i32_1 = arith.constant 0 : i32
    return %c0_i32, %c0_i32_0 : i32, i32
  }
  func.func @transform_3(%arg0: i32, %arg1: i32) -> (i32, i32, i32, i32) {
    %c0_i32 = arith.constant 0 : i32
    %c0_i32_0 = arith.constant 0 : i32
    %c0_i32_1 = arith.constant 0 : i32
    return %arg0, %arg1, %c0_i32, %c0_i32_0 : i32, i32, i32, i32
  }
}

</mosaic_0001>

<bundles_post_ra>
// kernel: tile.8
= control target key start
LH: loop header
LB: loop body
LE: loop exit
PB: predicated region body
PF: predicated region fallthrough
CT: control target
= control target key end

     0   :  { %s22_s0 = inlined_call_operand.vmem [shape: f32[4], index: 0, kind: input, shape index: {}]   ;;  %s23_s1 = inlined_call_operand.vmem [shape: f32[2,4], index: 1, kind: output, shape index: {}]  }
   0x1   :  { %v4_v0 = vld [vmem:[%s22_s0] ss:$0 sm:$0xff] }
   0x2   :  { %5 = vst [vmem:[%s23_s1] sm:$0x3] %v4_v0 }

// kernel: tile.9
= control target key start
LH: loop header
LB: loop body
LE: loop exit
PB: predicated region body
PF: predicated region fallthrough
CT: control target
= control target key end

     0   :  { %vm8_vm0 = vcmask 31744   ;;  %vm14_vm1 = vcmask 64544   ;;  %s42_s0 = inlined_call_operand.vmem [shape: f32[2,4], index: 0, kind: input, shape index: {}]   ;;  %s43_s1 = inlined_call_operand.vmem [shape: f32[1,8], index: 1, kind: output, shape index: {}]  }
   0x1   :  { %v5_v0 = vld [vmem:[%s42_s0] sm:$0x3]  ;;  %s25_s0 = smov 4  }
   0x2   :  { %6 = vst [vmem:[#allocation1] sm:$0x3] %v5_v0 }
   0x9   :  { %v11_v1 = vld [vmem:[#allocation1 + $0x1] sm:$0x1]   ;;  %v7_v2 = vld [vmem:[#allocation1] sm:$0x1]  }
   0xa   :  { %12 = vrot.lane.b32.xlu0 %v11_v1, %s25_s0  ;;  %9 = vst.msk [vmem:[#allocation0] sm:$0x1] %vm8_vm0, %v7_v2  }
  0x7c   :  { %v13_v3 = vpop.permute.xlu0 %12  }
  0x7d   :  { %15 = vst.msk [vmem:[#allocation0] sm:$0x1] %vm14_vm1, %v13_v3  }
  0x84   :  { %v20_v4 = vld [vmem:[#allocation0] sm:$0x1] }
  0x85   :  { %23 = vst [vmem:[%s43_s1] sm:$0x1] %v20_v4 }

// kernel: upconv_block_forward.4
= control target key start
LH: loop header
LB: loop body
LE: loop exit
PB: predicated region body
PF: predicated region fallthrough
CT: control target
= control target key end

     0   :  { %s736_s12 = smov 0   ;;  %s738_s13 = smov 0   ;;  %s832_s0 = inlined_call_operand.vmem [shape: f32[2,8,8,8], index: 0, kind: input, shape index: {}]   ;;  %s833_s1 = inlined_call_operand.vmem [shape: f32[2,8,8], index: 1, kind: input, shape index: {}]   ;;  %s834_s2 = inlined_call_operand.vmem [shape: f32[1,8], index: 2, kind: input, shape index: {}]   ;;  %s835_s3 = inlined_call_operand.vmem [shape: f32[2,8,2,8,8], index: 3, kind: output, shape index: {}]  }
   0x1   :  { %s740_s14 = smov 0  }
   0x2 LB: > { %s25_s15 = sadd.s32 1, %s710_s13  ;;  %p586_p0 = scmp.ge.s32.totalorder %s714_s14, 1  ;;  %s714_s14 = sphi %s740_s14, %s13_s14   ;;  %s710_s13 = sphi %s738_s13, %s837_s13   ;;  %s706_s12 = sphi %s736_s12, %s836_s12  }
   0x3   : > { %p27_p1 = scmp.ge.s32.totalorder %s25_s15, 2  ;;  %p158_p2 = scmp.lt.s32.totalorder %s714_s14, 3 }
   0x5   : > { %s839_s15 = smov (%p27_p1, %s25_s15), 0  ;;  %p159_p3 = pnand %p586_p0, %p158_p2 }
   0x6   : > { %p192_p4 = scmp.lt.s32.totalorder (!%p159_p3), %s706_s12, 1 }
   0x7   : > { %162 = sbr.rel (%p159_p3) target bundleno = 227 (0xe3), region = 32 }
   0xc   : > { %v220_v0 = vld [vmem:[%s833_s1] sm:$0xff]  ;;  %v600_v1 = vld [vmem:[%s833_s1 + $0x8] sm:$0xff]  ;;  %s841_s12 = smov (!%p192_p4, %s706_s12), 1  ;;  %vm228_vm0 = vcmask 64512  }
   0xd   : > { %640 = vmatprep.subr.mxu0 %v220_v0  ;;  %654 = vmatprep.subr.mxu1 %v600_v1  ;;  %s620_s20 = sshll.u32 %s841_s12, 6  ;;  %s621_s24 = sshll.u32 %s841_s12, 7  ;;  %v591_v10 = vld [vmem:[%s834_s2] ss:$0 sm:$0xff] }
   0xe   : > { %641 = vmatpush3.msra.mxu0 %v220_v0  ;;  %655 = vmatpush3.msra.mxu1 %v600_v1  ;;  %s199_s23 = scalar_lea.vmem %s832_s0, %s620_s20  ;;  %s789_s29 = scalar_lea.vmem %s835_s3, %s621_s24 }
   0xf   : > { %v212_v2 = vld [vmem:[%s199_s23] sm:$0xff]  ;;  %v213_v3 = vld [vmem:[%s199_s23 + $0x8] sm:$0xff]  ;;  %v214_v4 = vld [vmem:[%s199_s23 + $0x10] sm:$0xff] }
  0x10   : > { %642 = vmatprep.mubr.msk.f32.mxu0 %vm228_vm0, %v212_v2  ;;  %656 = vmatprep.mubr.msk.f32.mxu1 %vm228_vm0, %v212_v2  ;;  %v215_v5 = vld [vmem:[%s199_s23 + $0x18] sm:$0xff]  ;;  %v216_v6 = vld [vmem:[%s199_s23 + $0x20] sm:$0xff]  ;;  %v217_v7 = vld [vmem:[%s199_s23 + $0x28] sm:$0xff] }
  0x11   : > { %643 = vmatmul.mubr.msk.f32.vlgmr.msra.gmra.mxu0 %vm228_vm0, %v213_v3  ;;  %657 = vmatmul.mubr.msk.f32.vlgmr.msra.gmra.mxu1 %vm228_vm0, %v213_v3  ;;  %v218_v8 = vld [vmem:[%s199_s23 + $0x30] sm:$0xff]  ;;  %v219_v9 = vld [vmem:[%s199_s23 + $0x38] sm:$0xff] }
  0x12   : > { %645 = vmatprep.mubr.msk.f32.mxu0 %vm228_vm0, %v214_v4  ;;  %659 = vmatprep.mubr.msk.f32.mxu1 %vm228_vm0, %v214_v4 }
  0x15   : > { %646 = vmatmul.mubr.msk.f32.gmra.mxu0 %vm228_vm0, %v215_v5  ;;  %660 = vmatmul.mubr.msk.f32.gmra.mxu1 %vm228_vm0, %v215_v5 }
  0x16   : > { %648 = vmatprep.mubr.msk.f32.mxu0 %vm228_vm0, %v216_v6  ;;  %662 = vmatprep.mubr.msk.f32.mxu1 %vm228_vm0, %v216_v6 }
  0x19   : > { %649 = vmatmul.mubr.msk.f32.gmra.mxu0 %vm228_vm0, %v217_v7  ;;  %663 = vmatmul.mubr.msk.f32.gmra.mxu1 %vm228_vm0, %v217_v7 }
  0x1a   : > { %651 = vmatprep.mubr.msk.f32.mxu0 %vm228_vm0, %v218_v8  ;;  %665 = vmatprep.mubr.msk.f32.mxu1 %vm228_vm0, %v218_v8 }
  0x1d   : > { %652 = vmatmul.mubr.msk.f32.gmra.mxu0 %vm228_vm0, %v219_v9  ;;  %666 = vmatmul.mubr.msk.f32.gmra.mxu1 %vm228_vm0, %v219_v9 }
  0xd1   : > { %v644_v11 = vpop.f32.mrf.mxu0  ;;  %v658_v12 = vpop.f32.mrf.mxu1 }
  0xd2   : > { %v325_v13 = vadd.f32 %v644_v11, %v591_v10  ;;  %v447_v14 = vadd.f32 %v658_v12, %v591_v10 }
  0xd3   : > { %v319_v15 = vpop.f32.mrf.mxu0  ;;  %v441_v16 = vpop.f32.mrf.mxu1 }
  0xd4   : > { %359 = vst.msk [vmem:[%s789_s29 + $0x10] sm:$0xff] %vm228_vm0, %v325_v13  ;;  %611 = vst.msk [vmem:[%s789_s29 + $0x18] sm:$0xff] %vm228_vm0, %v447_v14  ;;  %v320_v17 = vadd.f32 %v591_v10, %v319_v15  ;;  %v442_v18 = vadd.f32 %v591_v10, %v441_v16 }
  0xd5   : > { %v647_v19 = vpop.f32.mrf.mxu0  ;;  %v661_v20 = vpop.f32.mrf.mxu1 }
  0xd6   : > { %358 = vst.msk [vmem:[%s789_s29] sm:$0xff] %vm228_vm0, %v320_v17  ;;  %610 = vst.msk [vmem:[%s789_s29 + $0x8] sm:$0xff] %vm228_vm0, %v442_v18  ;;  %v335_v21 = vadd.f32 %v647_v19, %v591_v10  ;;  %v457_v22 = vadd.f32 %v661_v20, %v591_v10 }
  0xd7   : > { %v329_v23 = vpop.f32.mrf.mxu0  ;;  %v451_v24 = vpop.f32.mrf.mxu1 }
  0xd8   : > { %361 = vst.msk [vmem:[%s789_s29 + $0x30] sm:$0xff] %vm228_vm0, %v335_v21  ;;  %613 = vst.msk [vmem:[%s789_s29 + $0x38] sm:$0xff] %vm228_vm0, %v457_v22  ;;  %v330_v25 = vadd.f32 %v591_v10, %v329_v23  ;;  %v452_v26 = vadd.f32 %v591_v10, %v451_v24 }
  0xd9   : > { %v650_v27 = vpop.f32.mrf.mxu0  ;;  %v664_v28 = vpop.f32.mrf.mxu1 }
  0xda   : > { %360 = vst.msk [vmem:[%s789_s29 + $0x20] sm:$0xff] %vm228_vm0, %v330_v25  ;;  %612 = vst.msk [vmem:[%s789_s29 + $0x28] sm:$0xff] %vm228_vm0, %v452_v26  ;;  %v345_v29 = vadd.f32 %v650_v27, %v591_v10  ;;  %v467_v30 = vadd.f32 %v664_v28, %v591_v10 }
  0xdb   : > { %v339_v31 = vpop.f32.mrf.mxu0  ;;  %v461_v32 = vpop.f32.mrf.mxu1 }
  0xdc   : > { %363 = vst.msk [vmem:[%s789_s29 + $0x50] sm:$0xff] %vm228_vm0, %v345_v29  ;;  %615 = vst.msk [vmem:[%s789_s29 + $0x58] sm:$0xff] %vm228_vm0, %v467_v30  ;;  %v340_v33 = vadd.f32 %v591_v10, %v339_v31  ;;  %v462_v34 = vadd.f32 %v591_v10, %v461_v32 }
  0xdd   : > { %v653_v35 = vpop.f32.mrf.mxu0  ;;  %v667_v36 = vpop.f32.mrf.mxu1 }
  0xde   : > { %362 = vst.msk [vmem:[%s789_s29 + $0x40] sm:$0xff] %vm228_vm0, %v340_v33  ;;  %614 = vst.msk [vmem:[%s789_s29 + $0x48] sm:$0xff] %vm228_vm0, %v462_v34  ;;  %v355_v37 = vadd.f32 %v653_v35, %v591_v10  ;;  %v477_v38 = vadd.f32 %v667_v36, %v591_v10 }
  0xdf   : > { %v349_v39 = vpop.f32.mrf.mxu0  ;;  %v471_v40 = vpop.f32.mrf.mxu1 }
  0xe0   : > { %365 = vst.msk [vmem:[%s789_s29 + $0x70] sm:$0xff] %vm228_vm0, %v355_v37  ;;  %617 = vst.msk [vmem:[%s789_s29 + $0x78] sm:$0xff] %vm228_vm0, %v477_v38  ;;  %v350_v41 = vadd.f32 %v591_v10, %v349_v39  ;;  %v472_v42 = vadd.f32 %v591_v10, %v471_v40 }
  0xe2   : > { %364 = vst.msk [vmem:[%s789_s29 + $0x60] sm:$0xff] %vm228_vm0, %v350_v41  ;;  %616 = vst.msk [vmem:[%s789_s29 + $0x68] sm:$0xff] %vm228_vm0, %v472_v42 }
  0xe3 PF: > { %s13_s14 = sadd.s32 1, %s714_s14   ;;  %s836_s12 = smov %s710_s13 }
  0xe4   : > { %p10_p5 = scmp.ge.s32.totalorder %s13_s14, 4   ;;  %s837_s13 = smov %s839_s15 }
  0xe6   :  { %12 = sbr.rel (!%p10_p5) target bundleno = 2 (0x2), region = 64 }

// kernel: upconv_block_forward.7
= control target key start
LH: loop header
LB: loop body
LE: loop exit
PB: predicated region body
PF: predicated region fallthrough
CT: control target
= control target key end

     0   :  { %s569_s12 = smov 0   ;;  %s571_s13 = smov 0   ;;  %s776_s0 = inlined_call_operand.vmem [shape: f32[2,16,16,4], index: 0, kind: input, shape index: {}]   ;;  %s777_s1 = inlined_call_operand.vmem [shape: f32[1,4], index: 1, kind: input, shape index: {}]   ;;  %s778_s2 = inlined_call_operand.vmem [shape: f32[1,4], index: 2, kind: input, shape index: {}]   ;;  %s779_s3 = inlined_call_operand.vmem [shape: f32[2,16,16,4], index: 3, kind: output, shape index: {}]  }
   0x1   :  { %s573_s14 = smov 0  }
   0x2 LB: > { %s25_s15 = sadd.s32 1, %s543_s13  ;;  %p490_p0 = scmp.ge.s32.totalorder %s547_s14, 1  ;;  %s547_s14 = sphi %s573_s14, %s13_s14   ;;  %s543_s13 = sphi %s571_s13, %s781_s13   ;;  %s539_s12 = sphi %s569_s12, %s780_s12  }
   0x3   : > { %p27_p1 = scmp.ge.s32.totalorder %s25_s15, 2  ;;  %p159_p2 = scmp.lt.s32.totalorder %s547_s14, 3 }
   0x5   : > { %s783_s15 = smov (%p27_p1, %s25_s15), 0  ;;  %p160_p3 = pnand %p490_p0, %p159_p2 }
   0x6   : > { %p194_p4 = scmp.lt.s32.totalorder (!%p160_p3), %s539_s12, 1 }
   0x7   : > { %163 = sbr.rel (%p160_p3) target bundleno = 45 (0x2d), region = 32 }
   0xc   : > { %s785_s12 = smov (!%p194_p4, %s539_s12), 1  ;;  %v590_v0 = vld [vmem:[%s777_s1] ss:$0 sm:$0xff]  ;;  %vm357_vm0 = vcmask 31744  }
   0xd   : > { %s499_s16 = sshll.u32 %s785_s12, 8  ;;  %v600_v1 = vld [vmem:[%s778_s2] ss:$0 sm:$0xff] }
   0xe   : > { %s595_s21 = scalar_lea.vmem %s776_s0, %s499_s16  ;;  %s623_s26 = scalar_lea.vmem %s779_s3, %s499_s16 }
   0xf   : > { %v215_v2 = vld [vmem:[%s595_s21] sm:$0xff]  ;;  %v216_v3 = vld [vmem:[%s595_s21 + $0x8] sm:$0xff]  ;;  %v217_v4 = vld [vmem:[%s595_s21 + $0x10] sm:$0xff] }
  0x10   : > { %v254_v5 = vmul.f32 %v590_v0, %v215_v2  ;;  %v255_v6 = vmul.f32 %v590_v0, %v216_v3  ;;  %v256_v7 = vmul.f32 %v590_v0, %v217_v4  ;;  %v218_v8 = vld [vmem:[%s595_s21 + $0x18] sm:$0xff]  ;;  %v219_v9 = vld [vmem:[%s595_s21 + $0x20] sm:$0xff]  ;;  %v220_v10 = vld [vmem:[%s595_s21 + $0x28] sm:$0xff] }
  0x11   : > { %v257_v11 = vmul.f32 %v590_v0, %v218_v8  ;;  %v258_v12 = vmul.f32 %v590_v0, %v219_v9  ;;  %v259_v13 = vmul.f32 %v590_v0, %v220_v10  ;;  %v221_v14 = vld [vmem:[%s595_s21 + $0x30] sm:$0xff]  ;;  %v222_v15 = vld [vmem:[%s595_s21 + $0x38] sm:$0xff]  ;;  %v223_v24 = vld [vmem:[%s595_s21 + $0x40] sm:$0xff] }
  0x12   : > { %v293_v16 = vadd.f32 %v600_v1, %v254_v5  ;;  %v294_v17 = vadd.f32 %v600_v1, %v255_v6  ;;  %v295_v18 = vadd.f32 %v600_v1, %v256_v7  ;;  %v260_v19 = vmul.f32 %v590_v0, %v221_v14  ;;  %v224_v25 = vld [vmem:[%s595_s21 + $0x48] sm:$0xff]  ;;  %v225_v26 = vld [vmem:[%s595_s21 + $0x50] sm:$0xff]  ;;  %v226_v31 = vld [vmem:[%s595_s21 + $0x58] sm:$0xff] }
  0x13   : > { %v296_v20 = vadd.f32 %v600_v1, %v257_v11  ;;  %v297_v21 = vadd.f32 %v600_v1, %v258_v12  ;;  %v298_v22 = vadd.f32 %v600_v1, %v259_v13  ;;  %v261_v23 = vmul.f32 %v590_v0, %v222_v15  ;;  %v227_v32 = vld [vmem:[%s595_s21 + $0x60] sm:$0xff]  ;;  %v228_v33 = vld [vmem:[%s595_s21 + $0x68] sm:$0xff]  ;;  %v229_v38 = vld [vmem:[%s595_s21 + $0x70] sm:$0xff] }
  0x14   : > { %v325_v27 = vmax.f32 %v293_v16, 0.0  ;;  %v326_v28 = vmax.f32 %v294_v17, 0.0  ;;  %v327_v29 = vmax.f32 %v295_v18, 0.0  ;;  %v299_v30 = vadd.f32 %v600_v1, %v260_v19  ;;  %v230_v43 = vld [vmem:[%s595_s21 + $0x78] sm:$0xff]  ;;  %v231_v56 = vld [vmem:[%s595_s21 + $0x80] sm:$0xff]  ;;  %v232_v57 = vld [vmem:[%s595_s21 + $0x88] sm:$0xff] }
  0x15   : > { %v328_v34 = vmax.f32 %v296_v20, 0.0  ;;  %v329_v35 = vmax.f32 %v297_v21, 0.0  ;;  %v330_v36 = vmax.f32 %v298_v22, 0.0  ;;  %v300_v37 = vadd.f32 %v600_v1, %v261_v23  ;;  %v233_v58 = vld [vmem:[%s595_s21 + $0x90] sm:$0xff]  ;;  %v234_v63 = vld [vmem:[%s595_s21 + $0x98] sm:$0xff]  ;;  %v235_v2 = vld [vmem:[%s595_s21 + $0xa0] sm:$0xff] }
  0x16   : > { %358 = vst.msk [vmem:[%s623_s26] sm:$0xff] %vm357_vm0, %v325_v27  ;;  %359 = vst.msk [vmem:[%s623_s26 + $0x8] sm:$0xff] %vm357_vm0, %v326_v28  ;;  %v331_v39 = vmax.f32 %v299_v30, 0.0  ;;  %v262_v40 = vmul.f32 %v590_v0, %v223_v24  ;;  %v263_v41 = vmul.f32 %v590_v0, %v224_v25  ;;  %v264_v42 = vmul.f32 %v590_v0, %v225_v26  ;;  %v236_v3 = vld [vmem:[%s595_s21 + $0xa8] sm:$0xff]  ;;  %v237_v8 = vld [vmem:[%s595_s21 + $0xb0] sm:$0xff] }
  0x17   : > { %360 = vst.msk [vmem:[%s623_s26 + $0x10] sm:$0xff] %vm357_vm0, %v327_v29  ;;  %361 = vst.msk [vmem:[%s623_s26 + $0x18] sm:$0xff] %vm357_vm0, %v328_v34  ;;  %v332_v44 = vmax.f32 %v300_v37, 0.0  ;;  %v265_v45 = vmul.f32 %v590_v0, %v226_v31  ;;  %v266_v46 = vmul.f32 %v590_v0, %v227_v32  ;;  %v267_v47 = vmul.f32 %v590_v0, %v228_v33  ;;  %v238_v13 = vld [vmem:[%s595_s21 + $0xb8] sm:$0xff]  ;;  %v239_v26 = vld [vmem:[%s595_s21 + $0xc0] sm:$0xff] }
  0x18   : > { %362 = vst.msk [vmem:[%s623_s26 + $0x20] sm:$0xff] %vm357_vm0, %v329_v35  ;;  %363 = vst.msk [vmem:[%s623_s26 + $0x28] sm:$0xff] %vm357_vm0, %v330_v36  ;;  %v301_v48 = vadd.f32 %v600_v1, %v262_v40  ;;  %v302_v49 = vadd.f32 %v600_v1, %v263_v41  ;;  %v303_v50 = vadd.f32 %v600_v1, %v264_v42  ;;  %v240_v27 = vld [vmem:[%s595_s21 + $0xc8] sm:$0xff]  ;;  %v241_v28 = vld [vmem:[%s595_s21 + $0xd0] sm:$0xff] }
  0x19   : > { %364 = vst.msk [vmem:[%s623_s26 + $0x30] sm:$0xff] %vm357_vm0, %v331_v39  ;;  %v268_v51 = vmul.f32 %v590_v0, %v229_v38  ;;  %365 = vst.msk [vmem:[%s623_s26 + $0x38] sm:$0xff] %vm357_vm0, %v332_v44  ;;  %v304_v52 = vadd.f32 %v600_v1, %v265_v45  ;;  %v305_v53 = vadd.f32 %v600_v1, %v266_v46  ;;  %v242_v33 = vld [vmem:[%s595_s21 + $0xd8] sm:$0xff]  ;;  %v243_v34 = vld [vmem:[%s595_s21 + $0xe0] sm:$0xff] }
  0x1a   : > { %v306_v54 = vadd.f32 %v600_v1, %v267_v47  ;;  %v269_v55 = vmul.f32 %v590_v0, %v230_v43  ;;  %v333_v59 = vmax.f32 %v301_v48, 0.0  ;;  %v334_v60 = vmax.f32 %v302_v49, 0.0  ;;  %v244_v35 = vld [vmem:[%s595_s21 + $0xe8] sm:$0xff]  ;;  %v245_v40 = vld [vmem:[%s595_s21 + $0xf0] sm:$0xff]  ;;  %v246_v45 = vld [vmem:[%s595_s21 + $0xf8] sm:$0xff] }
  0x1b   : > { %v335_v61 = vmax.f32 %v303_v50, 0.0  ;;  %v307_v62 = vadd.f32 %v600_v1, %v268_v51  ;;  %v336_v4 = vmax.f32 %v304_v52, 0.0  ;;  %v337_v5 = vmax.f32 %v305_v53, 0.0 }
  0x1c   : > { %v338_v6 = vmax.f32 %v306_v54, 0.0  ;;  %v308_v7 = vadd.f32 %v600_v1, %v269_v55  ;;  %366 = vst.msk [vmem:[%s623_s26 + $0x40] sm:$0xff] %vm357_vm0, %v333_v59  ;;  %367 = vst.msk [vmem:[%s623_s26 + $0x48] sm:$0xff] %vm357_vm0, %v334_v60  ;;  %v270_v10 = vmul.f32 %v590_v0, %v231_v56  ;;  %v271_v11 = vmul.f32 %v590_v0, %v232_v57 }
  0x1d   : > { %368 = vst.msk [vmem:[%s623_s26 + $0x50] sm:$0xff] %vm357_vm0, %v335_v61  ;;  %v339_v9 = vmax.f32 %v307_v62, 0.0  ;;  %v272_v12 = vmul.f32 %v590_v0, %v233_v58  ;;  %369 = vst.msk [vmem:[%s623_s26 + $0x58] sm:$0xff] %vm357_vm0, %v336_v4  ;;  %v273_v15 = vmul.f32 %v590_v0, %v234_v63  ;;  %v274_v16 = vmul.f32 %v590_v0, %v235_v2 }
  0x1e   : > { %370 = vst.msk [vmem:[%s623_s26 + $0x60] sm:$0xff] %vm357_vm0, %v337_v5  ;;  %371 = vst.msk [vmem:[%s623_s26 + $0x68] sm:$0xff] %vm357_vm0, %v338_v6  ;;  %v340_v14 = vmax.f32 %v308_v7, 0.0  ;;  %v275_v17 = vmul.f32 %v590_v0, %v236_v3  ;;  %v309_v18 = vadd.f32 %v600_v1, %v270_v10  ;;  %v310_v19 = vadd.f32 %v600_v1, %v271_v11 }
  0x1f   : > { %372 = vst.msk [vmem:[%s623_s26 + $0x70] sm:$0xff] %vm357_vm0, %v339_v9  ;;  %v311_v20 = vadd.f32 %v600_v1, %v272_v12  ;;  %v276_v21 = vmul.f32 %v590_v0, %v237_v8  ;;  %v312_v22 = vadd.f32 %v600_v1, %v273_v15  ;;  %v313_v23 = vadd.f32 %v600_v1, %v274_v16 }
  0x20   : > { %373 = vst.msk [vmem:[%s623_s26 + $0x78] sm:$0xff] %vm357_vm0, %v340_v14  ;;  %v314_v24 = vadd.f32 %v600_v1, %v275_v17  ;;  %v277_v25 = vmul.f32 %v590_v0, %v238_v13  ;;  %v341_v29 = vmax.f32 %v309_v18, 0.0  ;;  %v342_v30 = vmax.f32 %v310_v19, 0.0 }
  0x21   : > { %v343_v31 = vmax.f32 %v311_v20, 0.0  ;;  %v315_v32 = vadd.f32 %v600_v1, %v276_v21  ;;  %v344_v36 = vmax.f32 %v312_v22, 0.0  ;;  %v345_v37 = vmax.f32 %v313_v23, 0.0 }
  0x22   : > { %v346_v38 = vmax.f32 %v314_v24, 0.0  ;;  %v316_v39 = vadd.f32 %v600_v1, %v277_v25  ;;  %374 = vst.msk [vmem:[%s623_s26 + $0x80] sm:$0xff] %vm357_vm0, %v341_v29  ;;  %375 = vst.msk [vmem:[%s623_s26 + $0x88] sm:$0xff] %vm357_vm0, %v342_v30  ;;  %v278_v42 = vmul.f32 %v590_v0, %v239_v26  ;;  %v279_v43 = vmul.f32 %v590_v0, %v240_v27 }
  0x23   : > { %376 = vst.msk [vmem:[%s623_s26 + $0x90] sm:$0xff] %vm357_vm0, %v343_v31  ;;  %v347_v41 = vmax.f32 %v315_v32, 0.0  ;;  %v280_v44 = vmul.f32 %v590_v0, %v241_v28  ;;  %377 = vst.msk [vmem:[%s623_s26 + $0x98] sm:$0xff] %vm357_vm0, %v344_v36  ;;  %v281_v47 = vmul.f32 %v590_v0, %v242_v33  ;;  %v282_v48 = vmul.f32 %v590_v0, %v243_v34 }
  0x24   : > { %378 = vst.msk [vmem:[%s623_s26 + $0xa0] sm:$0xff] %vm357_vm0, %v345_v37  ;;  %379 = vst.msk [vmem:[%s623_s26 + $0xa8] sm:$0xff] %vm357_vm0, %v346_v38  ;;  %v348_v46 = vmax.f32 %v316_v39, 0.0  ;;  %v283_v49 = vmul.f32 %v590_v0, %v244_v35  ;;  %v317_v50 = vadd.f32 %v600_v1, %v278_v42  ;;  %v318_v51 = vadd.f32 %v600_v1, %v279_v43 }
  0x25   : > { %380 = vst.msk [vmem:[%s623_s26 + $0xb0] sm:$0xff] %vm357_vm0, %v347_v41  ;;  %v319_v52 = vadd.f32 %v600_v1, %v280_v44  ;;  %v284_v53 = vmul.f32 %v590_v0, %v245_v40  ;;  %v320_v54 = vadd.f32 %v600_v1, %v281_v47  ;;  %v321_v55 = vadd.f32 %v600_v1, %v282_v48 }
  0x26   : > { %381 = vst.msk [vmem:[%s623_s26 + $0xb8] sm:$0xff] %vm357_vm0, %v348_v46  ;;  %v322_v56 = vadd.f32 %v600_v1, %v283_v49  ;;  %v285_v57 = vmul.f32 %v590_v0, %v246_v45  ;;  %v349_v58 = vmax.f32 %v317_v50, 0.0  ;;  %v350_v59 = vmax.f32 %v318_v51, 0.0 }
  0x27   : > { %v351_v60 = vmax.f32 %v319_v52, 0.0  ;;  %v323_v61 = vadd.f32 %v600_v1, %v284_v53  ;;  %v352_v62 = vmax.f32 %v320_v54, 0.0  ;;  %v353_v63 = vmax.f32 %v321_v55, 0.0 }
  0x28   : > { %v354_v2 = vmax.f32 %v322_v56, 0.0  ;;  %v324_v3 = vadd.f32 %v600_v1, %v285_v57  ;;  %382 = vst.msk [vmem:[%s623_s26 + $0xc0] sm:$0xff] %vm357_vm0, %v349_v58  ;;  %383 = vst.msk [vmem:[%s623_s26 + $0xc8] sm:$0xff] %vm357_vm0, %v350_v59 }
  0x29   : > { %384 = vst.msk [vmem:[%s623_s26 + $0xd0] sm:$0xff] %vm357_vm0, %v351_v60  ;;  %v355_v4 = vmax.f32 %v323_v61, 0.0  ;;  %385 = vst.msk [vmem:[%s623_s26 + $0xd8] sm:$0xff] %vm357_vm0, %v352_v62 }
  0x2a   : > { %386 = vst.msk [vmem:[%s623_s26 + $0xe0] sm:$0xff] %vm357_vm0, %v353_v63  ;;  %387 = vst.msk [vmem:[%s623_s26 + $0xe8] sm:$0xff] %vm357_vm0, %v354_v2  ;;  %v356_v0 = vmax.f32 %v324_v3, 0.0 }
  0x2b   : > { %388 = vst.msk [vmem:[%s623_s26 + $0xf0] sm:$0xff] %vm357_vm0, %v355_v4 }
  0x2c   : > { %389 = vst.msk [vmem:[%s623_s26 + $0xf8] sm:$0xff] %vm357_vm0, %v356_v0 }
  0x2d PF: > { %s13_s14 = sadd.s32 1, %s547_s14   ;;  %s780_s12 = smov %s543_s13 }
  0x2e   : > { %p10_p5 = scmp.ge.s32.totalorder %s13_s14, 4   ;;  %s781_s13 = smov %s783_s15 }
  0x30   :  { %12 = sbr.rel (!%p10_p5) target bundleno = 2 (0x2), region = 62 }

// kernel: upconv_block_forward.6
= control target key start
LH: loop header
LB: loop body
LE: loop exit
PB: predicated region body
PF: predicated region fallthrough
CT: control target
= control target key end

     0   :  { %s3313_s21 = smov 0   ;;  %s3315_s22 = smov 0   ;;  %s4555_s0 = inlined_call_operand.vmem [shape: f32[2,16,16,4], index: 0, kind: input, shape index: {}]   ;;  %s4556_s1 = inlined_call_operand.vmem [shape: f32[1,1,4], index: 1, kind: input, shape index: {}]   ;;  %s4557_s2 = inlined_call_operand.vmem [shape: f32[1,1,4], index: 2, kind: input, shape index: {}]   ;;  %s4558_s3 = inlined_call_operand.vmem [shape: f32[36,4], index: 3, kind: input, shape index: {}]   ;;  %s4559_s4 = inlined_call_operand.vmem [shape: f32[1,4], index: 4, kind: input, shape index: {}]   ;;  %s4560_s5 = inlined_call_operand.vmem [shape: f32[2,16,16,4], index: 5, kind: output, shape index: {0}]   ;;  %s4561_s6 = inlined_call_operand.vmem [shape: f32[2,1,2,4], index: 6, kind: output, shape index: {1}]  }
   0x1   :  { %s3317_s23 = smov 0  }
   0x2 LB: > { %s29_s24 = sadd.s32 1, %s3263_s22  ;;  %p2867_p0 = scmp.ge.s32.totalorder %s3267_s23, 1  ;;  %s3267_s23 = sphi %s3317_s23, %s17_s23   ;;  %s3263_s22 = sphi %s3315_s22, %s4563_s22   ;;  %s3259_s21 = sphi %s3313_s21, %s4562_s21  }
   0x3   : > { %p31_p1 = scmp.ge.s32.totalorder %s29_s24, 2  ;;  %p231_p2 = scmp.lt.s32.totalorder %s3267_s23, 3 }
   0x5   : > { %s4565_s24 = smov (%p31_p1, %s29_s24), 0  ;;  %p232_p3 = pnand %p2867_p0, %p231_p2 }
   0x6   : > { %p273_p4 = scmp.lt.s32.totalorder (!%p232_p3), %s3259_s21, 1  ;;  %s3270_s9 = smov (!%p232_p3), 4  }
   0x7   : > { %235 = sbr.rel (%p232_p3) target bundleno = 897 (0x381), region = 40  ;;  %s3271_s10 = smov (!%p232_p3), 8  }
   0x8   : > { %s3272_s11 = smov (!%p232_p3), 12   ;;  %s3273_s12 = smov (!%p232_p3), 16  }
   0x9   : > { %s3274_s13 = smov (!%p232_p3), 20   ;;  %s3275_s14 = smov (!%p232_p3), 24  }
   0xa   : > { %s3276_s15 = smov (!%p232_p3), 28   ;;  %s3277_s8 = smov (!%p232_p3), 32  }
   0xc   : > { %vm300_vm0 = vcmask 31744   ;;  %vm303_vm1 = vcmask 25600   ;;  %v3269_v0 = vmov 0.0   ;;  %s4567_s21 = smov (!%p273_p4, %s3259_s21), 1  ;;  %v3397_v1 = vld [vmem:[%s4556_s1] ss:$0 sm:$0xff] }
   0xd   : > { %301 = vst.msk [vmem:[#allocation2] sm:$0xff] %vm300_vm0, %v3269_v0  ;;  %302 = vst.msk [vmem:[#allocation2 + $0x8] sm:$0xff] %vm300_vm0, %v3269_v0  ;;  %s3103_s25 = sshll.u32 %s4567_s21, 8  ;;  %v3409_v2 = vld [vmem:[%s4557_s2] ss:$0 sm:$0xff]  ;;  %vm759_vm2 = vcmask 64544  }
   0xe   : > { %305 = vst.msk [vmem:[#allocation2 + $0x18] sm:$0xff] %vm300_vm0, %v3269_v0  ;;  %306 = vst.msk [vmem:[#allocation2 + $0x20] sm:$0xff] %vm300_vm0, %v3269_v0  ;;  %s3404_s30 = scalar_lea.vmem %s4555_s0, %s3103_s25  ;;  %vm952_vm3 = vcmask 97344   ;;  %vm2290_vm4 = vcmask 1043456   ;;  %vm1148_vm5 = vcmask 130144   ;;  %vm1341_vm6 = vcmask 162944   ;;  %s4300_s19 = scalar_lea.vmem %s4560_s5, %s3103_s25 }
   0xf   : > { %308 = vst.msk [vmem:[#allocation2 + $0x30] sm:$0xff] %vm300_vm0, %v3269_v0  ;;  %309 = vst.msk [vmem:[#allocation2 + $0x38] sm:$0xff] %vm300_vm0, %v3269_v0  ;;  %v356_v3 = vld [vmem:[%s3404_s30] sm:$0xff]  ;;  %v358_v4 = vld [vmem:[%s3404_s30 + $0x10] sm:$0xff]  ;;  %vm1534_vm7 = vcmask 195744   ;;  %vm1730_vm8 = vcmask 228544  }
  0x10   : > { %311 = vst.msk [vmem:[#allocation2 + $0x48] sm:$0xff] %vm300_vm0, %v3269_v0  ;;  %312 = vst.msk [vmem:[#allocation2 + $0x50] sm:$0xff] %vm300_vm0, %v3269_v0  ;;  %v357_v5 = vld [vmem:[%s3404_s30 + $0x8] sm:$0xff]  ;;  %v395_v6 = vmul.f32 %v3397_v1, %v356_v3  ;;  %v397_v7 = vmul.f32 %v3397_v1, %v358_v4  ;;  %v360_v9 = vld [vmem:[%s3404_s30 + $0x20] sm:$0xff]  ;;  %vm1923_vm9 = vcmask 261344   ;;  %vm2116_vm10 = vcmask 294144  }
  0x11   : > { %314 = vst.msk [vmem:[#allocation2 + $0x60] sm:$0xff] %vm300_vm0, %v3269_v0  ;;  %315 = vst.msk [vmem:[#allocation2 + $0x68] sm:$0xff] %vm300_vm0, %v3269_v0  ;;  %v396_v8 = vmul.f32 %v3397_v1, %v357_v5  ;;  %v359_v10 = vld [vmem:[%s3404_s30 + $0x18] sm:$0xff]  ;;  %v362_v11 = vld [vmem:[%s3404_s30 + $0x30] sm:$0xff]  ;;  %v399_v13 = vmul.f32 %v3397_v1, %v360_v9  ;;  %vm2193_vm11 = vcmask 293888   ;;  %s2872_s25 = sshll.u32 %s4567_s21, 1 }
  0x12   : > { %317 = vst.msk [vmem:[#allocation2 + $0x78] sm:$0xff] %vm300_vm0, %v3269_v0  ;;  %318 = vst.msk [vmem:[#allocation2 + $0x80] sm:$0xff] %vm300_vm0, %v3269_v0  ;;  %v398_v14 = vmul.f32 %v3397_v1, %v359_v10  ;;  %v401_v15 = vmul.f32 %v3397_v1, %v362_v11  ;;  %v361_v16 = vld [vmem:[%s3404_s30 + $0x28] sm:$0xff]  ;;  %v434_v18 = vadd.f32 %v3409_v2, %v395_v6  ;;  %v364_v22 = vld [vmem:[%s3404_s30 + $0x40] sm:$0xff]  ;;  %vm2721_vm12 = vcmask 1040384  }
  0x13   : > { %320 = vst.msk [vmem:[#allocation2 + $0x90] sm:$0xff] %vm300_vm0, %v3269_v0  ;;  %321 = vst.msk [vmem:[#allocation2 + $0x98] sm:$0xff] %vm300_vm0, %v3269_v0  ;;  %v436_v19 = vadd.f32 %v3409_v2, %v397_v7  ;;  %v435_v20 = vadd.f32 %v3409_v2, %v396_v8  ;;  %v400_v21 = vmul.f32 %v3397_v1, %v361_v16  ;;  %v363_v27 = vld [vmem:[%s3404_s30 + $0x38] sm:$0xff]  ;;  %v366_v28 = vld [vmem:[%s3404_s30 + $0x50] sm:$0xff] }
  0x14   : > { %323 = vst.msk [vmem:[#allocation2 + $0xa8] sm:$0xff] %vm300_vm0, %v3269_v0  ;;  %324 = vst.msk [vmem:[#allocation2 + $0xb0] sm:$0xff] %vm300_vm0, %v3269_v0  ;;  %v599_v12 = vld [vmem:[#allocation2 + $0x1] sm:$0xff]  ;;  %v438_v23 = vadd.f32 %v3409_v2, %v399_v13  ;;  %v437_v24 = vadd.f32 %v3409_v2, %v398_v14  ;;  %v440_v25 = vadd.f32 %v3409_v2, %v401_v15  ;;  %v466_v30 = vmax.f32 %v434_v18, 0.0  ;;  %v367_v35 = vld [vmem:[%s3404_s30 + $0x58] sm:$0xff] }
  0x15   : > { %326 = vst.msk [vmem:[#allocation2 + $0xc0] sm:$0xff] %vm300_vm0, %v3269_v0  ;;  %327 = vst.msk [vmem:[#allocation2 + $0xc8] sm:$0xff] %vm300_vm0, %v3269_v0  ;;  %663 = vrot.lane.b32.xlu0 %v599_v12, %s3270_s9  ;;  %v403_v26 = vmul.f32 %v3397_v1, %v364_v22  ;;  %v365_v29 = vld [vmem:[%s3404_s30 + $0x48] sm:$0xff]  ;;  %v468_v31 = vmax.f32 %v436_v19, 0.0  ;;  %v467_v32 = vmax.f32 %v435_v20, 0.0  ;;  %v439_v33 = vadd.f32 %v3409_v2, %v400_v21  ;;  %v368_v34 = vld [vmem:[%s3404_s30 + $0x60] sm:$0xff] }
  0x16   : > { %329 = vst.msk [vmem:[#allocation2 + $0xd8] sm:$0xff] %vm300_vm0, %v3269_v0  ;;  %330 = vst.msk [vmem:[#allocation2 + $0xe0] sm:$0xff] %vm300_vm0, %v3269_v0  ;;  %v370_v36 = vld [vmem:[%s3404_s30 + $0x70] sm:$0xff]  ;;  %v470_v37 = vmax.f32 %v438_v23, 0.0  ;;  %v469_v38 = vmax.f32 %v437_v24, 0.0  ;;  %v472_v39 = vmax.f32 %v440_v25, 0.0  ;;  %v402_v43 = vmul.f32 %v3397_v1, %v363_v27 }
  0x17   : > { %332 = vst.msk [vmem:[#allocation2 + $0xf0] sm:$0xff] %vm300_vm0, %v3269_v0  ;;  %333 = vst.msk [vmem:[#allocation2 + $0xf8] sm:$0xff] %vm300_vm0, %v3269_v0  ;;  %v442_v40 = vadd.f32 %v3409_v2, %v403_v26  ;;  %v369_v41 = vld [vmem:[%s3404_s30 + $0x68] sm:$0xff]  ;;  %v471_v42 = vmax.f32 %v439_v33, 0.0  ;;  %v405_v44 = vmul.f32 %v3397_v1, %v366_v28  ;;  %v404_v45 = vmul.f32 %v3397_v1, %v365_v29  ;;  %v372_v46 = vld [vmem:[%s3404_s30 + $0x80] sm:$0xff] }
  0x18   : > { %335 = vst.msk [vmem:[#allocation2 + $0x108] sm:$0xff] %vm300_vm0, %v3269_v0  ;;  %336 = vst.msk [vmem:[#allocation2 + $0x110] sm:$0xff] %vm300_vm0, %v3269_v0  ;;  %v407_v48 = vmul.f32 %v3397_v1, %v368_v34  ;;  %v406_v49 = vmul.f32 %v3397_v1, %v367_v35  ;;  %v409_v50 = vmul.f32 %v3397_v1, %v370_v36  ;;  %v371_v55 = vld [vmem:[%s3404_s30 + $0x78] sm:$0xff]  ;;  %v374_v56 = vld [vmem:[%s3404_s30 + $0x90] sm:$0xff] }
  0x19   : > { %338 = vst.msk [vmem:[#allocation2 + $0x120] sm:$0xff] %vm300_vm0, %v3269_v0  ;;  %339 = vst.msk [vmem:[#allocation2 + $0x128] sm:$0xff] %vm300_vm0, %v3269_v0  ;;  %v474_v47 = vmax.f32 %v442_v40, 0.0  ;;  %v441_v51 = vadd.f32 %v3409_v2, %v402_v43  ;;  %v444_v52 = vadd.f32 %v3409_v2, %v405_v44  ;;  %v443_v53 = vadd.f32 %v3409_v2, %v404_v45  ;;  %v373_v61 = vld [vmem:[%s3404_s30 + $0x88] sm:$0xff]  ;;  %v376_v62 = vld [vmem:[%s3404_s30 + $0xa0] sm:$0xff] }
  0x1a   : > { %341 = vst.msk [vmem:[#allocation2 + $0x138] sm:$0xff] %vm300_vm0, %v3269_v0  ;;  %342 = vst.msk [vmem:[#allocation2 + $0x140] sm:$0xff] %vm300_vm0, %v3269_v0  ;;  %v408_v54 = vmul.f32 %v3397_v1, %v369_v41  ;;  %v446_v57 = vadd.f32 %v3409_v2, %v407_v48  ;;  %v445_v58 = vadd.f32 %v3409_v2, %v406_v49  ;;  %v375_v63 = vld [vmem:[%s3404_s30 + $0x98] sm:$0xff]  ;;  %v378_v6 = vld [vmem:[%s3404_s30 + $0xb0] sm:$0xff] }
  0x1b   : > { %344 = vst.msk [vmem:[#allocation2 + $0x150] sm:$0xff] %vm300_vm0, %v3269_v0  ;;  %345 = vst.msk [vmem:[#allocation2 + $0x158] sm:$0xff] %vm300_vm0, %v3269_v0  ;;  %v448_v59 = vadd.f32 %v3409_v2, %v409_v50  ;;  %v411_v60 = vmul.f32 %v3397_v1, %v372_v46  ;;  %v476_v3 = vmax.f32 %v444_v52, 0.0  ;;  %v475_v4 = vmax.f32 %v443_v53, 0.0  ;;  %v534_v7 = vld [vmem:[#allocation2] sm:$0xff]  ;;  %v535_v8 = vld [vmem:[#allocation2 + $0x8] sm:$0xff] }
  0x1c   : > { %347 = vst.msk [vmem:[#allocation2 + $0x168] sm:$0xff] %vm300_vm0, %v3269_v0  ;;  %348 = vst.msk [vmem:[#allocation2 + $0x170] sm:$0xff] %vm300_vm0, %v3269_v0  ;;  %v447_v5 = vadd.f32 %v3409_v2, %v408_v54  ;;  %v478_v9 = vmax.f32 %v446_v57, 0.0  ;;  %v477_v10 = vmax.f32 %v445_v58, 0.0  ;;  %v410_v14 = vmul.f32 %v3397_v1, %v371_v55  ;;  %v380_v24 = vld [vmem:[%s3404_s30 + $0xc0] sm:$0xff]  ;;  %v379_v28 = vld [vmem:[%s3404_s30 + $0xb8] sm:$0xff] }
  0x1d   : > { %350 = vst.msk [vmem:[#allocation2 + $0x180] sm:$0xff] %vm300_vm0, %v3269_v0  ;;  %351 = vst.msk [vmem:[#allocation2 + $0x188] sm:$0xff] %vm300_vm0, %v3269_v0  ;;  %v480_v11 = vmax.f32 %v448_v59, 0.0  ;;  %v450_v12 = vadd.f32 %v3409_v2, %v411_v60  ;;  %v413_v15 = vmul.f32 %v3397_v1, %v374_v56  ;;  %v412_v16 = vmul.f32 %v3397_v1, %v373_v61  ;;  %v382_v35 = vld [vmem:[%s3404_s30 + $0xd0] sm:$0xff]  ;;  %v381_v40 = vld [vmem:[%s3404_s30 + $0xc8] sm:$0xff] }
  0x1e   : > { %353 = vst.msk [vmem:[#allocation2 + $0x198] sm:$0xff] %vm300_vm0, %v3269_v0  ;;  %354 = vst.msk [vmem:[#allocation2 + $0x1a0] sm:$0xff] %vm300_vm0, %v3269_v0  ;;  %v479_v13 = vmax.f32 %v447_v5, 0.0  ;;  %v415_v21 = vmul.f32 %v3397_v1, %v376_v62  ;;  %v414_v22 = vmul.f32 %v3397_v1, %v375_v63  ;;  %v417_v23 = vmul.f32 %v3397_v1, %v378_v6  ;;  %v384_v41 = vld [vmem:[%s3404_s30 + $0xe0] sm:$0xff] }
  0x1f   : > { %304 = vst.msk [vmem:[#allocation2 + $0x10] sm:$0x3] %vm303_vm1, %v3269_v0  ;;  %307 = vst.msk [vmem:[#allocation2 + $0x28] sm:$0x3] %vm303_vm1, %v3269_v0  ;;  %v482_v20 = vmax.f32 %v450_v12, 0.0  ;;  %v449_v25 = vadd.f32 %v3409_v2, %v410_v14  ;;  %v452_v26 = vadd.f32 %v3409_v2, %v413_v15  ;;  %v451_v27 = vadd.f32 %v3409_v2, %v412_v16 }
  0x20   : > { %310 = vst.msk [vmem:[#allocation2 + $0x40] sm:$0x3] %vm303_vm1, %v3269_v0  ;;  %313 = vst.msk [vmem:[#allocation2 + $0x58] sm:$0x3] %vm303_vm1, %v3269_v0  ;;  %v456_v33 = vadd.f32 %v3409_v2, %v417_v23  ;;  %v418_v50 = vmul.f32 %v3397_v1, %v379_v28  ;;  %v420_v58 = vmul.f32 %v3397_v1, %v381_v40 }
  0x21   : > { %316 = vst.msk [vmem:[#allocation2 + $0x70] sm:$0x3] %vm303_vm1, %v3269_v0  ;;  %319 = vst.msk [vmem:[#allocation2 + $0x88] sm:$0x3] %vm303_vm1, %v3269_v0  ;;  %v481_v36 = vmax.f32 %v449_v25, 0.0  ;;  %v423_v59 = vmul.f32 %v3397_v1, %v384_v41 }
  0x22   : > { %322 = vst.msk [vmem:[#allocation2 + $0xa0] sm:$0x3] %vm303_vm1, %v3269_v0  ;;  %325 = vst.msk [vmem:[#allocation2 + $0xb8] sm:$0x3] %vm303_vm1, %v3269_v0  ;;  %v488_v45 = vmax.f32 %v456_v33, 0.0  ;;  %v457_v62 = vadd.f32 %v3409_v2, %v418_v50 }
  0x23   : > { %328 = vst.msk [vmem:[#allocation2 + $0xd0] sm:$0x3] %vm303_vm1, %v3269_v0  ;;  %331 = vst.msk [vmem:[#allocation2 + $0xe8] sm:$0x3] %vm303_vm1, %v3269_v0 }
  0x24   : > { %334 = vst.msk [vmem:[#allocation2 + $0x100] sm:$0x3] %vm303_vm1, %v3269_v0  ;;  %337 = vst.msk [vmem:[#allocation2 + $0x118] sm:$0x3] %vm303_vm1, %v3269_v0  ;;  %v489_v6 = vmax.f32 %v457_v62, 0.0 }
  0x25   : > { %340 = vst.msk [vmem:[#allocation2 + $0x130] sm:$0x3] %vm303_vm1, %v3269_v0  ;;  %343 = vst.msk [vmem:[#allocation2 + $0x148] sm:$0x3] %vm303_vm1, %v3269_v0 }
  0x26   : > { %346 = vst.msk [vmem:[#allocation2 + $0x160] sm:$0x3] %vm303_vm1, %v3269_v0  ;;  %349 = vst.msk [vmem:[#allocation2 + $0x178] sm:$0x3] %vm303_vm1, %v3269_v0  ;;  %v600_v17 = vld [vmem:[#allocation2 + $0x9] sm:$0xff] }
  0x27   : > { %352 = vst.msk [vmem:[#allocation2 + $0x190] sm:$0x3] %vm303_vm1, %v3269_v0  ;;  %355 = vst.msk [vmem:[#allocation2 + $0x1a8] sm:$0x3] %vm303_vm1, %v3269_v0  ;;  %665 = vrot.lane.b32.xlu0 %v600_v17, %s3270_s9  ;;  %v473_v0 = vmax.f32 %v441_v51, 0.0  ;;  %v377_v17 = vld [vmem:[%s3404_s30 + $0xa8] sm:$0xff]  ;;  %v421_v51 = vmul.f32 %v3397_v1, %v382_v35 }
  0x28   : > { %499 = vst.msk [vmem:[#allocation2 + $0x19] sm:$0xff] %vm300_vm0, %v466_v30  ;;  %501 = vst.msk [vmem:[#allocation2 + $0x31] sm:$0xff] %vm300_vm0, %v468_v31  ;;  %v454_v31 = vadd.f32 %v3409_v2, %v415_v21  ;;  %v416_v34 = vmul.f32 %v3397_v1, %v377_v17 }
  0x29   : > { %500 = vst.msk [vmem:[#allocation2 + $0x21] sm:$0xff] %vm300_vm0, %v467_v32  ;;  %503 = vst.msk [vmem:[#allocation2 + $0x49] sm:$0xff] %vm300_vm0, %v470_v37  ;;  %v453_v32 = vadd.f32 %v3409_v2, %v414_v22  ;;  %v484_v37 = vmax.f32 %v452_v26, 0.0  ;;  %v460_v63 = vadd.f32 %v3409_v2, %v421_v51 }
  0x2a   : > { %502 = vst.msk [vmem:[#allocation2 + $0x39] sm:$0xff] %vm300_vm0, %v469_v38  ;;  %505 = vst.msk [vmem:[#allocation2 + $0x61] sm:$0xff] %vm300_vm0, %v472_v39  ;;  %v483_v38 = vmax.f32 %v451_v27, 0.0  ;;  %v419_v39 = vmul.f32 %v3397_v1, %v380_v24  ;;  %v486_v43 = vmax.f32 %v454_v31, 0.0  ;;  %v455_v46 = vadd.f32 %v3409_v2, %v416_v34 }
  0x2b   : > { %504 = vst.msk [vmem:[#allocation2 + $0x51] sm:$0xff] %vm300_vm0, %v471_v42  ;;  %507 = vst.msk [vmem:[#allocation2 + $0x79] sm:$0xff] %vm300_vm0, %v474_v47  ;;  %v383_v42 = vld [vmem:[%s3404_s30 + $0xd8] sm:$0xff]  ;;  %v485_v44 = vmax.f32 %v453_v32, 0.0  ;;  %v385_v47 = vld [vmem:[%s3404_s30 + $0xe8] sm:$0xff] }
  0x2c   : > { %567 = vst.msk [vmem:[#allocation3] sm:$0xff] %vm300_vm0, %v534_v7  ;;  %568 = vst.msk [vmem:[#allocation3 + $0x8] sm:$0xff] %vm300_vm0, %v535_v8  ;;  %v458_v49 = vadd.f32 %v3409_v2, %v419_v39  ;;  %v487_v57 = vmax.f32 %v455_v46, 0.0  ;;  %v422_v60 = vmul.f32 %v3397_v1, %v383_v42  ;;  %v492_v7 = vmax.f32 %v460_v63, 0.0 }
  0x2d   : > { %506 = vst.msk [vmem:[#allocation2 + $0x69] sm:$0xff] %vm300_vm0, %v473_v0  ;;  %509 = vst.msk [vmem:[#allocation2 + $0x91] sm:$0xff] %vm300_vm0, %v476_v3  ;;  %v424_v0 = vmul.f32 %v3397_v1, %v385_v47  ;;  %v459_v3 = vadd.f32 %v3409_v2, %v420_v58 }
  0x2e   : > { %508 = vst.msk [vmem:[#allocation2 + $0x81] sm:$0xff] %vm300_vm0, %v475_v4  ;;  %511 = vst.msk [vmem:[#allocation2 + $0xa9] sm:$0xff] %vm300_vm0, %v478_v9  ;;  %v490_v61 = vmax.f32 %v458_v49, 0.0  ;;  %v462_v4 = vadd.f32 %v3409_v2, %v423_v59  ;;  %v461_v5 = vadd.f32 %v3409_v2, %v422_v60 }
  0x2f   : > { %v3484_v18 = vld [vmem:[#allocation2 + $0x19] sm:$0xff]  ;;  %v3486_v19 = vld [vmem:[#allocation2 + $0x31] sm:$0xff]  ;;  %510 = vst.msk [vmem:[#allocation2 + $0x99] sm:$0xff] %vm300_vm0, %v477_v10  ;;  %513 = vst.msk [vmem:[#allocation2 + $0xc1] sm:$0xff] %vm300_vm0, %v480_v11  ;;  %v463_v1 = vadd.f32 %v3409_v2, %v424_v0  ;;  %v491_v10 = vmax.f32 %v459_v3, 0.0 }
  0x30   : > { %667 = vrot.lane.b32.xlu1 %v3484_v18, %s3270_s9  ;;  %671 = vrot.lane.b32.xlu0 %v3486_v19, %s3270_s9  ;;  %512 = vst.msk [vmem:[#allocation2 + $0xb1] sm:$0xff] %vm300_vm0, %v479_v13  ;;  %v3504_v29 = vld [vmem:[#allocation2 + $0x21] sm:$0xff]  ;;  %v3506_v30 = vld [vmem:[#allocation2 + $0x49] sm:$0xff]  ;;  %515 = vst.msk [vmem:[#allocation2 + $0xd9] sm:$0xff] %vm300_vm0, %v482_v20  ;;  %v494_v11 = vmax.f32 %v462_v4, 0.0  ;;  %v493_v12 = vmax.f32 %v461_v5, 0.0 }
  0x31   : > { %v3520_v48 = vld [vmem:[#allocation2 + $0x18] sm:$0xff]  ;;  %514 = vst.msk [vmem:[#allocation2 + $0xc9] sm:$0xff] %vm300_vm0, %v481_v36  ;;  %517 = vst.msk [vmem:[#allocation2 + $0xf1] sm:$0xff] %vm300_vm0, %v484_v37  ;;  %v3534_v52 = vld [vmem:[#allocation2 + $0x30] sm:$0xff]  ;;  %v495_v13 = vmax.f32 %v463_v1, 0.0 }
  0x32   : > { %516 = vst.msk [vmem:[#allocation2 + $0xe1] sm:$0xff] %vm300_vm0, %v483_v38  ;;  %569 = vst.msk [vmem:[#allocation3 + $0x10] sm:$0xff] %vm300_vm0, %v3520_v48  ;;  %v3536_v53 = vld [vmem:[#allocation2 + $0x20] sm:$0xff]  ;;  %v3538_v54 = vld [vmem:[#allocation2 + $0x48] sm:$0xff] }
  0x33   : > { %v3540_v55 = vld [vmem:[#allocation2 + $0x39] sm:$0xff]  ;;  %v3542_v56 = vld [vmem:[#allocation2 + $0x61] sm:$0xff]  ;;  %519 = vst.msk [vmem:[#allocation2 + $0x109] sm:$0xff] %vm300_vm0, %v486_v43  ;;  %518 = vst.msk [vmem:[#allocation2 + $0xf9] sm:$0xff] %vm300_vm0, %v485_v44 }
  0x34   : > { %669 = vrot.lane.b32.xlu1 %v3504_v29, %s3270_s9  ;;  %675 = vrot.lane.b32.xlu0 %v3506_v30, %s3270_s9  ;;  %521 = vst.msk [vmem:[#allocation2 + $0x121] sm:$0xff] %vm300_vm0, %v488_v45  ;;  %571 = vst.msk [vmem:[#allocation3 + $0x20] sm:$0xff] %vm300_vm0, %v3534_v52  ;;  %v3569_v8 = vld [vmem:[#allocation2 + $0x51] sm:$0xff]  ;;  %v609_v9 = vld [vmem:[#allocation2 + $0x79] sm:$0xff] }
  0x35   : > { %570 = vst.msk [vmem:[#allocation3 + $0x18] sm:$0xff] %vm300_vm0, %v3536_v53  ;;  %573 = vst.msk [vmem:[#allocation3 + $0x30] sm:$0xff] %vm300_vm0, %v3538_v54  ;;  %v3573_v14 = vld [vmem:[#allocation2 + $0x38] sm:$0xff]  ;;  %v3575_v15 = vld [vmem:[#allocation2 + $0x60] sm:$0xff] }
  0x36   : > { %520 = vst.msk [vmem:[#allocation2 + $0x111] sm:$0xff] %vm300_vm0, %v487_v57  ;;  %523 = vst.msk [vmem:[#allocation2 + $0x139] sm:$0xff] %vm300_vm0, %v490_v61  ;;  %v3588_v2 = vld [vmem:[#allocation2 + $0x69] sm:$0xff]  ;;  %v611_v16 = vld [vmem:[#allocation2 + $0x91] sm:$0xff] }
  0x37   : > { %522 = vst.msk [vmem:[#allocation2 + $0x129] sm:$0xff] %vm300_vm0, %v489_v6  ;;  %525 = vst.msk [vmem:[#allocation2 + $0x151] sm:$0xff] %vm300_vm0, %v492_v7  ;;  %v3593_v17 = vld [vmem:[#allocation2 + $0x50] sm:$0xff]  ;;  %v3595_v20 = vld [vmem:[#allocation2 + $0x78] sm:$0xff] }
  0x38   : > { %673 = vrot.lane.b32.xlu1 %v3540_v55, %s3270_s9  ;;  %679 = vrot.lane.b32.xlu0 %v3542_v56, %s3270_s9  ;;  %524 = vst.msk [vmem:[#allocation2 + $0x141] sm:$0xff] %vm300_vm0, %v491_v10  ;;  %527 = vst.msk [vmem:[#allocation2 + $0x169] sm:$0xff] %vm300_vm0, %v494_v11  ;;  %v3597_v21 = vld [vmem:[#allocation2 + $0x81] sm:$0xff]  ;;  %v613_v22 = vld [vmem:[#allocation2 + $0xa9] sm:$0xff] }
  0x39   : > { %526 = vst.msk [vmem:[#allocation2 + $0x159] sm:$0xff] %vm300_vm0, %v493_v12  ;;  %572 = vst.msk [vmem:[#allocation3 + $0x28] sm:$0xff] %vm300_vm0, %v3573_v14  ;;  %v612_v23 = vld [vmem:[#allocation2 + $0x99] sm:$0xff]  ;;  %v615_v24 = vld [vmem:[#allocation2 + $0xc1] sm:$0xff] }
  0x3a   : > { %575 = vst.msk [vmem:[#allocation3 + $0x40] sm:$0xff] %vm300_vm0, %v3575_v15  ;;  %528 = vst.msk [vmem:[#allocation2 + $0x171] sm:$0xff] %vm300_vm0, %v495_v13  ;;  %v3606_v25 = vld [vmem:[#allocation2 + $0x68] sm:$0xff]  ;;  %v3610_v26 = vld [vmem:[#allocation2 + $0x90] sm:$0xff] }
  0x3b   : > { %574 = vst.msk [vmem:[#allocation3 + $0x38] sm:$0xff] %vm300_vm0, %v3593_v17  ;;  %577 = vst.msk [vmem:[#allocation3 + $0x50] sm:$0xff] %vm300_vm0, %v3595_v20  ;;  %v3612_v27 = vld [vmem:[#allocation2 + $0x80] sm:$0xff]  ;;  %v3614_v28 = vld [vmem:[#allocation2 + $0xa8] sm:$0xff] }
  0x3c   : > { %677 = vrot.lane.b32.xlu1 %v3569_v8, %s3270_s9  ;;  %683 = vrot.lane.b32.xlu0 %v609_v9, %s3270_s9  ;;  %576 = vst.msk [vmem:[#allocation3 + $0x48] sm:$0xff] %vm300_vm0, %v3606_v25  ;;  %v614_v31 = vld [vmem:[#allocation2 + $0xb1] sm:$0xff]  ;;  %v617_v32 = vld [vmem:[#allocation2 + $0xd9] sm:$0xff]  ;;  %579 = vst.msk [vmem:[#allocation3 + $0x60] sm:$0xff] %vm300_vm0, %v3610_v26 }
  0x3d   : > { %578 = vst.msk [vmem:[#allocation3 + $0x58] sm:$0xff] %vm300_vm0, %v3612_v27  ;;  %581 = vst.msk [vmem:[#allocation3 + $0x70] sm:$0xff] %vm300_vm0, %v3614_v28  ;;  %v3622_v33 = vld [vmem:[#allocation2 + $0x98] sm:$0xff]  ;;  %v3624_v34 = vld [vmem:[#allocation2 + $0xc0] sm:$0xff] }
  0x3e   : > { %v3626_v35 = vld [vmem:[#allocation2 + $0xb0] sm:$0xff]  ;;  %580 = vst.msk [vmem:[#allocation3 + $0x68] sm:$0xff] %vm300_vm0, %v3622_v33  ;;  %583 = vst.msk [vmem:[#allocation3 + $0x80] sm:$0xff] %vm300_vm0, %v3624_v34  ;;  %v3636_v36 = vld [vmem:[#allocation2 + $0xd8] sm:$0xff] }
  0x3f   : > { %582 = vst.msk [vmem:[#allocation3 + $0x78] sm:$0xff] %vm300_vm0, %v3626_v35  ;;  %v3638_v37 = vld [vmem:[#allocation2 + $0xc8] sm:$0xff]  ;;  %v3640_v38 = vld [vmem:[#allocation2 + $0xf0] sm:$0xff]  ;;  %585 = vst.msk [vmem:[#allocation3 + $0x90] sm:$0xff] %vm300_vm0, %v3636_v36 }
  0x40   : > { %681 = vrot.lane.b32.xlu1 %v3588_v2, %s3270_s9  ;;  %687 = vrot.lane.b32.xlu0 %v611_v16, %s3270_s9  ;;  %584 = vst.msk [vmem:[#allocation3 + $0x88] sm:$0xff] %vm300_vm0, %v3638_v37  ;;  %587 = vst.msk [vmem:[#allocation3 + $0xa0] sm:$0xff] %vm300_vm0, %v3640_v38  ;;  %v3648_v39 = vld [vmem:[#allocation2 + $0xe0] sm:$0xff]  ;;  %v3650_v40 = vld [vmem:[#allocation2 + $0x108] sm:$0xff] }
  0x41   : > { %v3652_v41 = vld [vmem:[#allocation2 + $0xf8] sm:$0xff]  ;;  %586 = vst.msk [vmem:[#allocation3 + $0x98] sm:$0xff] %vm300_vm0, %v3648_v39  ;;  %589 = vst.msk [vmem:[#allocation3 + $0xb0] sm:$0xff] %vm300_vm0, %v3650_v40  ;;  %v3660_v42 = vld [vmem:[#allocation2 + $0x120] sm:$0xff] }
  0x42   : > { %588 = vst.msk [vmem:[#allocation3 + $0xa8] sm:$0xff] %vm300_vm0, %v3652_v41  ;;  %591 = vst.msk [vmem:[#allocation3 + $0xc0] sm:$0xff] %vm300_vm0, %v3660_v42  ;;  %v3666_v43 = vld [vmem:[#allocation2 + $0x110] sm:$0xff]  ;;  %v560_v46 = vld [vmem:[#allocation2 + $0x138] sm:$0xff] }
  0x43   : > { %v616_v44 = vld [vmem:[#allocation2 + $0xc9] sm:$0xff]  ;;  %v619_v45 = vld [vmem:[#allocation2 + $0xf1] sm:$0xff]  ;;  %590 = vst.msk [vmem:[#allocation3 + $0xb8] sm:$0xff] %vm300_vm0, %v3666_v43  ;;  %593 = vst.msk [vmem:[#allocation3 + $0xd0] sm:$0xff] %vm300_vm0, %v560_v46 }
  0x44   : > { %685 = vrot.lane.b32.xlu1 %v3597_v21, %s3270_s9  ;;  %691 = vrot.lane.b32.xlu0 %v613_v22, %s3270_s9  ;;  %v3673_v47 = vld [vmem:[#allocation2 + $0x128] sm:$0xff]  ;;  %v562_v51 = vld [vmem:[#allocation2 + $0x150] sm:$0xff]  ;;  %v561_v57 = vld [vmem:[#allocation2 + $0x140] sm:$0xff] }
  0x45   : > { %v618_v49 = vld [vmem:[#allocation2 + $0xe1] sm:$0xff]  ;;  %v621_v50 = vld [vmem:[#allocation2 + $0x109] sm:$0xff]  ;;  %592 = vst.msk [vmem:[#allocation3 + $0xc8] sm:$0xff] %vm300_vm0, %v3673_v47  ;;  %595 = vst.msk [vmem:[#allocation3 + $0xe0] sm:$0xff] %vm300_vm0, %v562_v51 }
  0x46   : > { %v620_v58 = vld [vmem:[#allocation2 + $0xf9] sm:$0xff]  ;;  %v623_v59 = vld [vmem:[#allocation2 + $0x121] sm:$0xff]  ;;  %594 = vst.msk [vmem:[#allocation3 + $0xd8] sm:$0xff] %vm300_vm0, %v561_v57  ;;  %v622_v62 = vld [vmem:[#allocation2 + $0x111] sm:$0xff] }
  0x47   : > { %v564_v60 = vld [vmem:[#allocation2 + $0x168] sm:$0xff]  ;;  %v563_v61 = vld [vmem:[#allocation2 + $0x158] sm:$0xff]  ;;  %v565_v0 = vld [vmem:[#allocation2 + $0x170] sm:$0xff] }
  0x48   : > { %689 = vrot.lane.b32.xlu1 %v612_v23, %s3270_s9  ;;  %695 = vrot.lane.b32.xlu0 %v615_v24, %s3270_s9  ;;  %597 = vst.msk [vmem:[#allocation3 + $0xf0] sm:$0xff] %vm300_vm0, %v564_v60  ;;  %v625_v63 = vld [vmem:[#allocation2 + $0x139] sm:$0xff]  ;;  %596 = vst.msk [vmem:[#allocation3 + $0xe8] sm:$0xff] %vm300_vm0, %v563_v61  ;;  %v624_v3 = vld [vmem:[#allocation2 + $0x129] sm:$0xff] }
  0x49   : > { %v627_v4 = vld [vmem:[#allocation2 + $0x151] sm:$0xff]  ;;  %598 = vst.msk [vmem:[#allocation3 + $0xf8] sm:$0xff] %vm300_vm0, %v565_v0  ;;  %v626_v5 = vld [vmem:[#allocation2 + $0x141] sm:$0xff]  ;;  %v629_v6 = vld [vmem:[#allocation2 + $0x169] sm:$0xff] }
  0x4a   : > { %v628_v7 = vld [vmem:[#allocation2 + $0x159] sm:$0xff]  ;;  %v792_v1 = vld [vmem:[#allocation2 + $0x2] sm:$0xff]  ;;  %v630_v9 = vld [vmem:[#allocation2 + $0x171] sm:$0xff] }
  0x4b   : > { %v3694_v10 = vld [vmem:[#allocation2 + $0x1a] sm:$0xff]  ;;  %v793_v11 = vld [vmem:[#allocation2 + $0xa] sm:$0xff]  ;;  %v3699_v12 = vld [vmem:[#allocation2 + $0x32] sm:$0xff] }
  0x4c   : > { %693 = vrot.lane.b32.xlu1 %v614_v31, %s3270_s9  ;;  %699 = vrot.lane.b32.xlu0 %v617_v32, %s3270_s9  ;;  %v3704_v13 = vld [vmem:[#allocation2 + $0x22] sm:$0xff]  ;;  %v3706_v16 = vld [vmem:[#allocation2 + $0x4a] sm:$0xff]  ;;  %v3712_v22 = vld [vmem:[#allocation2 + $0x3a] sm:$0xff] }
  0x4d   : > { %v3714_v23 = vld [vmem:[#allocation2 + $0x62] sm:$0xff]  ;;  %v3720_v24 = vld [vmem:[#allocation2 + $0x52] sm:$0xff]  ;;  %v3722_v31 = vld [vmem:[#allocation2 + $0x7a] sm:$0xff] }
  0x4e   : > { %v3728_v32 = vld [vmem:[#allocation2 + $0x6a] sm:$0xff]  ;;  %v3752_v51 = vld [vmem:[#allocation2 + $0xb2] sm:$0xff]  ;;  %v810_v57 = vld [vmem:[#allocation2 + $0xda] sm:$0xff] }
  0x4f   : > { %v3738_v46 = vld [vmem:[#allocation2 + $0xaa] sm:$0xff]  ;;  %v811_v60 = vld [vmem:[#allocation2 + $0xe2] sm:$0xff] }
  0x50   : > { %697 = vrot.lane.b32.xlu1 %v616_v44, %s3270_s9  ;;  %703 = vrot.lane.b32.xlu0 %v619_v45, %s3270_s9  ;;  %v3730_v44 = vld [vmem:[#allocation2 + $0x92] sm:$0xff]  ;;  %v3736_v45 = vld [vmem:[#allocation2 + $0x82] sm:$0xff]  ;;  %v814_v61 = vld [vmem:[#allocation2 + $0x10a] sm:$0xff] }
  0x54   : > { %701 = vrot.lane.b32.xlu1 %v618_v49, %s3270_s9  ;;  %707 = vrot.lane.b32.xlu0 %v621_v50, %s3270_s9  ;;  %v3744_v49 = vld [vmem:[#allocation2 + $0x9a] sm:$0xff]  ;;  %v3746_v50 = vld [vmem:[#allocation2 + $0xc2] sm:$0xff] }
  0x58   : > { %705 = vrot.lane.b32.xlu1 %v620_v58, %s3270_s9  ;;  %711 = vrot.lane.b32.xlu0 %v623_v59, %s3270_s9  ;;  %v3757_v58 = vld [vmem:[#allocation2 + $0xca] sm:$0xff]  ;;  %v812_v59 = vld [vmem:[#allocation2 + $0xf2] sm:$0xff] }
  0x5c   : > { %709 = vrot.lane.b32.xlu1 %v622_v62, %s3270_s9  ;;  %715 = vrot.lane.b32.xlu0 %v625_v63, %s3270_s9  ;;  %v813_v62 = vld [vmem:[#allocation2 + $0xfa] sm:$0xff]  ;;  %v816_v63 = vld [vmem:[#allocation2 + $0x122] sm:$0xff] }
  0x60   : > { %713 = vrot.lane.b32.xlu1 %v624_v3, %s3270_s9  ;;  %719 = vrot.lane.b32.xlu0 %v627_v4, %s3270_s9  ;;  %v815_v3 = vld [vmem:[#allocation2 + $0x112] sm:$0xff]  ;;  %v818_v4 = vld [vmem:[#allocation2 + $0x13a] sm:$0xff] }
  0x64   : > { %717 = vrot.lane.b32.xlu1 %v626_v5, %s3270_s9  ;;  %723 = vrot.lane.b32.xlu0 %v629_v6, %s3270_s9  ;;  %v817_v6 = vld [vmem:[#allocation2 + $0x12a] sm:$0xff] }
  0x68   : > { %721 = vrot.lane.b32.xlu1 %v628_v7, %s3270_s9  ;;  %856 = vrot.lane.b32.xlu0 %v792_v1, %s3271_s10  ;;  %v820_v7 = vld [vmem:[#allocation2 + $0x152] sm:$0xff]  ;;  %v819_v1 = vld [vmem:[#allocation2 + $0x142] sm:$0xff] }
  0x6c   : > { %725 = vrot.lane.b32.xlu1 %v630_v9, %s3270_s9  ;;  %860 = vrot.lane.b32.xlu0 %v3694_v10, %s3271_s10  ;;  %v822_v9 = vld [vmem:[#allocation2 + $0x16a] sm:$0xff] }
  0x70   : > { %858 = vrot.lane.b32.xlu1 %v793_v11, %s3271_s10  ;;  %864 = vrot.lane.b32.xlu0 %v3699_v12, %s3271_s10 }
  0x74   : > { %862 = vrot.lane.b32.xlu1 %v3704_v13, %s3271_s10  ;;  %868 = vrot.lane.b32.xlu0 %v3706_v16, %s3271_s10 }
  0x78   : > { %866 = vrot.lane.b32.xlu1 %v3712_v22, %s3271_s10  ;;  %872 = vrot.lane.b32.xlu0 %v3714_v23, %s3271_s10 }
  0x7c   : > { %870 = vrot.lane.b32.xlu1 %v3720_v24, %s3271_s10  ;;  %876 = vrot.lane.b32.xlu0 %v3722_v31, %s3271_s10 }
  0x80   : > { %874 = vrot.lane.b32.xlu1 %v3728_v32, %s3271_s10  ;;  %880 = vrot.lane.b32.xlu0 %v3730_v44, %s3271_s10 }
  0x84   : > { %878 = vrot.lane.b32.xlu1 %v3736_v45, %s3271_s10  ;;  %884 = vrot.lane.b32.xlu0 %v3738_v46, %s3271_s10 }
  0x87   : > { %v664_v0 = vpop.permute.xlu0 %663 }
  0x88   : > { %882 = vrot.lane.b32.xlu1 %v3744_v49, %s3271_s10  ;;  %888 = vrot.lane.b32.xlu0 %v3746_v50, %s3271_s10  ;;  %760 = vst.msk [vmem:[#allocation3] sm:$0xff] %vm759_vm2, %v664_v0 }
  0x8c   : > { %886 = vrot.lane.b32.xlu1 %v3752_v51, %s3271_s10  ;;  %892 = vrot.lane.b32.xlu0 %v810_v57, %s3271_s10 }
  0x90   : > { %890 = vrot.lane.b32.xlu1 %v3757_v58, %s3271_s10  ;;  %896 = vrot.lane.b32.xlu0 %v812_v59, %s3271_s10  ;;  %v821_v59 = vld [vmem:[#allocation2 + $0x15a] sm:$0xff] }
  0x94   : > { %894 = vrot.lane.b32.xlu1 %v811_v60, %s3271_s10  ;;  %900 = vrot.lane.b32.xlu0 %v814_v61, %s3271_s10 }
  0x98   : > { %898 = vrot.lane.b32.xlu1 %v813_v62, %s3271_s10  ;;  %904 = vrot.lane.b32.xlu0 %v816_v63, %s3271_s10  ;;  %v823_v62 = vld [vmem:[#allocation2 + $0x172] sm:$0xff] }
  0x99   : > { %v666_v5 = vpop.permute.xlu0 %665 }
  0x9a   : > { %761 = vst.msk [vmem:[#allocation3 + $0x8] sm:$0xff] %vm759_vm2, %v666_v5 }
  0x9c   : > { %902 = vrot.lane.b32.xlu1 %v815_v3, %s3271_s10  ;;  %908 = vrot.lane.b32.xlu0 %v818_v4, %s3271_s10 }
  0xa0   : > { %906 = vrot.lane.b32.xlu1 %v817_v6, %s3271_s10  ;;  %912 = vrot.lane.b32.xlu0 %v820_v7, %s3271_s10 }
  0xa2   : > { %v668_v11 = vpop.permute.xlu1 %667  ;;  %v672_v57 = vpop.permute.xlu0 %671 }
  0xa3   : > { %762 = vst.msk [vmem:[#allocation3 + $0x10] sm:$0xff] %vm759_vm2, %v668_v11  ;;  %764 = vst.msk [vmem:[#allocation3 + $0x20] sm:$0xff] %vm759_vm2, %v672_v57 }
  0xa4   : > { %910 = vrot.lane.b32.xlu1 %v819_v1, %s3271_s10  ;;  %916 = vrot.lane.b32.xlu0 %v822_v9, %s3271_s10 }
  0xa6   : > { %v670_v60 = vpop.permute.xlu1 %669  ;;  %v676_v61 = vpop.permute.xlu0 %675 }
  0xa7   : > { %763 = vst.msk [vmem:[#allocation3 + $0x18] sm:$0xff] %vm759_vm2, %v670_v60  ;;  %766 = vst.msk [vmem:[#allocation3 + $0x30] sm:$0xff] %vm759_vm2, %v676_v61 }
  0xa8   : > { %914 = vrot.lane.b32.xlu1 %v821_v59, %s3271_s10  ;;  %1052 = vrot.lane.b32.xlu0 %v3520_v48, %s3272_s11 }
  0xaa   : > { %v674_v63 = vpop.permute.xlu1 %673  ;;  %v680_v0 = vpop.permute.xlu0 %679 }
  0xab   : > { %765 = vst.msk [vmem:[#allocation3 + $0x28] sm:$0xff] %vm759_vm2, %v674_v63  ;;  %768 = vst.msk [vmem:[#allocation3 + $0x40] sm:$0xff] %vm759_vm2, %v680_v0 }
  0xac   : > { %918 = vrot.lane.b32.xlu1 %v823_v62, %s3271_s10  ;;  %1056 = vrot.lane.b32.xlu0 %v3534_v52, %s3272_s11 }
  0xae   : > { %v678_v3 = vpop.permute.xlu1 %677  ;;  %v684_v4 = vpop.permute.xlu0 %683 }
  0xaf   : > { %767 = vst.msk [vmem:[#allocation3 + $0x38] sm:$0xff] %vm759_vm2, %v678_v3  ;;  %770 = vst.msk [vmem:[#allocation3 + $0x50] sm:$0xff] %vm759_vm2, %v684_v4 }
  0xb0   : > { %1054 = vrot.lane.b32.xlu1 %v3536_v53, %s3272_s11  ;;  %1060 = vrot.lane.b32.xlu0 %v3538_v54, %s3272_s11 }
  0xb2   : > { %v682_v48 = vpop.permute.xlu1 %681  ;;  %v688_v5 = vpop.permute.xlu0 %687 }
  0xb3   : > { %769 = vst.msk [vmem:[#allocation3 + $0x48] sm:$0xff] %vm759_vm2, %v682_v48  ;;  %772 = vst.msk [vmem:[#allocation3 + $0x60] sm:$0xff] %vm759_vm2, %v688_v5 }
  0xb4   : > { %1058 = vrot.lane.b32.xlu1 %v3573_v14, %s3272_s11  ;;  %1064 = vrot.lane.b32.xlu0 %v3575_v15, %s3272_s11 }
  0xb6   : > { %v686_v6 = vpop.permute.xlu1 %685  ;;  %v692_v7 = vpop.permute.xlu0 %691 }
  0xb7   : > { %771 = vst.msk [vmem:[#allocation3 + $0x58] sm:$0xff] %vm759_vm2, %v686_v6  ;;  %774 = vst.msk [vmem:[#allocation3 + $0x70] sm:$0xff] %vm759_vm2, %v692_v7  ;;  %v2183_v6 = vld [vmem:[%s4558_s3 + $0x10] sm:$0xff] }
  0xb8   : > { %1062 = vrot.lane.b32.xlu1 %v3593_v17, %s3272_s11  ;;  %1068 = vrot.lane.b32.xlu0 %v3595_v20, %s3272_s11 }
  0xba   : > { %v690_v53 = vpop.permute.xlu1 %689  ;;  %v696_v1 = vpop.permute.xlu0 %695 }
  0xbb   : > { %773 = vst.msk [vmem:[#allocation3 + $0x68] sm:$0xff] %vm759_vm2, %v690_v53  ;;  %776 = vst.msk [vmem:[#allocation3 + $0x80] sm:$0xff] %vm759_vm2, %v696_v1 }
  0xbc   : > { %1066 = vrot.lane.b32.xlu1 %v3606_v25, %s3272_s11  ;;  %1072 = vrot.lane.b32.xlu0 %v3610_v26, %s3272_s11 }
  0xbe   : > { %v694_v9 = vpop.permute.xlu1 %693  ;;  %v700_v11 = vpop.permute.xlu0 %699 }
  0xbf   : > { %775 = vst.msk [vmem:[#allocation3 + $0x78] sm:$0xff] %vm759_vm2, %v694_v9  ;;  %778 = vst.msk [vmem:[#allocation3 + $0x90] sm:$0xff] %vm759_vm2, %v700_v11  ;;  %v2181_v11 = vld [vmem:[%s4558_s3] sm:$0xff] }
  0xc0   : > { %1070 = vrot.lane.b32.xlu1 %v3612_v27, %s3272_s11  ;;  %1076 = vrot.lane.b32.xlu0 %v3614_v28, %s3272_s11 }
  0xc2   : > { %v698_v57 = vpop.permute.xlu1 %697  ;;  %v704_v59 = vpop.permute.xlu0 %703 }
  0xc3   : > { %777 = vst.msk [vmem:[#allocation3 + $0x88] sm:$0xff] %vm759_vm2, %v698_v57  ;;  %780 = vst.msk [vmem:[#allocation3 + $0xa0] sm:$0xff] %vm759_vm2, %v704_v59 }
  0xc4   : > { %1074 = vrot.lane.b32.xlu1 %v3622_v33, %s3272_s11  ;;  %1080 = vrot.lane.b32.xlu0 %v3624_v34, %s3272_s11 }
  0xc6   : > { %v702_v60 = vpop.permute.xlu1 %701  ;;  %v708_v61 = vpop.permute.xlu0 %707 }
  0xc7   : > { %779 = vst.msk [vmem:[#allocation3 + $0x98] sm:$0xff] %vm759_vm2, %v702_v60  ;;  %782 = vst.msk [vmem:[#allocation3 + $0xb0] sm:$0xff] %vm759_vm2, %v708_v61 }
  0xc8   : > { %1078 = vrot.lane.b32.xlu1 %v3626_v35, %s3272_s11  ;;  %1084 = vrot.lane.b32.xlu0 %v3636_v36, %s3272_s11 }
  0xca   : > { %v706_v62 = vpop.permute.xlu1 %705  ;;  %v712_v63 = vpop.permute.xlu0 %711 }
  0xcb   : > { %781 = vst.msk [vmem:[#allocation3 + $0xa8] sm:$0xff] %vm759_vm2, %v706_v62  ;;  %784 = vst.msk [vmem:[#allocation3 + $0xc0] sm:$0xff] %vm759_vm2, %v712_v63 }
  0xcc   : > { %1082 = vrot.lane.b32.xlu1 %v3638_v37, %s3272_s11  ;;  %1245 = vrot.lane.b32.xlu0 %v3484_v18, %s3273_s12 }
  0xce   : > { %v710_v0 = vpop.permute.xlu1 %709  ;;  %v716_v3 = vpop.permute.xlu0 %715 }
  0xcf   : > { %783 = vst.msk [vmem:[#allocation3 + $0xb8] sm:$0xff] %vm759_vm2, %v710_v0  ;;  %786 = vst.msk [vmem:[#allocation3 + $0xd0] sm:$0xff] %vm759_vm2, %v716_v3 }
  0xd0   : > { %1086 = vrot.lane.b32.xlu1 %v3648_v39, %s3272_s11  ;;  %1438 = vrot.lane.b32.xlu0 %v3694_v10, %s3274_s13 }
  0xd2   : > { %v714_v4 = vpop.permute.xlu1 %713  ;;  %v720_v48 = vpop.permute.xlu0 %719 }
  0xd3   : > { %785 = vst.msk [vmem:[#allocation3 + $0xc8] sm:$0xff] %vm759_vm2, %v714_v4  ;;  %788 = vst.msk [vmem:[#allocation3 + $0xe0] sm:$0xff] %vm759_vm2, %v720_v48 }
  0xd4   : > { %1247 = vrot.lane.b32.xlu1 %v3504_v29, %s3273_s12  ;;  %1634 = vrot.lane.b32.xlu0 %v3534_v52, %s3275_s14  ;;  %v2185_v29 = vld [vmem:[%s4558_s3 + $0x20] sm:$0xf] }
  0xd5   : > { %3142 = vmatprep.subr.msk.mxu0 %vm2290_vm4, %v2185_v29  ;;  %3200 = vmatprep.subr.msk.mxu1 %vm2290_vm4, %v2185_v29 }
  0xd6   : > { %v718_v18 = vpop.permute.xlu1 %717  ;;  %v724_v5 = vpop.permute.xlu0 %723  ;;  %3143 = vmatpush3.msk.msra.mxu0 %vm2290_vm4, %v2185_v29  ;;  %3205 = vmatpush3.msk.msra.mxu1 %vm2290_vm4, %v2185_v29 }
  0xd7   : > { %787 = vst.msk [vmem:[#allocation3 + $0xd8] sm:$0xff] %vm759_vm2, %v718_v18  ;;  %790 = vst.msk [vmem:[#allocation3 + $0xf0] sm:$0xff] %vm759_vm2, %v724_v5 }
  0xd8   : > { %1440 = vrot.lane.b32.xlu1 %v3704_v13, %s3274_s13  ;;  %1827 = vrot.lane.b32.xlu0 %v3486_v19, %s3276_s15  ;;  %v2184_v13 = vld [vmem:[%s4558_s3 + $0x18] sm:$0xff] }
  0xd9   : > { %3144 = vmatprep.subr.mxu0 %v2184_v13  ;;  %3201 = vmatprep.subr.mxu1 %v2184_v13 }
  0xda   : > { %v722_v52 = vpop.permute.xlu1 %721  ;;  %v857_v10 = vpop.permute.xlu0 %856  ;;  %3145 = vmatpush3.msra.mxu0 %v2184_v13  ;;  %3206 = vmatpush3.msra.mxu1 %v2184_v13  ;;  %v3011_v13 = vld [vmem:[#allocation2 + $0x91] sm:$0xff] }
  0xdb   : > { %789 = vst.msk [vmem:[#allocation3 + $0xe8] sm:$0xff] %vm759_vm2, %v722_v52  ;;  %3146 = vmatprep.subr.mxu0 %v2183_v6  ;;  %3202 = vmatprep.subr.mxu1 %v2183_v6 }
  0xdc   : > { %953 = vst.msk [vmem:[#allocation3] sm:$0xff] %vm952_vm3, %v857_v10  ;;  %1636 = vrot.lane.b32.xlu1 %v3573_v14, %s3275_s14  ;;  %1829 = vrot.lane.b32.xlu0 %v3540_v55, %s3276_s15  ;;  %v2182_v14 = vld [vmem:[%s4558_s3 + $0x8] sm:$0xff] }
  0xdd   : > { %3147 = vmatpush3.msra.mxu0 %v2183_v6  ;;  %3207 = vmatpush3.msra.mxu1 %v2183_v6 }
  0xde   : > { %v726_v7 = vpop.permute.xlu1 %725  ;;  %v861_v53 = vpop.permute.xlu0 %860  ;;  %3148 = vmatprep.subr.mxu0 %v2182_v14  ;;  %3203 = vmatprep.subr.mxu1 %v2182_v14 }
  0xdf   : > { %791 = vst.msk [vmem:[#allocation3 + $0xf8] sm:$0xff] %vm759_vm2, %v726_v7  ;;  %3149 = vmatpush3.msra.mxu0 %v2182_v14  ;;  %3208 = vmatpush3.msra.mxu1 %v2182_v14 }
  0xe0   : > { %955 = vst.msk [vmem:[#allocation3 + $0x10] sm:$0xff] %vm952_vm3, %v861_v53  ;;  %1249 = vrot.lane.b32.xlu1 %v3486_v19, %s3273_s12  ;;  %1251 = vrot.lane.b32.xlu0 %v3540_v55, %s3273_s12  ;;  %v3012_v53 = vld [vmem:[#allocation2 + $0x99] sm:$0xff] }
  0xe1   : > { %3150 = vmatprep.subr.mxu0 %v2181_v11  ;;  %3204 = vmatprep.subr.mxu1 %v2181_v11 }
  0xe2   : > { %v859_v1 = vpop.permute.xlu1 %858  ;;  %v865_v9 = vpop.permute.xlu0 %864  ;;  %3151 = vmatpush3.msra.mxu0 %v2181_v11  ;;  %3209 = vmatpush3.msra.mxu1 %v2181_v11 }
  0xe3   : > { %954 = vst.msk [vmem:[#allocation3 + $0x8] sm:$0xff] %vm952_vm3, %v859_v1  ;;  %957 = vst.msk [vmem:[#allocation3 + $0x20] sm:$0xff] %vm952_vm3, %v865_v9 }
  0xe4   : > { %2020 = vrot.lane.b32.xlu1 %v3699_v12, %s3277_s8  ;;  %2022 = vrot.lane.b32.xlu0 %v3712_v22, %s3277_s8 }
  0xe6   : > { %v863_v19 = vpop.permute.xlu1 %862  ;;  %v869_v55 = vpop.permute.xlu0 %868 }
  0xe7   : > { %956 = vst.msk [vmem:[#allocation3 + $0x18] sm:$0xff] %vm952_vm3, %v863_v19  ;;  %959 = vst.msk [vmem:[#allocation3 + $0x30] sm:$0xff] %vm952_vm3, %v869_v55  ;;  %v3013_v19 = vld [vmem:[#allocation2 + $0xa9] sm:$0xff] }
  0xe8   : > { %1442 = vrot.lane.b32.xlu1 %v3699_v12, %s3274_s13  ;;  %1638 = vrot.lane.b32.xlu0 %v3538_v54, %s3275_s14 }
  0xea   : > { %v867_v57 = vpop.permute.xlu1 %866  ;;  %v873_v59 = vpop.permute.xlu0 %872 }
  0xeb   : > { %958 = vst.msk [vmem:[#allocation3 + $0x28] sm:$0xff] %vm952_vm3, %v867_v57  ;;  %961 = vst.msk [vmem:[#allocation3 + $0x40] sm:$0xff] %vm952_vm3, %v873_v59  ;;  %v3014_v59 = vld [vmem:[#allocation2 + $0xb1] sm:$0xff] }
  0xec   : > { %1444 = vrot.lane.b32.xlu1 %v3712_v22, %s3274_s13  ;;  %1831 = vrot.lane.b32.xlu0 %v3506_v30, %s3276_s15 }
  0xee   : > { %v871_v60 = vpop.permute.xlu1 %870  ;;  %v877_v61 = vpop.permute.xlu0 %876 }
  0xef   : > { %960 = vst.msk [vmem:[#allocation3 + $0x38] sm:$0xff] %vm952_vm3, %v871_v60  ;;  %963 = vst.msk [vmem:[#allocation3 + $0x50] sm:$0xff] %vm952_vm3, %v877_v61 }
  0xf0   : > { %1640 = vrot.lane.b32.xlu1 %v3593_v17, %s3275_s14  ;;  %1833 = vrot.lane.b32.xlu0 %v3569_v8, %s3276_s15 }
  0xf2   : > { %v875_v54 = vpop.permute.xlu1 %874  ;;  %v881_v12 = vpop.permute.xlu0 %880 }
  0xf3   : > { %962 = vst.msk [vmem:[#allocation3 + $0x48] sm:$0xff] %vm952_vm3, %v875_v54  ;;  %965 = vst.msk [vmem:[#allocation3 + $0x60] sm:$0xff] %vm952_vm3, %v881_v12 }
  0xf4   : > { %1253 = vrot.lane.b32.xlu1 %v3506_v30, %s3273_s12  ;;  %1255 = vrot.lane.b32.xlu0 %v3569_v8, %s3273_s12 }
  0xf6   : > { %v879_v22 = vpop.permute.xlu1 %878  ;;  %v885_v62 = vpop.permute.xlu0 %884 }
  0xf7   : > { %964 = vst.msk [vmem:[#allocation3 + $0x58] sm:$0xff] %vm952_vm3, %v879_v22  ;;  %967 = vst.msk [vmem:[#allocation3 + $0x70] sm:$0xff] %vm952_vm3, %v885_v62  ;;  %v3015_v22 = vld [vmem:[#allocation2 + $0xc1] sm:$0xff] }
  0xf8   : > { %2024 = vrot.lane.b32.xlu1 %v3706_v16, %s3277_s8  ;;  %2026 = vrot.lane.b32.xlu0 %v3720_v24, %s3277_s8 }
  0xfa   : > { %v883_v17 = vpop.permute.xlu1 %882  ;;  %v889_v63 = vpop.permute.xlu0 %888 }
  0xfb   : > { %966 = vst.msk [vmem:[#allocation3 + $0x68] sm:$0xff] %vm952_vm3, %v883_v17  ;;  %969 = vst.msk [vmem:[#allocation3 + $0x80] sm:$0xff] %vm952_vm3, %v889_v63  ;;  %v3016_v63 = vld [vmem:[#allocation2 + $0xc9] sm:$0xff] }
  0xfc   : > { %1446 = vrot.lane.b32.xlu1 %v3706_v16, %s3274_s13  ;;  %1642 = vrot.lane.b32.xlu0 %v3575_v15, %s3275_s14 }
  0xfe   : > { %v887_v30 = vpop.permute.xlu1 %886  ;;  %v893_v8 = vpop.permute.xlu0 %892 }
  0xff   : > { %968 = vst.msk [vmem:[#allocation3 + $0x78] sm:$0xff] %vm952_vm3, %v887_v30  ;;  %971 = vst.msk [vmem:[#allocation3 + $0x90] sm:$0xff] %vm952_vm3, %v893_v8 }
 0x100   : > { %1448 = vrot.lane.b32.xlu1 %v3720_v24, %s3274_s13  ;;  %1835 = vrot.lane.b32.xlu0 %v3542_v56, %s3276_s15 }
 0x102   : > { %v891_v0 = vpop.permute.xlu1 %890  ;;  %v897_v3 = vpop.permute.xlu0 %896 }
 0x103   : > { %970 = vst.msk [vmem:[#allocation3 + $0x88] sm:$0xff] %vm952_vm3, %v891_v0  ;;  %973 = vst.msk [vmem:[#allocation3 + $0xa0] sm:$0xff] %vm952_vm3, %v897_v3 }
 0x104   : > { %1644 = vrot.lane.b32.xlu1 %v3606_v25, %s3275_s14  ;;  %1837 = vrot.lane.b32.xlu0 %v3588_v2, %s3276_s15 }
 0x106   : > { %v895_v15 = vpop.permute.xlu1 %894  ;;  %v901_v16 = vpop.permute.xlu0 %900 }
 0x107   : > { %972 = vst.msk [vmem:[#allocation3 + $0x98] sm:$0xff] %vm952_vm3, %v895_v15  ;;  %975 = vst.msk [vmem:[#allocation3 + $0xb0] sm:$0xff] %vm952_vm3, %v901_v16 }
 0x108   : > { %1257 = vrot.lane.b32.xlu1 %v3542_v56, %s3273_s12  ;;  %1259 = vrot.lane.b32.xlu0 %v3588_v2, %s3273_s12  ;;  %v3009_v56 = vld [vmem:[#allocation2 + $0x79] sm:$0xff] }
 0x10a   : > { %v899_v24 = vpop.permute.xlu1 %898  ;;  %v905_v4 = vpop.permute.xlu0 %904 }
 0x10b   : > { %974 = vst.msk [vmem:[#allocation3 + $0xa8] sm:$0xff] %vm952_vm3, %v899_v24  ;;  %977 = vst.msk [vmem:[#allocation3 + $0xc0] sm:$0xff] %vm952_vm3, %v905_v4  ;;  %v3017_v24 = vld [vmem:[#allocation2 + $0xd9] sm:$0xff] }
 0x10c   : > { %2028 = vrot.lane.b32.xlu1 %v3714_v23, %s3277_s8  ;;  %2030 = vrot.lane.b32.xlu0 %v3728_v32, %s3277_s8 }
 0x10e   : > { %v903_v25 = vpop.permute.xlu1 %902  ;;  %v909_v48 = vpop.permute.xlu0 %908 }
 0x10f   : > { %976 = vst.msk [vmem:[#allocation3 + $0xb8] sm:$0xff] %vm952_vm3, %v903_v25  ;;  %979 = vst.msk [vmem:[#allocation3 + $0xd0] sm:$0xff] %vm952_vm3, %v909_v48  ;;  %v3018_v48 = vld [vmem:[#allocation2 + $0xe1] sm:$0xff] }
 0x110   : > { %1450 = vrot.lane.b32.xlu1 %v3714_v23, %s3274_s13  ;;  %1646 = vrot.lane.b32.xlu0 %v3595_v20, %s3275_s14  ;;  %v2916_v20 = vld [vmem:[#allocation2 + $0x81] sm:$0xff] }
 0x112   : > { %v907_v2 = vpop.permute.xlu1 %906  ;;  %v913_v18 = vpop.permute.xlu0 %912 }
 0x113   : > { %978 = vst.msk [vmem:[#allocation3 + $0xc8] sm:$0xff] %vm952_vm3, %v907_v2  ;;  %981 = vst.msk [vmem:[#allocation3 + $0xe0] sm:$0xff] %vm952_vm3, %v913_v18  ;;  %v3050_v18 = vld [vmem:[#allocation2 + $0xe2] sm:$0xff] }
 0x114   : > { %1452 = vrot.lane.b32.xlu1 %v3728_v32, %s3274_s13  ;;  %1839 = vrot.lane.b32.xlu0 %v3009_v56, %s3276_s15 }
 0x116   : > { %v911_v5 = vpop.permute.xlu1 %910  ;;  %v917_v29 = vpop.permute.xlu0 %916 }
 0x117   : > { %980 = vst.msk [vmem:[#allocation3 + $0xd8] sm:$0xff] %vm952_vm3, %v911_v5  ;;  %983 = vst.msk [vmem:[#allocation3 + $0xf0] sm:$0xff] %vm952_vm3, %v917_v29 }
 0x118   : > { %1648 = vrot.lane.b32.xlu1 %v3612_v27, %s3275_s14  ;;  %1841 = vrot.lane.b32.xlu0 %v3597_v21, %s3276_s15 }
 0x11a   : > { %v915_v23 = vpop.permute.xlu1 %914  ;;  %v1053_v52 = vpop.permute.xlu0 %1052 }
 0x11b   : > { %982 = vst.msk [vmem:[#allocation3 + $0xe8] sm:$0xff] %vm952_vm3, %v915_v23 }
 0x11c   : > { %1149 = vst.msk [vmem:[#allocation3] sm:$0xff] %vm1148_vm5, %v1053_v52  ;;  %1261 = vrot.lane.b32.xlu1 %v3009_v56, %s3273_s12  ;;  %1263 = vrot.lane.b32.xlu0 %v2916_v20, %s3273_s12 }
 0x11e   : > { %v919_v32 = vpop.permute.xlu1 %918  ;;  %v1057_v10 = vpop.permute.xlu0 %1056 }
 0x11f   : > { %984 = vst.msk [vmem:[#allocation3 + $0xf8] sm:$0xff] %vm952_vm3, %v919_v32 }
 0x120   : > { %1151 = vst.msk [vmem:[#allocation3 + $0x10] sm:$0xff] %vm1148_vm5, %v1057_v10  ;;  %2032 = vrot.lane.b32.xlu1 %v3722_v31, %s3277_s8  ;;  %2034 = vrot.lane.b32.xlu0 %v3736_v45, %s3277_s8 }
 0x122   : > { %v1055_v21 = vpop.permute.xlu1 %1054  ;;  %v1061_v27 = vpop.permute.xlu0 %1060 }
 0x123   : > { %1150 = vst.msk [vmem:[#allocation3 + $0x8] sm:$0xff] %vm1148_vm5, %v1055_v21  ;;  %1153 = vst.msk [vmem:[#allocation3 + $0x20] sm:$0xff] %vm1148_vm5, %v1061_v27  ;;  %v386_v21 = vld [vmem:[%s3404_s30 + $0xf0] sm:$0xff]  ;;  %v3243_v27 = vld [vmem:[%s4556_s1] ss:$0 sm:$0xff] }
 0x124   : > { %1454 = vrot.lane.b32.xlu1 %v3722_v31, %s3274_s13  ;;  %1650 = vrot.lane.b32.xlu0 %v3610_v26, %s3275_s14 }
 0x126   : > { %v1059_v6 = vpop.permute.xlu1 %1058  ;;  %v1065_v7 = vpop.permute.xlu0 %1064 }
 0x127   : > { %1152 = vst.msk [vmem:[#allocation3 + $0x18] sm:$0xff] %vm1148_vm5, %v1059_v6  ;;  %1155 = vst.msk [vmem:[#allocation3 + $0x30] sm:$0xff] %vm1148_vm5, %v1065_v7  ;;  %v3244_v6 = vld [vmem:[%s4557_s2] ss:$0 sm:$0xff] }
 0x128   : > { %1456 = vrot.lane.b32.xlu1 %v3736_v45, %s3274_s13  ;;  %1843 = vrot.lane.b32.xlu0 %v3011_v13, %s3276_s15 }
 0x12a   : > { %v1063_v14 = vpop.permute.xlu1 %1062  ;;  %v1069_v1 = vpop.permute.xlu0 %1068 }
 0x12b   : > { %1154 = vst.msk [vmem:[#allocation3 + $0x28] sm:$0xff] %vm1148_vm5, %v1063_v14  ;;  %1157 = vst.msk [vmem:[#allocation3 + $0x40] sm:$0xff] %vm1148_vm5, %v1069_v1  ;;  %v387_v1 = vld [vmem:[%s3404_s30 + $0xf8] sm:$0xff] }
 0x12c   : > { %1652 = vrot.lane.b32.xlu1 %v3622_v33, %s3275_s14  ;;  %1845 = vrot.lane.b32.xlu0 %v3012_v53, %s3276_s15 }
 0x12e   : > { %v1067_v26 = vpop.permute.xlu1 %1066  ;;  %v1073_v31 = vpop.permute.xlu0 %1072 }
 0x12f   : > { %1156 = vst.msk [vmem:[#allocation3 + $0x38] sm:$0xff] %vm1148_vm5, %v1067_v26  ;;  %1159 = vst.msk [vmem:[#allocation3 + $0x50] sm:$0xff] %vm1148_vm5, %v1073_v31  ;;  %v426_v31 = vmul.f32 %v3243_v27, %v387_v1  ;;  %v3025_v1 = vld [vmem:[#allocation2 + $0x139] sm:$0xff] }
 0x130   : > { %1265 = vrot.lane.b32.xlu1 %v3011_v13, %s3273_s12  ;;  %1267 = vrot.lane.b32.xlu0 %v3012_v53, %s3273_s12  ;;  %v425_v13 = vmul.f32 %v3243_v27, %v386_v21 }
 0x132   : > { %v1071_v45 = vpop.permute.xlu1 %1070  ;;  %v1077_v9 = vpop.permute.xlu0 %1076  ;;  %v464_v7 = vadd.f32 %v3244_v6, %v425_v13  ;;  %v2994_v13 = vld [vmem:[#allocation2 + $0x140] sm:$0xff] }
 0x133   : > { %1158 = vst.msk [vmem:[#allocation3 + $0x48] sm:$0xff] %vm1148_vm5, %v1071_v45  ;;  %1161 = vst.msk [vmem:[#allocation3 + $0x60] sm:$0xff] %vm1148_vm5, %v1077_v9  ;;  %v3019_v45 = vld [vmem:[#allocation2 + $0xf1] sm:$0xff]  ;;  %v465_v9 = vadd.f32 %v3244_v6, %v426_v31 }
 0x134   : > { %2036 = vrot.lane.b32.xlu1 %v3730_v44, %s3277_s8  ;;  %2038 = vrot.lane.b32.xlu0 %v3744_v49, %s3277_s8  ;;  %v496_v26 = vmax.f32 %v464_v7, 0.0 }
 0x136   : > { %v1075_v33 = vpop.permute.xlu1 %1074  ;;  %v1081_v11 = vpop.permute.xlu0 %1080  ;;  %529 = vst.msk [vmem:[#allocation2 + $0x181] sm:$0xff] %vm300_vm0, %v496_v26 }
 0x137   : > { %1160 = vst.msk [vmem:[#allocation3 + $0x58] sm:$0xff] %vm1148_vm5, %v1075_v33  ;;  %1163 = vst.msk [vmem:[#allocation3 + $0x70] sm:$0xff] %vm1148_vm5, %v1081_v11 }
 0x138   : > { %1458 = vrot.lane.b32.xlu1 %v3730_v44, %s3274_s13  ;;  %1654 = vrot.lane.b32.xlu0 %v3614_v28, %s3275_s14 }
 0x13a   : > { %v1079_v55 = vpop.permute.xlu1 %1078  ;;  %v1085_v57 = vpop.permute.xlu0 %1084 }
 0x13b   : > { %1162 = vst.msk [vmem:[#allocation3 + $0x68] sm:$0xff] %vm1148_vm5, %v1079_v55  ;;  %1165 = vst.msk [vmem:[#allocation3 + $0x80] sm:$0xff] %vm1148_vm5, %v1085_v57  ;;  %v497_v55 = vmax.f32 %v465_v9, 0.0  ;;  %v3051_v57 = vld [vmem:[#allocation2 + $0xf2] sm:$0xff] }
 0x13c   : > { %1460 = vrot.lane.b32.xlu1 %v3744_v49, %s3274_s13  ;;  %1847 = vrot.lane.b32.xlu0 %v3013_v19, %s3276_s15 }
 0x13d   : > { %530 = vst.msk [vmem:[#allocation2 + $0x189] sm:$0xff] %vm300_vm0, %v497_v55 }
 0x13e   : > { %v1083_v60 = vpop.permute.xlu1 %1082  ;;  %v1246_v61 = vpop.permute.xlu0 %1245 }
 0x13f   : > { %1164 = vst.msk [vmem:[#allocation3 + $0x78] sm:$0xff] %vm1148_vm5, %v1083_v60 }
 0x140   : > { %1342 = vst.msk [vmem:[#allocation3] sm:$0xff] %vm1341_vm6, %v1246_v61  ;;  %1656 = vrot.lane.b32.xlu1 %v3626_v35, %s3275_s14  ;;  %1849 = vrot.lane.b32.xlu0 %v3014_v59, %s3276_s15 }
 0x142   : > { %v1087_v28 = vpop.permute.xlu1 %1086  ;;  %v1439_v44 = vpop.permute.xlu0 %1438 }
 0x143   : > { %1166 = vst.msk [vmem:[#allocation3 + $0x88] sm:$0xff] %vm1148_vm5, %v1087_v28 }
 0x144   : > { %1535 = vst.msk [vmem:[#allocation3] sm:$0xff] %vm1534_vm7, %v1439_v44  ;;  %1269 = vrot.lane.b32.xlu1 %v3013_v19, %s3273_s12  ;;  %1271 = vrot.lane.b32.xlu0 %v3014_v59, %s3273_s12  ;;  %v3020_v19 = vld [vmem:[#allocation2 + $0xf9] sm:$0xff] }
 0x145   : > { %v3052_v44 = vld [vmem:[#allocation2 + $0xfa] sm:$0xff] }
 0x146   : > { %v1248_v49 = vpop.permute.xlu1 %1247  ;;  %v1635_v54 = vpop.permute.xlu0 %1634 }
 0x147   : > { %1343 = vst.msk [vmem:[#allocation3 + $0x8] sm:$0xff] %vm1341_vm6, %v1248_v49 }
 0x148   : > { %1731 = vst.msk [vmem:[#allocation3] sm:$0xff] %vm1730_vm8, %v1635_v54  ;;  %2040 = vrot.lane.b32.xlu1 %v3738_v46, %s3277_s8  ;;  %2042 = vrot.lane.b32.xlu0 %v3752_v51, %s3277_s8 }
 0x14a   : > { %v1441_v35 = vpop.permute.xlu1 %1440  ;;  %v1828_v12 = vpop.permute.xlu0 %1827 }
 0x14b   : > { %1536 = vst.msk [vmem:[#allocation3 + $0x8] sm:$0xff] %vm1534_vm7, %v1441_v35 }
 0x14c   : > { %1924 = vst.msk [vmem:[#allocation3] sm:$0xff] %vm1923_vm9, %v1828_v12  ;;  %1462 = vrot.lane.b32.xlu1 %v3738_v46, %s3274_s13  ;;  %1658 = vrot.lane.b32.xlu0 %v3624_v34, %s3275_s14 }
 0x14e   : > { %v1637_v62 = vpop.permute.xlu1 %1636  ;;  %v1830_v17 = vpop.permute.xlu0 %1829 }
 0x14f   : > { %1732 = vst.msk [vmem:[#allocation3 + $0x8] sm:$0xff] %vm1730_vm8, %v1637_v62 }
 0x150   : > { %1925 = vst.msk [vmem:[#allocation3 + $0x8] sm:$0xff] %vm1923_vm9, %v1830_v17  ;;  %1464 = vrot.lane.b32.xlu1 %v3752_v51, %s3274_s13  ;;  %1851 = vrot.lane.b32.xlu0 %v3015_v22, %s3276_s15  ;;  %v3021_v17 = vld [vmem:[#allocation2 + $0x109] sm:$0xff] }
 0x152   : > { %v1250_v30 = vpop.permute.xlu1 %1249  ;;  %v1252_v8 = vpop.permute.xlu0 %1251 }
 0x153   : > { %1344 = vst.msk [vmem:[#allocation3 + $0x10] sm:$0xff] %vm1341_vm6, %v1250_v30  ;;  %1345 = vst.msk [vmem:[#allocation3 + $0x18] sm:$0xff] %vm1341_vm6, %v1252_v8  ;;  %v3022_v8 = vld [vmem:[#allocation2 + $0x111] sm:$0xff] }
 0x154   : > { %1660 = vrot.lane.b32.xlu1 %v3638_v37, %s3275_s14  ;;  %1853 = vrot.lane.b32.xlu0 %v3016_v63, %s3276_s15 }
 0x156   : > { %v2021_v34 = vpop.permute.xlu1 %2020  ;;  %v2023_v46 = vpop.permute.xlu0 %2022 }
 0x157   : > { %2117 = vst.msk [vmem:[#allocation3] sm:$0xff] %vm2116_vm10, %v2021_v34  ;;  %2118 = vst.msk [vmem:[#allocation3 + $0x8] sm:$0xff] %vm2116_vm10, %v2023_v46 }
 0x158   : > { %1273 = vrot.lane.b32.xlu1 %v3015_v22, %s3273_s12  ;;  %1275 = vrot.lane.b32.xlu0 %v3016_v63, %s3273_s12 }
 0x15a   : > { %v1443_v51 = vpop.permute.xlu1 %1442  ;;  %v1639_v0 = vpop.permute.xlu0 %1638 }
 0x15b   : > { %1537 = vst.msk [vmem:[#allocation3 + $0x10] sm:$0xff] %vm1534_vm7, %v1443_v51 }
 0x15c   : > { %1733 = vst.msk [vmem:[#allocation3 + $0x10] sm:$0xff] %vm1730_vm8, %v1639_v0  ;;  %2044 = vrot.lane.b32.xlu1 %v3746_v50, %s3277_s8  ;;  %2046 = vrot.lane.b32.xlu0 %v3757_v58, %s3277_s8 }
 0x15e   : > { %v1445_v37 = vpop.permute.xlu1 %1444  ;;  %v1832_v3 = vpop.permute.xlu0 %1831  ;;  %v2149_v15 = vld [vmem:[#allocation3] sm:$0xff]  ;;  %v2150_v16 = vld [vmem:[#allocation3 + $0x8] sm:$0xff] }
 0x15f   : > { %1538 = vst.msk [vmem:[#allocation3 + $0x18] sm:$0xff] %vm1534_vm7, %v1445_v37  ;;  %3152 = vmatprep.mubr.msk.f32.mxu0 %vm2193_vm11, %v2149_v15 }
 0x160   : > { %1926 = vst.msk [vmem:[#allocation3 + $0x10] sm:$0xff] %vm1923_vm9, %v1832_v3  ;;  %1466 = vrot.lane.b32.xlu1 %v3746_v50, %s3274_s13  ;;  %1662 = vrot.lane.b32.xlu0 %v3636_v36, %s3275_s14  ;;  %v3054_v3 = vld [vmem:[#allocation2 + $0x112] sm:$0xff] }
 0x161   : > { %3153 = vmatmul.mubr.msk.f32.vlgmr.msra.gmra.mxu0 %vm2193_vm11, %v2150_v16 }
 0x162   : > { %v1641_v4 = vpop.permute.xlu1 %1640  ;;  %v1834_v25 = vpop.permute.xlu0 %1833 }
 0x163   : > { %1734 = vst.msk [vmem:[#allocation3 + $0x18] sm:$0xff] %vm1730_vm8, %v1641_v4 }
 0x164   : > { %1927 = vst.msk [vmem:[#allocation3 + $0x18] sm:$0xff] %vm1923_vm9, %v1834_v25  ;;  %1468 = vrot.lane.b32.xlu1 %v3757_v58, %s3274_s13  ;;  %1855 = vrot.lane.b32.xlu0 %v3017_v24, %s3276_s15  ;;  %v3049_v58 = vld [vmem:[#allocation2 + $0xda] sm:$0xff] }
 0x165   : > { %v2897_v25 = vld [vmem:[#allocation2 + $0x120] sm:$0xff] }
 0x166   : > { %v1254_v56 = vpop.permute.xlu1 %1253  ;;  %v1256_v50 = vpop.permute.xlu0 %1255 }
 0x167   : > { %1346 = vst.msk [vmem:[#allocation3 + $0x20] sm:$0xff] %vm1341_vm6, %v1254_v56  ;;  %1347 = vst.msk [vmem:[#allocation3 + $0x28] sm:$0xff] %vm1341_vm6, %v1256_v50 }
 0x168   : > { %1664 = vrot.lane.b32.xlu1 %v3648_v39, %s3275_s14  ;;  %1857 = vrot.lane.b32.xlu0 %v3018_v48, %s3276_s15 }
 0x16a   : > { %v2025_v36 = vpop.permute.xlu1 %2024  ;;  %v2027_v2 = vpop.permute.xlu0 %2026 }
 0x16b   : > { %2119 = vst.msk [vmem:[#allocation3 + $0x10] sm:$0xff] %vm2116_vm10, %v2025_v36  ;;  %2120 = vst.msk [vmem:[#allocation3 + $0x18] sm:$0xff] %vm2116_vm10, %v2027_v2 }
 0x16c   : > { %1277 = vrot.lane.b32.xlu1 %v3017_v24, %s3273_s12  ;;  %1279 = vrot.lane.b32.xlu0 %v3018_v48, %s3273_s12 }
 0x16e   : > { %v1447_v5 = vpop.permute.xlu1 %1446  ;;  %v1643_v29 = vpop.permute.xlu0 %1642 }
 0x16f   : > { %1539 = vst.msk [vmem:[#allocation3 + $0x20] sm:$0xff] %vm1534_vm7, %v1447_v5 }
 0x170   : > { %1735 = vst.msk [vmem:[#allocation3 + $0x20] sm:$0xff] %vm1730_vm8, %v1643_v29  ;;  %2048 = vrot.lane.b32.xlu1 %v3049_v58, %s3277_s8  ;;  %2050 = vrot.lane.b32.xlu0 %v3050_v18, %s3277_s8  ;;  %v3055_v29 = vld [vmem:[#allocation2 + $0x122] sm:$0xff] }
 0x172   : > { %v1449_v39 = vpop.permute.xlu1 %1448  ;;  %v1836_v20 = vpop.permute.xlu0 %1835  ;;  %v2151_v23 = vld [vmem:[#allocation3 + $0x10] sm:$0xff]  ;;  %v2152_v52 = vld [vmem:[#allocation3 + $0x18] sm:$0xff] }
 0x173   : > { %1540 = vst.msk [vmem:[#allocation3 + $0x28] sm:$0xff] %vm1534_vm7, %v1449_v39  ;;  %3155 = vmatprep.mubr.msk.f32.mxu0 %vm2193_vm11, %v2151_v23  ;;  %v3056_v23 = vld [vmem:[#allocation2 + $0x12a] sm:$0xff] }
 0x174   : > { %1928 = vst.msk [vmem:[#allocation3 + $0x20] sm:$0xff] %vm1923_vm9, %v1836_v20  ;;  %1470 = vrot.lane.b32.xlu1 %v3049_v58, %s3274_s13  ;;  %3156 = vmatmul.mubr.msk.f32.gmra.mxu0 %vm2193_vm11, %v2152_v52 }
 0x175   : > { %1666 = vrot.lane.b32.xlu0 %v3640_v38, %s3275_s14 }
 0x176   : > { %v1645_v32 = vpop.permute.xlu1 %1644  ;;  %v1838_v10 = vpop.permute.xlu0 %1837 }
 0x177   : > { %1736 = vst.msk [vmem:[#allocation3 + $0x28] sm:$0xff] %vm1730_vm8, %v1645_v32 }
 0x178   : > { %1929 = vst.msk [vmem:[#allocation3 + $0x28] sm:$0xff] %vm1923_vm9, %v1838_v10  ;;  %1472 = vrot.lane.b32.xlu1 %v3050_v18, %s3274_s13  ;;  %v3024_v18 = vld [vmem:[#allocation2 + $0x129] sm:$0xff]  ;;  %v2993_v10 = vld [vmem:[#allocation2 + $0x138] sm:$0xff] }
 0x179   : > { %1668 = vrot.lane.b32.xlu0 %v3652_v41, %s3275_s14 }
 0x17a   : > { %v1258_v53 = vpop.permute.xlu1 %1257  ;;  %v1260_v14 = vpop.permute.xlu0 %1259 }
 0x17b   : > { %1348 = vst.msk [vmem:[#allocation3 + $0x30] sm:$0xff] %vm1341_vm6, %v1258_v53  ;;  %1349 = vst.msk [vmem:[#allocation3 + $0x38] sm:$0xff] %vm1341_vm6, %v1260_v14 }
 0x17c   : > { %1088 = vrot.lane.b32.xlu1 %v3640_v38, %s3272_s11 }
 0x17d   : > { %1090 = vrot.lane.b32.xlu0 %v3652_v41, %s3272_s11 }
 0x17e   : > { %v2029_v33 = vpop.permute.xlu1 %2028  ;;  %v2031_v11 = vpop.permute.xlu0 %2030 }
 0x17f   : > { %2121 = vst.msk [vmem:[#allocation3 + $0x20] sm:$0xff] %vm2116_vm10, %v2029_v33  ;;  %2122 = vst.msk [vmem:[#allocation3 + $0x28] sm:$0xff] %vm2116_vm10, %v2031_v11  ;;  %v3057_v11 = vld [vmem:[#allocation2 + $0x13a] sm:$0xff] }
 0x180   : > { %1859 = vrot.lane.b32.xlu1 %v3019_v45, %s3276_s15 }
 0x181   : > { %1861 = vrot.lane.b32.xlu0 %v3020_v19, %s3276_s15 }
 0x182   : > { %v1451_v38 = vpop.permute.xlu1 %1450  ;;  %v1647_v41 = vpop.permute.xlu0 %1646 }
 0x183   : > { %1541 = vst.msk [vmem:[#allocation3 + $0x30] sm:$0xff] %vm1534_vm7, %v1451_v38  ;;  %v3058_v38 = vld [vmem:[#allocation2 + $0x142] sm:$0xff] }
 0x184   : > { %1737 = vst.msk [vmem:[#allocation3 + $0x30] sm:$0xff] %vm1730_vm8, %v1647_v41  ;;  %1281 = vrot.lane.b32.xlu1 %v3019_v45, %s3273_s12  ;;  %v3026_v45 = vld [vmem:[#allocation2 + $0x141] sm:$0xff] }
 0x185   : > { %1283 = vrot.lane.b32.xlu0 %v3020_v19, %s3273_s12 }
 0x186   : > { %v1453_v59 = vpop.permute.xlu1 %1452  ;;  %v1840_v60 = vpop.permute.xlu0 %1839  ;;  %v2153_v61 = vld [vmem:[#allocation3 + $0x20] sm:$0xff]  ;;  %v2154_v28 = vld [vmem:[#allocation3 + $0x28] sm:$0xff] }
 0x187   : > { %1542 = vst.msk [vmem:[#allocation3 + $0x38] sm:$0xff] %vm1534_vm7, %v1453_v59  ;;  %3158 = vmatprep.mubr.msk.f32.mxu0 %vm2193_vm11, %v2153_v61  ;;  %v2995_v59 = vld [vmem:[#allocation2 + $0x150] sm:$0xff] }
 0x188   : > { %1930 = vst.msk [vmem:[#allocation3 + $0x30] sm:$0xff] %vm1923_vm9, %v1840_v60  ;;  %2052 = vrot.lane.b32.xlu1 %v3051_v57, %s3277_s8  ;;  %3159 = vmatmul.mubr.msk.f32.gmra.mxu0 %vm2193_vm11, %v2154_v28 }
 0x189   : > { %2054 = vrot.lane.b32.xlu0 %v3052_v44, %s3277_s8 }
 0x18a   : > { %v1649_v49 = vpop.permute.xlu1 %1648  ;;  %v1842_v54 = vpop.permute.xlu0 %1841 }
 0x18b   : > { %1738 = vst.msk [vmem:[#allocation3 + $0x38] sm:$0xff] %vm1730_vm8, %v1649_v49  ;;  %v2996_v49 = vld [vmem:[#allocation2 + $0x158] sm:$0xff] }
 0x18c   : > { %1931 = vst.msk [vmem:[#allocation3 + $0x38] sm:$0xff] %vm1923_vm9, %v1842_v54  ;;  %1474 = vrot.lane.b32.xlu1 %v3051_v57, %s3274_s13 }
 0x18d   : > { %1670 = vrot.lane.b32.xlu0 %v3650_v40, %s3275_s14 }
 0x18e   : > { %v1262_v35 = vpop.permute.xlu1 %1261  ;;  %v1264_v12 = vpop.permute.xlu0 %1263 }
 0x18f   : > { %1350 = vst.msk [vmem:[#allocation3 + $0x40] sm:$0xff] %vm1341_vm6, %v1262_v35  ;;  %1351 = vst.msk [vmem:[#allocation3 + $0x48] sm:$0xff] %vm1341_vm6, %v1264_v12  ;;  %v3027_v12 = vld [vmem:[#allocation2 + $0x151] sm:$0xff] }
 0x190   : > { %1476 = vrot.lane.b32.xlu1 %v3052_v44, %s3274_s13 }
 0x191   : > { %1672 = vrot.lane.b32.xlu0 %v3666_v43, %s3275_s14 }
 0x192   : > { %v2033_v22 = vpop.permute.xlu1 %2032  ;;  %v2035_v62 = vpop.permute.xlu0 %2034 }
 0x193   : > { %2123 = vst.msk [vmem:[#allocation3 + $0x30] sm:$0xff] %vm2116_vm10, %v2033_v22  ;;  %2124 = vst.msk [vmem:[#allocation3 + $0x38] sm:$0xff] %vm2116_vm10, %v2035_v62 }
 0x194   : > { %1092 = vrot.lane.b32.xlu1 %v3650_v40, %s3272_s11  ;;  %v3053_v40 = vld [vmem:[#allocation2 + $0x10a] sm:$0xff] }
 0x195   : > { %1094 = vrot.lane.b32.xlu0 %v3666_v43, %s3272_s11 }
 0x196   : > { %v1455_v63 = vpop.permute.xlu1 %1454  ;;  %v1651_v30 = vpop.permute.xlu0 %1650 }
 0x197   : > { %1543 = vst.msk [vmem:[#allocation3 + $0x40] sm:$0xff] %vm1534_vm7, %v1455_v63 }
 0x198   : > { %1739 = vst.msk [vmem:[#allocation3 + $0x40] sm:$0xff] %vm1730_vm8, %v1651_v30  ;;  %1863 = vrot.lane.b32.xlu1 %v3021_v17, %s3276_s15 }
 0x199   : > { %1865 = vrot.lane.b32.xlu0 %v3022_v8, %s3276_s15 }
 0x19a   : > { %v1457_v34 = vpop.permute.xlu1 %1456  ;;  %v1844_v46 = vpop.permute.xlu0 %1843  ;;  %v2155_v51 = vld [vmem:[#allocation3 + $0x30] sm:$0xff]  ;;  %v2156_v0 = vld [vmem:[#allocation3 + $0x38] sm:$0xff] }
 0x19b   : > { %1544 = vst.msk [vmem:[#allocation3 + $0x48] sm:$0xff] %vm1534_vm7, %v1457_v34  ;;  %3161 = vmatprep.mubr.msk.f32.mxu0 %vm2193_vm11, %v2155_v51 }
 0x19c   : > { %1932 = vst.msk [vmem:[#allocation3 + $0x40] sm:$0xff] %vm1923_vm9, %v1844_v46  ;;  %1285 = vrot.lane.b32.xlu1 %v3021_v17, %s3273_s12  ;;  %3162 = vmatmul.mubr.msk.f32.gmra.mxu0 %vm2193_vm11, %v2156_v0  ;;  %v3028_v17 = vld [vmem:[#allocation2 + $0x159] sm:$0xff] }
 0x19d   : > { %1287 = vrot.lane.b32.xlu0 %v3022_v8, %s3273_s12  ;;  %v3059_v8 = vld [vmem:[#allocation2 + $0x152] sm:$0xff]  ;;  %v3060_v46 = vld [vmem:[#allocation2 + $0x15a] sm:$0xff] }
 0x19e   : > { %v1653_v43 = vpop.permute.xlu1 %1652  ;;  %v1846_v37 = vpop.permute.xlu0 %1845 }
 0x19f   : > { %1740 = vst.msk [vmem:[#allocation3 + $0x48] sm:$0xff] %vm1730_vm8, %v1653_v43 }
 0x1a0   : > { %1933 = vst.msk [vmem:[#allocation3 + $0x48] sm:$0xff] %vm1923_vm9, %v1846_v37  ;;  %2056 = vrot.lane.b32.xlu1 %v3053_v40, %s3277_s8  ;;  %v2997_v37 = vld [vmem:[#allocation2 + $0x168] sm:$0xff] }
 0x1a1   : > { %2058 = vrot.lane.b32.xlu0 %v3054_v3, %s3277_s8 }
 0x1a2   : > { %v1266_v15 = vpop.permute.xlu1 %1265  ;;  %v1268_v16 = vpop.permute.xlu0 %1267 }
 0x1a3   : > { %1352 = vst.msk [vmem:[#allocation3 + $0x50] sm:$0xff] %vm1341_vm6, %v1266_v15  ;;  %1353 = vst.msk [vmem:[#allocation3 + $0x58] sm:$0xff] %vm1341_vm6, %v1268_v16  ;;  %v2998_v16 = vld [vmem:[#allocation2 + $0x170] sm:$0xff] }
 0x1a4   : > { %1478 = vrot.lane.b32.xlu1 %v3053_v40, %s3274_s13 }
 0x1a5   : > { %1674 = vrot.lane.b32.xlu0 %v3660_v42, %s3275_s14  ;;  %v3023_v42 = vld [vmem:[#allocation2 + $0x121] sm:$0xff] }
 0x1a6   : > { %v2037_v24 = vpop.permute.xlu1 %2036  ;;  %v2039_v4 = vpop.permute.xlu0 %2038 }
 0x1a7   : > { %2125 = vst.msk [vmem:[#allocation3 + $0x40] sm:$0xff] %vm2116_vm10, %v2037_v24  ;;  %2126 = vst.msk [vmem:[#allocation3 + $0x48] sm:$0xff] %vm2116_vm10, %v2039_v4 }
 0x1a8   : > { %1480 = vrot.lane.b32.xlu1 %v3054_v3, %s3274_s13 }
 0x1a9   : > { %1676 = vrot.lane.b32.xlu0 %v3673_v47, %s3275_s14 }
 0x1aa   : > { %v1459_v48 = vpop.permute.xlu1 %1458  ;;  %v1655_v56 = vpop.permute.xlu0 %1654 }
 0x1ab   : > { %1545 = vst.msk [vmem:[#allocation3 + $0x50] sm:$0xff] %vm1534_vm7, %v1459_v48  ;;  %v3029_v48 = vld [vmem:[#allocation2 + $0x169] sm:$0xff] }
 0x1ac   : > { %1741 = vst.msk [vmem:[#allocation3 + $0x50] sm:$0xff] %vm1730_vm8, %v1655_v56  ;;  %1096 = vrot.lane.b32.xlu1 %v2897_v25, %s3272_s11 }
 0x1ad   : > { %1098 = vrot.lane.b32.xlu0 %v3673_v47, %s3272_s11 }
 0x1ae   : > { %v1461_v50 = vpop.permute.xlu1 %1460  ;;  %v1848_v36 = vpop.permute.xlu0 %1847  ;;  %v2157_v2 = vld [vmem:[#allocation3 + $0x40] sm:$0xff]  ;;  %v2158_v58 = vld [vmem:[#allocation3 + $0x48] sm:$0xff] }
 0x1af   : > { %1546 = vst.msk [vmem:[#allocation3 + $0x58] sm:$0xff] %vm1534_vm7, %v1461_v50  ;;  %3164 = vmatprep.mubr.msk.f32.mxu0 %vm2193_vm11, %v2157_v2 }
 0x1b0   : > { %1934 = vst.msk [vmem:[#allocation3 + $0x50] sm:$0xff] %vm1923_vm9, %v1848_v36  ;;  %1867 = vrot.lane.b32.xlu1 %v3023_v42, %s3276_s15  ;;  %3165 = vmatmul.mubr.msk.f32.gmra.mxu0 %vm2193_vm11, %v2158_v58  ;;  %v3061_v58 = vld [vmem:[#allocation2 + $0x16a] sm:$0xff] }
 0x1b1   : > { %1869 = vrot.lane.b32.xlu0 %v3024_v18, %s3276_s15 }
 0x1b2   : > { %v1657_v5 = vpop.permute.xlu1 %1656  ;;  %v1850_v47 = vpop.permute.xlu0 %1849 }
 0x1b3   : > { %1742 = vst.msk [vmem:[#allocation3 + $0x58] sm:$0xff] %vm1730_vm8, %v1657_v5  ;;  %v3062_v5 = vld [vmem:[#allocation2 + $0x172] sm:$0xff] }
 0x1b4   : > { %1935 = vst.msk [vmem:[#allocation3 + $0x58] sm:$0xff] %vm1923_vm9, %v1850_v47  ;;  %1289 = vrot.lane.b32.xlu1 %v3023_v42, %s3273_s12  ;;  %v3030_v42 = vld [vmem:[#allocation2 + $0x171] sm:$0xff] }
 0x1b5   : > { %1291 = vrot.lane.b32.xlu0 %v3024_v18, %s3273_s12 }
 0x1b6   : > { %v1270_v39 = vpop.permute.xlu1 %1269  ;;  %v1272_v20 = vpop.permute.xlu0 %1271 }
 0x1b7   : > { %1354 = vst.msk [vmem:[#allocation3 + $0x60] sm:$0xff] %vm1341_vm6, %v1270_v39  ;;  %1355 = vst.msk [vmem:[#allocation3 + $0x68] sm:$0xff] %vm1341_vm6, %v1272_v20  ;;  %v2999_v20 = vld [vmem:[#allocation2 + $0x180] sm:$0xff] }
 0x1b8   : > { %2060 = vrot.lane.b32.xlu1 %v3055_v29, %s3277_s8 }
 0x1b9   : > { %2062 = vrot.lane.b32.xlu0 %v3056_v23, %s3277_s8 }
 0x1ba   : > { %v2041_v52 = vpop.permute.xlu1 %2040  ;;  %v2043_v32 = vpop.permute.xlu0 %2042 }
 0x1bb   : > { %2127 = vst.msk [vmem:[#allocation3 + $0x50] sm:$0xff] %vm2116_vm10, %v2041_v52  ;;  %2128 = vst.msk [vmem:[#allocation3 + $0x58] sm:$0xff] %vm2116_vm10, %v2043_v32 }
 0x1bc   : > { %1482 = vrot.lane.b32.xlu1 %v3055_v29, %s3274_s13 }
 0x1bd   : > { %1678 = vrot.lane.b32.xlu0 %v2993_v10, %s3275_s14 }
 0x1be   : > { %v1463_v21 = vpop.permute.xlu1 %1462  ;;  %v1659_v27 = vpop.permute.xlu0 %1658 }
 0x1bf   : > { %1547 = vst.msk [vmem:[#allocation3 + $0x60] sm:$0xff] %vm1534_vm7, %v1463_v21 }
 0x1c0   : > { %1743 = vst.msk [vmem:[#allocation3 + $0x60] sm:$0xff] %vm1730_vm8, %v1659_v27  ;;  %1484 = vrot.lane.b32.xlu1 %v3056_v23, %s3274_s13 }
 0x1c1   : > { %1680 = vrot.lane.b32.xlu0 %v2994_v13, %s3275_s14 }
 0x1c2   : > { %v1465_v6 = vpop.permute.xlu1 %1464  ;;  %v1852_v7 = vpop.permute.xlu0 %1851  ;;  %v2159_v53 = vld [vmem:[#allocation3 + $0x50] sm:$0xff]  ;;  %v2160_v14 = vld [vmem:[#allocation3 + $0x58] sm:$0xff] }
 0x1c3   : > { %1548 = vst.msk [vmem:[#allocation3 + $0x68] sm:$0xff] %vm1534_vm7, %v1465_v6  ;;  %3167 = vmatprep.mubr.msk.f32.mxu0 %vm2193_vm11, %v2159_v53  ;;  %v3031_v6 = vld [vmem:[#allocation2 + $0x181] sm:$0xff]  ;;  %v3032_v53 = vld [vmem:[#allocation2 + $0x189] sm:$0xff] }
 0x1c4   : > { %1936 = vst.msk [vmem:[#allocation3 + $0x60] sm:$0xff] %vm1923_vm9, %v1852_v7  ;;  %1100 = vrot.lane.b32.xlu1 %v2993_v10, %s3272_s11  ;;  %3168 = vmatmul.mubr.msk.f32.gmra.mxu0 %vm2193_vm11, %v2160_v14  ;;  %v3000_v10 = vld [vmem:[#allocation2 + $0x188] sm:$0xff] }
 0x1c5   : > { %1102 = vrot.lane.b32.xlu0 %v2994_v13, %s3272_s11 }
 0x1c6   : > { %v1661_v26 = vpop.permute.xlu1 %1660  ;;  %v1854_v31 = vpop.permute.xlu0 %1853 }
 0x1c7   : > { %1744 = vst.msk [vmem:[#allocation3 + $0x68] sm:$0xff] %vm1730_vm8, %v1661_v26 }
 0x1c8   : > { %1937 = vst.msk [vmem:[#allocation3 + $0x68] sm:$0xff] %vm1923_vm9, %v1854_v31  ;;  %1871 = vrot.lane.b32.xlu1 %v3025_v1, %s3276_s15  ;;  %v3063_v31 = vld [vmem:[#allocation2 + $0x182] sm:$0xff] }
 0x1c9   : > { %1873 = vrot.lane.b32.xlu0 %v3026_v45, %s3276_s15 }
 0x1ca   : > { %v1274_v9 = vpop.permute.xlu1 %1273  ;;  %v1276_v33 = vpop.permute.xlu0 %1275 }
 0x1cb   : > { %1356 = vst.msk [vmem:[#allocation3 + $0x70] sm:$0xff] %vm1341_vm6, %v1274_v9  ;;  %1357 = vst.msk [vmem:[#allocation3 + $0x78] sm:$0xff] %vm1341_vm6, %v1276_v33  ;;  %v3064_v9 = vld [vmem:[#allocation2 + $0x18a] sm:$0xff] }
 0x1cc   : > { %1293 = vrot.lane.b32.xlu1 %v3025_v1, %s3273_s12 }
 0x1cd   : > { %1295 = vrot.lane.b32.xlu0 %v3026_v45, %s3273_s12 }
 0x1ce   : > { %v2045_v19 = vpop.permute.xlu1 %2044  ;;  %v2047_v55 = vpop.permute.xlu0 %2046 }
 0x1cf   : > { %2129 = vst.msk [vmem:[#allocation3 + $0x60] sm:$0xff] %vm2116_vm10, %v2045_v19  ;;  %2130 = vst.msk [vmem:[#allocation3 + $0x68] sm:$0xff] %vm2116_vm10, %v2047_v55  ;;  %v3001_v55 = vld [vmem:[#allocation2 + $0x198] sm:$0xff] }
 0x1d0   : > { %2064 = vrot.lane.b32.xlu1 %v3057_v11, %s3277_s8 }
 0x1d1   : > { %2066 = vrot.lane.b32.xlu0 %v3058_v38, %s3277_s8 }
 0x1d2   : > { %v1467_v41 = vpop.permute.xlu1 %1466  ;;  %v1663_v57 = vpop.permute.xlu0 %1662 }
 0x1d3   : > { %1549 = vst.msk [vmem:[#allocation3 + $0x70] sm:$0xff] %vm1534_vm7, %v1467_v41 }
 0x1d4   : > { %1745 = vst.msk [vmem:[#allocation3 + $0x70] sm:$0xff] %vm1730_vm8, %v1663_v57  ;;  %1486 = vrot.lane.b32.xlu1 %v3057_v11, %s3274_s13 }
 0x1d5   : > { %1682 = vrot.lane.b32.xlu0 %v2995_v59, %s3275_s14 }
 0x1d6   : > { %v1469_v60 = vpop.permute.xlu1 %1468  ;;  %v1856_v61 = vpop.permute.xlu0 %1855  ;;  %v2161_v28 = vld [vmem:[#allocation3 + $0x60] sm:$0xff]  ;;  %v2162_v44 = vld [vmem:[#allocation3 + $0x68] sm:$0xff] }
 0x1d7   : > { %1550 = vst.msk [vmem:[#allocation3 + $0x78] sm:$0xff] %vm1534_vm7, %v1469_v60  ;;  %3170 = vmatprep.mubr.msk.f32.mxu0 %vm2193_vm11, %v2161_v28 }
 0x1d8   : > { %1938 = vst.msk [vmem:[#allocation3 + $0x70] sm:$0xff] %vm1923_vm9, %v1856_v61  ;;  %1488 = vrot.lane.b32.xlu1 %v3058_v38, %s3274_s13  ;;  %3171 = vmatmul.mubr.msk.f32.gmra.mxu0 %vm2193_vm11, %v2162_v44  ;;  %v4291_v61 = vld [vmem:[%s4559_s4] ss:$0 sm:$0xff] }
 0x1d9   : > { %1684 = vrot.lane.b32.xlu0 %v2996_v49, %s3275_s14  ;;  %v3002_v44 = vld [vmem:[#allocation2 + $0x1a0] sm:$0xff] }
 0x1da   : > { %v1665_v54 = vpop.permute.xlu1 %1664  ;;  %v1858_v35 = vpop.permute.xlu0 %1857 }
 0x1db   : > { %1746 = vst.msk [vmem:[#allocation3 + $0x78] sm:$0xff] %vm1730_vm8, %v1665_v54 }
 0x1dc   : > { %1939 = vst.msk [vmem:[#allocation3 + $0x78] sm:$0xff] %vm1923_vm9, %v1858_v35  ;;  %1104 = vrot.lane.b32.xlu1 %v2995_v59, %s3272_s11  ;;  %v3033_v59 = vld [vmem:[#allocation2 + $0x199] sm:$0xff] }
 0x1dd   : > { %1106 = vrot.lane.b32.xlu0 %v2996_v49, %s3272_s11  ;;  %v3065_v35 = vld [vmem:[#allocation2 + $0x19a] sm:$0xff] }
 0x1de   : > { %v1278_v22 = vpop.permute.xlu1 %1277  ;;  %v1280_v62 = vpop.permute.xlu0 %1279 }
 0x1df   : > { %1358 = vst.msk [vmem:[#allocation3 + $0x80] sm:$0xff] %vm1341_vm6, %v1278_v22  ;;  %1359 = vst.msk [vmem:[#allocation3 + $0x88] sm:$0xff] %vm1341_vm6, %v1280_v62 }
 0x1e0   : > { %1875 = vrot.lane.b32.xlu1 %v3027_v12, %s3276_s15 }
 0x1e1   : > { %1877 = vrot.lane.b32.xlu0 %v3028_v17, %s3276_s15 }
 0x1e2   : > { %v2049_v63 = vpop.permute.xlu1 %2048  ;;  %v2051_v30 = vpop.permute.xlu0 %2050 }
 0x1e3   : > { %2131 = vst.msk [vmem:[#allocation3 + $0x70] sm:$0xff] %vm2116_vm10, %v2049_v63  ;;  %2132 = vst.msk [vmem:[#allocation3 + $0x78] sm:$0xff] %vm2116_vm10, %v2051_v30  ;;  %v3034_v30 = vld [vmem:[#allocation2 + $0x1a1] sm:$0xff] }
 0x1e4   : > { %1297 = vrot.lane.b32.xlu1 %v3027_v12, %s3273_s12 }
 0x1e5   : > { %1299 = vrot.lane.b32.xlu0 %v3028_v17, %s3273_s12 }
 0x1e6   : > { %v1471_v34 = vpop.permute.xlu1 %1470 }
 0x1e7   : > { %1551 = vst.msk [vmem:[#allocation3 + $0x80] sm:$0xff] %vm1534_vm7, %v1471_v34  ;;  %v1667_v51 = vpop.permute.xlu0 %1666 }
 0x1e8   : > { %1747 = vst.msk [vmem:[#allocation3 + $0x80] sm:$0xff] %vm1730_vm8, %v1667_v51  ;;  %2068 = vrot.lane.b32.xlu1 %v3059_v8, %s3277_s8 }
 0x1e9   : > { %2070 = vrot.lane.b32.xlu0 %v3060_v46, %s3277_s8 }
 0x1ea   : > { %v1473_v0 = vpop.permute.xlu1 %1472  ;;  %v2163_v40 = vld [vmem:[#allocation3 + $0x70] sm:$0xff]  ;;  %v2164_v43 = vld [vmem:[#allocation3 + $0x78] sm:$0xff] }
 0x1eb   : > { %1552 = vst.msk [vmem:[#allocation3 + $0x88] sm:$0xff] %vm1534_vm7, %v1473_v0  ;;  %v1669_v3 = vpop.permute.xlu0 %1668  ;;  %3173 = vmatprep.mubr.msk.f32.mxu0 %vm2193_vm11, %v2163_v40 }
 0x1ec   : > { %1748 = vst.msk [vmem:[#allocation3 + $0x88] sm:$0xff] %vm1730_vm8, %v1669_v3  ;;  %1490 = vrot.lane.b32.xlu1 %v3059_v8, %s3274_s13  ;;  %3174 = vmatmul.mubr.msk.f32.gmra.mxu0 %vm2193_vm11, %v2164_v43  ;;  %v3066_v3 = vld [vmem:[#allocation2 + $0x1a2] sm:$0xff] }
 0x1ed   : > { %1686 = vrot.lane.b32.xlu0 %v2997_v37, %s3275_s14 }
 0x1ee   : > { %v1089_v15 = vpop.permute.xlu1 %1088 }
 0x1ef   : > { %1167 = vst.msk [vmem:[#allocation3 + $0x90] sm:$0xff] %vm1148_vm5, %v1089_v15  ;;  %v1091_v24 = vpop.permute.xlu0 %1090 }
 0x1f0   : > { %1168 = vst.msk [vmem:[#allocation3 + $0x98] sm:$0xff] %vm1148_vm5, %v1091_v24  ;;  %1492 = vrot.lane.b32.xlu1 %v3060_v46, %s3274_s13 }
 0x1f1   : > { %1688 = vrot.lane.b32.xlu0 %v2998_v16, %s3275_s14 }
 0x1f2   : > { %v1860_v4 = vpop.permute.xlu1 %1859 }
 0x1f3   : > { %1940 = vst.msk [vmem:[#allocation3 + $0x80] sm:$0xff] %vm1923_vm9, %v1860_v4  ;;  %v1862_v25 = vpop.permute.xlu0 %1861 }
 0x1f4   : > { %1941 = vst.msk [vmem:[#allocation3 + $0x88] sm:$0xff] %vm1923_vm9, %v1862_v25  ;;  %1108 = vrot.lane.b32.xlu1 %v2997_v37, %s3272_s11 }
 0x1f5   : > { %1110 = vrot.lane.b32.xlu0 %v2998_v16, %s3272_s11 }
 0x1f6   : > { %v1282_v56 = vpop.permute.xlu1 %1281 }
 0x1f7   : > { %1360 = vst.msk [vmem:[#allocation3 + $0x90] sm:$0xff] %vm1341_vm6, %v1282_v56  ;;  %v1284_v50 = vpop.permute.xlu0 %1283 }
 0x1f8   : > { %1361 = vst.msk [vmem:[#allocation3 + $0x98] sm:$0xff] %vm1341_vm6, %v1284_v50  ;;  %1879 = vrot.lane.b32.xlu1 %v3029_v48, %s3276_s15 }
 0x1f9   : > { %1881 = vrot.lane.b32.xlu0 %v3030_v42, %s3276_s15 }
 0x1fa   : > { %v2053_v36 = vpop.permute.xlu1 %2052 }
 0x1fb   : > { %2133 = vst.msk [vmem:[#allocation3 + $0x80] sm:$0xff] %vm2116_vm10, %v2053_v36  ;;  %v2055_v2 = vpop.permute.xlu0 %2054 }
 0x1fc   : > { %2134 = vst.msk [vmem:[#allocation3 + $0x88] sm:$0xff] %vm2116_vm10, %v2055_v2  ;;  %1301 = vrot.lane.b32.xlu1 %v3029_v48, %s3273_s12 }
 0x1fd   : > { %1303 = vrot.lane.b32.xlu0 %v3030_v42, %s3273_s12 }
 0x1fe   : > { %v1475_v18 = vpop.permute.xlu1 %1474 }
 0x1ff   : > { %1553 = vst.msk [vmem:[#allocation3 + $0x90] sm:$0xff] %vm1534_vm7, %v1475_v18  ;;  %v1671_v47 = vpop.permute.xlu0 %1670 }
 0x200   : > { %1749 = vst.msk [vmem:[#allocation3 + $0x90] sm:$0xff] %vm1730_vm8, %v1671_v47  ;;  %2072 = vrot.lane.b32.xlu1 %v3061_v58, %s3277_s8 }
 0x201   : > { %2074 = vrot.lane.b32.xlu0 %v3062_v5, %s3277_s8 }
 0x202   : > { %v1477_v29 = vpop.permute.xlu1 %1476  ;;  %v2165_v39 = vld [vmem:[#allocation3 + $0x80] sm:$0xff] }
 0x203   : > { %1554 = vst.msk [vmem:[#allocation3 + $0x98] sm:$0xff] %vm1534_vm7, %v1477_v29  ;;  %v1673_v23 = vpop.permute.xlu0 %1672  ;;  %3176 = vmatprep.mubr.msk.f32.mxu1 %vm2193_vm11, %v2165_v39  ;;  %v2166_v52 = vld [vmem:[#allocation3 + $0x88] sm:$0xff] }
 0x204   : > { %1750 = vst.msk [vmem:[#allocation3 + $0x98] sm:$0xff] %vm1730_vm8, %v1673_v23  ;;  %1494 = vrot.lane.b32.xlu1 %v3061_v58, %s3274_s13  ;;  %3177 = vmatmul.mubr.msk.f32.vlgmr.msra.gmra.mxu1 %vm2193_vm11, %v2166_v52 }
 0x205   : > { %1690 = vrot.lane.b32.xlu0 %v2999_v20, %s3275_s14 }
 0x206   : > { %v1093_v32 = vpop.permute.xlu1 %1092 }
 0x207   : > { %1169 = vst.msk [vmem:[#allocation3 + $0xa0] sm:$0xff] %vm1148_vm5, %v1093_v32  ;;  %v1095_v21 = vpop.permute.xlu0 %1094 }
 0x208   : > { %1170 = vst.msk [vmem:[#allocation3 + $0xa8] sm:$0xff] %vm1148_vm5, %v1095_v21  ;;  %1496 = vrot.lane.b32.xlu1 %v3062_v5, %s3274_s13 }
 0x209   : > { %1692 = vrot.lane.b32.xlu0 %v3000_v10, %s3275_s14 }
 0x20a   : > { %v1864_v27 = vpop.permute.xlu1 %1863 }
 0x20b   : > { %1942 = vst.msk [vmem:[#allocation3 + $0x90] sm:$0xff] %vm1923_vm9, %v1864_v27  ;;  %v1866_v13 = vpop.permute.xlu0 %1865 }
 0x20c   : > { %1943 = vst.msk [vmem:[#allocation3 + $0x98] sm:$0xff] %vm1923_vm9, %v1866_v13  ;;  %1112 = vrot.lane.b32.xlu1 %v2999_v20, %s3272_s11 }
 0x20d   : > { %1114 = vrot.lane.b32.xlu0 %v3000_v10, %s3272_s11 }
 0x20e   : > { %v1286_v7 = vpop.permute.xlu1 %1285 }
 0x20f   : > { %1362 = vst.msk [vmem:[#allocation3 + $0xa0] sm:$0xff] %vm1341_vm6, %v1286_v7  ;;  %v1288_v14 = vpop.permute.xlu0 %1287 }
 0x210   : > { %1363 = vst.msk [vmem:[#allocation3 + $0xa8] sm:$0xff] %vm1341_vm6, %v1288_v14  ;;  %1883 = vrot.lane.b32.xlu1 %v3031_v6, %s3276_s15 }
 0x211   : > { %1885 = vrot.lane.b32.xlu0 %v3032_v53, %s3276_s15 }
 0x212   : > { %v2057_v1 = vpop.permute.xlu1 %2056 }
 0x213   : > { %2135 = vst.msk [vmem:[#allocation3 + $0x90] sm:$0xff] %vm2116_vm10, %v2057_v1  ;;  %v2059_v26 = vpop.permute.xlu0 %2058 }
 0x214   : > { %2136 = vst.msk [vmem:[#allocation3 + $0x98] sm:$0xff] %vm2116_vm10, %v2059_v26  ;;  %1305 = vrot.lane.b32.xlu1 %v3031_v6, %s3273_s12 }
 0x215   : > { %1307 = vrot.lane.b32.xlu0 %v3032_v53, %s3273_s12 }
 0x216   : > { %v1479_v45 = vpop.permute.xlu1 %1478 }
 0x217   : > { %1555 = vst.msk [vmem:[#allocation3 + $0xa0] sm:$0xff] %vm1534_vm7, %v1479_v45  ;;  %v1675_v33 = vpop.permute.xlu0 %1674 }
 0x218   : > { %1751 = vst.msk [vmem:[#allocation3 + $0xa0] sm:$0xff] %vm1730_vm8, %v1675_v33  ;;  %2076 = vrot.lane.b32.xlu1 %v3063_v31, %s3277_s8 }
 0x219   : > { %2078 = vrot.lane.b32.xlu0 %v3064_v9, %s3277_s8 }
 0x21a   : > { %v1481_v11 = vpop.permute.xlu1 %1480  ;;  %v2167_v19 = vld [vmem:[#allocation3 + $0x90] sm:$0xff] }
 0x21b   : > { %1556 = vst.msk [vmem:[#allocation3 + $0xa8] sm:$0xff] %vm1534_vm7, %v1481_v11  ;;  %v1677_v38 = vpop.permute.xlu0 %1676  ;;  %3179 = vmatprep.mubr.msk.f32.mxu1 %vm2193_vm11, %v2167_v19  ;;  %v2168_v41 = vld [vmem:[#allocation3 + $0x98] sm:$0xff] }
 0x21c   : > { %1752 = vst.msk [vmem:[#allocation3 + $0xa8] sm:$0xff] %vm1730_vm8, %v1677_v38  ;;  %1498 = vrot.lane.b32.xlu1 %v3063_v31, %s3274_s13  ;;  %3180 = vmatmul.mubr.msk.f32.gmra.mxu1 %vm2193_vm11, %v2168_v41 }
 0x21d   : > { %1694 = vrot.lane.b32.xlu0 %v3001_v55, %s3275_s14 }
 0x21e   : > { %v1097_v57 = vpop.permute.xlu1 %1096 }
 0x21f   : > { %1171 = vst.msk [vmem:[#allocation3 + $0xb0] sm:$0xff] %vm1148_vm5, %v1097_v57  ;;  %v1099_v60 = vpop.permute.xlu0 %1098 }
 0x220   : > { %1172 = vst.msk [vmem:[#allocation3 + $0xb8] sm:$0xff] %vm1148_vm5, %v1099_v60  ;;  %1500 = vrot.lane.b32.xlu1 %v3064_v9, %s3274_s13 }
 0x221   : > { %v3154_v28 = vpop.f32.mrf.mxu0  ;;  %1887 = vrot.lane.b32.xlu0 %v3033_v59, %s3276_s15 }
 0x222   : > { %v1868_v49 = vpop.permute.xlu1 %1867  ;;  %v2366_v54 = vadd.f32 %v3154_v28, %v4291_v61 }
 0x223   : > { %1944 = vst.msk [vmem:[#allocation3 + $0xa0] sm:$0xff] %vm1923_vm9, %v1868_v49  ;;  %v1870_v12 = vpop.permute.xlu0 %1869  ;;  %v2360_v22 = vpop.f32.mrf.mxu0 }
 0x224   : > { %1945 = vst.msk [vmem:[#allocation3 + $0xa8] sm:$0xff] %vm1923_vm9, %v1870_v12  ;;  %v2552_v62 = vsel %vm300_vm0, %v2366_v54, 0.0  ;;  %v2621_v17 = vmul.f32 %v2366_v54, %v2366_v54  ;;  %1696 = vrot.lane.b32.xlu1 %v3002_v44, %s3275_s14  ;;  %v2361_v63 = vadd.f32 %v4291_v61, %v2360_v22 }
 0x225   : > { %2520 = vst.msk [vmem:[%s4300_s19 + $0x8] sm:$0xff] %vm300_vm0, %v2366_v54  ;;  %2080 = vrot.lane.b32.xlu0 %v3065_v35, %s3277_s8 }
 0x226   : > { %v2653_v8 = vsel %vm300_vm0, %v2621_v17, 0.0  ;;  %2519 = vst.msk [vmem:[%s4300_s19] sm:$0xff] %vm300_vm0, %v2361_v63  ;;  %v2551_v34 = vsel %vm300_vm0, %v2361_v63, 0.0  ;;  %v2620_v46 = vmul.f32 %v2361_v63, %v2361_v63  ;;  %v1290_v51 = vpop.permute.xlu1 %1289 }
 0x227   : > { %v2553_v0 = vadd.f32 %v2552_v62, %v2551_v34  ;;  %1364 = vst.msk [vmem:[#allocation3 + $0xb0] sm:$0xff] %vm1341_vm6, %v1290_v51  ;;  %v1292_v40 = vpop.permute.xlu0 %1291 }
 0x228   : > { %v2652_v43 = vsel %vm300_vm0, %v2620_v46, 0.0  ;;  %1365 = vst.msk [vmem:[#allocation3 + $0xb8] sm:$0xff] %vm1341_vm6, %v1292_v40  ;;  %1889 = vrot.lane.b32.xlu1 %v3034_v30, %s3276_s15  ;;  %s295_s15 = scalar_lea.vmem %s4561_s6, %s2872_s25 }
 0x229   : > { %v2654_v37 = vadd.f32 %v2653_v8, %v2652_v43 }
 0x22a   : > { %v2061_v15 = vpop.permute.xlu1 %2060 }
 0x22b   : > { %2137 = vst.msk [vmem:[#allocation3 + $0xa0] sm:$0xff] %vm2116_vm10, %v2061_v15  ;;  %v2063_v16 = vpop.permute.xlu0 %2062 }
 0x22c   : > { %2138 = vst.msk [vmem:[#allocation3 + $0xa8] sm:$0xff] %vm2116_vm10, %v2063_v16  ;;  %2082 = vrot.lane.b32.xlu1 %v3066_v3, %s3277_s8 }
 0x22e   : > { %v1483_v24 = vpop.permute.xlu1 %1482 }
 0x22f   : > { %1557 = vst.msk [vmem:[#allocation3 + $0xb0] sm:$0xff] %vm1534_vm7, %v1483_v24  ;;  %v1679_v4 = vpop.permute.xlu0 %1678 }
 0x230   : > { %1753 = vst.msk [vmem:[#allocation3 + $0xb0] sm:$0xff] %vm1730_vm8, %v1679_v4 }
 0x232   : > { %v1485_v25 = vpop.permute.xlu1 %1484  ;;  %v2169_v48 = vld [vmem:[#allocation3 + $0xa0] sm:$0xff] }
 0x233   : > { %1558 = vst.msk [vmem:[#allocation3 + $0xb8] sm:$0xff] %vm1534_vm7, %v1485_v25  ;;  %v1681_v56 = vpop.permute.xlu0 %1680  ;;  %3182 = vmatprep.mubr.msk.f32.mxu1 %vm2193_vm11, %v2169_v48  ;;  %v2170_v42 = vld [vmem:[#allocation3 + $0xa8] sm:$0xff] }
 0x234   : > { %1754 = vst.msk [vmem:[#allocation3 + $0xb8] sm:$0xff] %vm1730_vm8, %v1681_v56  ;;  %v3157_v50 = vpop.f32.mrf.mxu0  ;;  %3183 = vmatmul.mubr.msk.f32.gmra.mxu1 %vm2193_vm11, %v2170_v42 }
 0x235   : > { %v2376_v36 = vadd.f32 %v3157_v50, %v4291_v61 }
 0x236   : > { %v1101_v2 = vpop.permute.xlu1 %1100  ;;  %v2370_v58 = vpop.f32.mrf.mxu0 }
 0x237   : > { %2522 = vst.msk [vmem:[%s4300_s19 + $0x18] sm:$0xff] %vm300_vm0, %v2376_v36  ;;  %v2623_v18 = vmul.f32 %v2376_v36, %v2376_v36  ;;  %v2371_v5 = vadd.f32 %v4291_v61, %v2370_v58  ;;  %v1103_v47 = vpop.permute.xlu0 %1102  ;;  %v2556_v29 = vsel %vm300_vm0, %v2376_v36, 0.0 }
 0x238   : > { %1173 = vst.msk [vmem:[#allocation3 + $0xc0] sm:$0xff] %vm1148_vm5, %v1101_v2  ;;  %1174 = vst.msk [vmem:[#allocation3 + $0xc8] sm:$0xff] %vm1148_vm5, %v1103_v47 }
 0x239   : > { %2521 = vst.msk [vmem:[%s4300_s19 + $0x10] sm:$0xff] %vm300_vm0, %v2371_v5  ;;  %v2554_v39 = vsel %vm300_vm0, %v2371_v5, 0.0  ;;  %v2622_v20 = vmul.f32 %v2371_v5, %v2371_v5  ;;  %v2657_v32 = vsel %vm300_vm0, %v2623_v18, 0.0 }
 0x23a   : > { %v2555_v23 = vadd.f32 %v2554_v39, %v2553_v0  ;;  %v1872_v52 = vpop.permute.xlu1 %1871 }
 0x23b   : > { %v2655_v10 = vsel %vm300_vm0, %v2622_v20, 0.0  ;;  %1946 = vst.msk [vmem:[#allocation3 + $0xb0] sm:$0xff] %vm1923_vm9, %v1872_v52  ;;  %v1874_v21 = vpop.permute.xlu0 %1873 }
 0x23c   : > { %v2656_v27 = vadd.f32 %v2655_v10, %v2654_v37  ;;  %1947 = vst.msk [vmem:[#allocation3 + $0xb8] sm:$0xff] %vm1923_vm9, %v1874_v21  ;;  %v2557_v13 = vadd.f32 %v2556_v29, %v2555_v23 }
 0x23e   : > { %v1294_v6 = vpop.permute.xlu1 %1293  ;;  %v2658_v7 = vadd.f32 %v2657_v32, %v2656_v27 }
 0x23f   : > { %1366 = vst.msk [vmem:[#allocation3 + $0xc0] sm:$0xff] %vm1341_vm6, %v1294_v6  ;;  %v1296_v53 = vpop.permute.xlu0 %1295 }
 0x240   : > { %1367 = vst.msk [vmem:[#allocation3 + $0xc8] sm:$0xff] %vm1341_vm6, %v1296_v53 }
 0x242   : > { %v2065_v14 = vpop.permute.xlu1 %2064 }
 0x243   : > { %2139 = vst.msk [vmem:[#allocation3 + $0xb0] sm:$0xff] %vm2116_vm10, %v2065_v14  ;;  %v2067_v1 = vpop.permute.xlu0 %2066 }
 0x244   : > { %2140 = vst.msk [vmem:[#allocation3 + $0xb8] sm:$0xff] %vm2116_vm10, %v2067_v1 }
 0x246   : > { %v1487_v26 = vpop.permute.xlu1 %1486 }
 0x247   : > { %1559 = vst.msk [vmem:[#allocation3 + $0xc0] sm:$0xff] %vm1534_vm7, %v1487_v26  ;;  %v1683_v31 = vpop.permute.xlu0 %1682 }
 0x248   : > { %1755 = vst.msk [vmem:[#allocation3 + $0xc0] sm:$0xff] %vm1730_vm8, %v1683_v31  ;;  %v3160_v45 = vpop.f32.mrf.mxu0 }
 0x249   : > { %v2386_v9 = vadd.f32 %v3160_v45, %v4291_v61 }
 0x24a   : > { %v1489_v33 = vpop.permute.xlu1 %1488  ;;  %v2380_v11 = vpop.f32.mrf.mxu0  ;;  %v2171_v19 = vld [vmem:[#allocation3 + $0xb0] sm:$0xff] }
 0x24b   : > { %2524 = vst.msk [vmem:[%s4300_s19 + $0x28] sm:$0xff] %vm300_vm0, %v2386_v9  ;;  %v2625_v55 = vmul.f32 %v2386_v9, %v2386_v9  ;;  %v2381_v38 = vadd.f32 %v4291_v61, %v2380_v11  ;;  %v1685_v41 = vpop.permute.xlu0 %1684  ;;  %3185 = vmatprep.mubr.msk.f32.mxu1 %vm2193_vm11, %v2171_v19  ;;  %v2172_v57 = vld [vmem:[#allocation3 + $0xb8] sm:$0xff]  ;;  %v2560_v59 = vsel %vm300_vm0, %v2386_v9, 0.0 }
 0x24c   : > { %1560 = vst.msk [vmem:[#allocation3 + $0xc8] sm:$0xff] %vm1534_vm7, %v1489_v33  ;;  %3186 = vmatmul.mubr.msk.f32.gmra.mxu1 %vm2193_vm11, %v2172_v57 }
 0x24d   : > { %1756 = vst.msk [vmem:[#allocation3 + $0xc8] sm:$0xff] %vm1730_vm8, %v1685_v41  ;;  %v2558_v60 = vsel %vm300_vm0, %v2381_v38, 0.0  ;;  %v2624_v28 = vmul.f32 %v2381_v38, %v2381_v38  ;;  %v2661_v54 = vsel %vm300_vm0, %v2625_v55, 0.0 }
 0x24e   : > { %2523 = vst.msk [vmem:[%s4300_s19 + $0x20] sm:$0xff] %vm300_vm0, %v2381_v38  ;;  %v2559_v44 = vadd.f32 %v2558_v60, %v2557_v13  ;;  %v1105_v49 = vpop.permute.xlu1 %1104 }
 0x24f   : > { %v2659_v35 = vsel %vm300_vm0, %v2624_v28, 0.0  ;;  %1175 = vst.msk [vmem:[#allocation3 + $0xd0] sm:$0xff] %vm1148_vm5, %v1105_v49  ;;  %v1107_v12 = vpop.permute.xlu0 %1106 }
 0x250   : > { %v2660_v22 = vadd.f32 %v2659_v35, %v2658_v7  ;;  %1176 = vst.msk [vmem:[#allocation3 + $0xd8] sm:$0xff] %vm1148_vm5, %v1107_v12  ;;  %v2561_v62 = vadd.f32 %v2560_v59, %v2559_v44 }
 0x252   : > { %v1876_v17 = vpop.permute.xlu1 %1875  ;;  %v2662_v63 = vadd.f32 %v2661_v54, %v2660_v22 }
 0x253   : > { %1948 = vst.msk [vmem:[#allocation3 + $0xc0] sm:$0xff] %vm1923_vm9, %v1876_v17  ;;  %v1878_v30 = vpop.permute.xlu0 %1877 }
 0x254   : > { %1949 = vst.msk [vmem:[#allocation3 + $0xc8] sm:$0xff] %vm1923_vm9, %v1878_v30 }
 0x256   : > { %v1298_v8 = vpop.permute.xlu1 %1297 }
 0x257   : > { %1368 = vst.msk [vmem:[#allocation3 + $0xd0] sm:$0xff] %vm1341_vm6, %v1298_v8  ;;  %v1300_v34 = vpop.permute.xlu0 %1299 }
 0x258   : > { %1369 = vst.msk [vmem:[#allocation3 + $0xd8] sm:$0xff] %vm1341_vm6, %v1300_v34 }
 0x25a   : > { %v2069_v46 = vpop.permute.xlu1 %2068 }
 0x25b   : > { %2141 = vst.msk [vmem:[#allocation3 + $0xc0] sm:$0xff] %vm2116_vm10, %v2069_v46  ;;  %v2071_v51 = vpop.permute.xlu0 %2070 }
 0x25c   : > { %2142 = vst.msk [vmem:[#allocation3 + $0xc8] sm:$0xff] %vm2116_vm10, %v2071_v51  ;;  %v3163_v0 = vpop.f32.mrf.mxu0 }
 0x25d   : > { %v2396_v40 = vadd.f32 %v3163_v0, %v4291_v61 }
 0x25e   : > { %v1491_v43 = vpop.permute.xlu1 %1490  ;;  %v2390_v37 = vpop.f32.mrf.mxu0 }
 0x25f   : > { %2526 = vst.msk [vmem:[%s4300_s19 + $0x38] sm:$0xff] %vm300_vm0, %v2396_v40  ;;  %v2627_v3 = vmul.f32 %v2396_v40, %v2396_v40  ;;  %v2391_v15 = vadd.f32 %v4291_v61, %v2390_v37  ;;  %v1687_v16 = vpop.permute.xlu0 %1686  ;;  %v2564_v24 = vsel %vm300_vm0, %v2396_v40, 0.0 }
 0x260   : > { %1561 = vst.msk [vmem:[#allocation3 + $0xd0] sm:$0xff] %vm1534_vm7, %v1491_v43 }
 0x261   : > { %1757 = vst.msk [vmem:[#allocation3 + $0xd0] sm:$0xff] %vm1730_vm8, %v1687_v16  ;;  %v2562_v4 = vsel %vm300_vm0, %v2391_v15, 0.0  ;;  %v2626_v25 = vmul.f32 %v2391_v15, %v2391_v15  ;;  %v2665_v50 = vsel %vm300_vm0, %v2627_v3, 0.0 }
 0x262   : > { %2525 = vst.msk [vmem:[%s4300_s19 + $0x30] sm:$0xff] %vm300_vm0, %v2391_v15  ;;  %v2563_v48 = vadd.f32 %v2562_v4, %v2561_v62  ;;  %v1493_v56 = vpop.permute.xlu1 %1492  ;;  %v2173_v42 = vld [vmem:[#allocation3 + $0xc0] sm:$0xff] }
 0x263   : > { %v2663_v36 = vsel %vm300_vm0, %v2626_v25, 0.0  ;;  %1562 = vst.msk [vmem:[#allocation3 + $0xd8] sm:$0xff] %vm1534_vm7, %v1493_v56  ;;  %v1689_v2 = vpop.permute.xlu0 %1688  ;;  %3188 = vmatprep.mubr.msk.f32.mxu1 %vm2193_vm11, %v2173_v42  ;;  %v2174_v58 = vld [vmem:[#allocation3 + $0xc8] sm:$0xff] }
 0x264   : > { %v2664_v18 = vadd.f32 %v2663_v36, %v2662_v63  ;;  %1758 = vst.msk [vmem:[#allocation3 + $0xd8] sm:$0xff] %vm1730_vm8, %v1689_v2  ;;  %3189 = vmatmul.mubr.msk.f32.gmra.mxu1 %vm2193_vm11, %v2174_v58  ;;  %v2565_v5 = vadd.f32 %v2564_v24, %v2563_v48 }
 0x266   : > { %v1109_v47 = vpop.permute.xlu1 %1108  ;;  %v2666_v29 = vadd.f32 %v2665_v50, %v2664_v18 }
 0x267   : > { %1177 = vst.msk [vmem:[#allocation3 + $0xe0] sm:$0xff] %vm1148_vm5, %v1109_v47  ;;  %v1111_v39 = vpop.permute.xlu0 %1110 }
 0x268   : > { %1178 = vst.msk [vmem:[#allocation3 + $0xe8] sm:$0xff] %vm1148_vm5, %v1111_v39 }
 0x26a   : > { %v1880_v20 = vpop.permute.xlu1 %1879 }
 0x26b   : > { %1950 = vst.msk [vmem:[#allocation3 + $0xd0] sm:$0xff] %vm1923_vm9, %v1880_v20  ;;  %v1882_v23 = vpop.permute.xlu0 %1881 }
 0x26c   : > { %1951 = vst.msk [vmem:[#allocation3 + $0xd8] sm:$0xff] %vm1923_vm9, %v1882_v23 }
 0x26e   : > { %v1302_v52 = vpop.permute.xlu1 %1301 }
 0x26f   : > { %1370 = vst.msk [vmem:[#allocation3 + $0xe0] sm:$0xff] %vm1341_vm6, %v1302_v52  ;;  %v1304_v32 = vpop.permute.xlu0 %1303 }
 0x270   : > { %1371 = vst.msk [vmem:[#allocation3 + $0xe8] sm:$0xff] %vm1341_vm6, %v1304_v32  ;;  %v3166_v10 = vpop.f32.mrf.mxu0 }
 0x271   : > { %v2406_v21 = vadd.f32 %v3166_v10, %v4291_v61 }
 0x272   : > { %v2073_v27 = vpop.permute.xlu1 %2072  ;;  %v2400_v13 = vpop.f32.mrf.mxu0 }
 0x273   : > { %2528 = vst.msk [vmem:[%s4300_s19 + $0x48] sm:$0xff] %vm300_vm0, %v2406_v21  ;;  %v2629_v6 = vmul.f32 %v2406_v21, %v2406_v21  ;;  %v2401_v7 = vadd.f32 %v4291_v61, %v2400_v13  ;;  %v2075_v53 = vpop.permute.xlu0 %2074  ;;  %v2568_v14 = vsel %vm300_vm0, %v2406_v21, 0.0 }
 0x274   : > { %2143 = vst.msk [vmem:[#allocation3 + $0xd0] sm:$0xff] %vm2116_vm10, %v2073_v27  ;;  %2144 = vst.msk [vmem:[#allocation3 + $0xd8] sm:$0xff] %vm2116_vm10, %v2075_v53 }
 0x275   : > { %2527 = vst.msk [vmem:[%s4300_s19 + $0x40] sm:$0xff] %vm300_vm0, %v2401_v7  ;;  %v2566_v1 = vsel %vm300_vm0, %v2401_v7, 0.0  ;;  %v2628_v26 = vmul.f32 %v2401_v7, %v2401_v7  ;;  %v2669_v9 = vsel %vm300_vm0, %v2629_v6, 0.0 }
 0x276   : > { %v2567_v31 = vadd.f32 %v2566_v1, %v2565_v5  ;;  %v1495_v45 = vpop.permute.xlu1 %1494 }
 0x277   : > { %v2667_v33 = vsel %vm300_vm0, %v2628_v26, 0.0  ;;  %1563 = vst.msk [vmem:[#allocation3 + $0xe0] sm:$0xff] %vm1534_vm7, %v1495_v45  ;;  %v1691_v11 = vpop.permute.xlu0 %1690 }
 0x278   : > { %v2668_v19 = vadd.f32 %v2667_v33, %v2666_v29  ;;  %1759 = vst.msk [vmem:[#allocation3 + $0xe0] sm:$0xff] %vm1730_vm8, %v1691_v11  ;;  %v2569_v55 = vadd.f32 %v2568_v14, %v2567_v31 }
 0x27a   : > { %v1497_v38 = vpop.permute.xlu1 %1496  ;;  %v2670_v57 = vadd.f32 %v2669_v9, %v2668_v19 }
 0x27b   : > { %v2175_v41 = vld [vmem:[#allocation3 + $0xd0] sm:$0xff]  ;;  %1564 = vst.msk [vmem:[#allocation3 + $0xe8] sm:$0xff] %vm1534_vm7, %v1497_v38  ;;  %v1693_v59 = vpop.permute.xlu0 %1692  ;;  %v2176_v60 = vld [vmem:[#allocation3 + $0xd8] sm:$0xff] }
 0x27c   : > { %3191 = vmatprep.mubr.msk.f32.mxu1 %vm2193_vm11, %v2175_v41  ;;  %1760 = vst.msk [vmem:[#allocation3 + $0xe8] sm:$0xff] %vm1730_vm8, %v1693_v59 }
 0x27d   : > { %3192 = vmatmul.mubr.msk.f32.gmra.mxu1 %vm2193_vm11, %v2176_v60 }
 0x27e   : > { %v1113_v28 = vpop.permute.xlu1 %1112 }
 0x27f   : > { %1179 = vst.msk [vmem:[#allocation3 + $0xf0] sm:$0xff] %vm1148_vm5, %v1113_v28  ;;  %v1115_v44 = vpop.permute.xlu0 %1114 }
 0x280   : > { %1180 = vst.msk [vmem:[#allocation3 + $0xf8] sm:$0xff] %vm1148_vm5, %v1115_v44 }
 0x282   : > { %v1884_v49 = vpop.permute.xlu1 %1883 }
 0x283   : > { %1952 = vst.msk [vmem:[#allocation3 + $0xe0] sm:$0xff] %vm1923_vm9, %v1884_v49  ;;  %v1886_v54 = vpop.permute.xlu0 %1885 }
 0x284   : > { %1953 = vst.msk [vmem:[#allocation3 + $0xe8] sm:$0xff] %vm1923_vm9, %v1886_v54  ;;  %v3169_v35 = vpop.f32.mrf.mxu0 }
 0x285   : > { %v2416_v12 = vadd.f32 %v3169_v35, %v4291_v61 }
 0x286   : > { %v1306_v22 = vpop.permute.xlu1 %1305  ;;  %v2410_v62 = vpop.f32.mrf.mxu0 }
 0x287   : > { %2530 = vst.msk [vmem:[%s4300_s19 + $0x58] sm:$0xff] %vm300_vm0, %v2416_v12  ;;  %v2631_v17 = vmul.f32 %v2416_v12, %v2416_v12  ;;  %v2411_v63 = vadd.f32 %v4291_v61, %v2410_v62  ;;  %v1308_v30 = vpop.permute.xlu0 %1307  ;;  %v2572_v8 = vsel %vm300_vm0, %v2416_v12, 0.0 }
 0x288   : > { %1372 = vst.msk [vmem:[#allocation3 + $0xf0] sm:$0xff] %vm1341_vm6, %v1306_v22  ;;  %1373 = vst.msk [vmem:[#allocation3 + $0xf8] sm:$0xff] %vm1341_vm6, %v1308_v30 }
 0x289   : > { %2529 = vst.msk [vmem:[%s4300_s19 + $0x50] sm:$0xff] %vm300_vm0, %v2411_v63  ;;  %v2570_v34 = vsel %vm300_vm0, %v2411_v63, 0.0  ;;  %v2630_v46 = vmul.f32 %v2411_v63, %v2411_v63  ;;  %v2673_v40 = vsel %vm300_vm0, %v2631_v17, 0.0 }
 0x28a   : > { %v2571_v51 = vadd.f32 %v2570_v34, %v2569_v55  ;;  %v2077_v0 = vpop.permute.xlu1 %2076 }
 0x28b   : > { %v2671_v43 = vsel %vm300_vm0, %v2630_v46, 0.0  ;;  %2145 = vst.msk [vmem:[#allocation3 + $0xe0] sm:$0xff] %vm2116_vm10, %v2077_v0  ;;  %v2079_v37 = vpop.permute.xlu0 %2078 }
 0x28c   : > { %v2672_v3 = vadd.f32 %v2671_v43, %v2670_v57  ;;  %2146 = vst.msk [vmem:[#allocation3 + $0xe8] sm:$0xff] %vm2116_vm10, %v2079_v37  ;;  %v2573_v15 = vadd.f32 %v2572_v8, %v2571_v51 }
 0x28e   : > { %v1499_v16 = vpop.permute.xlu1 %1498  ;;  %v2674_v24 = vadd.f32 %v2673_v40, %v2672_v3 }
 0x28f   : > { %1565 = vst.msk [vmem:[#allocation3 + $0xf0] sm:$0xff] %vm1534_vm7, %v1499_v16  ;;  %v1695_v4 = vpop.permute.xlu0 %1694 }
 0x290   : > { %1761 = vst.msk [vmem:[#allocation3 + $0xf0] sm:$0xff] %vm1730_vm8, %v1695_v4 }
 0x292   : > { %v1501_v25 = vpop.permute.xlu1 %1500  ;;  %v2177_v48 = vld [vmem:[#allocation3 + $0xe0] sm:$0xff] }
 0x293   : > { %1566 = vst.msk [vmem:[#allocation3 + $0xf8] sm:$0xff] %vm1534_vm7, %v1501_v25  ;;  %3194 = vmatprep.mubr.msk.f32.mxu1 %vm2193_vm11, %v2177_v48  ;;  %v2178_v56 = vld [vmem:[#allocation3 + $0xe8] sm:$0xff]  ;;  %v1888_v42 = vpop.permute.xlu0 %1887 }
 0x294   : > { %3195 = vmatmul.mubr.msk.f32.gmra.mxu1 %vm2193_vm11, %v2178_v56  ;;  %1954 = vst.msk [vmem:[#allocation3 + $0xf0] sm:$0xff] %vm1923_vm9, %v1888_v42 }
 0x296   : > { %v1697_v50 = vpop.permute.xlu1 %1696 }
 0x297   : > { %1762 = vst.msk [vmem:[#allocation3 + $0xf8] sm:$0xff] %vm1730_vm8, %v1697_v50  ;;  %v2081_v36 = vpop.permute.xlu0 %2080 }
 0x298   : > { %v3172_v2 = vpop.f32.mrf.mxu0  ;;  %2147 = vst.msk [vmem:[#allocation3 + $0xf0] sm:$0xff] %vm2116_vm10, %v2081_v36 }
 0x299   : > { %v2426_v58 = vadd.f32 %v3172_v2, %v4291_v61 }
 0x29a   : > { %v1890_v18 = vpop.permute.xlu1 %1889  ;;  %v2420_v5 = vpop.f32.mrf.mxu0 }
 0x29b   : > { %2532 = vst.msk [vmem:[%s4300_s19 + $0x68] sm:$0xff] %vm300_vm0, %v2426_v58  ;;  %v2633_v47 = vmul.f32 %v2426_v58, %v2426_v58  ;;  %v2421_v29 = vadd.f32 %v4291_v61, %v2420_v5  ;;  %v2576_v39 = vsel %vm300_vm0, %v2426_v58, 0.0 }
 0x29c   : > { %1955 = vst.msk [vmem:[#allocation3 + $0xf8] sm:$0xff] %vm1923_vm9, %v1890_v18 }
 0x29d   : > { %2531 = vst.msk [vmem:[%s4300_s19 + $0x60] sm:$0xff] %vm300_vm0, %v2421_v29  ;;  %v2574_v20 = vsel %vm300_vm0, %v2421_v29, 0.0  ;;  %v2632_v23 = vmul.f32 %v2421_v29, %v2421_v29  ;;  %v2677_v10 = vsel %vm300_vm0, %v2633_v47, 0.0 }
 0x29e   : > { %v2575_v52 = vadd.f32 %v2574_v20, %v2573_v15  ;;  %v2083_v32 = vpop.permute.xlu1 %2082 }
 0x29f   : > { %v2675_v21 = vsel %vm300_vm0, %v2632_v23, 0.0  ;;  %2148 = vst.msk [vmem:[#allocation3 + $0xf8] sm:$0xff] %vm2116_vm10, %v2083_v32  ;;  %v2179_v27 = vld [vmem:[#allocation3 + $0xf0] sm:$0xff] }
 0x2a0   : > { %v2676_v13 = vadd.f32 %v2675_v21, %v2674_v24  ;;  %3197 = vmatprep.mubr.msk.f32.mxu1 %vm2193_vm11, %v2179_v27  ;;  %v2577_v6 = vadd.f32 %v2576_v39, %v2575_v52 }
 0x2a2   : > { %v2678_v7 = vadd.f32 %v2677_v10, %v2676_v13 }
 0x2a6   : > { %v2180_v53 = vld [vmem:[#allocation3 + $0xf8] sm:$0xff] }
 0x2a7   : > { %3198 = vmatmul.mubr.msk.f32.gmra.mxu1 %vm2193_vm11, %v2180_v53 }
 0x2ac   : > { %v3175_v14 = vpop.f32.mrf.mxu0 }
 0x2ad   : > { %v2436_v1 = vadd.f32 %v3175_v14, %v4291_v61 }
 0x2ae   : > { %v2430_v26 = vpop.f32.mrf.mxu0 }
 0x2af   : > { %2534 = vst.msk [vmem:[%s4300_s19 + $0x78] sm:$0xff] %vm300_vm0, %v2436_v1  ;;  %v2635_v31 = vmul.f32 %v2436_v1, %v2436_v1  ;;  %v2431_v45 = vadd.f32 %v4291_v61, %v2430_v26  ;;  %v2580_v9 = vsel %vm300_vm0, %v2436_v1, 0.0 }
 0x2b1   : > { %2533 = vst.msk [vmem:[%s4300_s19 + $0x70] sm:$0xff] %vm300_vm0, %v2431_v45  ;;  %v2578_v33 = vsel %vm300_vm0, %v2431_v45, 0.0  ;;  %v2634_v11 = vmul.f32 %v2431_v45, %v2431_v45  ;;  %v2681_v55 = vsel %vm300_vm0, %v2635_v31, 0.0 }
 0x2b2   : > { %v2579_v19 = vadd.f32 %v2578_v33, %v2577_v6 }
 0x2b3   : > { %v2679_v38 = vsel %vm300_vm0, %v2634_v11, 0.0 }
 0x2b4   : > { %v2680_v41 = vadd.f32 %v2679_v38, %v2678_v7  ;;  %v2581_v57 = vadd.f32 %v2580_v9, %v2579_v19 }
 0x2b6   : > { %v2682_v59 = vadd.f32 %v2681_v55, %v2680_v41 }
 0x2c4   : > { %v3178_v60 = vpop.f32.mrf.mxu1 }
 0x2c5   : > { %v2446_v28 = vadd.f32 %v3178_v60, %v4291_v61 }
 0x2c6   : > { %v2440_v44 = vpop.f32.mrf.mxu1 }
 0x2c7   : > { %2536 = vst.msk [vmem:[%s4300_s19 + $0x88] sm:$0xff] %vm300_vm0, %v2446_v28  ;;  %v2637_v49 = vmul.f32 %v2446_v28, %v2446_v28  ;;  %v2441_v54 = vadd.f32 %v4291_v61, %v2440_v44  ;;  %v2584_v35 = vsel %vm300_vm0, %v2446_v28, 0.0 }
 0x2c9   : > { %2535 = vst.msk [vmem:[%s4300_s19 + $0x80] sm:$0xff] %vm300_vm0, %v2441_v54  ;;  %v2582_v12 = vsel %vm300_vm0, %v2441_v54, 0.0  ;;  %v2636_v22 = vmul.f32 %v2441_v54, %v2441_v54  ;;  %v2685_v17 = vsel %vm300_vm0, %v2637_v49, 0.0 }
 0x2ca   : > { %v2583_v62 = vadd.f32 %v2582_v12, %v2581_v57 }
 0x2cb   : > { %v2683_v63 = vsel %vm300_vm0, %v2636_v22, 0.0 }
 0x2cc   : > { %v2684_v30 = vadd.f32 %v2683_v63, %v2682_v59  ;;  %v2585_v8 = vadd.f32 %v2584_v35, %v2583_v62 }
 0x2ce   : > { %v2686_v34 = vadd.f32 %v2685_v17, %v2684_v30 }
 0x2dc   : > { %v3181_v46 = vpop.f32.mrf.mxu1 }
 0x2dd   : > { %v2456_v51 = vadd.f32 %v3181_v46, %v4291_v61 }
 0x2de   : > { %v2450_v0 = vpop.f32.mrf.mxu1 }
 0x2df   : > { %2538 = vst.msk [vmem:[%s4300_s19 + $0x98] sm:$0xff] %vm300_vm0, %v2456_v51  ;;  %v2639_v40 = vmul.f32 %v2456_v51, %v2456_v51  ;;  %v2451_v43 = vadd.f32 %v4291_v61, %v2450_v0  ;;  %v2588_v37 = vsel %vm300_vm0, %v2456_v51, 0.0 }
 0x2e1   : > { %2537 = vst.msk [vmem:[%s4300_s19 + $0x90] sm:$0xff] %vm300_vm0, %v2451_v43  ;;  %v2586_v3 = vsel %vm300_vm0, %v2451_v43, 0.0  ;;  %v2638_v15 = vmul.f32 %v2451_v43, %v2451_v43  ;;  %v2689_v24 = vsel %vm300_vm0, %v2639_v40, 0.0 }
 0x2e2   : > { %v2587_v16 = vadd.f32 %v2586_v3, %v2585_v8 }
 0x2e3   : > { %v2687_v4 = vsel %vm300_vm0, %v2638_v15, 0.0 }
 0x2e4   : > { %v2688_v25 = vadd.f32 %v2687_v4, %v2686_v34  ;;  %v2589_v48 = vadd.f32 %v2588_v37, %v2587_v16 }
 0x2e6   : > { %v2690_v56 = vadd.f32 %v2689_v24, %v2688_v25 }
 0x2f4   : > { %v3184_v42 = vpop.f32.mrf.mxu1 }
 0x2f5   : > { %v2466_v50 = vadd.f32 %v3184_v42, %v4291_v61 }
 0x2f6   : > { %v2460_v36 = vpop.f32.mrf.mxu1 }
 0x2f7   : > { %2540 = vst.msk [vmem:[%s4300_s19 + $0xa8] sm:$0xff] %vm300_vm0, %v2466_v50  ;;  %v2641_v2 = vmul.f32 %v2466_v50, %v2466_v50  ;;  %v2461_v58 = vadd.f32 %v4291_v61, %v2460_v36  ;;  %v2592_v18 = vsel %vm300_vm0, %v2466_v50, 0.0 }
 0x2f9   : > { %2539 = vst.msk [vmem:[%s4300_s19 + $0xa0] sm:$0xff] %vm300_vm0, %v2461_v58  ;;  %v2590_v5 = vsel %vm300_vm0, %v2461_v58, 0.0  ;;  %v2640_v47 = vmul.f32 %v2461_v58, %v2461_v58  ;;  %v2693_v39 = vsel %vm300_vm0, %v2641_v2, 0.0 }
 0x2fa   : > { %v2591_v29 = vadd.f32 %v2590_v5, %v2589_v48 }
 0x2fb   : > { %v2691_v20 = vsel %vm300_vm0, %v2640_v47, 0.0 }
 0x2fc   : > { %v2692_v23 = vadd.f32 %v2691_v20, %v2690_v56  ;;  %v2593_v52 = vadd.f32 %v2592_v18, %v2591_v29 }
 0x2fe   : > { %v2694_v32 = vadd.f32 %v2693_v39, %v2692_v23 }
 0x30c   : > { %v3187_v10 = vpop.f32.mrf.mxu1 }
 0x30d   : > { %v2476_v21 = vadd.f32 %v3187_v10, %v4291_v61 }
 0x30e   : > { %v2470_v27 = vpop.f32.mrf.mxu1 }
 0x30f   : > { %2542 = vst.msk [vmem:[%s4300_s19 + $0xb8] sm:$0xff] %vm300_vm0, %v2476_v21  ;;  %v2643_v13 = vmul.f32 %v2476_v21, %v2476_v21  ;;  %v2471_v6 = vadd.f32 %v4291_v61, %v2470_v27  ;;  %v2596_v7 = vsel %vm300_vm0, %v2476_v21, 0.0 }
 0x311   : > { %2541 = vst.msk [vmem:[%s4300_s19 + $0xb0] sm:$0xff] %vm300_vm0, %v2471_v6  ;;  %v2594_v53 = vsel %vm300_vm0, %v2471_v6, 0.0  ;;  %v2642_v14 = vmul.f32 %v2471_v6, %v2471_v6  ;;  %v2697_v26 = vsel %vm300_vm0, %v2643_v13, 0.0 }
 0x312   : > { %v2595_v1 = vadd.f32 %v2594_v53, %v2593_v52 }
 0x313   : > { %v2695_v31 = vsel %vm300_vm0, %v2642_v14, 0.0 }
 0x314   : > { %v2696_v45 = vadd.f32 %v2695_v31, %v2694_v32  ;;  %v2597_v9 = vadd.f32 %v2596_v7, %v2595_v1 }
 0x316   : > { %v2698_v33 = vadd.f32 %v2697_v26, %v2696_v45 }
 0x324   : > { %v3190_v11 = vpop.f32.mrf.mxu1 }
 0x325   : > { %v2486_v19 = vadd.f32 %v3190_v11, %v4291_v61 }
 0x326   : > { %v2480_v55 = vpop.f32.mrf.mxu1 }
 0x327   : > { %2544 = vst.msk [vmem:[%s4300_s19 + $0xc8] sm:$0xff] %vm300_vm0, %v2486_v19  ;;  %v2481_v38 = vadd.f32 %v4291_v61, %v2480_v55  ;;  %v2645_v22 = vmul.f32 %v2486_v19, %v2486_v19  ;;  %v2600_v63 = vsel %vm300_vm0, %v2486_v19, 0.0 }
 0x329   : > { %2543 = vst.msk [vmem:[%s4300_s19 + $0xc0] sm:$0xff] %vm300_vm0, %v2481_v38  ;;  %v2644_v49 = vmul.f32 %v2481_v38, %v2481_v38  ;;  %v2598_v12 = vsel %vm300_vm0, %v2481_v38, 0.0  ;;  %v2701_v34 = vsel %vm300_vm0, %v2645_v22, 0.0 }
 0x32a   : > { %v2599_v17 = vadd.f32 %v2598_v12, %v2597_v9 }
 0x32b   : > { %v2699_v62 = vsel %vm300_vm0, %v2644_v49, 0.0 }
 0x32c   : > { %v2700_v8 = vadd.f32 %v2699_v62, %v2698_v33  ;;  %v2601_v51 = vadd.f32 %v2600_v63, %v2599_v17 }
 0x32e   : > { %v2702_v37 = vadd.f32 %v2701_v34, %v2700_v8 }
 0x33d   : > { %v3193_v41 = vpop.f32.mrf.mxu1 }
 0x33e   : > { %v2496_v57 = vadd.f32 %v3193_v41, %v4291_v61 }
 0x33f   : > { %v2490_v59 = vpop.f32.mrf.mxu1 }
 0x340   : > { %2546 = vst.msk [vmem:[%s4300_s19 + $0xd8] sm:$0xff] %vm300_vm0, %v2496_v57  ;;  %v2491_v60 = vadd.f32 %v4291_v61, %v2490_v59  ;;  %v2647_v0 = vmul.f32 %v2496_v57, %v2496_v57  ;;  %v2604_v3 = vsel %vm300_vm0, %v2496_v57, 0.0 }
 0x342   : > { %2545 = vst.msk [vmem:[%s4300_s19 + $0xd0] sm:$0xff] %vm300_vm0, %v2491_v60  ;;  %v2646_v30 = vmul.f32 %v2491_v60, %v2491_v60  ;;  %v2602_v46 = vsel %vm300_vm0, %v2491_v60, 0.0  ;;  %v2705_v24 = vsel %vm300_vm0, %v2647_v0, 0.0 }
 0x343   : > { %v2603_v43 = vadd.f32 %v2602_v46, %v2601_v51 }
 0x344   : > { %v2703_v40 = vsel %vm300_vm0, %v2646_v30, 0.0 }
 0x345   : > { %v2704_v16 = vadd.f32 %v2703_v40, %v2702_v37  ;;  %v2605_v25 = vadd.f32 %v2604_v3, %v2603_v43 }
 0x347   : > { %v2706_v50 = vadd.f32 %v2705_v24, %v2704_v16 }
 0x354   : > { %v3196_v28 = vpop.f32.mrf.mxu1 }
 0x355   : > { %v2506_v44 = vadd.f32 %v3196_v28, %v4291_v61 }
 0x356   : > { %v2500_v54 = vpop.f32.mrf.mxu1 }
 0x357   : > { %2548 = vst.msk [vmem:[%s4300_s19 + $0xe8] sm:$0xff] %vm300_vm0, %v2506_v44  ;;  %v2501_v35 = vadd.f32 %v4291_v61, %v2500_v54  ;;  %v2649_v48 = vmul.f32 %v2506_v44, %v2506_v44  ;;  %v2608_v2 = vsel %vm300_vm0, %v2506_v44, 0.0 }
 0x359   : > { %2547 = vst.msk [vmem:[%s4300_s19 + $0xe0] sm:$0xff] %vm300_vm0, %v2501_v35  ;;  %v2648_v15 = vmul.f32 %v2501_v35, %v2501_v35  ;;  %v2606_v4 = vsel %vm300_vm0, %v2501_v35, 0.0  ;;  %v2709_v47 = vsel %vm300_vm0, %v2649_v48, 0.0 }
 0x35a   : > { %v2607_v42 = vadd.f32 %v2606_v4, %v2605_v25 }
 0x35b   : > { %v2707_v56 = vsel %vm300_vm0, %v2648_v15, 0.0 }
 0x35c   : > { %v2708_v18 = vadd.f32 %v2707_v56, %v2706_v50  ;;  %v2609_v39 = vadd.f32 %v2608_v2, %v2607_v42 }
 0x35e   : > { %v2710_v10 = vadd.f32 %v2709_v47, %v2708_v18 }
 0x367   : > { %v3199_v36 = vpop.f32.mrf.mxu1 }
 0x368   : > { %v2516_v58 = vadd.f32 %v3199_v36, %v4291_v61 }
 0x369   : > { %v2510_v5 = vpop.f32.mrf.mxu1 }
 0x36a   : > { %2550 = vst.msk [vmem:[%s4300_s19 + $0xf8] sm:$0xff] %vm300_vm0, %v2516_v58  ;;  %v2511_v29 = vadd.f32 %v4291_v61, %v2510_v5  ;;  %v2651_v20 = vmul.f32 %v2516_v58, %v2516_v58  ;;  %v2612_v21 = vsel %vm300_vm0, %v2516_v58, 0.0 }
 0x36c   : > { %2549 = vst.msk [vmem:[%s4300_s19 + $0xf0] sm:$0xff] %vm300_vm0, %v2511_v29  ;;  %v2610_v23 = vsel %vm300_vm0, %v2511_v29, 0.0  ;;  %v2650_v52 = vmul.f32 %v2511_v29, %v2511_v29  ;;  %v2713_v7 = vsel %vm300_vm0, %v2651_v20, 0.0 }
 0x36d   : > { %v2611_v32 = vadd.f32 %v2610_v23, %v2609_v39 }
 0x36e   : > { %v2711_v27 = vsel %vm300_vm0, %v2650_v52, 0.0 }
 0x36f   : > { %v2613_v13 = vadd.f32 %v2612_v21, %v2611_v32  ;;  %v2712_v6 = vadd.f32 %v2711_v27, %v2710_v10 }
 0x371   : > { %v2614_v53 = vrot.slane %v2613_v13, 4  ;;  %v2714_v61 = vadd.f32 %v2713_v7, %v2712_v6 }
 0x373   : > { %v2615_v14 = vadd.f32 %v2614_v53, %v2613_v13  ;;  %v2715_v1 = vrot.slane %v2714_v61, 4 }
 0x375   : > { %v2616_v26 = vrot.slane %v2615_v14, 2  ;;  %v2716_v31 = vadd.f32 %v2715_v1, %v2714_v61 }
 0x377   : > { %v2617_v45 = vadd.f32 %v2616_v26, %v2615_v14  ;;  %v2717_v9 = vrot.slane %v2716_v31, 2 }
 0x379   : > { %v2618_v33 = vrot.slane %v2617_v45, 1  ;;  %v2718_v11 = vadd.f32 %v2717_v9, %v2716_v31 }
 0x37b   : > { %v2719_v19 = vrot.slane %v2718_v11, 1  ;;  %v2619_v55 = vadd.f32 %v2618_v33, %v2617_v45 }
 0x37d   : > { %v2720_v38 = vadd.f32 %v2719_v19, %v2718_v11 }
 0x37f   : > { %v2722_v41 = vsel %vm2721_vm12, %v2619_v55, %v2720_v38 }
 0x380   : > { %2724 = vst.msk [vmem:[%s295_s15] sm:$0x3] %vm303_vm1, %v2722_v41 }
 0x381 PF: > { %s17_s23 = sadd.s32 1, %s3267_s23   ;;  %s4562_s21 = smov %s3263_s22 }
 0x382   : > { %p14_p5 = scmp.ge.s32.totalorder %s17_s23, 4   ;;  %s4563_s22 = smov %s4565_s24 }
 0x384   :  { %16 = sbr.rel (!%p14_p5) target bundleno = 2 (0x2), region = 90 }

// kernel: upconv_block_forward.5
= control target key start
LH: loop header
LB: loop body
LE: loop exit
PB: predicated region body
PF: predicated region fallthrough
CT: control target
= control target key end

     0   :  { %s5300_s18 = smov 0   ;;  %s5302_s19 = smov 0   ;;  %s7688_s0 = inlined_call_operand.vmem [shape: f32[2,16,16,4], index: 0, kind: input, shape index: {}]   ;;  %s7689_s1 = inlined_call_operand.vmem [shape: f32[2,16,16,4], index: 1, kind: input, shape index: {}]   ;;  %s7690_s2 = inlined_call_operand.vmem [shape: f32[72,4], index: 2, kind: input, shape index: {}]   ;;  %s7691_s3 = inlined_call_operand.vmem [shape: f32[1,4], index: 3, kind: input, shape index: {}]   ;;  %s7692_s4 = inlined_call_operand.vmem [shape: f32[2,16,16,4], index: 4, kind: output, shape index: {0}]   ;;  %s7693_s5 = inlined_call_operand.vmem [shape: f32[2,1,2,4], index: 5, kind: output, shape index: {1}]  }
   0x1   :  { %s5304_s20 = smov 0  }
   0x2 LB: > { %s28_s21 = sadd.s32 1, %s5246_s19  ;;  %p4631_p0 = scmp.ge.s32.totalorder %s5250_s20, 1  ;;  %s5250_s20 = sphi %s5304_s20, %s16_s20   ;;  %s5246_s19 = sphi %s5302_s19, %s7785_s19   ;;  %s5242_s18 = sphi %s5300_s18, %s7784_s18  }
   0x3   : > { %p30_p1 = scmp.ge.s32.totalorder %s28_s21, 2  ;;  %p216_p2 = scmp.lt.s32.totalorder %s5250_s20, 3 }
   0x5   : > { %s7787_s21 = smov (%p30_p1, %s28_s21), 0  ;;  %p217_p3 = pnand %p4631_p0, %p216_p2 }
   0x7   : > { %220 = sbr.rel (%p217_p3) target bundleno = 1500 (0x5dc), region = 36 }
   0xc   : > { %vm293_vm0 = vcmask 31744   ;;  %vm296_vm1 = vcmask 25600   ;;  %p261_p4 = scmp.lt.s32.totalorder %s5242_s18, 1  ;;  %v5252_v0 = vmov 0.0   ;;  %s5253_s26 = smov 4   ;;  %vm761_vm2 = vcmask 64544  }
   0xd   : > { %294 = vst.msk [vmem:[#allocation2] sm:$0xff] %vm293_vm0, %v5252_v0  ;;  %295 = vst.msk [vmem:[#allocation2 + $0x8] sm:$0xff] %vm293_vm0, %v5252_v0  ;;  %s5254_s27 = smov 8   ;;  %s5255_s28 = smov 12   ;;  %vm954_vm3 = vcmask 97344   ;;  %vm1150_vm4 = vcmask 130144  }
   0xe   : > { %298 = vst.msk [vmem:[#allocation2 + $0x18] sm:$0xff] %vm293_vm0, %v5252_v0  ;;  %299 = vst.msk [vmem:[#allocation2 + $0x20] sm:$0xff] %vm293_vm0, %v5252_v0  ;;  %s7789_s18 = smov (!%p261_p4, %s5242_s18), 1  ;;  %s5256_s29 = smov 16   ;;  %vm1343_vm5 = vcmask 162944   ;;  %vm1536_vm6 = vcmask 195744  }
   0xf   : > { %301 = vst.msk [vmem:[#allocation2 + $0x30] sm:$0xff] %vm293_vm0, %v5252_v0  ;;  %302 = vst.msk [vmem:[#allocation2 + $0x38] sm:$0xff] %vm293_vm0, %v5252_v0  ;;  %s5543_s22 = sshll.u32 %s7789_s18, 8  ;;  %s5257_s30 = smov 20   ;;  %vm1732_vm7 = vcmask 228544   ;;  %vm1925_vm8 = vcmask 261344  }
  0x10   : > { %304 = vst.msk [vmem:[#allocation2 + $0x48] sm:$0xff] %vm293_vm0, %v5252_v0  ;;  %305 = vst.msk [vmem:[#allocation2 + $0x50] sm:$0xff] %vm293_vm0, %v5252_v0  ;;  %s5549_s25 = scalar_lea.vmem %s7688_s0, %s5543_s22  ;;  %s5258_s6 = smov 24   ;;  %vm2118_vm9 = vcmask 294144   ;;  %vm2312_vm10 = vcmask 326944   ;;  %vm2505_vm11 = vcmask 359744  }
  0x11   : > { %307 = vst.msk [vmem:[#allocation2 + $0x60] sm:$0xff] %vm293_vm0, %v5252_v0  ;;  %308 = vst.msk [vmem:[#allocation2 + $0x68] sm:$0xff] %vm293_vm0, %v5252_v0  ;;  %v349_v1 = vld [vmem:[%s5549_s25] sm:$0xff]  ;;  %v351_v2 = vld [vmem:[%s5549_s25 + $0x10] sm:$0xff]  ;;  %s6378_s9 = scalar_lea.vmem %s7689_s1, %s5543_s22  ;;  %s5259_s10 = smov 28   ;;  %vm2698_vm12 = vcmask 392544  }
  0x12   : > { %310 = vst.msk [vmem:[#allocation2 + $0x78] sm:$0xff] %vm293_vm0, %v5252_v0  ;;  %311 = vst.msk [vmem:[#allocation2 + $0x80] sm:$0xff] %vm293_vm0, %v5252_v0  ;;  %v350_v3 = vld [vmem:[%s5549_s25 + $0x8] sm:$0xff]  ;;  %v353_v4 = vld [vmem:[%s5549_s25 + $0x20] sm:$0xff]  ;;  %s5260_s11 = smov 32   ;;  %s5261_s12 = smov 36  }
  0x13   : > { %313 = vst.msk [vmem:[#allocation2 + $0x90] sm:$0xff] %vm293_vm0, %v5252_v0  ;;  %314 = vst.msk [vmem:[#allocation2 + $0x98] sm:$0xff] %vm293_vm0, %v5252_v0  ;;  %v352_v5 = vld [vmem:[%s5549_s25 + $0x18] sm:$0xff]  ;;  %v355_v6 = vld [vmem:[%s5549_s25 + $0x30] sm:$0xff]  ;;  %s5262_s13 = smov 40   ;;  %s5263_s14 = smov 44  }
  0x14   : > { %316 = vst.msk [vmem:[#allocation2 + $0xa8] sm:$0xff] %vm293_vm0, %v5252_v0  ;;  %317 = vst.msk [vmem:[#allocation2 + $0xb0] sm:$0xff] %vm293_vm0, %v5252_v0  ;;  %v601_v7 = vld [vmem:[#allocation2 + $0x1] sm:$0xff]  ;;  %v356_v11 = vld [vmem:[%s5549_s25 + $0x38] sm:$0xff]  ;;  %s5264_s15 = smov 48   ;;  %s5265_s16 = smov 52  }
  0x15   : > { %319 = vst.msk [vmem:[#allocation2 + $0xc0] sm:$0xff] %vm293_vm0, %v5252_v0  ;;  %320 = vst.msk [vmem:[#allocation2 + $0xc8] sm:$0xff] %vm293_vm0, %v5252_v0  ;;  %v354_v9 = vld [vmem:[%s5549_s25 + $0x28] sm:$0xff]  ;;  %665 = vrot.lane.b32.xlu0 %v601_v7, %s5253_s26  ;;  %v357_v10 = vld [vmem:[%s5549_s25 + $0x40] sm:$0xff]  ;;  %s5266_s24 = smov 56   ;;  %vm2892_vm13 = vcmask 425344  }
  0x16   : > { %322 = vst.msk [vmem:[#allocation2 + $0xd8] sm:$0xff] %vm293_vm0, %v5252_v0  ;;  %323 = vst.msk [vmem:[#allocation2 + $0xe0] sm:$0xff] %vm293_vm0, %v5252_v0  ;;  %v359_v12 = vld [vmem:[%s5549_s25 + $0x50] sm:$0xff]  ;;  %v358_v13 = vld [vmem:[%s5549_s25 + $0x48] sm:$0xff]  ;;  %vm3085_vm14 = vcmask 458144   ;;  %vm3278_vm15 = vcmask 490944  }
  0x17   : > { %325 = vst.msk [vmem:[#allocation2 + $0xf0] sm:$0xff] %vm293_vm0, %v5252_v0  ;;  %326 = vst.msk [vmem:[#allocation2 + $0xf8] sm:$0xff] %vm293_vm0, %v5252_v0  ;;  %v361_v14 = vld [vmem:[%s5549_s25 + $0x60] sm:$0xff]  ;;  %v360_v15 = vld [vmem:[%s5549_s25 + $0x58] sm:$0xff] }
  0x18   : > { %328 = vst.msk [vmem:[#allocation2 + $0x108] sm:$0xff] %vm293_vm0, %v5252_v0  ;;  %329 = vst.msk [vmem:[#allocation2 + $0x110] sm:$0xff] %vm293_vm0, %v5252_v0  ;;  %v363_v16 = vld [vmem:[%s5549_s25 + $0x70] sm:$0xff]  ;;  %v362_v17 = vld [vmem:[%s5549_s25 + $0x68] sm:$0xff] }
  0x19   : > { %331 = vst.msk [vmem:[#allocation2 + $0x120] sm:$0xff] %vm293_vm0, %v5252_v0  ;;  %332 = vst.msk [vmem:[#allocation2 + $0x128] sm:$0xff] %vm293_vm0, %v5252_v0  ;;  %v365_v18 = vld [vmem:[%s5549_s25 + $0x80] sm:$0xff]  ;;  %v364_v19 = vld [vmem:[%s5549_s25 + $0x78] sm:$0xff] }
  0x1a   : > { %334 = vst.msk [vmem:[#allocation2 + $0x138] sm:$0xff] %vm293_vm0, %v5252_v0  ;;  %335 = vst.msk [vmem:[#allocation2 + $0x140] sm:$0xff] %vm293_vm0, %v5252_v0  ;;  %v367_v20 = vld [vmem:[%s5549_s25 + $0x90] sm:$0xff]  ;;  %v366_v21 = vld [vmem:[%s5549_s25 + $0x88] sm:$0xff] }
  0x1b   : > { %337 = vst.msk [vmem:[#allocation2 + $0x150] sm:$0xff] %vm293_vm0, %v5252_v0  ;;  %338 = vst.msk [vmem:[#allocation2 + $0x158] sm:$0xff] %vm293_vm0, %v5252_v0  ;;  %v369_v22 = vld [vmem:[%s5549_s25 + $0xa0] sm:$0xff]  ;;  %v368_v23 = vld [vmem:[%s5549_s25 + $0x98] sm:$0xff] }
  0x1c   : > { %340 = vst.msk [vmem:[#allocation2 + $0x168] sm:$0xff] %vm293_vm0, %v5252_v0  ;;  %341 = vst.msk [vmem:[#allocation2 + $0x170] sm:$0xff] %vm293_vm0, %v5252_v0  ;;  %v371_v24 = vld [vmem:[%s5549_s25 + $0xb0] sm:$0xff]  ;;  %v370_v28 = vld [vmem:[%s5549_s25 + $0xa8] sm:$0xff] }
  0x1d   : > { %343 = vst.msk [vmem:[#allocation2 + $0x180] sm:$0xff] %vm293_vm0, %v5252_v0  ;;  %344 = vst.msk [vmem:[#allocation2 + $0x188] sm:$0xff] %vm293_vm0, %v5252_v0  ;;  %v373_v29 = vld [vmem:[%s5549_s25 + $0xc0] sm:$0xff]  ;;  %v372_v33 = vld [vmem:[%s5549_s25 + $0xb8] sm:$0xff] }
  0x1e   : > { %346 = vst.msk [vmem:[#allocation2 + $0x198] sm:$0xff] %vm293_vm0, %v5252_v0  ;;  %347 = vst.msk [vmem:[#allocation2 + $0x1a0] sm:$0xff] %vm293_vm0, %v5252_v0  ;;  %v375_v34 = vld [vmem:[%s5549_s25 + $0xd0] sm:$0xff]  ;;  %v374_v35 = vld [vmem:[%s5549_s25 + $0xc8] sm:$0xff] }
  0x1f   : > { %414 = vst.msk [vmem:[#allocation3] sm:$0xff] %vm293_vm0, %v5252_v0  ;;  %415 = vst.msk [vmem:[#allocation3 + $0x8] sm:$0xff] %vm293_vm0, %v5252_v0  ;;  %v377_v36 = vld [vmem:[%s5549_s25 + $0xe0] sm:$0xff]  ;;  %v376_v37 = vld [vmem:[%s5549_s25 + $0xd8] sm:$0xff] }
  0x20   : > { %417 = vst.msk [vmem:[#allocation3 + $0x18] sm:$0xff] %vm293_vm0, %v5252_v0  ;;  %418 = vst.msk [vmem:[#allocation3 + $0x20] sm:$0xff] %vm293_vm0, %v5252_v0  ;;  %v378_v39 = vld [vmem:[%s5549_s25 + $0xe8] sm:$0xff]  ;;  %v536_v45 = vld [vmem:[#allocation2] sm:$0xff] }
  0x21   : > { %420 = vst.msk [vmem:[#allocation3 + $0x30] sm:$0xff] %vm293_vm0, %v5252_v0  ;;  %421 = vst.msk [vmem:[#allocation3 + $0x38] sm:$0xff] %vm293_vm0, %v5252_v0  ;;  %v537_v46 = vld [vmem:[#allocation2 + $0x8] sm:$0xff] }
  0x22   : > { %423 = vst.msk [vmem:[#allocation3 + $0x48] sm:$0xff] %vm293_vm0, %v5252_v0  ;;  %424 = vst.msk [vmem:[#allocation3 + $0x50] sm:$0xff] %vm293_vm0, %v5252_v0 }
  0x23   : > { %426 = vst.msk [vmem:[#allocation3 + $0x60] sm:$0xff] %vm293_vm0, %v5252_v0  ;;  %427 = vst.msk [vmem:[#allocation3 + $0x68] sm:$0xff] %vm293_vm0, %v5252_v0 }
  0x24   : > { %429 = vst.msk [vmem:[#allocation3 + $0x78] sm:$0xff] %vm293_vm0, %v5252_v0  ;;  %430 = vst.msk [vmem:[#allocation3 + $0x80] sm:$0xff] %vm293_vm0, %v5252_v0 }
  0x25   : > { %432 = vst.msk [vmem:[#allocation3 + $0x90] sm:$0xff] %vm293_vm0, %v5252_v0  ;;  %433 = vst.msk [vmem:[#allocation3 + $0x98] sm:$0xff] %vm293_vm0, %v5252_v0 }
  0x26   : > { %435 = vst.msk [vmem:[#allocation3 + $0xa8] sm:$0xff] %vm293_vm0, %v5252_v0  ;;  %436 = vst.msk [vmem:[#allocation3 + $0xb0] sm:$0xff] %vm293_vm0, %v5252_v0 }
  0x27   : > { %438 = vst.msk [vmem:[#allocation3 + $0xc0] sm:$0xff] %vm293_vm0, %v5252_v0  ;;  %439 = vst.msk [vmem:[#allocation3 + $0xc8] sm:$0xff] %vm293_vm0, %v5252_v0 }
  0x28   : > { %441 = vst.msk [vmem:[#allocation3 + $0xd8] sm:$0xff] %vm293_vm0, %v5252_v0  ;;  %442 = vst.msk [vmem:[#allocation3 + $0xe0] sm:$0xff] %vm293_vm0, %v5252_v0 }
  0x29   : > { %444 = vst.msk [vmem:[#allocation3 + $0xf0] sm:$0xff] %vm293_vm0, %v5252_v0  ;;  %445 = vst.msk [vmem:[#allocation3 + $0xf8] sm:$0xff] %vm293_vm0, %v5252_v0 }
  0x2a   : > { %447 = vst.msk [vmem:[#allocation3 + $0x108] sm:$0xff] %vm293_vm0, %v5252_v0  ;;  %448 = vst.msk [vmem:[#allocation3 + $0x110] sm:$0xff] %vm293_vm0, %v5252_v0 }
  0x2b   : > { %450 = vst.msk [vmem:[#allocation3 + $0x120] sm:$0xff] %vm293_vm0, %v5252_v0  ;;  %451 = vst.msk [vmem:[#allocation3 + $0x128] sm:$0xff] %vm293_vm0, %v5252_v0 }
  0x2c   : > { %453 = vst.msk [vmem:[#allocation3 + $0x138] sm:$0xff] %vm293_vm0, %v5252_v0  ;;  %454 = vst.msk [vmem:[#allocation3 + $0x140] sm:$0xff] %vm293_vm0, %v5252_v0 }
  0x2d   : > { %456 = vst.msk [vmem:[#allocation3 + $0x150] sm:$0xff] %vm293_vm0, %v5252_v0  ;;  %457 = vst.msk [vmem:[#allocation3 + $0x158] sm:$0xff] %vm293_vm0, %v5252_v0 }
  0x2e   : > { %459 = vst.msk [vmem:[#allocation3 + $0x168] sm:$0xff] %vm293_vm0, %v5252_v0  ;;  %460 = vst.msk [vmem:[#allocation3 + $0x170] sm:$0xff] %vm293_vm0, %v5252_v0 }
  0x2f   : > { %462 = vst.msk [vmem:[#allocation3 + $0x180] sm:$0xff] %vm293_vm0, %v5252_v0  ;;  %463 = vst.msk [vmem:[#allocation3 + $0x188] sm:$0xff] %vm293_vm0, %v5252_v0 }
  0x30   : > { %465 = vst.msk [vmem:[#allocation3 + $0x198] sm:$0xff] %vm293_vm0, %v5252_v0  ;;  %466 = vst.msk [vmem:[#allocation3 + $0x1a0] sm:$0xff] %vm293_vm0, %v5252_v0 }
  0x31   : > { %297 = vst.msk [vmem:[#allocation2 + $0x10] sm:$0x3] %vm296_vm1, %v5252_v0  ;;  %300 = vst.msk [vmem:[#allocation2 + $0x28] sm:$0x3] %vm296_vm1, %v5252_v0 }
  0x32   : > { %303 = vst.msk [vmem:[#allocation2 + $0x40] sm:$0x3] %vm296_vm1, %v5252_v0  ;;  %306 = vst.msk [vmem:[#allocation2 + $0x58] sm:$0x3] %vm296_vm1, %v5252_v0 }
  0x33   : > { %309 = vst.msk [vmem:[#allocation2 + $0x70] sm:$0x3] %vm296_vm1, %v5252_v0  ;;  %312 = vst.msk [vmem:[#allocation2 + $0x88] sm:$0x3] %vm296_vm1, %v5252_v0 }
  0x34   : > { %315 = vst.msk [vmem:[#allocation2 + $0xa0] sm:$0x3] %vm296_vm1, %v5252_v0  ;;  %318 = vst.msk [vmem:[#allocation2 + $0xb8] sm:$0x3] %vm296_vm1, %v5252_v0 }
  0x35   : > { %321 = vst.msk [vmem:[#allocation2 + $0xd0] sm:$0x3] %vm296_vm1, %v5252_v0  ;;  %324 = vst.msk [vmem:[#allocation2 + $0xe8] sm:$0x3] %vm296_vm1, %v5252_v0 }
  0x36   : > { %327 = vst.msk [vmem:[#allocation2 + $0x100] sm:$0x3] %vm296_vm1, %v5252_v0  ;;  %330 = vst.msk [vmem:[#allocation2 + $0x118] sm:$0x3] %vm296_vm1, %v5252_v0 }
  0x37   : > { %333 = vst.msk [vmem:[#allocation2 + $0x130] sm:$0x3] %vm296_vm1, %v5252_v0  ;;  %336 = vst.msk [vmem:[#allocation2 + $0x148] sm:$0x3] %vm296_vm1, %v5252_v0 }
  0x38   : > { %339 = vst.msk [vmem:[#allocation2 + $0x160] sm:$0x3] %vm296_vm1, %v5252_v0  ;;  %342 = vst.msk [vmem:[#allocation2 + $0x178] sm:$0x3] %vm296_vm1, %v5252_v0  ;;  %v602_v8 = vld [vmem:[#allocation2 + $0x9] sm:$0xff] }
  0x39   : > { %345 = vst.msk [vmem:[#allocation2 + $0x190] sm:$0x3] %vm296_vm1, %v5252_v0  ;;  %348 = vst.msk [vmem:[#allocation2 + $0x1a8] sm:$0x3] %vm296_vm1, %v5252_v0  ;;  %667 = vrot.lane.b32.xlu0 %v602_v8, %s5253_s26 }
  0x3a   : > { %416 = vst.msk [vmem:[#allocation3 + $0x10] sm:$0x3] %vm296_vm1, %v5252_v0  ;;  %419 = vst.msk [vmem:[#allocation3 + $0x28] sm:$0x3] %vm296_vm1, %v5252_v0 }
  0x3b   : > { %422 = vst.msk [vmem:[#allocation3 + $0x40] sm:$0x3] %vm296_vm1, %v5252_v0  ;;  %425 = vst.msk [vmem:[#allocation3 + $0x58] sm:$0x3] %vm296_vm1, %v5252_v0 }
  0x3c   : > { %428 = vst.msk [vmem:[#allocation3 + $0x70] sm:$0x3] %vm296_vm1, %v5252_v0  ;;  %431 = vst.msk [vmem:[#allocation3 + $0x88] sm:$0x3] %vm296_vm1, %v5252_v0 }
  0x3d   : > { %434 = vst.msk [vmem:[#allocation3 + $0xa0] sm:$0x3] %vm296_vm1, %v5252_v0  ;;  %437 = vst.msk [vmem:[#allocation3 + $0xb8] sm:$0x3] %vm296_vm1, %v5252_v0 }
  0x3e   : > { %440 = vst.msk [vmem:[#allocation3 + $0xd0] sm:$0x3] %vm296_vm1, %v5252_v0  ;;  %443 = vst.msk [vmem:[#allocation3 + $0xe8] sm:$0x3] %vm296_vm1, %v5252_v0 }
  0x3f   : > { %446 = vst.msk [vmem:[#allocation3 + $0x100] sm:$0x3] %vm296_vm1, %v5252_v0  ;;  %449 = vst.msk [vmem:[#allocation3 + $0x118] sm:$0x3] %vm296_vm1, %v5252_v0 }
  0x40   : > { %452 = vst.msk [vmem:[#allocation3 + $0x130] sm:$0x3] %vm296_vm1, %v5252_v0  ;;  %455 = vst.msk [vmem:[#allocation3 + $0x148] sm:$0x3] %vm296_vm1, %v5252_v0 }
  0x41   : > { %458 = vst.msk [vmem:[#allocation3 + $0x160] sm:$0x3] %vm296_vm1, %v5252_v0  ;;  %461 = vst.msk [vmem:[#allocation3 + $0x178] sm:$0x3] %vm296_vm1, %v5252_v0 }
  0x42   : > { %464 = vst.msk [vmem:[#allocation3 + $0x190] sm:$0x3] %vm296_vm1, %v5252_v0  ;;  %467 = vst.msk [vmem:[#allocation3 + $0x1a8] sm:$0x3] %vm296_vm1, %v5252_v0 }
  0x43   : > { %382 = vst.msk [vmem:[#allocation2 + $0x19] sm:$0xff] %vm293_vm0, %v349_v1  ;;  %384 = vst.msk [vmem:[#allocation2 + $0x31] sm:$0xff] %vm293_vm0, %v351_v2 }
  0x44   : > { %383 = vst.msk [vmem:[#allocation2 + $0x21] sm:$0xff] %vm293_vm0, %v350_v3  ;;  %386 = vst.msk [vmem:[#allocation2 + $0x49] sm:$0xff] %vm293_vm0, %v353_v4 }
  0x45   : > { %385 = vst.msk [vmem:[#allocation2 + $0x39] sm:$0xff] %vm293_vm0, %v352_v5  ;;  %388 = vst.msk [vmem:[#allocation2 + $0x61] sm:$0xff] %vm293_vm0, %v355_v6 }
  0x46   : > { %387 = vst.msk [vmem:[#allocation2 + $0x51] sm:$0xff] %vm293_vm0, %v354_v9  ;;  %390 = vst.msk [vmem:[#allocation2 + $0x79] sm:$0xff] %vm293_vm0, %v357_v10 }
  0x47   : > { %389 = vst.msk [vmem:[#allocation2 + $0x69] sm:$0xff] %vm293_vm0, %v356_v11  ;;  %392 = vst.msk [vmem:[#allocation2 + $0x91] sm:$0xff] %vm293_vm0, %v359_v12 }
  0x48   : > { %391 = vst.msk [vmem:[#allocation2 + $0x81] sm:$0xff] %vm293_vm0, %v358_v13  ;;  %394 = vst.msk [vmem:[#allocation2 + $0xa9] sm:$0xff] %vm293_vm0, %v361_v14 }
  0x49   : > { %393 = vst.msk [vmem:[#allocation2 + $0x99] sm:$0xff] %vm293_vm0, %v360_v15  ;;  %396 = vst.msk [vmem:[#allocation2 + $0xc1] sm:$0xff] %vm293_vm0, %v363_v16 }
  0x4a   : > { %395 = vst.msk [vmem:[#allocation2 + $0xb1] sm:$0xff] %vm293_vm0, %v362_v17  ;;  %398 = vst.msk [vmem:[#allocation2 + $0xd9] sm:$0xff] %vm293_vm0, %v365_v18  ;;  %v5594_v25 = vld [vmem:[#allocation2 + $0x19] sm:$0xff]  ;;  %v5596_v26 = vld [vmem:[#allocation2 + $0x31] sm:$0xff] }
  0x4b   : > { %397 = vst.msk [vmem:[#allocation2 + $0xc9] sm:$0xff] %vm293_vm0, %v364_v19  ;;  %400 = vst.msk [vmem:[#allocation2 + $0xf1] sm:$0xff] %vm293_vm0, %v367_v20  ;;  %669 = vrot.lane.b32.xlu1 %v5594_v25, %s5253_s26  ;;  %v5603_v27 = vld [vmem:[#allocation2 + $0x21] sm:$0xff]  ;;  %673 = vrot.lane.b32.xlu0 %v5596_v26, %s5253_s26  ;;  %v5611_v30 = vld [vmem:[#allocation2 + $0x49] sm:$0xff] }
  0x4c   : > { %399 = vst.msk [vmem:[#allocation2 + $0xe1] sm:$0xff] %vm293_vm0, %v366_v21  ;;  %402 = vst.msk [vmem:[#allocation2 + $0x109] sm:$0xff] %vm293_vm0, %v369_v22  ;;  %v5615_v31 = vld [vmem:[#allocation2 + $0x39] sm:$0xff]  ;;  %v5619_v32 = vld [vmem:[#allocation2 + $0x61] sm:$0xff] }
  0x4d   : > { %401 = vst.msk [vmem:[#allocation2 + $0xf9] sm:$0xff] %vm293_vm0, %v368_v23  ;;  %404 = vst.msk [vmem:[#allocation2 + $0x121] sm:$0xff] %vm293_vm0, %v371_v24  ;;  %v5631_v38 = vld [vmem:[#allocation2 + $0x51] sm:$0xff]  ;;  %v5639_v40 = vld [vmem:[#allocation2 + $0x79] sm:$0xff] }
  0x4e   : > { %403 = vst.msk [vmem:[#allocation2 + $0x111] sm:$0xff] %vm293_vm0, %v370_v28  ;;  %406 = vst.msk [vmem:[#allocation2 + $0x139] sm:$0xff] %vm293_vm0, %v373_v29  ;;  %v5643_v41 = vld [vmem:[#allocation2 + $0x69] sm:$0xff]  ;;  %v5647_v42 = vld [vmem:[#allocation2 + $0x91] sm:$0xff] }
  0x4f   : > { %671 = vrot.lane.b32.xlu1 %v5603_v27, %s5253_s26  ;;  %677 = vrot.lane.b32.xlu0 %v5611_v30, %s5253_s26  ;;  %405 = vst.msk [vmem:[#allocation2 + $0x129] sm:$0xff] %vm293_vm0, %v372_v33  ;;  %408 = vst.msk [vmem:[#allocation2 + $0x151] sm:$0xff] %vm293_vm0, %v375_v34  ;;  %v5651_v43 = vld [vmem:[#allocation2 + $0x81] sm:$0xff]  ;;  %v5655_v44 = vld [vmem:[#allocation2 + $0xa9] sm:$0xff] }
  0x50   : > { %407 = vst.msk [vmem:[#allocation2 + $0x141] sm:$0xff] %vm293_vm0, %v374_v35  ;;  %410 = vst.msk [vmem:[#allocation2 + $0x169] sm:$0xff] %vm293_vm0, %v377_v36  ;;  %v5660_v47 = vld [vmem:[#allocation2 + $0x99] sm:$0xff]  ;;  %v5669_v49 = vld [vmem:[#allocation2 + $0x30] sm:$0xff] }
  0x51   : > { %409 = vst.msk [vmem:[#allocation2 + $0x159] sm:$0xff] %vm293_vm0, %v376_v37  ;;  %411 = vst.msk [vmem:[#allocation2 + $0x171] sm:$0xff] %vm293_vm0, %v378_v39  ;;  %v5663_v48 = vld [vmem:[#allocation2 + $0x18] sm:$0xff]  ;;  %v5671_v50 = vld [vmem:[#allocation2 + $0xc1] sm:$0xff] }
  0x52   : > { %569 = vst.msk [vmem:[#allocation4] sm:$0xff] %vm293_vm0, %v536_v45  ;;  %570 = vst.msk [vmem:[#allocation4 + $0x8] sm:$0xff] %vm293_vm0, %v537_v46  ;;  %v5675_v51 = vld [vmem:[#allocation2 + $0x20] sm:$0xff]  ;;  %v5677_v52 = vld [vmem:[#allocation2 + $0x48] sm:$0xff] }
  0x53   : > { %675 = vrot.lane.b32.xlu1 %v5615_v31, %s5253_s26  ;;  %681 = vrot.lane.b32.xlu0 %v5619_v32, %s5253_s26  ;;  %571 = vst.msk [vmem:[#allocation4 + $0x10] sm:$0xff] %vm293_vm0, %v5663_v48  ;;  %573 = vst.msk [vmem:[#allocation4 + $0x20] sm:$0xff] %vm293_vm0, %v5669_v49  ;;  %v5681_v53 = vld [vmem:[#allocation2 + $0xb1] sm:$0xff]  ;;  %v5689_v55 = vld [vmem:[#allocation2 + $0x60] sm:$0xff] }
  0x54   : > { %572 = vst.msk [vmem:[#allocation4 + $0x18] sm:$0xff] %vm293_vm0, %v5675_v51  ;;  %575 = vst.msk [vmem:[#allocation4 + $0x30] sm:$0xff] %vm293_vm0, %v5677_v52  ;;  %v5687_v54 = vld [vmem:[#allocation2 + $0x38] sm:$0xff]  ;;  %v5697_v57 = vld [vmem:[#allocation2 + $0x50] sm:$0xff] }
  0x55   : > { %v5691_v56 = vld [vmem:[#allocation2 + $0xd9] sm:$0xff]  ;;  %574 = vst.msk [vmem:[#allocation4 + $0x28] sm:$0xff] %vm293_vm0, %v5687_v54  ;;  %577 = vst.msk [vmem:[#allocation4 + $0x40] sm:$0xff] %vm293_vm0, %v5689_v55  ;;  %v5701_v59 = vld [vmem:[#allocation2 + $0x68] sm:$0xff] }
  0x56   : > { %v5699_v58 = vld [vmem:[#allocation2 + $0x78] sm:$0xff]  ;;  %576 = vst.msk [vmem:[#allocation4 + $0x38] sm:$0xff] %vm293_vm0, %v5697_v57  ;;  %578 = vst.msk [vmem:[#allocation4 + $0x48] sm:$0xff] %vm293_vm0, %v5701_v59  ;;  %v5711_v60 = vld [vmem:[#allocation2 + $0x90] sm:$0xff] }
  0x57   : > { %679 = vrot.lane.b32.xlu1 %v5631_v38, %s5253_s26  ;;  %685 = vrot.lane.b32.xlu0 %v5639_v40, %s5253_s26  ;;  %579 = vst.msk [vmem:[#allocation4 + $0x50] sm:$0xff] %vm293_vm0, %v5699_v58  ;;  %v5713_v61 = vld [vmem:[#allocation2 + $0x80] sm:$0xff]  ;;  %v5715_v62 = vld [vmem:[#allocation2 + $0xa8] sm:$0xff]  ;;  %581 = vst.msk [vmem:[#allocation4 + $0x60] sm:$0xff] %vm293_vm0, %v5711_v60 }
  0x58   : > { %v5717_v63 = vld [vmem:[#allocation2 + $0xc9] sm:$0xff]  ;;  %580 = vst.msk [vmem:[#allocation4 + $0x58] sm:$0xff] %vm293_vm0, %v5713_v61  ;;  %583 = vst.msk [vmem:[#allocation4 + $0x70] sm:$0xff] %vm293_vm0, %v5715_v62  ;;  %v5725_v0 = vld [vmem:[#allocation2 + $0x98] sm:$0xff] }
  0x59   : > { %v5727_v1 = vld [vmem:[#allocation2 + $0xc0] sm:$0xff]  ;;  %v5729_v2 = vld [vmem:[#allocation2 + $0xb0] sm:$0xff]  ;;  %582 = vst.msk [vmem:[#allocation4 + $0x68] sm:$0xff] %vm293_vm0, %v5725_v0  ;;  %v5739_v3 = vld [vmem:[#allocation2 + $0xd8] sm:$0xff] }
  0x5a   : > { %585 = vst.msk [vmem:[#allocation4 + $0x80] sm:$0xff] %vm293_vm0, %v5727_v1  ;;  %584 = vst.msk [vmem:[#allocation4 + $0x78] sm:$0xff] %vm293_vm0, %v5729_v2  ;;  %v5741_v4 = vld [vmem:[#allocation2 + $0xc8] sm:$0xff]  ;;  %v5743_v5 = vld [vmem:[#allocation2 + $0xf0] sm:$0xff] }
  0x5b   : > { %683 = vrot.lane.b32.xlu1 %v5643_v41, %s5253_s26  ;;  %689 = vrot.lane.b32.xlu0 %v5647_v42, %s5253_s26  ;;  %587 = vst.msk [vmem:[#allocation4 + $0x90] sm:$0xff] %vm293_vm0, %v5739_v3  ;;  %586 = vst.msk [vmem:[#allocation4 + $0x88] sm:$0xff] %vm293_vm0, %v5741_v4  ;;  %v5751_v6 = vld [vmem:[#allocation2 + $0xe0] sm:$0xff]  ;;  %v5753_v7 = vld [vmem:[#allocation2 + $0x108] sm:$0xff] }
  0x5c   : > { %589 = vst.msk [vmem:[#allocation4 + $0xa0] sm:$0xff] %vm293_vm0, %v5743_v5  ;;  %v5755_v8 = vld [vmem:[#allocation2 + $0xf8] sm:$0xff]  ;;  %588 = vst.msk [vmem:[#allocation4 + $0x98] sm:$0xff] %vm293_vm0, %v5751_v6  ;;  %v5765_v9 = vld [vmem:[#allocation2 + $0x120] sm:$0xff] }
  0x5d   : > { %591 = vst.msk [vmem:[#allocation4 + $0xb0] sm:$0xff] %vm293_vm0, %v5753_v7  ;;  %590 = vst.msk [vmem:[#allocation4 + $0xa8] sm:$0xff] %vm293_vm0, %v5755_v8  ;;  %v5767_v10 = vld [vmem:[#allocation2 + $0x110] sm:$0xff]  ;;  %v5775_v12 = vld [vmem:[#allocation2 + $0x138] sm:$0xff] }
  0x5e   : > { %v5769_v11 = vld [vmem:[#allocation2 + $0xf1] sm:$0xff]  ;;  %593 = vst.msk [vmem:[#allocation4 + $0xc0] sm:$0xff] %vm293_vm0, %v5765_v9  ;;  %592 = vst.msk [vmem:[#allocation4 + $0xb8] sm:$0xff] %vm293_vm0, %v5767_v10  ;;  %v5781_v13 = vld [vmem:[#allocation2 + $0xe1] sm:$0xff] }
  0x5f   : > { %687 = vrot.lane.b32.xlu1 %v5651_v43, %s5253_s26  ;;  %693 = vrot.lane.b32.xlu0 %v5655_v44, %s5253_s26  ;;  %595 = vst.msk [vmem:[#allocation4 + $0xd0] sm:$0xff] %vm293_vm0, %v5775_v12  ;;  %v5783_v14 = vld [vmem:[#allocation2 + $0x128] sm:$0xff]  ;;  %v5791_v16 = vld [vmem:[#allocation2 + $0x150] sm:$0xff]  ;;  %v5797_v17 = vld [vmem:[#allocation2 + $0xf9] sm:$0xff] }
  0x60   : > { %594 = vst.msk [vmem:[#allocation4 + $0xc8] sm:$0xff] %vm293_vm0, %v5783_v14  ;;  %v5789_v15 = vld [vmem:[#allocation2 + $0x109] sm:$0xff]  ;;  %597 = vst.msk [vmem:[#allocation4 + $0xe0] sm:$0xff] %vm293_vm0, %v5791_v16  ;;  %v5799_v18 = vld [vmem:[#allocation2 + $0x140] sm:$0xff] }
  0x61   : > { %596 = vst.msk [vmem:[#allocation4 + $0xd8] sm:$0xff] %vm293_vm0, %v5799_v18  ;;  %v5805_v19 = vld [vmem:[#allocation2 + $0x121] sm:$0xff]  ;;  %v5813_v21 = vld [vmem:[#allocation2 + $0x111] sm:$0xff]  ;;  %v5821_v23 = vld [vmem:[#allocation2 + $0x139] sm:$0xff] }
  0x62   : > { %v5807_v20 = vld [vmem:[#allocation2 + $0x168] sm:$0xff]  ;;  %v5815_v22 = vld [vmem:[#allocation2 + $0x158] sm:$0xff]  ;;  %v5827_v28 = vld [vmem:[#allocation2 + $0x170] sm:$0xff] }
  0x63   : > { %691 = vrot.lane.b32.xlu1 %v5660_v47, %s5253_s26  ;;  %697 = vrot.lane.b32.xlu0 %v5671_v50, %s5253_s26  ;;  %599 = vst.msk [vmem:[#allocation4 + $0xf0] sm:$0xff] %vm293_vm0, %v5807_v20  ;;  %598 = vst.msk [vmem:[#allocation4 + $0xe8] sm:$0xff] %vm293_vm0, %v5815_v22  ;;  %v5825_v24 = vld [vmem:[#allocation2 + $0x129] sm:$0xff]  ;;  %v5835_v33 = vld [vmem:[#allocation2 + $0x151] sm:$0xff] }
  0x64   : > { %v379_v29 = vld [vmem:[%s5549_s25 + $0xf0] sm:$0xff]  ;;  %600 = vst.msk [vmem:[#allocation4 + $0xf8] sm:$0xff] %vm293_vm0, %v5827_v28  ;;  %v5839_v34 = vld [vmem:[#allocation2 + $0x141] sm:$0xff]  ;;  %v380_v36 = vld [vmem:[%s5549_s25 + $0xf8] sm:$0xff] }
  0x65   : > { %412 = vst.msk [vmem:[#allocation2 + $0x181] sm:$0xff] %vm293_vm0, %v379_v29  ;;  %7724 = vst [vmem:[#allocation5_spill] sm:$0xff] %v5839_v34  ;;  %v5843_v35 = vld [vmem:[#allocation2 + $0x169] sm:$0xff]  ;;  %v5849_v37 = vld [vmem:[#allocation2 + $0x159] sm:$0xff] }
  0x66   : > { %7725 = vst [vmem:[#allocation6_spill] sm:$0xff] %v5843_v35  ;;  %413 = vst.msk [vmem:[#allocation2 + $0x189] sm:$0xff] %vm293_vm0, %v380_v36  ;;  %v794_v39 = vld [vmem:[#allocation2 + $0x2] sm:$0xff]  ;;  %v5855_v45 = vld [vmem:[#allocation2 + $0x171] sm:$0xff] }
  0x67   : > { %695 = vrot.lane.b32.xlu1 %v5681_v53, %s5253_s26  ;;  %701 = vrot.lane.b32.xlu0 %v5691_v56, %s5253_s26  ;;  %7726 = vst [vmem:[#allocation7_spill] sm:$0xff] %v5849_v37  ;;  %7727 = vst [vmem:[#allocation8_spill] sm:$0xff] %v5855_v45  ;;  %v5858_v46 = vld [vmem:[#allocation2 + $0x1a] sm:$0xff]  ;;  %v795_v29 = vld [vmem:[#allocation2 + $0xa] sm:$0xff] }
  0x68   : > { %7728 = vst [vmem:[#allocation9_spill] sm:$0xff] %v5858_v46  ;;  %v5864_v36 = vld [vmem:[#allocation2 + $0x32] sm:$0xff] }
  0x69   : > { %7729 = vst [vmem:[#allocation10_spill] sm:$0xff] %v5864_v36 }
  0x6b   : > { %699 = vrot.lane.b32.xlu1 %v5717_v63, %s5253_s26  ;;  %705 = vrot.lane.b32.xlu0 %v5769_v11, %s5253_s26 }
  0x6f   : > { %703 = vrot.lane.b32.xlu1 %v5781_v13, %s5253_s26  ;;  %709 = vrot.lane.b32.xlu0 %v5789_v15, %s5253_s26 }
  0x73   : > { %707 = vrot.lane.b32.xlu1 %v5797_v17, %s5253_s26  ;;  %713 = vrot.lane.b32.xlu0 %v5805_v19, %s5253_s26 }
  0x77   : > { %711 = vrot.lane.b32.xlu1 %v5813_v21, %s5253_s26  ;;  %717 = vrot.lane.b32.xlu0 %v5821_v23, %s5253_s26 }
  0x7b   : > { %715 = vrot.lane.b32.xlu1 %v5825_v24, %s5253_s26  ;;  %721 = vrot.lane.b32.xlu0 %v5835_v33, %s5253_s26 }
  0x7f   : > { %719 = vrot.lane.b32.xlu1 %v5839_v34, %s5253_s26  ;;  %725 = vrot.lane.b32.xlu0 %v5843_v35, %s5253_s26  ;;  %v5867_v35 = vld [vmem:[#allocation2 + $0x22] sm:$0xff] }
  0x80   : > { %7730 = vst [vmem:[#allocation11_spill] sm:$0xff] %v5867_v35 }
  0x83   : > { %723 = vrot.lane.b32.xlu1 %v5849_v37, %s5253_s26  ;;  %858 = vrot.lane.b32.xlu0 %v794_v39, %s5254_s27  ;;  %v5871_v37 = vld [vmem:[#allocation2 + $0x4a] sm:$0xff]  ;;  %v5875_v39 = vld [vmem:[#allocation2 + $0x3a] sm:$0xff] }
  0x84   : > { %7731 = vst [vmem:[#allocation12_spill] sm:$0xff] %v5871_v37  ;;  %7732 = vst [vmem:[#allocation13_spill] sm:$0xff] %v5875_v39 }
  0x87   : > { %727 = vrot.lane.b32.xlu1 %v5855_v45, %s5253_s26  ;;  %862 = vrot.lane.b32.xlu0 %v5858_v46, %s5254_s27  ;;  %v5879_v46 = vld [vmem:[#allocation2 + $0x62] sm:$0xff]  ;;  %v666_v45 = vpop.permute.xlu0 %665 }
  0x88   : > { %7733 = vst [vmem:[#allocation14_spill] sm:$0xff] %v5879_v46  ;;  %762 = vst.msk [vmem:[#allocation4] sm:$0xff] %vm761_vm2, %v666_v45  ;;  %v5970_v45 = vld [vmem:[#allocation2 + $0x16a] sm:$0xff] }
  0x8b   : > { %860 = vrot.lane.b32.xlu1 %v795_v29, %s5254_s27  ;;  %866 = vrot.lane.b32.xlu0 %v5864_v36, %s5254_s27  ;;  %v5883_v29 = vld [vmem:[#allocation2 + $0x52] sm:$0xff]  ;;  %v5887_v36 = vld [vmem:[#allocation2 + $0x7a] sm:$0xff] }
  0x8c   : > { %7734 = vst [vmem:[#allocation15_spill] sm:$0xff] %v5883_v29  ;;  %7735 = vst [vmem:[#allocation16_spill] sm:$0xff] %v5887_v36 }
  0x8f   : > { %864 = vrot.lane.b32.xlu1 %v5867_v35, %s5254_s27  ;;  %870 = vrot.lane.b32.xlu0 %v5871_v37, %s5254_s27  ;;  %v5891_v35 = vld [vmem:[#allocation2 + $0x6a] sm:$0xff]  ;;  %v5895_v37 = vld [vmem:[#allocation2 + $0x92] sm:$0xff] }
  0x90   : > { %7736 = vst [vmem:[#allocation17_spill] sm:$0xff] %v5891_v35  ;;  %7737 = vst [vmem:[#allocation18_spill] sm:$0xff] %v5895_v37 }
  0x93   : > { %868 = vrot.lane.b32.xlu1 %v5875_v39, %s5254_s27  ;;  %874 = vrot.lane.b32.xlu0 %v5879_v46, %s5254_s27  ;;  %v5899_v39 = vld [vmem:[#allocation2 + $0x82] sm:$0xff]  ;;  %v5903_v46 = vld [vmem:[#allocation2 + $0xaa] sm:$0xff] }
  0x94   : > { %7738 = vst [vmem:[#allocation19_spill] sm:$0xff] %v5899_v39  ;;  %7739 = vst [vmem:[#allocation20_spill] sm:$0xff] %v5903_v46 }
  0x97   : > { %872 = vrot.lane.b32.xlu1 %v5883_v29, %s5254_s27  ;;  %878 = vrot.lane.b32.xlu0 %v5887_v36, %s5254_s27  ;;  %v5907_v29 = vld [vmem:[#allocation2 + $0x9a] sm:$0xff]  ;;  %v5911_v36 = vld [vmem:[#allocation2 + $0xc2] sm:$0xff] }
  0x98   : > { %7740 = vst [vmem:[#allocation21_spill] sm:$0xff] %v5907_v29  ;;  %7741 = vst [vmem:[#allocation22_spill] sm:$0xff] %v5911_v36 }
  0x9b   : > { %876 = vrot.lane.b32.xlu1 %v5891_v35, %s5254_s27  ;;  %882 = vrot.lane.b32.xlu0 %v5895_v37, %s5254_s27  ;;  %v5915_v35 = vld [vmem:[#allocation2 + $0xb2] sm:$0xff]  ;;  %v5919_v37 = vld [vmem:[#allocation2 + $0xda] sm:$0xff] }
  0x9c   : > { %7742 = vst [vmem:[#allocation23_spill] sm:$0xff] %v5915_v35  ;;  %7743 = vst [vmem:[#allocation24_spill] sm:$0xff] %v5919_v37 }
  0x9f   : > { %880 = vrot.lane.b32.xlu1 %v5899_v39, %s5254_s27  ;;  %886 = vrot.lane.b32.xlu0 %v5903_v46, %s5254_s27  ;;  %v5923_v39 = vld [vmem:[#allocation2 + $0xca] sm:$0xff]  ;;  %v5927_v46 = vld [vmem:[#allocation2 + $0xf2] sm:$0xff] }
  0xa0   : > { %7744 = vst [vmem:[#allocation25_spill] sm:$0xff] %v5923_v39  ;;  %7745 = vst [vmem:[#allocation26_spill] sm:$0xff] %v5927_v46 }
  0xa3   : > { %884 = vrot.lane.b32.xlu1 %v5907_v29, %s5254_s27  ;;  %890 = vrot.lane.b32.xlu0 %v5911_v36, %s5254_s27  ;;  %v5931_v29 = vld [vmem:[#allocation2 + $0xe2] sm:$0xff]  ;;  %v5935_v36 = vld [vmem:[#allocation2 + $0x10a] sm:$0xff] }
  0xa4   : > { %7746 = vst [vmem:[#allocation27_spill] sm:$0xff] %v5931_v29  ;;  %7747 = vst [vmem:[#allocation28_spill] sm:$0xff] %v5935_v36 }
  0xa7   : > { %888 = vrot.lane.b32.xlu1 %v5915_v35, %s5254_s27  ;;  %894 = vrot.lane.b32.xlu0 %v5919_v37, %s5254_s27  ;;  %v5939_v35 = vld [vmem:[#allocation2 + $0xfa] sm:$0xff]  ;;  %v5943_v37 = vld [vmem:[#allocation2 + $0x122] sm:$0xff] }
  0xa8   : > { %7748 = vst [vmem:[#allocation29_spill] sm:$0xff] %v5939_v35  ;;  %7749 = vst [vmem:[#allocation30_spill] sm:$0xff] %v5943_v37 }
  0xab   : > { %892 = vrot.lane.b32.xlu1 %v5923_v39, %s5254_s27  ;;  %898 = vrot.lane.b32.xlu0 %v5927_v46, %s5254_s27  ;;  %v5947_v39 = vld [vmem:[#allocation2 + $0x112] sm:$0xff]  ;;  %v5951_v46 = vld [vmem:[#allocation2 + $0x13a] sm:$0xff] }
  0xac   : > { %7750 = vst [vmem:[#allocation31_spill] sm:$0xff] %v5947_v39  ;;  %7751 = vst [vmem:[#allocation32_spill] sm:$0xff] %v5951_v46 }
  0xaf   : > { %896 = vrot.lane.b32.xlu1 %v5931_v29, %s5254_s27  ;;  %902 = vrot.lane.b32.xlu0 %v5935_v36, %s5254_s27  ;;  %v5956_v36 = vld [vmem:[#allocation2 + $0x12a] sm:$0xff]  ;;  %v668_v29 = vpop.permute.xlu0 %667 }
  0xb0   : > { %763 = vst.msk [vmem:[#allocation4 + $0x8] sm:$0xff] %vm761_vm2, %v668_v29 }
  0xb3   : > { %900 = vrot.lane.b32.xlu1 %v5939_v35, %s5254_s27  ;;  %906 = vrot.lane.b32.xlu0 %v5943_v37, %s5254_s27  ;;  %v5960_v35 = vld [vmem:[#allocation2 + $0x152] sm:$0xff]  ;;  %v5965_v37 = vld [vmem:[#allocation2 + $0x142] sm:$0xff] }
  0xb4   : > { %7752 = vst [vmem:[#allocation33_spill] sm:$0xff] %v5960_v35  ;;  %7753 = vst [vmem:[#allocation34_spill] sm:$0xff] %v5965_v37 }
  0xb7   : > { %904 = vrot.lane.b32.xlu1 %v5947_v39, %s5254_s27  ;;  %910 = vrot.lane.b32.xlu0 %v5951_v46, %s5254_s27  ;;  %v5975_v46 = vld [vmem:[#allocation2 + $0x15a] sm:$0xff] }
  0xbb   : > { %908 = vrot.lane.b32.xlu1 %v5956_v36, %s5254_s27  ;;  %914 = vrot.lane.b32.xlu0 %v5960_v35, %s5254_s27 }
  0xbd   : > { %v670_v39 = vpop.permute.xlu1 %669  ;;  %v674_v34 = vpop.permute.xlu0 %673 }
  0xbe   : > { %764 = vst.msk [vmem:[#allocation4 + $0x10] sm:$0xff] %vm761_vm2, %v670_v39  ;;  %766 = vst.msk [vmem:[#allocation4 + $0x20] sm:$0xff] %vm761_vm2, %v674_v34  ;;  %v5983_v39 = vld [vmem:[#allocation2 + $0x172] sm:$0xff] }
  0xbf   : > { %912 = vrot.lane.b32.xlu1 %v5965_v37, %s5254_s27  ;;  %918 = vrot.lane.b32.xlu0 %v5970_v45, %s5254_s27 }
  0xc1   : > { %v672_v29 = vpop.permute.xlu1 %671  ;;  %v678_v35 = vpop.permute.xlu0 %677 }
  0xc2   : > { %765 = vst.msk [vmem:[#allocation4 + $0x18] sm:$0xff] %vm761_vm2, %v672_v29  ;;  %768 = vst.msk [vmem:[#allocation4 + $0x30] sm:$0xff] %vm761_vm2, %v678_v35 }
  0xc3   : > { %916 = vrot.lane.b32.xlu1 %v5975_v46, %s5254_s27  ;;  %1054 = vrot.lane.b32.xlu0 %v5663_v48, %s5255_s28 }
  0xc5   : > { %v676_v34 = vpop.permute.xlu1 %675  ;;  %v682_v37 = vpop.permute.xlu0 %681 }
  0xc6   : > { %767 = vst.msk [vmem:[#allocation4 + $0x28] sm:$0xff] %vm761_vm2, %v676_v34  ;;  %770 = vst.msk [vmem:[#allocation4 + $0x40] sm:$0xff] %vm761_vm2, %v682_v37 }
  0xc7   : > { %920 = vrot.lane.b32.xlu1 %v5983_v39, %s5254_s27  ;;  %1058 = vrot.lane.b32.xlu0 %v5669_v49, %s5255_s28  ;;  %s5269_s27 = smov 68  }
  0xc9   : > { %v680_v29 = vpop.permute.xlu1 %679  ;;  %v686_v35 = vpop.permute.xlu0 %685 }
  0xca   : > { %769 = vst.msk [vmem:[#allocation4 + $0x38] sm:$0xff] %vm761_vm2, %v680_v29  ;;  %772 = vst.msk [vmem:[#allocation4 + $0x50] sm:$0xff] %vm761_vm2, %v686_v35 }
  0xcb   : > { %1056 = vrot.lane.b32.xlu1 %v5675_v51, %s5255_s28  ;;  %1062 = vrot.lane.b32.xlu0 %v5677_v52, %s5255_s28 }
  0xcd   : > { %v684_v48 = vpop.permute.xlu1 %683  ;;  %v690_v34 = vpop.permute.xlu0 %689 }
  0xce   : > { %771 = vst.msk [vmem:[#allocation4 + $0x48] sm:$0xff] %vm761_vm2, %v684_v48  ;;  %774 = vst.msk [vmem:[#allocation4 + $0x60] sm:$0xff] %vm761_vm2, %v690_v34 }
  0xcf   : > { %1060 = vrot.lane.b32.xlu1 %v5687_v54, %s5255_s28  ;;  %1066 = vrot.lane.b32.xlu0 %v5689_v55, %s5255_s28 }
  0xd1   : > { %v688_v37 = vpop.permute.xlu1 %687  ;;  %v694_v51 = vpop.permute.xlu0 %693 }
  0xd2   : > { %773 = vst.msk [vmem:[#allocation4 + $0x58] sm:$0xff] %vm761_vm2, %v688_v37  ;;  %776 = vst.msk [vmem:[#allocation4 + $0x70] sm:$0xff] %vm761_vm2, %v694_v51 }
  0xd3   : > { %1064 = vrot.lane.b32.xlu1 %v5697_v57, %s5255_s28  ;;  %1070 = vrot.lane.b32.xlu0 %v5699_v58, %s5255_s28 }
  0xd5   : > { %v692_v29 = vpop.permute.xlu1 %691  ;;  %v698_v35 = vpop.permute.xlu0 %697 }
  0xd6   : > { %775 = vst.msk [vmem:[#allocation4 + $0x68] sm:$0xff] %vm761_vm2, %v692_v29  ;;  %778 = vst.msk [vmem:[#allocation4 + $0x80] sm:$0xff] %vm761_vm2, %v698_v35 }
  0xd7   : > { %1068 = vrot.lane.b32.xlu1 %v5701_v59, %s5255_s28  ;;  %1074 = vrot.lane.b32.xlu0 %v5711_v60, %s5255_s28 }
  0xd9   : > { %v696_v48 = vpop.permute.xlu1 %695  ;;  %v702_v34 = vpop.permute.xlu0 %701 }
  0xda   : > { %777 = vst.msk [vmem:[#allocation4 + $0x78] sm:$0xff] %vm761_vm2, %v696_v48  ;;  %780 = vst.msk [vmem:[#allocation4 + $0x90] sm:$0xff] %vm761_vm2, %v702_v34 }
  0xdb   : > { %1072 = vrot.lane.b32.xlu1 %v5713_v61, %s5255_s28  ;;  %1078 = vrot.lane.b32.xlu0 %v5715_v62, %s5255_s28 }
  0xdd   : > { %v700_v37 = vpop.permute.xlu1 %699  ;;  %v706_v51 = vpop.permute.xlu0 %705 }
  0xde   : > { %779 = vst.msk [vmem:[#allocation4 + $0x88] sm:$0xff] %vm761_vm2, %v700_v37  ;;  %782 = vst.msk [vmem:[#allocation4 + $0xa0] sm:$0xff] %vm761_vm2, %v706_v51 }
  0xdf   : > { %1076 = vrot.lane.b32.xlu1 %v5725_v0, %s5255_s28  ;;  %1082 = vrot.lane.b32.xlu0 %v5727_v1, %s5255_s28 }
  0xe1   : > { %v704_v29 = vpop.permute.xlu1 %703  ;;  %v710_v35 = vpop.permute.xlu0 %709 }
  0xe2   : > { %781 = vst.msk [vmem:[#allocation4 + $0x98] sm:$0xff] %vm761_vm2, %v704_v29  ;;  %784 = vst.msk [vmem:[#allocation4 + $0xb0] sm:$0xff] %vm761_vm2, %v710_v35 }
  0xe3   : > { %1080 = vrot.lane.b32.xlu1 %v5729_v2, %s5255_s28  ;;  %1086 = vrot.lane.b32.xlu0 %v5739_v3, %s5255_s28 }
  0xe5   : > { %v708_v48 = vpop.permute.xlu1 %707  ;;  %v714_v34 = vpop.permute.xlu0 %713 }
  0xe6   : > { %783 = vst.msk [vmem:[#allocation4 + $0xa8] sm:$0xff] %vm761_vm2, %v708_v48  ;;  %786 = vst.msk [vmem:[#allocation4 + $0xc0] sm:$0xff] %vm761_vm2, %v714_v34 }
  0xe7   : > { %1084 = vrot.lane.b32.xlu1 %v5741_v4, %s5255_s28  ;;  %1090 = vrot.lane.b32.xlu0 %v5743_v5, %s5255_s28 }
  0xe9   : > { %v712_v37 = vpop.permute.xlu1 %711  ;;  %v718_v51 = vpop.permute.xlu0 %717 }
  0xea   : > { %785 = vst.msk [vmem:[#allocation4 + $0xb8] sm:$0xff] %vm761_vm2, %v712_v37  ;;  %788 = vst.msk [vmem:[#allocation4 + $0xd0] sm:$0xff] %vm761_vm2, %v718_v51 }
  0xeb   : > { %1088 = vrot.lane.b32.xlu1 %v5751_v6, %s5255_s28  ;;  %1094 = vrot.lane.b32.xlu0 %v5753_v7, %s5255_s28 }
  0xed   : > { %v716_v29 = vpop.permute.xlu1 %715  ;;  %v722_v35 = vpop.permute.xlu0 %721 }
  0xee   : > { %787 = vst.msk [vmem:[#allocation4 + $0xc8] sm:$0xff] %vm761_vm2, %v716_v29  ;;  %790 = vst.msk [vmem:[#allocation4 + $0xe0] sm:$0xff] %vm761_vm2, %v722_v35 }
  0xef   : > { %1092 = vrot.lane.b32.xlu1 %v5755_v8, %s5255_s28  ;;  %1098 = vrot.lane.b32.xlu0 %v5765_v9, %s5255_s28 }
  0xf1   : > { %v720_v48 = vpop.permute.xlu1 %719  ;;  %v726_v34 = vpop.permute.xlu0 %725 }
  0xf2   : > { %789 = vst.msk [vmem:[#allocation4 + $0xd8] sm:$0xff] %vm761_vm2, %v720_v48  ;;  %792 = vst.msk [vmem:[#allocation4 + $0xf0] sm:$0xff] %vm761_vm2, %v726_v34  ;;  %v6072_v34 = vld [vmem:[#allocation2 + $0x180] sm:$0xff] }
  0xf3   : > { %1096 = vrot.lane.b32.xlu1 %v5767_v10, %s5255_s28  ;;  %1102 = vrot.lane.b32.xlu0 %v5775_v12, %s5255_s28 }
  0xf5   : > { %v724_v37 = vpop.permute.xlu1 %723  ;;  %v859_v51 = vpop.permute.xlu0 %858 }
  0xf6   : > { %791 = vst.msk [vmem:[#allocation4 + $0xe8] sm:$0xff] %vm761_vm2, %v724_v37 }
  0xf7   : > { %1100 = vrot.lane.b32.xlu1 %v5783_v14, %s5255_s28  ;;  %955 = vst.msk [vmem:[#allocation4] sm:$0xff] %vm954_vm3, %v859_v51  ;;  %1106 = vrot.lane.b32.xlu0 %v5791_v16, %s5255_s28 }
  0xf9   : > { %v728_v29 = vpop.permute.xlu1 %727  ;;  %v863_v35 = vpop.permute.xlu0 %862 }
  0xfa   : > { %793 = vst.msk [vmem:[#allocation4 + $0xf8] sm:$0xff] %vm761_vm2, %v728_v29  ;;  %vm3472_vm2 = vcmask 523744  }
  0xfb   : > { %1104 = vrot.lane.b32.xlu1 %v5799_v18, %s5255_s28  ;;  %957 = vst.msk [vmem:[#allocation4 + $0x10] sm:$0xff] %vm954_vm3, %v863_v35  ;;  %1110 = vrot.lane.b32.xlu0 %v5807_v20, %s5255_s28  ;;  %v6083_v35 = vld [vmem:[#allocation2 + $0x188] sm:$0xff] }
  0xfd   : > { %v861_v48 = vpop.permute.xlu1 %860  ;;  %v867_v37 = vpop.permute.xlu0 %866 }
  0xfe   : > { %956 = vst.msk [vmem:[#allocation4 + $0x8] sm:$0xff] %vm954_vm3, %v861_v48  ;;  %959 = vst.msk [vmem:[#allocation4 + $0x20] sm:$0xff] %vm954_vm3, %v867_v37 }
  0xff   : > { %1108 = vrot.lane.b32.xlu1 %v5815_v22, %s5255_s28  ;;  %1114 = vrot.lane.b32.xlu0 %v6072_v34, %s5255_s28 }
 0x101   : > { %v865_v51 = vpop.permute.xlu1 %864  ;;  %v871_v29 = vpop.permute.xlu0 %870 }
 0x102   : > { %958 = vst.msk [vmem:[#allocation4 + $0x18] sm:$0xff] %vm954_vm3, %v865_v51  ;;  %961 = vst.msk [vmem:[#allocation4 + $0x30] sm:$0xff] %vm954_vm3, %v871_v29 }
 0x103   : > { %1112 = vrot.lane.b32.xlu1 %v5827_v28, %s5255_s28  ;;  %1247 = vrot.lane.b32.xlu0 %v5594_v25, %s5256_s29 }
 0x105   : > { %v869_v48 = vpop.permute.xlu1 %868  ;;  %v875_v37 = vpop.permute.xlu0 %874 }
 0x106   : > { %960 = vst.msk [vmem:[#allocation4 + $0x28] sm:$0xff] %vm954_vm3, %v869_v48  ;;  %963 = vst.msk [vmem:[#allocation4 + $0x40] sm:$0xff] %vm954_vm3, %v875_v37  ;;  %v7754_v37 = vld [vmem:[#allocation5_spill] sm:$0xff] }
 0x107   : > { %1116 = vrot.lane.b32.xlu1 %v6083_v35, %s5255_s28  ;;  %1251 = vrot.lane.b32.xlu0 %v5596_v26, %s5256_s29 }
 0x109   : > { %v873_v51 = vpop.permute.xlu1 %872  ;;  %v879_v29 = vpop.permute.xlu0 %878 }
 0x10a   : > { %962 = vst.msk [vmem:[#allocation4 + $0x38] sm:$0xff] %vm954_vm3, %v873_v51  ;;  %965 = vst.msk [vmem:[#allocation4 + $0x50] sm:$0xff] %vm954_vm3, %v879_v29 }
 0x10b   : > { %1249 = vrot.lane.b32.xlu1 %v5603_v27, %s5256_s29  ;;  %1255 = vrot.lane.b32.xlu0 %v5611_v30, %s5256_s29 }
 0x10d   : > { %v877_v25 = vpop.permute.xlu1 %876  ;;  %v883_v48 = vpop.permute.xlu0 %882 }
 0x10e   : > { %964 = vst.msk [vmem:[#allocation4 + $0x48] sm:$0xff] %vm954_vm3, %v877_v25  ;;  %967 = vst.msk [vmem:[#allocation4 + $0x60] sm:$0xff] %vm954_vm3, %v883_v48 }
 0x10f   : > { %1253 = vrot.lane.b32.xlu1 %v5615_v31, %s5256_s29  ;;  %1259 = vrot.lane.b32.xlu0 %v5619_v32, %s5256_s29 }
 0x111   : > { %v881_v26 = vpop.permute.xlu1 %880  ;;  %v887_v27 = vpop.permute.xlu0 %886 }
 0x112   : > { %966 = vst.msk [vmem:[#allocation4 + $0x58] sm:$0xff] %vm954_vm3, %v881_v26  ;;  %969 = vst.msk [vmem:[#allocation4 + $0x70] sm:$0xff] %vm954_vm3, %v887_v27  ;;  %v7757_v26 = vld [vmem:[#allocation8_spill] sm:$0xff]  ;;  %v6183_v27 = vld [vmem:[#allocation2 + $0x189] sm:$0xff] }
 0x113   : > { %1257 = vrot.lane.b32.xlu1 %v5631_v38, %s5256_s29  ;;  %1263 = vrot.lane.b32.xlu0 %v5639_v40, %s5256_s29 }
 0x115   : > { %v885_v30 = vpop.permute.xlu1 %884  ;;  %v891_v31 = vpop.permute.xlu0 %890 }
 0x116   : > { %968 = vst.msk [vmem:[#allocation4 + $0x68] sm:$0xff] %vm954_vm3, %v885_v30  ;;  %971 = vst.msk [vmem:[#allocation4 + $0x80] sm:$0xff] %vm954_vm3, %v891_v31  ;;  %v7758_v30 = vld [vmem:[#allocation9_spill] sm:$0xff] }
 0x117   : > { %1261 = vrot.lane.b32.xlu1 %v5643_v41, %s5256_s29  ;;  %1267 = vrot.lane.b32.xlu0 %v5647_v42, %s5256_s29 }
 0x119   : > { %v889_v32 = vpop.permute.xlu1 %888  ;;  %v895_v38 = vpop.permute.xlu0 %894 }
 0x11a   : > { %970 = vst.msk [vmem:[#allocation4 + $0x78] sm:$0xff] %vm954_vm3, %v889_v32  ;;  %973 = vst.msk [vmem:[#allocation4 + $0x90] sm:$0xff] %vm954_vm3, %v895_v38  ;;  %v7759_v38 = vld [vmem:[#allocation10_spill] sm:$0xff] }
 0x11b   : > { %1265 = vrot.lane.b32.xlu1 %v5651_v43, %s5256_s29  ;;  %1271 = vrot.lane.b32.xlu0 %v5655_v44, %s5256_s29 }
 0x11d   : > { %v893_v40 = vpop.permute.xlu1 %892  ;;  %v899_v41 = vpop.permute.xlu0 %898 }
 0x11e   : > { %972 = vst.msk [vmem:[#allocation4 + $0x88] sm:$0xff] %vm954_vm3, %v893_v40  ;;  %975 = vst.msk [vmem:[#allocation4 + $0xa0] sm:$0xff] %vm954_vm3, %v899_v41 }
 0x11f   : > { %1269 = vrot.lane.b32.xlu1 %v5660_v47, %s5256_s29  ;;  %1275 = vrot.lane.b32.xlu0 %v5671_v50, %s5256_s29 }
 0x121   : > { %v897_v42 = vpop.permute.xlu1 %896  ;;  %v903_v43 = vpop.permute.xlu0 %902 }
 0x122   : > { %974 = vst.msk [vmem:[#allocation4 + $0x98] sm:$0xff] %vm954_vm3, %v897_v42  ;;  %977 = vst.msk [vmem:[#allocation4 + $0xb0] sm:$0xff] %vm954_vm3, %v903_v43  ;;  %v7760_v42 = vld [vmem:[#allocation11_spill] sm:$0xff]  ;;  %v7761_v43 = vld [vmem:[#allocation12_spill] sm:$0xff] }
 0x123   : > { %1273 = vrot.lane.b32.xlu1 %v5681_v53, %s5256_s29  ;;  %1279 = vrot.lane.b32.xlu0 %v5691_v56, %s5256_s29 }
 0x125   : > { %v901_v44 = vpop.permute.xlu1 %900  ;;  %v907_v47 = vpop.permute.xlu0 %906 }
 0x126   : > { %976 = vst.msk [vmem:[#allocation4 + $0xa8] sm:$0xff] %vm954_vm3, %v901_v44  ;;  %979 = vst.msk [vmem:[#allocation4 + $0xc0] sm:$0xff] %vm954_vm3, %v907_v47 }
 0x127   : > { %1277 = vrot.lane.b32.xlu1 %v5717_v63, %s5256_s29  ;;  %1283 = vrot.lane.b32.xlu0 %v5769_v11, %s5256_s29 }
 0x129   : > { %v905_v50 = vpop.permute.xlu1 %904  ;;  %v911_v53 = vpop.permute.xlu0 %910 }
 0x12a   : > { %978 = vst.msk [vmem:[#allocation4 + $0xb8] sm:$0xff] %vm954_vm3, %v905_v50  ;;  %981 = vst.msk [vmem:[#allocation4 + $0xd0] sm:$0xff] %vm954_vm3, %v911_v53  ;;  %v7762_v50 = vld [vmem:[#allocation13_spill] sm:$0xff]  ;;  %v7763_v53 = vld [vmem:[#allocation14_spill] sm:$0xff] }
 0x12b   : > { %1281 = vrot.lane.b32.xlu1 %v5781_v13, %s5256_s29  ;;  %1287 = vrot.lane.b32.xlu0 %v5789_v15, %s5256_s29 }
 0x12d   : > { %v909_v56 = vpop.permute.xlu1 %908  ;;  %v915_v63 = vpop.permute.xlu0 %914 }
 0x12e   : > { %980 = vst.msk [vmem:[#allocation4 + $0xc8] sm:$0xff] %vm954_vm3, %v909_v56  ;;  %983 = vst.msk [vmem:[#allocation4 + $0xe0] sm:$0xff] %vm954_vm3, %v915_v63 }
 0x12f   : > { %1285 = vrot.lane.b32.xlu1 %v5797_v17, %s5256_s29  ;;  %1291 = vrot.lane.b32.xlu0 %v5805_v19, %s5256_s29 }
 0x131   : > { %v913_v11 = vpop.permute.xlu1 %912  ;;  %v919_v13 = vpop.permute.xlu0 %918 }
 0x132   : > { %982 = vst.msk [vmem:[#allocation4 + $0xd8] sm:$0xff] %vm954_vm3, %v913_v11  ;;  %985 = vst.msk [vmem:[#allocation4 + $0xf0] sm:$0xff] %vm954_vm3, %v919_v13  ;;  %v7764_v11 = vld [vmem:[#allocation15_spill] sm:$0xff]  ;;  %v7765_v13 = vld [vmem:[#allocation16_spill] sm:$0xff] }
 0x133   : > { %1289 = vrot.lane.b32.xlu1 %v5813_v21, %s5256_s29  ;;  %1295 = vrot.lane.b32.xlu0 %v5821_v23, %s5256_s29  ;;  %v7755_v23 = vld [vmem:[#allocation6_spill] sm:$0xff] }
 0x135   : > { %v917_v15 = vpop.permute.xlu1 %916  ;;  %v1055_v17 = vpop.permute.xlu0 %1054 }
 0x136   : > { %984 = vst.msk [vmem:[#allocation4 + $0xe8] sm:$0xff] %vm954_vm3, %v917_v15 }
 0x137   : > { %1293 = vrot.lane.b32.xlu1 %v5825_v24, %s5256_s29  ;;  %1151 = vst.msk [vmem:[#allocation4] sm:$0xff] %vm1150_vm4, %v1055_v17  ;;  %1299 = vrot.lane.b32.xlu0 %v5835_v33, %s5256_s29  ;;  %v6172_v24 = vld [vmem:[#allocation2 + $0x181] sm:$0xff]  ;;  %v7756_v33 = vld [vmem:[#allocation7_spill] sm:$0xff] }
 0x139   : > { %v921_v19 = vpop.permute.xlu1 %920  ;;  %v1059_v21 = vpop.permute.xlu0 %1058 }
 0x13a   : > { %986 = vst.msk [vmem:[#allocation4 + $0xf8] sm:$0xff] %vm954_vm3, %v921_v19  ;;  %v7766_v19 = vld [vmem:[#allocation17_spill] sm:$0xff]  ;;  %vm3665_vm3 = vcmask 556544  }
 0x13b   : > { %1297 = vrot.lane.b32.xlu1 %v7754_v37, %s5256_s29  ;;  %1153 = vst.msk [vmem:[#allocation4 + $0x10] sm:$0xff] %vm1150_vm4, %v1059_v21  ;;  %1303 = vrot.lane.b32.xlu0 %v7755_v23, %s5256_s29  ;;  %v7767_v21 = vld [vmem:[#allocation18_spill] sm:$0xff] }
 0x13d   : > { %v1057_v51 = vpop.permute.xlu1 %1056  ;;  %v1063_v29 = vpop.permute.xlu0 %1062 }
 0x13e   : > { %1152 = vst.msk [vmem:[#allocation4 + $0x8] sm:$0xff] %vm1150_vm4, %v1057_v51  ;;  %1155 = vst.msk [vmem:[#allocation4 + $0x20] sm:$0xff] %vm1150_vm4, %v1063_v29  ;;  %v7768_v51 = vld [vmem:[#allocation19_spill] sm:$0xff]  ;;  %v7769_v29 = vld [vmem:[#allocation20_spill] sm:$0xff] }
 0x13f   : > { %1301 = vrot.lane.b32.xlu1 %v7756_v33, %s5256_s29  ;;  %1307 = vrot.lane.b32.xlu0 %v6172_v24, %s5256_s29 }
 0x141   : > { %v1061_v25 = vpop.permute.xlu1 %1060  ;;  %v1067_v48 = vpop.permute.xlu0 %1066 }
 0x142   : > { %1154 = vst.msk [vmem:[#allocation4 + $0x18] sm:$0xff] %vm1150_vm4, %v1061_v25  ;;  %1157 = vst.msk [vmem:[#allocation4 + $0x30] sm:$0xff] %vm1150_vm4, %v1067_v48  ;;  %v7770_v48 = vld [vmem:[#allocation21_spill] sm:$0xff] }
 0x143   : > { %1305 = vrot.lane.b32.xlu1 %v7757_v26, %s5256_s29  ;;  %1440 = vrot.lane.b32.xlu0 %v7758_v30, %s5257_s30  ;;  %v7771_v26 = vld [vmem:[#allocation22_spill] sm:$0xff] }
 0x145   : > { %v1065_v31 = vpop.permute.xlu1 %1064  ;;  %v1071_v32 = vpop.permute.xlu0 %1070 }
 0x146   : > { %1156 = vst.msk [vmem:[#allocation4 + $0x28] sm:$0xff] %vm1150_vm4, %v1065_v31  ;;  %1159 = vst.msk [vmem:[#allocation4 + $0x40] sm:$0xff] %vm1150_vm4, %v1071_v32  ;;  %v7772_v32 = vld [vmem:[#allocation23_spill] sm:$0xff] }
 0x147   : > { %1309 = vrot.lane.b32.xlu1 %v6183_v27, %s5256_s29  ;;  %1444 = vrot.lane.b32.xlu0 %v7759_v38, %s5257_s30  ;;  %v7773_v38 = vld [vmem:[#allocation24_spill] sm:$0xff]  ;;  %s5267_s29 = smov 60  }
 0x149   : > { %v1069_v40 = vpop.permute.xlu1 %1068  ;;  %v1075_v41 = vpop.permute.xlu0 %1074 }
 0x14a   : > { %1158 = vst.msk [vmem:[#allocation4 + $0x38] sm:$0xff] %vm1150_vm4, %v1069_v40  ;;  %1161 = vst.msk [vmem:[#allocation4 + $0x50] sm:$0xff] %vm1150_vm4, %v1075_v41 }
 0x14b   : > { %1442 = vrot.lane.b32.xlu1 %v7760_v42, %s5257_s30  ;;  %1448 = vrot.lane.b32.xlu0 %v7761_v43, %s5257_s30  ;;  %v7774_v42 = vld [vmem:[#allocation25_spill] sm:$0xff]  ;;  %v7775_v43 = vld [vmem:[#allocation26_spill] sm:$0xff] }
 0x14d   : > { %v1073_v44 = vpop.permute.xlu1 %1072  ;;  %v1079_v47 = vpop.permute.xlu0 %1078 }
 0x14e   : > { %1160 = vst.msk [vmem:[#allocation4 + $0x48] sm:$0xff] %vm1150_vm4, %v1073_v44  ;;  %1163 = vst.msk [vmem:[#allocation4 + $0x60] sm:$0xff] %vm1150_vm4, %v1079_v47 }
 0x14f   : > { %1446 = vrot.lane.b32.xlu1 %v7762_v50, %s5257_s30  ;;  %1452 = vrot.lane.b32.xlu0 %v7763_v53, %s5257_s30  ;;  %v7776_v50 = vld [vmem:[#allocation27_spill] sm:$0xff]  ;;  %v7777_v53 = vld [vmem:[#allocation28_spill] sm:$0xff] }
 0x151   : > { %v1077_v56 = vpop.permute.xlu1 %1076  ;;  %v1083_v63 = vpop.permute.xlu0 %1082 }
 0x152   : > { %1162 = vst.msk [vmem:[#allocation4 + $0x58] sm:$0xff] %vm1150_vm4, %v1077_v56  ;;  %1165 = vst.msk [vmem:[#allocation4 + $0x70] sm:$0xff] %vm1150_vm4, %v1083_v63 }
 0x153   : > { %1450 = vrot.lane.b32.xlu1 %v7764_v11, %s5257_s30  ;;  %1456 = vrot.lane.b32.xlu0 %v7765_v13, %s5257_s30  ;;  %v7778_v11 = vld [vmem:[#allocation29_spill] sm:$0xff]  ;;  %v7779_v13 = vld [vmem:[#allocation30_spill] sm:$0xff] }
 0x155   : > { %v1081_v15 = vpop.permute.xlu1 %1080  ;;  %v1087_v17 = vpop.permute.xlu0 %1086 }
 0x156   : > { %1164 = vst.msk [vmem:[#allocation4 + $0x68] sm:$0xff] %vm1150_vm4, %v1081_v15  ;;  %1167 = vst.msk [vmem:[#allocation4 + $0x80] sm:$0xff] %vm1150_vm4, %v1087_v17 }
 0x157   : > { %1454 = vrot.lane.b32.xlu1 %v7766_v19, %s5257_s30  ;;  %1460 = vrot.lane.b32.xlu0 %v7767_v21, %s5257_s30  ;;  %v7780_v19 = vld [vmem:[#allocation31_spill] sm:$0xff]  ;;  %v7781_v21 = vld [vmem:[#allocation32_spill] sm:$0xff] }
 0x159   : > { %v1085_v37 = vpop.permute.xlu1 %1084  ;;  %v1091_v23 = vpop.permute.xlu0 %1090 }
 0x15a   : > { %1166 = vst.msk [vmem:[#allocation4 + $0x78] sm:$0xff] %vm1150_vm4, %v1085_v37  ;;  %1169 = vst.msk [vmem:[#allocation4 + $0x90] sm:$0xff] %vm1150_vm4, %v1091_v23 }
 0x15b   : > { %1458 = vrot.lane.b32.xlu1 %v7768_v51, %s5257_s30  ;;  %1464 = vrot.lane.b32.xlu0 %v7769_v29, %s5257_s30  ;;  %v7782_v51 = vld [vmem:[#allocation33_spill] sm:$0xff] }
 0x15d   : > { %v1089_v33 = vpop.permute.xlu1 %1088  ;;  %v1095_v25 = vpop.permute.xlu0 %1094 }
 0x15e   : > { %1168 = vst.msk [vmem:[#allocation4 + $0x88] sm:$0xff] %vm1150_vm4, %v1089_v33  ;;  %1171 = vst.msk [vmem:[#allocation4 + $0xa0] sm:$0xff] %vm1150_vm4, %v1095_v25  ;;  %v7783_v25 = vld [vmem:[#allocation34_spill] sm:$0xff] }
 0x15f   : > { %1462 = vrot.lane.b32.xlu1 %v7770_v48, %s5257_s30  ;;  %1468 = vrot.lane.b32.xlu0 %v7771_v26, %s5257_s30 }
 0x161   : > { %v1093_v30 = vpop.permute.xlu1 %1092  ;;  %v1099_v31 = vpop.permute.xlu0 %1098 }
 0x162   : > { %1170 = vst.msk [vmem:[#allocation4 + $0x98] sm:$0xff] %vm1150_vm4, %v1093_v30  ;;  %1173 = vst.msk [vmem:[#allocation4 + $0xb0] sm:$0xff] %vm1150_vm4, %v1099_v31 }
 0x163   : > { %1466 = vrot.lane.b32.xlu1 %v7772_v32, %s5257_s30  ;;  %1472 = vrot.lane.b32.xlu0 %v7773_v38, %s5257_s30 }
 0x165   : > { %v1097_v40 = vpop.permute.xlu1 %1096  ;;  %v1103_v41 = vpop.permute.xlu0 %1102 }
 0x166   : > { %1172 = vst.msk [vmem:[#allocation4 + $0xa8] sm:$0xff] %vm1150_vm4, %v1097_v40  ;;  %1175 = vst.msk [vmem:[#allocation4 + $0xc0] sm:$0xff] %vm1150_vm4, %v1103_v41 }
 0x167   : > { %1470 = vrot.lane.b32.xlu1 %v7774_v42, %s5257_s30  ;;  %1476 = vrot.lane.b32.xlu0 %v7775_v43, %s5257_s30  ;;  %v4766_v42 = vld [vmem:[#allocation2 + $0x1a0] sm:$0xff]  ;;  %v470_v43 = vld [vmem:[%s6378_s9 + $0x10] sm:$0xff] }
 0x168   : > { %503 = vst.msk [vmem:[#allocation3 + $0x31] sm:$0xff] %vm293_vm0, %v470_v43  ;;  %v490_v43 = vld [vmem:[%s6378_s9 + $0xb0] sm:$0xff] }
 0x169   : > { %v1101_v44 = vpop.permute.xlu1 %1100  ;;  %v1107_v47 = vpop.permute.xlu0 %1106  ;;  %523 = vst.msk [vmem:[#allocation3 + $0x121] sm:$0xff] %vm293_vm0, %v490_v43  ;;  %v4814_v43 = vld [vmem:[#allocation2 + $0xe2] sm:$0xff] }
 0x16a   : > { %1174 = vst.msk [vmem:[#allocation4 + $0xb8] sm:$0xff] %vm1150_vm4, %v1101_v44  ;;  %1177 = vst.msk [vmem:[#allocation4 + $0xd0] sm:$0xff] %vm1150_vm4, %v1107_v47  ;;  %v4769_v47 = vld [vmem:[#allocation2 + $0x49] sm:$0xff] }
 0x16b   : > { %1474 = vrot.lane.b32.xlu1 %v7776_v50, %s5257_s30  ;;  %1480 = vrot.lane.b32.xlu0 %v7777_v53, %s5257_s30  ;;  %v469_v50 = vld [vmem:[%s6378_s9 + $0x8] sm:$0xff] }
 0x16c   : > { %502 = vst.msk [vmem:[#allocation3 + $0x21] sm:$0xff] %vm293_vm0, %v469_v50  ;;  %v489_v50 = vld [vmem:[%s6378_s9 + $0xa8] sm:$0xff] }
 0x16d   : > { %v1105_v56 = vpop.permute.xlu1 %1104  ;;  %v1111_v63 = vpop.permute.xlu0 %1110  ;;  %522 = vst.msk [vmem:[#allocation3 + $0x111] sm:$0xff] %vm293_vm0, %v489_v50 }
 0x16e   : > { %1176 = vst.msk [vmem:[#allocation4 + $0xc8] sm:$0xff] %vm1150_vm4, %v1105_v56  ;;  %1179 = vst.msk [vmem:[#allocation4 + $0xe0] sm:$0xff] %vm1150_vm4, %v1111_v63  ;;  %v472_v56 = vld [vmem:[%s6378_s9 + $0x20] sm:$0xff] }
 0x16f   : > { %1478 = vrot.lane.b32.xlu1 %v7778_v11, %s5257_s30  ;;  %1484 = vrot.lane.b32.xlu0 %v7779_v13, %s5257_s30  ;;  %505 = vst.msk [vmem:[#allocation3 + $0x49] sm:$0xff] %vm293_vm0, %v472_v56  ;;  %v4771_v11 = vld [vmem:[#allocation2 + $0x61] sm:$0xff]  ;;  %v471_v13 = vld [vmem:[%s6378_s9 + $0x18] sm:$0xff] }
 0x170   : > { %504 = vst.msk [vmem:[#allocation3 + $0x39] sm:$0xff] %vm293_vm0, %v471_v13  ;;  %v492_v56 = vld [vmem:[%s6378_s9 + $0xc0] sm:$0xff]  ;;  %v491_v13 = vld [vmem:[%s6378_s9 + $0xb8] sm:$0xff] }
 0x171   : > { %v1109_v15 = vpop.permute.xlu1 %1108  ;;  %v1115_v17 = vpop.permute.xlu0 %1114  ;;  %525 = vst.msk [vmem:[#allocation3 + $0x139] sm:$0xff] %vm293_vm0, %v492_v56  ;;  %524 = vst.msk [vmem:[#allocation3 + $0x129] sm:$0xff] %vm293_vm0, %v491_v13  ;;  %v4819_v56 = vld [vmem:[#allocation2 + $0x122] sm:$0xff] }
 0x172   : > { %1178 = vst.msk [vmem:[#allocation4 + $0xd8] sm:$0xff] %vm1150_vm4, %v1109_v15  ;;  %1181 = vst.msk [vmem:[#allocation4 + $0xf0] sm:$0xff] %vm1150_vm4, %v1115_v17  ;;  %v4770_v17 = vld [vmem:[#allocation2 + $0x51] sm:$0xff] }
 0x173   : > { %1482 = vrot.lane.b32.xlu1 %v7780_v19, %s5257_s30  ;;  %1488 = vrot.lane.b32.xlu0 %v7781_v21, %s5257_s30  ;;  %v474_v19 = vld [vmem:[%s6378_s9 + $0x30] sm:$0xff] }
 0x174   : > { %507 = vst.msk [vmem:[#allocation3 + $0x61] sm:$0xff] %vm293_vm0, %v474_v19  ;;  %v494_v19 = vld [vmem:[%s6378_s9 + $0xd0] sm:$0xff] }
 0x175   : > { %v1113_v37 = vpop.permute.xlu1 %1112  ;;  %v1248_v23 = vpop.permute.xlu0 %1247  ;;  %527 = vst.msk [vmem:[#allocation3 + $0x151] sm:$0xff] %vm293_vm0, %v494_v19  ;;  %v4820_v19 = vld [vmem:[#allocation2 + $0x12a] sm:$0xff] }
 0x176   : > { %1180 = vst.msk [vmem:[#allocation4 + $0xe8] sm:$0xff] %vm1150_vm4, %v1113_v37  ;;  %v4773_v37 = vld [vmem:[#allocation2 + $0x79] sm:$0xff] }
 0x177   : > { %1486 = vrot.lane.b32.xlu1 %v5956_v36, %s5257_s30  ;;  %1344 = vst.msk [vmem:[#allocation4] sm:$0xff] %vm1343_vm5, %v1248_v23  ;;  %1492 = vrot.lane.b32.xlu0 %v7782_v51, %s5257_s30  ;;  %v6272_v36 = vld [vmem:[#allocation2 + $0x182] sm:$0xff] }
 0x178   : > { %v473_v23 = vld [vmem:[%s6378_s9 + $0x28] sm:$0xff] }
 0x179   : > { %v1117_v29 = vpop.permute.xlu1 %1116  ;;  %v1252_v33 = vpop.permute.xlu0 %1251  ;;  %506 = vst.msk [vmem:[#allocation3 + $0x51] sm:$0xff] %vm293_vm0, %v473_v23  ;;  %v493_v23 = vld [vmem:[%s6378_s9 + $0xc8] sm:$0xff] }
 0x17a   : > { %1182 = vst.msk [vmem:[#allocation4 + $0xf8] sm:$0xff] %vm1150_vm4, %v1117_v29  ;;  %v4772_v29 = vld [vmem:[#allocation2 + $0x69] sm:$0xff]  ;;  %vm3858_vm4 = vcmask 589344  }
 0x17b   : > { %1490 = vrot.lane.b32.xlu1 %v7783_v25, %s5257_s30  ;;  %1346 = vst.msk [vmem:[#allocation4 + $0x10] sm:$0xff] %vm1343_vm5, %v1252_v33  ;;  %1496 = vrot.lane.b32.xlu0 %v5970_v45, %s5257_s30  ;;  %v6283_v45 = vld [vmem:[#allocation2 + $0x18a] sm:$0xff]  ;;  %v476_v33 = vld [vmem:[%s6378_s9 + $0x40] sm:$0xff] }
 0x17c   : > { %509 = vst.msk [vmem:[#allocation3 + $0x79] sm:$0xff] %vm293_vm0, %v476_v33  ;;  %526 = vst.msk [vmem:[#allocation3 + $0x141] sm:$0xff] %vm293_vm0, %v493_v23  ;;  %v496_v33 = vld [vmem:[%s6378_s9 + $0xe0] sm:$0xff] }
 0x17d   : > { %v1250_v48 = vpop.permute.xlu1 %1249  ;;  %v1256_v26 = vpop.permute.xlu0 %1255  ;;  %529 = vst.msk [vmem:[#allocation3 + $0x169] sm:$0xff] %vm293_vm0, %v496_v33  ;;  %v4825_v33 = vld [vmem:[#allocation2 + $0x16a] sm:$0xff] }
 0x17e   : > { %1345 = vst.msk [vmem:[#allocation4 + $0x8] sm:$0xff] %vm1343_vm5, %v1250_v48  ;;  %1348 = vst.msk [vmem:[#allocation4 + $0x20] sm:$0xff] %vm1343_vm5, %v1256_v26  ;;  %v4775_v48 = vld [vmem:[#allocation2 + $0x91] sm:$0xff] }
 0x17f   : > { %1494 = vrot.lane.b32.xlu1 %v5975_v46, %s5257_s30  ;;  %1500 = vrot.lane.b32.xlu0 %v6272_v36, %s5257_s30  ;;  %v475_v26 = vld [vmem:[%s6378_s9 + $0x38] sm:$0xff] }
 0x180   : > { %508 = vst.msk [vmem:[#allocation3 + $0x69] sm:$0xff] %vm293_vm0, %v475_v26 }
 0x181   : > { %v1254_v30 = vpop.permute.xlu1 %1253  ;;  %v1260_v31 = vpop.permute.xlu0 %1259 }
 0x182   : > { %1347 = vst.msk [vmem:[#allocation4 + $0x18] sm:$0xff] %vm1343_vm5, %v1254_v30  ;;  %1350 = vst.msk [vmem:[#allocation4 + $0x30] sm:$0xff] %vm1343_vm5, %v1260_v31  ;;  %v4774_v31 = vld [vmem:[#allocation2 + $0x81] sm:$0xff] }
 0x183   : > { %1498 = vrot.lane.b32.xlu1 %v5983_v39, %s5257_s30  ;;  %1636 = vrot.lane.b32.xlu0 %v5669_v49, %s5258_s6 }
 0x185   : > { %v1258_v46 = vpop.permute.xlu1 %1257  ;;  %v1264_v32 = vpop.permute.xlu0 %1263 }
 0x186   : > { %1349 = vst.msk [vmem:[#allocation4 + $0x28] sm:$0xff] %vm1343_vm5, %v1258_v46  ;;  %1352 = vst.msk [vmem:[#allocation4 + $0x40] sm:$0xff] %vm1343_vm5, %v1264_v32  ;;  %v478_v46 = vld [vmem:[%s6378_s9 + $0x50] sm:$0xff] }
 0x187   : > { %1502 = vrot.lane.b32.xlu1 %v6283_v45, %s5257_s30  ;;  %1640 = vrot.lane.b32.xlu0 %v5677_v52, %s5258_s6  ;;  %511 = vst.msk [vmem:[#allocation3 + $0x91] sm:$0xff] %vm293_vm0, %v478_v46  ;;  %v4797_v46 = vld [vmem:[#allocation2 + $0x199] sm:$0xff]  ;;  %s7433_s30 = scalar_lea.vmem %s7692_s4, %s5543_s22  ;;  %s4638_s22 = sshll.u32 %s7789_s18, 1 }
 0x189   : > { %v1262_v39 = vpop.permute.xlu1 %1261  ;;  %v1268_v38 = vpop.permute.xlu0 %1267 }
 0x18a   : > { %1351 = vst.msk [vmem:[#allocation4 + $0x38] sm:$0xff] %vm1343_vm5, %v1262_v39  ;;  %1354 = vst.msk [vmem:[#allocation4 + $0x50] sm:$0xff] %vm1343_vm5, %v1268_v38  ;;  %v4777_v39 = vld [vmem:[#allocation2 + $0xa9] sm:$0xff] }
 0x18b   : > { %1638 = vrot.lane.b32.xlu1 %v5687_v54, %s5258_s6  ;;  %1644 = vrot.lane.b32.xlu0 %v5689_v55, %s5258_s6  ;;  %v477_v38 = vld [vmem:[%s6378_s9 + $0x48] sm:$0xff] }
 0x18c   : > { %510 = vst.msk [vmem:[#allocation3 + $0x81] sm:$0xff] %vm293_vm0, %v477_v38 }
 0x18d   : > { %v1266_v49 = vpop.permute.xlu1 %1265  ;;  %v1272_v40 = vpop.permute.xlu0 %1271 }
 0x18e   : > { %1353 = vst.msk [vmem:[#allocation4 + $0x48] sm:$0xff] %vm1343_vm5, %v1266_v49  ;;  %1356 = vst.msk [vmem:[#allocation4 + $0x60] sm:$0xff] %vm1343_vm5, %v1272_v40  ;;  %v4776_v40 = vld [vmem:[#allocation2 + $0x99] sm:$0xff] }
 0x18f   : > { %1642 = vrot.lane.b32.xlu1 %v5697_v57, %s5258_s6  ;;  %1648 = vrot.lane.b32.xlu0 %v5699_v58, %s5258_s6 }
 0x191   : > { %v1270_v52 = vpop.permute.xlu1 %1269  ;;  %v1276_v54 = vpop.permute.xlu0 %1275 }
 0x192   : > { %1355 = vst.msk [vmem:[#allocation4 + $0x58] sm:$0xff] %vm1343_vm5, %v1270_v52  ;;  %1358 = vst.msk [vmem:[#allocation4 + $0x70] sm:$0xff] %vm1343_vm5, %v1276_v54  ;;  %v480_v52 = vld [vmem:[%s6378_s9 + $0x60] sm:$0xff] }
 0x193   : > { %1646 = vrot.lane.b32.xlu1 %v5701_v59, %s5258_s6  ;;  %1652 = vrot.lane.b32.xlu0 %v5711_v60, %s5258_s6  ;;  %513 = vst.msk [vmem:[#allocation3 + $0xa9] sm:$0xff] %vm293_vm0, %v480_v52 }
 0x195   : > { %v1274_v55 = vpop.permute.xlu1 %1273  ;;  %v1280_v57 = vpop.permute.xlu0 %1279 }
 0x196   : > { %1357 = vst.msk [vmem:[#allocation4 + $0x68] sm:$0xff] %vm1343_vm5, %v1274_v55  ;;  %1360 = vst.msk [vmem:[#allocation4 + $0x80] sm:$0xff] %vm1343_vm5, %v1280_v57  ;;  %v4779_v55 = vld [vmem:[#allocation2 + $0xc1] sm:$0xff]  ;;  %v479_v57 = vld [vmem:[%s6378_s9 + $0x58] sm:$0xff] }
 0x197   : > { %1650 = vrot.lane.b32.xlu1 %v5713_v61, %s5258_s6  ;;  %1656 = vrot.lane.b32.xlu0 %v5715_v62, %s5258_s6  ;;  %512 = vst.msk [vmem:[#allocation3 + $0x99] sm:$0xff] %vm293_vm0, %v479_v57  ;;  %v4800_v57 = vld [vmem:[#allocation2 + $0x3a] sm:$0xff] }
 0x199   : > { %v1278_v58 = vpop.permute.xlu1 %1277  ;;  %v1284_v59 = vpop.permute.xlu0 %1283 }
 0x19a   : > { %1359 = vst.msk [vmem:[#allocation4 + $0x78] sm:$0xff] %vm1343_vm5, %v1278_v58  ;;  %1362 = vst.msk [vmem:[#allocation4 + $0x90] sm:$0xff] %vm1343_vm5, %v1284_v59  ;;  %v4778_v59 = vld [vmem:[#allocation2 + $0xb1] sm:$0xff] }
 0x19b   : > { %1654 = vrot.lane.b32.xlu1 %v5725_v0, %s5258_s6  ;;  %1660 = vrot.lane.b32.xlu0 %v5727_v1, %s5258_s6 }
 0x19d   : > { %v1282_v60 = vpop.permute.xlu1 %1281  ;;  %v1288_v61 = vpop.permute.xlu0 %1287 }
 0x19e   : > { %1361 = vst.msk [vmem:[#allocation4 + $0x88] sm:$0xff] %vm1343_vm5, %v1282_v60  ;;  %1364 = vst.msk [vmem:[#allocation4 + $0xa0] sm:$0xff] %vm1343_vm5, %v1288_v61  ;;  %v482_v60 = vld [vmem:[%s6378_s9 + $0x70] sm:$0xff] }
 0x19f   : > { %1658 = vrot.lane.b32.xlu1 %v5729_v2, %s5258_s6  ;;  %1664 = vrot.lane.b32.xlu0 %v5739_v3, %s5258_s6  ;;  %515 = vst.msk [vmem:[#allocation3 + $0xc1] sm:$0xff] %vm293_vm0, %v482_v60  ;;  %v4802_v60 = vld [vmem:[#allocation2 + $0x52] sm:$0xff] }
 0x1a1   : > { %v1286_v62 = vpop.permute.xlu1 %1285  ;;  %v1292_v0 = vpop.permute.xlu0 %1291 }
 0x1a2   : > { %1363 = vst.msk [vmem:[#allocation4 + $0x98] sm:$0xff] %vm1343_vm5, %v1286_v62  ;;  %1366 = vst.msk [vmem:[#allocation4 + $0xb0] sm:$0xff] %vm1343_vm5, %v1292_v0  ;;  %v4781_v62 = vld [vmem:[#allocation2 + $0xd9] sm:$0xff]  ;;  %v481_v0 = vld [vmem:[%s6378_s9 + $0x68] sm:$0xff] }
 0x1a3   : > { %1662 = vrot.lane.b32.xlu1 %v5741_v4, %s5258_s6  ;;  %1668 = vrot.lane.b32.xlu0 %v5743_v5, %s5258_s6  ;;  %514 = vst.msk [vmem:[#allocation3 + $0xb1] sm:$0xff] %vm293_vm0, %v481_v0 }
 0x1a5   : > { %v1290_v1 = vpop.permute.xlu1 %1289  ;;  %v1296_v2 = vpop.permute.xlu0 %1295 }
 0x1a6   : > { %1365 = vst.msk [vmem:[#allocation4 + $0xa8] sm:$0xff] %vm1343_vm5, %v1290_v1  ;;  %1368 = vst.msk [vmem:[#allocation4 + $0xc0] sm:$0xff] %vm1343_vm5, %v1296_v2  ;;  %v4780_v2 = vld [vmem:[#allocation2 + $0xc9] sm:$0xff] }
 0x1a7   : > { %1666 = vrot.lane.b32.xlu1 %v5751_v6, %s5258_s6  ;;  %1672 = vrot.lane.b32.xlu0 %v5753_v7, %s5258_s6 }
 0x1a9   : > { %v1294_v3 = vpop.permute.xlu1 %1293  ;;  %v1300_v4 = vpop.permute.xlu0 %1299 }
 0x1aa   : > { %1367 = vst.msk [vmem:[#allocation4 + $0xb8] sm:$0xff] %vm1343_vm5, %v1294_v3  ;;  %1370 = vst.msk [vmem:[#allocation4 + $0xd0] sm:$0xff] %vm1343_vm5, %v1300_v4  ;;  %v484_v3 = vld [vmem:[%s6378_s9 + $0x80] sm:$0xff] }
 0x1ab   : > { %1670 = vrot.lane.b32.xlu1 %v5755_v8, %s5258_s6  ;;  %1676 = vrot.lane.b32.xlu0 %v5765_v9, %s5258_s6  ;;  %517 = vst.msk [vmem:[#allocation3 + $0xd9] sm:$0xff] %vm293_vm0, %v484_v3  ;;  %v4807_v3 = vld [vmem:[#allocation2 + $0x92] sm:$0xff] }
 0x1ad   : > { %v1298_v5 = vpop.permute.xlu1 %1297  ;;  %v1304_v6 = vpop.permute.xlu0 %1303 }
 0x1ae   : > { %1369 = vst.msk [vmem:[#allocation4 + $0xc8] sm:$0xff] %vm1343_vm5, %v1298_v5  ;;  %1372 = vst.msk [vmem:[#allocation4 + $0xe0] sm:$0xff] %vm1343_vm5, %v1304_v6  ;;  %v4783_v5 = vld [vmem:[#allocation2 + $0xf1] sm:$0xff] }
 0x1af   : > { %1674 = vrot.lane.b32.xlu1 %v5767_v10, %s5258_s6  ;;  %1680 = vrot.lane.b32.xlu0 %v5775_v12, %s5258_s6  ;;  %v483_v6 = vld [vmem:[%s6378_s9 + $0x78] sm:$0xff] }
 0x1b0   : > { %516 = vst.msk [vmem:[#allocation3 + $0xc9] sm:$0xff] %vm293_vm0, %v483_v6 }
 0x1b1   : > { %v1302_v7 = vpop.permute.xlu1 %1301  ;;  %v1308_v8 = vpop.permute.xlu0 %1307 }
 0x1b2   : > { %1371 = vst.msk [vmem:[#allocation4 + $0xd8] sm:$0xff] %vm1343_vm5, %v1302_v7  ;;  %1374 = vst.msk [vmem:[#allocation4 + $0xf0] sm:$0xff] %vm1343_vm5, %v1308_v8  ;;  %v4782_v8 = vld [vmem:[#allocation2 + $0xe1] sm:$0xff] }
 0x1b3   : > { %1678 = vrot.lane.b32.xlu1 %v5783_v14, %s5258_s6  ;;  %1684 = vrot.lane.b32.xlu0 %v5791_v16, %s5258_s6 }
 0x1b5   : > { %v1306_v9 = vpop.permute.xlu1 %1305  ;;  %v1441_v10 = vpop.permute.xlu0 %1440 }
 0x1b6   : > { %1373 = vst.msk [vmem:[#allocation4 + $0xe8] sm:$0xff] %vm1343_vm5, %v1306_v9  ;;  %v486_v9 = vld [vmem:[%s6378_s9 + $0x90] sm:$0xff] }
 0x1b7   : > { %1682 = vrot.lane.b32.xlu1 %v5799_v18, %s5258_s6  ;;  %1537 = vst.msk [vmem:[#allocation4] sm:$0xff] %vm1536_vm6, %v1441_v10  ;;  %1688 = vrot.lane.b32.xlu0 %v5807_v20, %s5258_s6  ;;  %v4765_v18 = vld [vmem:[#allocation2 + $0x198] sm:$0xff]  ;;  %v468_v20 = vld [vmem:[%s6378_s9] sm:$0xff] }
 0x1b8   : > { %501 = vst.msk [vmem:[#allocation3 + $0x19] sm:$0xff] %vm293_vm0, %v468_v20  ;;  %519 = vst.msk [vmem:[#allocation3 + $0xf1] sm:$0xff] %vm293_vm0, %v486_v9  ;;  %v4808_v9 = vld [vmem:[#allocation2 + $0x9a] sm:$0xff] }
 0x1b9   : > { %v1310_v12 = vpop.permute.xlu1 %1309  ;;  %v1445_v14 = vpop.permute.xlu0 %1444 }
 0x1ba   : > { %1375 = vst.msk [vmem:[#allocation4 + $0xf8] sm:$0xff] %vm1343_vm5, %v1310_v12  ;;  %v4785_v12 = vld [vmem:[#allocation2 + $0x109] sm:$0xff]  ;;  %vm3939_vm5 = vcmask 588800  }
 0x1bb   : > { %1686 = vrot.lane.b32.xlu1 %v5815_v22, %s5258_s6  ;;  %1539 = vst.msk [vmem:[#allocation4 + $0x10] sm:$0xff] %vm1536_vm6, %v1445_v14  ;;  %1692 = vrot.lane.b32.xlu0 %v6072_v34, %s5258_s6  ;;  %v4767_v34 = vld [vmem:[#allocation2 + $0x31] sm:$0xff]  ;;  %v485_v14 = vld [vmem:[%s6378_s9 + $0x88] sm:$0xff] }
 0x1bc   : > { %518 = vst.msk [vmem:[#allocation3 + $0xe1] sm:$0xff] %vm293_vm0, %v485_v14 }
 0x1bd   : > { %v1443_v16 = vpop.permute.xlu1 %1442  ;;  %v1449_v41 = vpop.permute.xlu0 %1448 }
 0x1be   : > { %1538 = vst.msk [vmem:[#allocation4 + $0x8] sm:$0xff] %vm1536_vm6, %v1443_v16  ;;  %1541 = vst.msk [vmem:[#allocation4 + $0x20] sm:$0xff] %vm1536_vm6, %v1449_v41  ;;  %v488_v41 = vld [vmem:[%s6378_s9 + $0xa0] sm:$0xff] }
 0x1bf   : > { %1690 = vrot.lane.b32.xlu1 %v5827_v28, %s5258_s6  ;;  %1696 = vrot.lane.b32.xlu0 %v4765_v18, %s5258_s6  ;;  %v4784_v18 = vld [vmem:[#allocation2 + $0xf9] sm:$0xff]  ;;  %521 = vst.msk [vmem:[#allocation3 + $0x109] sm:$0xff] %vm293_vm0, %v488_v41 }
 0x1c0   : > { %v4813_v41 = vld [vmem:[#allocation2 + $0xda] sm:$0xff] }
 0x1c1   : > { %v1447_v22 = vpop.permute.xlu1 %1446  ;;  %v1453_v28 = vpop.permute.xlu0 %1452 }
 0x1c2   : > { %1540 = vst.msk [vmem:[#allocation4 + $0x18] sm:$0xff] %vm1536_vm6, %v1447_v22  ;;  %1543 = vst.msk [vmem:[#allocation4 + $0x30] sm:$0xff] %vm1536_vm6, %v1453_v28  ;;  %v4787_v22 = vld [vmem:[#allocation2 + $0x121] sm:$0xff] }
 0x1c3   : > { %1694 = vrot.lane.b32.xlu1 %v6083_v35, %s5258_s6  ;;  %1829 = vrot.lane.b32.xlu0 %v4767_v34, %s5259_s10  ;;  %v4768_v35 = vld [vmem:[#allocation2 + $0x39] sm:$0xff] }
 0x1c4   : > { %v487_v34 = vld [vmem:[%s6378_s9 + $0x98] sm:$0xff] }
 0x1c5   : > { %v1451_v44 = vpop.permute.xlu1 %1450  ;;  %v1457_v53 = vpop.permute.xlu0 %1456  ;;  %520 = vst.msk [vmem:[#allocation3 + $0xf9] sm:$0xff] %vm293_vm0, %v487_v34 }
 0x1c6   : > { %1542 = vst.msk [vmem:[#allocation4 + $0x28] sm:$0xff] %vm1536_vm6, %v1451_v44  ;;  %1545 = vst.msk [vmem:[#allocation4 + $0x40] sm:$0xff] %vm1536_vm6, %v1457_v53 }
 0x1c7   : > { %1698 = vrot.lane.b32.xlu1 %v4766_v42, %s5258_s6  ;;  %1833 = vrot.lane.b32.xlu0 %v4769_v47, %s5259_s10  ;;  %v4786_v42 = vld [vmem:[#allocation2 + $0x111] sm:$0xff]  ;;  %v4789_v47 = vld [vmem:[#allocation2 + $0x139] sm:$0xff]  ;;  %s288_s6 = scalar_lea.vmem %s7693_s5, %s4638_s22 }
 0x1c9   : > { %v1455_v63 = vpop.permute.xlu1 %1454  ;;  %v1461_v15 = vpop.permute.xlu0 %1460 }
 0x1ca   : > { %1544 = vst.msk [vmem:[#allocation4 + $0x38] sm:$0xff] %vm1536_vm6, %v1455_v63  ;;  %1547 = vst.msk [vmem:[#allocation4 + $0x50] sm:$0xff] %vm1536_vm6, %v1461_v15 }
 0x1cb   : > { %1831 = vrot.lane.b32.xlu1 %v4768_v35, %s5259_s10  ;;  %1837 = vrot.lane.b32.xlu0 %v4771_v11, %s5259_s10  ;;  %v4788_v35 = vld [vmem:[#allocation2 + $0x129] sm:$0xff]  ;;  %v4791_v11 = vld [vmem:[#allocation2 + $0x151] sm:$0xff] }
 0x1cd   : > { %v1459_v21 = vpop.permute.xlu1 %1458  ;;  %v1465_v51 = vpop.permute.xlu0 %1464 }
 0x1ce   : > { %1546 = vst.msk [vmem:[#allocation4 + $0x48] sm:$0xff] %vm1536_vm6, %v1459_v21  ;;  %1549 = vst.msk [vmem:[#allocation4 + $0x60] sm:$0xff] %vm1536_vm6, %v1465_v51 }
 0x1cf   : > { %1835 = vrot.lane.b32.xlu1 %v4770_v17, %s5259_s10  ;;  %1841 = vrot.lane.b32.xlu0 %v4773_v37, %s5259_s10  ;;  %v4790_v17 = vld [vmem:[#allocation2 + $0x141] sm:$0xff]  ;;  %v4793_v37 = vld [vmem:[#allocation2 + $0x169] sm:$0xff] }
 0x1d1   : > { %v1463_v25 = vpop.permute.xlu1 %1462  ;;  %v1469_v30 = vpop.permute.xlu0 %1468 }
 0x1d2   : > { %1548 = vst.msk [vmem:[#allocation4 + $0x58] sm:$0xff] %vm1536_vm6, %v1463_v25  ;;  %1551 = vst.msk [vmem:[#allocation4 + $0x70] sm:$0xff] %vm1536_vm6, %v1469_v30  ;;  %v4794_v30 = vld [vmem:[#allocation2 + $0x171] sm:$0xff] }
 0x1d3   : > { %1839 = vrot.lane.b32.xlu1 %v4772_v29, %s5259_s10  ;;  %1845 = vrot.lane.b32.xlu0 %v4775_v48, %s5259_s10  ;;  %v4792_v29 = vld [vmem:[#allocation2 + $0x159] sm:$0xff] }
 0x1d4   : > { %v495_v48 = vld [vmem:[%s6378_s9 + $0xd8] sm:$0xff] }
 0x1d5   : > { %v1467_v32 = vpop.permute.xlu1 %1466  ;;  %v1473_v49 = vpop.permute.xlu0 %1472  ;;  %528 = vst.msk [vmem:[#allocation3 + $0x159] sm:$0xff] %vm293_vm0, %v495_v48  ;;  %v4824_v48 = vld [vmem:[#allocation2 + $0x15a] sm:$0xff] }
 0x1d6   : > { %1550 = vst.msk [vmem:[#allocation4 + $0x68] sm:$0xff] %vm1536_vm6, %v1467_v32  ;;  %1553 = vst.msk [vmem:[#allocation4 + $0x80] sm:$0xff] %vm1536_vm6, %v1473_v49  ;;  %v497_v32 = vld [vmem:[%s6378_s9 + $0xe8] sm:$0xff]  ;;  %v4799_v49 = vld [vmem:[#allocation2 + $0x32] sm:$0xff] }
 0x1d7   : > { %1843 = vrot.lane.b32.xlu1 %v4774_v31, %s5259_s10  ;;  %1849 = vrot.lane.b32.xlu0 %v4777_v39, %s5259_s10  ;;  %530 = vst.msk [vmem:[#allocation3 + $0x171] sm:$0xff] %vm293_vm0, %v497_v32  ;;  %v4829_v32 = vld [vmem:[#allocation2 + $0x19a] sm:$0xff] }
 0x1d9   : > { %v1471_v54 = vpop.permute.xlu1 %1470  ;;  %v1477_v58 = vpop.permute.xlu0 %1476 }
 0x1da   : > { %1552 = vst.msk [vmem:[#allocation4 + $0x78] sm:$0xff] %vm1536_vm6, %v1471_v54  ;;  %1555 = vst.msk [vmem:[#allocation4 + $0x90] sm:$0xff] %vm1536_vm6, %v1477_v58  ;;  %v4801_v54 = vld [vmem:[#allocation2 + $0x4a] sm:$0xff] }
 0x1db   : > { %1847 = vrot.lane.b32.xlu1 %v4776_v40, %s5259_s10  ;;  %1853 = vrot.lane.b32.xlu0 %v4779_v55, %s5259_s10 }
 0x1dd   : > { %v1475_v61 = vpop.permute.xlu1 %1474  ;;  %v1481_v1 = vpop.permute.xlu0 %1480 }
 0x1de   : > { %1554 = vst.msk [vmem:[#allocation4 + $0x88] sm:$0xff] %vm1536_vm6, %v1475_v61  ;;  %1557 = vst.msk [vmem:[#allocation4 + $0xa0] sm:$0xff] %vm1536_vm6, %v1481_v1  ;;  %v4804_v1 = vld [vmem:[#allocation2 + $0x6a] sm:$0xff] }
 0x1df   : > { %1851 = vrot.lane.b32.xlu1 %v4778_v59, %s5259_s10  ;;  %1857 = vrot.lane.b32.xlu0 %v4781_v62, %s5259_s10  ;;  %v4805_v62 = vld [vmem:[#allocation2 + $0x7a] sm:$0xff] }
 0x1e1   : > { %v1479_v4 = vpop.permute.xlu1 %1478  ;;  %v1485_v7 = vpop.permute.xlu0 %1484 }
 0x1e2   : > { %1556 = vst.msk [vmem:[#allocation4 + $0x98] sm:$0xff] %vm1536_vm6, %v1479_v4  ;;  %1559 = vst.msk [vmem:[#allocation4 + $0xb0] sm:$0xff] %vm1536_vm6, %v1485_v7  ;;  %v4809_v7 = vld [vmem:[#allocation2 + $0xaa] sm:$0xff] }
 0x1e3   : > { %1855 = vrot.lane.b32.xlu1 %v4780_v2, %s5259_s10  ;;  %1861 = vrot.lane.b32.xlu0 %v4783_v5, %s5259_s10  ;;  %v4806_v5 = vld [vmem:[#allocation2 + $0x82] sm:$0xff] }
 0x1e5   : > { %v1483_v10 = vpop.permute.xlu1 %1482  ;;  %v1489_v16 = vpop.permute.xlu0 %1488 }
 0x1e6   : > { %1558 = vst.msk [vmem:[#allocation4 + $0xa8] sm:$0xff] %vm1536_vm6, %v1483_v10  ;;  %1561 = vst.msk [vmem:[#allocation4 + $0xc0] sm:$0xff] %vm1536_vm6, %v1489_v16  ;;  %v4810_v16 = vld [vmem:[#allocation2 + $0xb2] sm:$0xff] }
 0x1e7   : > { %1859 = vrot.lane.b32.xlu1 %v4782_v8, %s5259_s10  ;;  %1865 = vrot.lane.b32.xlu0 %v4785_v12, %s5259_s10  ;;  %v4811_v12 = vld [vmem:[#allocation2 + $0xc2] sm:$0xff] }
 0x1e9   : > { %v1487_v20 = vpop.permute.xlu1 %1486  ;;  %v1493_v28 = vpop.permute.xlu0 %1492 }
 0x1ea   : > { %1560 = vst.msk [vmem:[#allocation4 + $0xb8] sm:$0xff] %vm1536_vm6, %v1487_v20  ;;  %1563 = vst.msk [vmem:[#allocation4 + $0xd0] sm:$0xff] %vm1536_vm6, %v1493_v28  ;;  %v4815_v28 = vld [vmem:[#allocation2 + $0xf2] sm:$0xff] }
 0x1eb   : > { %1863 = vrot.lane.b32.xlu1 %v4784_v18, %s5259_s10  ;;  %1869 = vrot.lane.b32.xlu0 %v4787_v22, %s5259_s10  ;;  %v4812_v22 = vld [vmem:[#allocation2 + $0xca] sm:$0xff] }
 0x1ed   : > { %v1491_v44 = vpop.permute.xlu1 %1490  ;;  %v1497_v53 = vpop.permute.xlu0 %1496 }
 0x1ee   : > { %1562 = vst.msk [vmem:[#allocation4 + $0xc8] sm:$0xff] %vm1536_vm6, %v1491_v44  ;;  %1565 = vst.msk [vmem:[#allocation4 + $0xe0] sm:$0xff] %vm1536_vm6, %v1497_v53  ;;  %v4816_v53 = vld [vmem:[#allocation2 + $0xfa] sm:$0xff] }
 0x1ef   : > { %1867 = vrot.lane.b32.xlu1 %v4786_v42, %s5259_s10  ;;  %1873 = vrot.lane.b32.xlu0 %v4789_v47, %s5259_s10  ;;  %v4817_v47 = vld [vmem:[#allocation2 + $0x10a] sm:$0xff] }
 0x1f1   : > { %v1495_v63 = vpop.permute.xlu1 %1494  ;;  %v1501_v15 = vpop.permute.xlu0 %1500 }
 0x1f2   : > { %1564 = vst.msk [vmem:[#allocation4 + $0xd8] sm:$0xff] %vm1536_vm6, %v1495_v63  ;;  %1567 = vst.msk [vmem:[#allocation4 + $0xf0] sm:$0xff] %vm1536_vm6, %v1501_v15  ;;  %v4821_v15 = vld [vmem:[#allocation2 + $0x13a] sm:$0xff] }
 0x1f3   : > { %1871 = vrot.lane.b32.xlu1 %v4788_v35, %s5259_s10  ;;  %1877 = vrot.lane.b32.xlu0 %v4791_v11, %s5259_s10  ;;  %v4818_v11 = vld [vmem:[#allocation2 + $0x112] sm:$0xff] }
 0x1f5   : > { %v1499_v21 = vpop.permute.xlu1 %1498  ;;  %v1637_v51 = vpop.permute.xlu0 %1636 }
 0x1f6   : > { %1566 = vst.msk [vmem:[#allocation4 + $0xe8] sm:$0xff] %vm1536_vm6, %v1499_v21 }
 0x1f7   : > { %1875 = vrot.lane.b32.xlu1 %v4790_v17, %s5259_s10  ;;  %1733 = vst.msk [vmem:[#allocation4] sm:$0xff] %vm1732_vm7, %v1637_v51  ;;  %1881 = vrot.lane.b32.xlu0 %v4793_v37, %s5259_s10  ;;  %v4823_v37 = vld [vmem:[#allocation2 + $0x152] sm:$0xff]  ;;  %v4822_v51 = vld [vmem:[#allocation2 + $0x142] sm:$0xff] }
 0x1f9   : > { %v1503_v25 = vpop.permute.xlu1 %1502  ;;  %v1641_v26 = vpop.permute.xlu0 %1640 }
 0x1fa   : > { %1568 = vst.msk [vmem:[#allocation4 + $0xf8] sm:$0xff] %vm1536_vm6, %v1503_v25  ;;  %vm4463_vm6 = vcmask 1040384  }
 0x1fb   : > { %1879 = vrot.lane.b32.xlu1 %v4792_v29, %s5259_s10  ;;  %1735 = vst.msk [vmem:[#allocation4 + $0x10] sm:$0xff] %vm1732_vm7, %v1641_v26  ;;  %1885 = vrot.lane.b32.xlu0 %v6172_v24, %s5259_s10  ;;  %v4798_v24 = vld [vmem:[#allocation2 + $0x1a1] sm:$0xff] }
 0x1fd   : > { %v1639_v31 = vpop.permute.xlu1 %1638  ;;  %v1645_v39 = vpop.permute.xlu0 %1644 }
 0x1fe   : > { %1734 = vst.msk [vmem:[#allocation4 + $0x8] sm:$0xff] %vm1732_vm7, %v1639_v31  ;;  %1737 = vst.msk [vmem:[#allocation4 + $0x20] sm:$0xff] %vm1732_vm7, %v1645_v39  ;;  %v4826_v31 = vld [vmem:[#allocation2 + $0x172] sm:$0xff] }
 0x1ff   : > { %1883 = vrot.lane.b32.xlu1 %v4794_v30, %s5259_s10  ;;  %1889 = vrot.lane.b32.xlu0 %v4797_v46, %s5259_s10 }
 0x201   : > { %v1643_v38 = vpop.permute.xlu1 %1642  ;;  %v1649_v40 = vpop.permute.xlu0 %1648 }
 0x202   : > { %1736 = vst.msk [vmem:[#allocation4 + $0x18] sm:$0xff] %vm1732_vm7, %v1643_v38  ;;  %1739 = vst.msk [vmem:[#allocation4 + $0x30] sm:$0xff] %vm1732_vm7, %v1649_v40 }
 0x203   : > { %1887 = vrot.lane.b32.xlu1 %v6183_v27, %s5259_s10  ;;  %2022 = vrot.lane.b32.xlu0 %v4799_v49, %s5260_s11  ;;  %v4803_v27 = vld [vmem:[#allocation2 + $0x62] sm:$0xff]  ;;  %v2152_v49 = vld [vmem:[#allocation3] sm:$0xff] }
 0x205   : > { %v1647_v52 = vpop.permute.xlu1 %1646  ;;  %v1653_v55 = vpop.permute.xlu0 %1652 }
 0x206   : > { %1738 = vst.msk [vmem:[#allocation4 + $0x28] sm:$0xff] %vm1732_vm7, %v1647_v52  ;;  %1741 = vst.msk [vmem:[#allocation4 + $0x40] sm:$0xff] %vm1732_vm7, %v1653_v55  ;;  %v6580_v52 = vld [vmem:[#allocation3 + $0x18] sm:$0xff]  ;;  %v2153_v55 = vld [vmem:[#allocation3 + $0x8] sm:$0xff] }
 0x207   : > { %1891 = vrot.lane.b32.xlu1 %v4798_v24, %s5259_s10  ;;  %2026 = vrot.lane.b32.xlu0 %v4801_v54, %s5260_s11  ;;  %s5268_s10 = smov 64  }
 0x209   : > { %v1651_v58 = vpop.permute.xlu1 %1650  ;;  %v1657_v59 = vpop.permute.xlu0 %1656 }
 0x20a   : > { %1740 = vst.msk [vmem:[#allocation4 + $0x38] sm:$0xff] %vm1732_vm7, %v1651_v58  ;;  %1743 = vst.msk [vmem:[#allocation4 + $0x50] sm:$0xff] %vm1732_vm7, %v1657_v59 }
 0x20b   : > { %2024 = vrot.lane.b32.xlu1 %v4800_v57, %s5260_s11  ;;  %2030 = vrot.lane.b32.xlu0 %v4803_v27, %s5260_s11  ;;  %v6587_v57 = vld [vmem:[#allocation3 + $0x30] sm:$0xff]  ;;  %v6591_v27 = vld [vmem:[#allocation3 + $0x20] sm:$0xff] }
 0x20d   : > { %v1655_v61 = vpop.permute.xlu1 %1654  ;;  %v1661_v0 = vpop.permute.xlu0 %1660 }
 0x20e   : > { %1742 = vst.msk [vmem:[#allocation4 + $0x48] sm:$0xff] %vm1732_vm7, %v1655_v61  ;;  %1745 = vst.msk [vmem:[#allocation4 + $0x60] sm:$0xff] %vm1732_vm7, %v1661_v0 }
 0x20f   : > { %2028 = vrot.lane.b32.xlu1 %v4802_v60, %s5260_s11  ;;  %2034 = vrot.lane.b32.xlu0 %v4805_v62, %s5260_s11  ;;  %v6596_v60 = vld [vmem:[#allocation3 + $0x48] sm:$0xff]  ;;  %v6601_v62 = vld [vmem:[#allocation3 + $0x38] sm:$0xff] }
 0x211   : > { %v1659_v2 = vpop.permute.xlu1 %1658  ;;  %v1665_v4 = vpop.permute.xlu0 %1664 }
 0x212   : > { %1744 = vst.msk [vmem:[#allocation4 + $0x58] sm:$0xff] %vm1732_vm7, %v1659_v2  ;;  %1747 = vst.msk [vmem:[#allocation4 + $0x70] sm:$0xff] %vm1732_vm7, %v1665_v4 }
 0x213   : > { %2032 = vrot.lane.b32.xlu1 %v4804_v1, %s5260_s11  ;;  %2038 = vrot.lane.b32.xlu0 %v4807_v3, %s5260_s11  ;;  %v6606_v1 = vld [vmem:[#allocation3 + $0x60] sm:$0xff]  ;;  %v6611_v3 = vld [vmem:[#allocation3 + $0x50] sm:$0xff] }
 0x215   : > { %v1663_v6 = vpop.permute.xlu1 %1662  ;;  %v1669_v8 = vpop.permute.xlu0 %1668 }
 0x216   : > { %1746 = vst.msk [vmem:[#allocation4 + $0x68] sm:$0xff] %vm1732_vm7, %v1663_v6  ;;  %1749 = vst.msk [vmem:[#allocation4 + $0x80] sm:$0xff] %vm1732_vm7, %v1669_v8 }
 0x217   : > { %2036 = vrot.lane.b32.xlu1 %v4806_v5, %s5260_s11  ;;  %2042 = vrot.lane.b32.xlu0 %v4809_v7, %s5260_s11  ;;  %v6616_v5 = vld [vmem:[#allocation3 + $0x78] sm:$0xff]  ;;  %v6621_v7 = vld [vmem:[#allocation3 + $0x68] sm:$0xff] }
 0x219   : > { %v1667_v10 = vpop.permute.xlu1 %1666  ;;  %v1673_v14 = vpop.permute.xlu0 %1672 }
 0x21a   : > { %1748 = vst.msk [vmem:[#allocation4 + $0x78] sm:$0xff] %vm1732_vm7, %v1667_v10  ;;  %1751 = vst.msk [vmem:[#allocation4 + $0x90] sm:$0xff] %vm1732_vm7, %v1673_v14 }
 0x21b   : > { %2040 = vrot.lane.b32.xlu1 %v4808_v9, %s5260_s11  ;;  %2046 = vrot.lane.b32.xlu0 %v4811_v12, %s5260_s11  ;;  %v6626_v9 = vld [vmem:[#allocation3 + $0x90] sm:$0xff]  ;;  %v6631_v12 = vld [vmem:[#allocation3 + $0x80] sm:$0xff] }
 0x21d   : > { %v1671_v18 = vpop.permute.xlu1 %1670  ;;  %v1677_v20 = vpop.permute.xlu0 %1676 }
 0x21e   : > { %1750 = vst.msk [vmem:[#allocation4 + $0x88] sm:$0xff] %vm1732_vm7, %v1671_v18  ;;  %1753 = vst.msk [vmem:[#allocation4 + $0xa0] sm:$0xff] %vm1732_vm7, %v1677_v20 }
 0x21f   : > { %2044 = vrot.lane.b32.xlu1 %v4810_v16, %s5260_s11  ;;  %2050 = vrot.lane.b32.xlu0 %v4813_v41, %s5260_s11  ;;  %v6636_v16 = vld [vmem:[#allocation3 + $0xa8] sm:$0xff]  ;;  %v6641_v41 = vld [vmem:[#allocation3 + $0x98] sm:$0xff] }
 0x221   : > { %v1675_v34 = vpop.permute.xlu1 %1674  ;;  %v1681_v42 = vpop.permute.xlu0 %1680 }
 0x222   : > { %1752 = vst.msk [vmem:[#allocation4 + $0x98] sm:$0xff] %vm1732_vm7, %v1675_v34  ;;  %1755 = vst.msk [vmem:[#allocation4 + $0xb0] sm:$0xff] %vm1732_vm7, %v1681_v42 }
 0x223   : > { %2048 = vrot.lane.b32.xlu1 %v4812_v22, %s5260_s11  ;;  %2054 = vrot.lane.b32.xlu0 %v4815_v28, %s5260_s11  ;;  %v6646_v22 = vld [vmem:[#allocation3 + $0xc0] sm:$0xff]  ;;  %v6651_v28 = vld [vmem:[#allocation3 + $0xb0] sm:$0xff] }
 0x225   : > { %v1679_v44 = vpop.permute.xlu1 %1678  ;;  %v1685_v50 = vpop.permute.xlu0 %1684 }
 0x226   : > { %1754 = vst.msk [vmem:[#allocation4 + $0xa8] sm:$0xff] %vm1732_vm7, %v1679_v44  ;;  %1757 = vst.msk [vmem:[#allocation4 + $0xc0] sm:$0xff] %vm1732_vm7, %v1685_v50 }
 0x227   : > { %2052 = vrot.lane.b32.xlu1 %v4814_v43, %s5260_s11  ;;  %2058 = vrot.lane.b32.xlu0 %v4817_v47, %s5260_s11  ;;  %v6656_v43 = vld [vmem:[#allocation3 + $0xd8] sm:$0xff]  ;;  %v6661_v47 = vld [vmem:[#allocation3 + $0xc8] sm:$0xff] }
 0x229   : > { %v1683_v35 = vpop.permute.xlu1 %1682  ;;  %v1689_v63 = vpop.permute.xlu0 %1688 }
 0x22a   : > { %1756 = vst.msk [vmem:[#allocation4 + $0xb8] sm:$0xff] %vm1732_vm7, %v1683_v35  ;;  %1759 = vst.msk [vmem:[#allocation4 + $0xd0] sm:$0xff] %vm1732_vm7, %v1689_v63 }
 0x22b   : > { %2056 = vrot.lane.b32.xlu1 %v4816_v53, %s5260_s11  ;;  %2062 = vrot.lane.b32.xlu0 %v4819_v56, %s5260_s11  ;;  %v2172_v53 = vld [vmem:[#allocation3 + $0xf0] sm:$0xff]  ;;  %v6669_v56 = vld [vmem:[#allocation3 + $0xe0] sm:$0xff] }
 0x22d   : > { %v1687_v13 = vpop.permute.xlu1 %1686  ;;  %v1693_v17 = vpop.permute.xlu0 %1692 }
 0x22e   : > { %1758 = vst.msk [vmem:[#allocation4 + $0xc8] sm:$0xff] %vm1732_vm7, %v1687_v13  ;;  %1761 = vst.msk [vmem:[#allocation4 + $0xe0] sm:$0xff] %vm1732_vm7, %v1693_v17 }
 0x22f   : > { %2060 = vrot.lane.b32.xlu1 %v4818_v11, %s5260_s11  ;;  %2066 = vrot.lane.b32.xlu0 %v4821_v15, %s5260_s11  ;;  %v2174_v11 = vld [vmem:[#allocation3 + $0x108] sm:$0xff]  ;;  %v2173_v15 = vld [vmem:[#allocation3 + $0xf8] sm:$0xff] }
 0x231   : > { %v1691_v21 = vpop.permute.xlu1 %1690  ;;  %v1697_v23 = vpop.permute.xlu0 %1696 }
 0x232   : > { %1760 = vst.msk [vmem:[#allocation4 + $0xd8] sm:$0xff] %vm1732_vm7, %v1691_v21  ;;  %1763 = vst.msk [vmem:[#allocation4 + $0xf0] sm:$0xff] %vm1732_vm7, %v1697_v23 }
 0x233   : > { %2064 = vrot.lane.b32.xlu1 %v4820_v19, %s5260_s11  ;;  %2070 = vrot.lane.b32.xlu0 %v4823_v37, %s5260_s11  ;;  %v2176_v19 = vld [vmem:[#allocation3 + $0x120] sm:$0xff]  ;;  %v2175_v37 = vld [vmem:[#allocation3 + $0x110] sm:$0xff] }
 0x235   : > { %v1695_v29 = vpop.permute.xlu1 %1694  ;;  %v1830_v25 = vpop.permute.xlu0 %1829 }
 0x236   : > { %1762 = vst.msk [vmem:[#allocation4 + $0xe8] sm:$0xff] %vm1732_vm7, %v1695_v29 }
 0x237   : > { %2068 = vrot.lane.b32.xlu1 %v4822_v51, %s5260_s11  ;;  %1926 = vst.msk [vmem:[#allocation4] sm:$0xff] %vm1925_vm8, %v1830_v25  ;;  %2074 = vrot.lane.b32.xlu0 %v4825_v33, %s5260_s11  ;;  %v2178_v51 = vld [vmem:[#allocation3 + $0x138] sm:$0xff]  ;;  %v2177_v33 = vld [vmem:[#allocation3 + $0x128] sm:$0xff] }
 0x239   : > { %v1699_v26 = vpop.permute.xlu1 %1698  ;;  %v1834_v30 = vpop.permute.xlu0 %1833 }
 0x23a   : > { %1764 = vst.msk [vmem:[#allocation4 + $0xf8] sm:$0xff] %vm1732_vm7, %v1699_v26 }
 0x23b   : > { %2072 = vrot.lane.b32.xlu1 %v4824_v48, %s5260_s11  ;;  %1928 = vst.msk [vmem:[#allocation4 + $0x10] sm:$0xff] %vm1925_vm8, %v1834_v30  ;;  %2078 = vrot.lane.b32.xlu0 %v6272_v36, %s5260_s11  ;;  %v4830_v36 = vld [vmem:[#allocation2 + $0x1a2] sm:$0xff]  ;;  %v2179_v30 = vld [vmem:[#allocation3 + $0x140] sm:$0xff] }
 0x23c   : > { %v2180_v48 = vld [vmem:[#allocation3 + $0x150] sm:$0xff] }
 0x23d   : > { %v1832_v46 = vpop.permute.xlu1 %1831  ;;  %v1838_v39 = vpop.permute.xlu0 %1837 }
 0x23e   : > { %1927 = vst.msk [vmem:[#allocation4 + $0x8] sm:$0xff] %vm1925_vm8, %v1832_v46  ;;  %1930 = vst.msk [vmem:[#allocation4 + $0x20] sm:$0xff] %vm1925_vm8, %v1838_v39  ;;  %v2182_v46 = vld [vmem:[#allocation3 + $0x168] sm:$0xff]  ;;  %v2181_v39 = vld [vmem:[#allocation3 + $0x158] sm:$0xff] }
 0x23f   : > { %2076 = vrot.lane.b32.xlu1 %v4826_v31, %s5260_s11  ;;  %2082 = vrot.lane.b32.xlu0 %v4829_v32, %s5260_s11 }
 0x241   : > { %v1836_v38 = vpop.permute.xlu1 %1835  ;;  %v1842_v40 = vpop.permute.xlu0 %1841 }
 0x242   : > { %1929 = vst.msk [vmem:[#allocation4 + $0x18] sm:$0xff] %vm1925_vm8, %v1836_v38  ;;  %1932 = vst.msk [vmem:[#allocation4 + $0x30] sm:$0xff] %vm1925_vm8, %v1842_v40 }
 0x243   : > { %2080 = vrot.lane.b32.xlu1 %v6283_v45, %s5260_s11  ;;  %2216 = vrot.lane.b32.xlu0 %v2152_v49, %s5261_s12  ;;  %v2345_v49 = vld [vmem:[#allocation3 + $0x1] sm:$0xff] }
 0x245   : > { %v1840_v24 = vpop.permute.xlu1 %1839  ;;  %v1846_v54 = vpop.permute.xlu0 %1845 }
 0x246   : > { %1931 = vst.msk [vmem:[#allocation4 + $0x28] sm:$0xff] %vm1925_vm8, %v1840_v24  ;;  %1934 = vst.msk [vmem:[#allocation4 + $0x40] sm:$0xff] %vm1925_vm8, %v1846_v54  ;;  %v6698_v54 = vld [vmem:[#allocation3 + $0x19] sm:$0xff] }
 0x247   : > { %2084 = vrot.lane.b32.xlu1 %v4830_v36, %s5260_s11  ;;  %2220 = vrot.lane.b32.xlu0 %v6580_v52, %s5261_s12  ;;  %v2183_v36 = vld [vmem:[#allocation3 + $0x170] sm:$0xff] }
 0x249   : > { %v1844_v45 = vpop.permute.xlu1 %1843  ;;  %v1850_v58 = vpop.permute.xlu0 %1849 }
 0x24a   : > { %1933 = vst.msk [vmem:[#allocation4 + $0x38] sm:$0xff] %vm1925_vm8, %v1844_v45  ;;  %1936 = vst.msk [vmem:[#allocation4 + $0x50] sm:$0xff] %vm1925_vm8, %v1850_v58  ;;  %v2346_v45 = vld [vmem:[#allocation3 + $0x9] sm:$0xff] }
 0x24b   : > { %2218 = vrot.lane.b32.xlu1 %v2153_v55, %s5261_s12  ;;  %2224 = vrot.lane.b32.xlu0 %v6587_v57, %s5261_s12 }
 0x24d   : > { %v1848_v59 = vpop.permute.xlu1 %1847  ;;  %v1854_v61 = vpop.permute.xlu0 %1853 }
 0x24e   : > { %1935 = vst.msk [vmem:[#allocation4 + $0x48] sm:$0xff] %vm1925_vm8, %v1848_v59  ;;  %1938 = vst.msk [vmem:[#allocation4 + $0x60] sm:$0xff] %vm1925_vm8, %v1854_v61  ;;  %v6705_v59 = vld [vmem:[#allocation3 + $0x31] sm:$0xff] }
 0x24f   : > { %2222 = vrot.lane.b32.xlu1 %v6591_v27, %s5261_s12  ;;  %2228 = vrot.lane.b32.xlu0 %v6596_v60, %s5261_s12 }
 0x251   : > { %v1852_v0 = vpop.permute.xlu1 %1851  ;;  %v1858_v2 = vpop.permute.xlu0 %1857 }
 0x252   : > { %1937 = vst.msk [vmem:[#allocation4 + $0x58] sm:$0xff] %vm1925_vm8, %v1852_v0  ;;  %1940 = vst.msk [vmem:[#allocation4 + $0x70] sm:$0xff] %vm1925_vm8, %v1858_v2  ;;  %v6709_v0 = vld [vmem:[#allocation3 + $0x21] sm:$0xff] }
 0x253   : > { %2226 = vrot.lane.b32.xlu1 %v6601_v62, %s5261_s12  ;;  %2232 = vrot.lane.b32.xlu0 %v6606_v1, %s5261_s12 }
 0x255   : > { %v1856_v4 = vpop.permute.xlu1 %1855  ;;  %v1862_v6 = vpop.permute.xlu0 %1861 }
 0x256   : > { %1939 = vst.msk [vmem:[#allocation4 + $0x68] sm:$0xff] %vm1925_vm8, %v1856_v4  ;;  %1942 = vst.msk [vmem:[#allocation4 + $0x80] sm:$0xff] %vm1925_vm8, %v1862_v6  ;;  %v6714_v4 = vld [vmem:[#allocation3 + $0x49] sm:$0xff] }
 0x257   : > { %2230 = vrot.lane.b32.xlu1 %v6611_v3, %s5261_s12  ;;  %2236 = vrot.lane.b32.xlu0 %v6616_v5, %s5261_s12 }
 0x259   : > { %v1860_v8 = vpop.permute.xlu1 %1859  ;;  %v1866_v10 = vpop.permute.xlu0 %1865 }
 0x25a   : > { %1941 = vst.msk [vmem:[#allocation4 + $0x78] sm:$0xff] %vm1925_vm8, %v1860_v8  ;;  %1944 = vst.msk [vmem:[#allocation4 + $0x90] sm:$0xff] %vm1925_vm8, %v1866_v10  ;;  %v6719_v8 = vld [vmem:[#allocation3 + $0x39] sm:$0xff] }
 0x25b   : > { %2234 = vrot.lane.b32.xlu1 %v6621_v7, %s5261_s12  ;;  %2240 = vrot.lane.b32.xlu0 %v6626_v9, %s5261_s12 }
 0x25d   : > { %v1864_v14 = vpop.permute.xlu1 %1863  ;;  %v1870_v18 = vpop.permute.xlu0 %1869 }
 0x25e   : > { %1943 = vst.msk [vmem:[#allocation4 + $0x88] sm:$0xff] %vm1925_vm8, %v1864_v14  ;;  %1946 = vst.msk [vmem:[#allocation4 + $0xa0] sm:$0xff] %vm1925_vm8, %v1870_v18  ;;  %v6724_v14 = vld [vmem:[#allocation3 + $0x61] sm:$0xff] }
 0x25f   : > { %2238 = vrot.lane.b32.xlu1 %v6631_v12, %s5261_s12  ;;  %2244 = vrot.lane.b32.xlu0 %v6636_v16, %s5261_s12 }
 0x261   : > { %v1868_v20 = vpop.permute.xlu1 %1867  ;;  %v1874_v34 = vpop.permute.xlu0 %1873 }
 0x262   : > { %1945 = vst.msk [vmem:[#allocation4 + $0x98] sm:$0xff] %vm1925_vm8, %v1868_v20  ;;  %1948 = vst.msk [vmem:[#allocation4 + $0xb0] sm:$0xff] %vm1925_vm8, %v1874_v34  ;;  %v6729_v20 = vld [vmem:[#allocation3 + $0x51] sm:$0xff] }
 0x263   : > { %2242 = vrot.lane.b32.xlu1 %v6641_v41, %s5261_s12  ;;  %2248 = vrot.lane.b32.xlu0 %v6646_v22, %s5261_s12 }
 0x265   : > { %v1872_v42 = vpop.permute.xlu1 %1871  ;;  %v1878_v44 = vpop.permute.xlu0 %1877 }
 0x266   : > { %1947 = vst.msk [vmem:[#allocation4 + $0xa8] sm:$0xff] %vm1925_vm8, %v1872_v42  ;;  %1950 = vst.msk [vmem:[#allocation4 + $0xc0] sm:$0xff] %vm1925_vm8, %v1878_v44  ;;  %v6734_v42 = vld [vmem:[#allocation3 + $0x79] sm:$0xff] }
 0x267   : > { %2246 = vrot.lane.b32.xlu1 %v6651_v28, %s5261_s12  ;;  %2252 = vrot.lane.b32.xlu0 %v6656_v43, %s5261_s12 }
 0x269   : > { %v1876_v50 = vpop.permute.xlu1 %1875  ;;  %v1882_v35 = vpop.permute.xlu0 %1881 }
 0x26a   : > { %1949 = vst.msk [vmem:[#allocation4 + $0xb8] sm:$0xff] %vm1925_vm8, %v1876_v50  ;;  %1952 = vst.msk [vmem:[#allocation4 + $0xd0] sm:$0xff] %vm1925_vm8, %v1882_v35  ;;  %v6739_v50 = vld [vmem:[#allocation3 + $0x69] sm:$0xff]  ;;  %v6744_v35 = vld [vmem:[#allocation3 + $0x91] sm:$0xff] }
 0x26b   : > { %2250 = vrot.lane.b32.xlu1 %v6661_v47, %s5261_s12  ;;  %2256 = vrot.lane.b32.xlu0 %v2172_v53, %s5261_s12 }
 0x26d   : > { %v1880_v63 = vpop.permute.xlu1 %1879  ;;  %v1886_v13 = vpop.permute.xlu0 %1885 }
 0x26e   : > { %1951 = vst.msk [vmem:[#allocation4 + $0xc8] sm:$0xff] %vm1925_vm8, %v1880_v63  ;;  %1954 = vst.msk [vmem:[#allocation4 + $0xe0] sm:$0xff] %vm1925_vm8, %v1886_v13 }
 0x26f   : > { %2254 = vrot.lane.b32.xlu1 %v6669_v56, %s5261_s12  ;;  %2260 = vrot.lane.b32.xlu0 %v2174_v11, %s5261_s12  ;;  %v6749_v11 = vld [vmem:[#allocation3 + $0x81] sm:$0xff] }
 0x271   : > { %v1884_v17 = vpop.permute.xlu1 %1883  ;;  %v1890_v21 = vpop.permute.xlu0 %1889 }
 0x272   : > { %1953 = vst.msk [vmem:[#allocation4 + $0xd8] sm:$0xff] %vm1925_vm8, %v1884_v17  ;;  %1956 = vst.msk [vmem:[#allocation4 + $0xf0] sm:$0xff] %vm1925_vm8, %v1890_v21 }
 0x273   : > { %2258 = vrot.lane.b32.xlu1 %v2173_v15, %s5261_s12  ;;  %2264 = vrot.lane.b32.xlu0 %v2176_v19, %s5261_s12  ;;  %v6754_v15 = vld [vmem:[#allocation3 + $0xa9] sm:$0xff]  ;;  %v6759_v19 = vld [vmem:[#allocation3 + $0x99] sm:$0xff] }
 0x275   : > { %v1888_v23 = vpop.permute.xlu1 %1887  ;;  %v2023_v29 = vpop.permute.xlu0 %2022 }
 0x276   : > { %1955 = vst.msk [vmem:[#allocation4 + $0xe8] sm:$0xff] %vm1925_vm8, %v1888_v23 }
 0x277   : > { %2262 = vrot.lane.b32.xlu1 %v2175_v37, %s5261_s12  ;;  %2119 = vst.msk [vmem:[#allocation4] sm:$0xff] %vm2118_vm9, %v2023_v29  ;;  %2268 = vrot.lane.b32.xlu0 %v2178_v51, %s5261_s12  ;;  %v2361_v37 = vld [vmem:[#allocation3 + $0xc1] sm:$0xff]  ;;  %v6767_v51 = vld [vmem:[#allocation3 + $0xb1] sm:$0xff] }
 0x279   : > { %v1892_v25 = vpop.permute.xlu1 %1891  ;;  %v2027_v26 = vpop.permute.xlu0 %2026 }
 0x27a   : > { %1957 = vst.msk [vmem:[#allocation4 + $0xf8] sm:$0xff] %vm1925_vm8, %v1892_v25 }
 0x27b   : > { %2266 = vrot.lane.b32.xlu1 %v2177_v33, %s5261_s12  ;;  %2121 = vst.msk [vmem:[#allocation4 + $0x10] sm:$0xff] %vm2118_vm9, %v2027_v26  ;;  %2272 = vrot.lane.b32.xlu0 %v2180_v48, %s5261_s12  ;;  %v2363_v33 = vld [vmem:[#allocation3 + $0xd9] sm:$0xff]  ;;  %v2362_v48 = vld [vmem:[#allocation3 + $0xc9] sm:$0xff] }
 0x27d   : > { %v2025_v31 = vpop.permute.xlu1 %2024  ;;  %v2031_v32 = vpop.permute.xlu0 %2030 }
 0x27e   : > { %2120 = vst.msk [vmem:[#allocation4 + $0x8] sm:$0xff] %vm2118_vm9, %v2025_v31  ;;  %2123 = vst.msk [vmem:[#allocation4 + $0x20] sm:$0xff] %vm2118_vm9, %v2031_v32 }
 0x27f   : > { %2270 = vrot.lane.b32.xlu1 %v2179_v30, %s5261_s12  ;;  %2276 = vrot.lane.b32.xlu0 %v2182_v46, %s5261_s12  ;;  %v2365_v30 = vld [vmem:[#allocation3 + $0xf1] sm:$0xff]  ;;  %v2364_v46 = vld [vmem:[#allocation3 + $0xe1] sm:$0xff] }
 0x281   : > { %v2029_v38 = vpop.permute.xlu1 %2028  ;;  %v2035_v40 = vpop.permute.xlu0 %2034 }
 0x282   : > { %2122 = vst.msk [vmem:[#allocation4 + $0x18] sm:$0xff] %vm2118_vm9, %v2029_v38  ;;  %2125 = vst.msk [vmem:[#allocation4 + $0x30] sm:$0xff] %vm2118_vm9, %v2035_v40 }
 0x283   : > { %2274 = vrot.lane.b32.xlu1 %v2181_v39, %s5261_s12  ;;  %2409 = vrot.lane.b32.xlu0 %v2345_v49, %s5262_s13  ;;  %v2367_v39 = vld [vmem:[#allocation3 + $0x109] sm:$0xff]  ;;  %v2366_v49 = vld [vmem:[#allocation3 + $0xf9] sm:$0xff] }
 0x285   : > { %v2033_v24 = vpop.permute.xlu1 %2032  ;;  %v2039_v55 = vpop.permute.xlu0 %2038 }
 0x286   : > { %2124 = vst.msk [vmem:[#allocation4 + $0x28] sm:$0xff] %vm2118_vm9, %v2033_v24  ;;  %2127 = vst.msk [vmem:[#allocation4 + $0x40] sm:$0xff] %vm2118_vm9, %v2039_v55  ;;  %v2368_v55 = vld [vmem:[#allocation3 + $0x111] sm:$0xff] }
 0x287   : > { %2278 = vrot.lane.b32.xlu1 %v2183_v36, %s5261_s12  ;;  %2413 = vrot.lane.b32.xlu0 %v6698_v54, %s5262_s13  ;;  %v2369_v36 = vld [vmem:[#allocation3 + $0x121] sm:$0xff] }
 0x289   : > { %v2037_v58 = vpop.permute.xlu1 %2036  ;;  %v2043_v61 = vpop.permute.xlu0 %2042 }
 0x28a   : > { %2126 = vst.msk [vmem:[#allocation4 + $0x38] sm:$0xff] %vm2118_vm9, %v2037_v58  ;;  %2129 = vst.msk [vmem:[#allocation4 + $0x50] sm:$0xff] %vm2118_vm9, %v2043_v61  ;;  %v2371_v58 = vld [vmem:[#allocation3 + $0x139] sm:$0xff] }
 0x28b   : > { %2411 = vrot.lane.b32.xlu1 %v2346_v45, %s5262_s13  ;;  %2417 = vrot.lane.b32.xlu0 %v6705_v59, %s5262_s13 }
 0x28d   : > { %v2041_v2 = vpop.permute.xlu1 %2040  ;;  %v2047_v6 = vpop.permute.xlu0 %2046 }
 0x28e   : > { %2128 = vst.msk [vmem:[#allocation4 + $0x48] sm:$0xff] %vm2118_vm9, %v2041_v2  ;;  %2131 = vst.msk [vmem:[#allocation4 + $0x60] sm:$0xff] %vm2118_vm9, %v2047_v6  ;;  %v2370_v2 = vld [vmem:[#allocation3 + $0x129] sm:$0xff] }
 0x28f   : > { %2415 = vrot.lane.b32.xlu1 %v6709_v0, %s5262_s13  ;;  %2421 = vrot.lane.b32.xlu0 %v6714_v4, %s5262_s13 }
 0x291   : > { %v2045_v10 = vpop.permute.xlu1 %2044  ;;  %v2051_v18 = vpop.permute.xlu0 %2050 }
 0x292   : > { %2130 = vst.msk [vmem:[#allocation4 + $0x58] sm:$0xff] %vm2118_vm9, %v2045_v10  ;;  %2133 = vst.msk [vmem:[#allocation4 + $0x70] sm:$0xff] %vm2118_vm9, %v2051_v18  ;;  %v2373_v10 = vld [vmem:[#allocation3 + $0x151] sm:$0xff] }
 0x293   : > { %2419 = vrot.lane.b32.xlu1 %v6719_v8, %s5262_s13  ;;  %2425 = vrot.lane.b32.xlu0 %v6724_v14, %s5262_s13 }
 0x295   : > { %v2049_v34 = vpop.permute.xlu1 %2048  ;;  %v2055_v44 = vpop.permute.xlu0 %2054 }
 0x296   : > { %2132 = vst.msk [vmem:[#allocation4 + $0x68] sm:$0xff] %vm2118_vm9, %v2049_v34  ;;  %2135 = vst.msk [vmem:[#allocation4 + $0x80] sm:$0xff] %vm2118_vm9, %v2055_v44  ;;  %v2372_v34 = vld [vmem:[#allocation3 + $0x141] sm:$0xff] }
 0x297   : > { %2423 = vrot.lane.b32.xlu1 %v6729_v20, %s5262_s13  ;;  %2429 = vrot.lane.b32.xlu0 %v6734_v42, %s5262_s13 }
 0x299   : > { %v2053_v53 = vpop.permute.xlu1 %2052  ;;  %v2059_v63 = vpop.permute.xlu0 %2058 }
 0x29a   : > { %2134 = vst.msk [vmem:[#allocation4 + $0x78] sm:$0xff] %vm2118_vm9, %v2053_v53  ;;  %2137 = vst.msk [vmem:[#allocation4 + $0x90] sm:$0xff] %vm2118_vm9, %v2059_v63  ;;  %v2375_v53 = vld [vmem:[#allocation3 + $0x169] sm:$0xff] }
 0x29b   : > { %2427 = vrot.lane.b32.xlu1 %v6739_v50, %s5262_s13  ;;  %2433 = vrot.lane.b32.xlu0 %v6744_v35, %s5262_s13 }
 0x29d   : > { %v2057_v13 = vpop.permute.xlu1 %2056  ;;  %v2063_v17 = vpop.permute.xlu0 %2062 }
 0x29e   : > { %2136 = vst.msk [vmem:[#allocation4 + $0x88] sm:$0xff] %vm2118_vm9, %v2057_v13  ;;  %2139 = vst.msk [vmem:[#allocation4 + $0xa0] sm:$0xff] %vm2118_vm9, %v2063_v17  ;;  %v2374_v13 = vld [vmem:[#allocation3 + $0x159] sm:$0xff] }
 0x29f   : > { %2431 = vrot.lane.b32.xlu1 %v6749_v11, %s5262_s13  ;;  %2437 = vrot.lane.b32.xlu0 %v6754_v15, %s5262_s13 }
 0x2a1   : > { %v2061_v21 = vpop.permute.xlu1 %2060  ;;  %v2067_v23 = vpop.permute.xlu0 %2066 }
 0x2a2   : > { %2138 = vst.msk [vmem:[#allocation4 + $0x98] sm:$0xff] %vm2118_vm9, %v2061_v21  ;;  %2141 = vst.msk [vmem:[#allocation4 + $0xb0] sm:$0xff] %vm2118_vm9, %v2067_v23  ;;  %v2538_v21 = vld [vmem:[#allocation3 + $0x2] sm:$0xff]  ;;  %v2376_v23 = vld [vmem:[#allocation3 + $0x171] sm:$0xff] }
 0x2a3   : > { %2435 = vrot.lane.b32.xlu1 %v6759_v19, %s5262_s13  ;;  %2441 = vrot.lane.b32.xlu0 %v2361_v37, %s5262_s13 }
 0x2a5   : > { %v2065_v29 = vpop.permute.xlu1 %2064  ;;  %v2071_v25 = vpop.permute.xlu0 %2070 }
 0x2a6   : > { %2140 = vst.msk [vmem:[#allocation4 + $0xa8] sm:$0xff] %vm2118_vm9, %v2065_v29  ;;  %2143 = vst.msk [vmem:[#allocation4 + $0xc0] sm:$0xff] %vm2118_vm9, %v2071_v25 }
 0x2a7   : > { %2439 = vrot.lane.b32.xlu1 %v6767_v51, %s5262_s13  ;;  %2445 = vrot.lane.b32.xlu0 %v2363_v33, %s5262_s13  ;;  %v6804_v33 = vld [vmem:[#allocation3 + $0x1a] sm:$0xff] }
 0x2a9   : > { %v2069_v26 = vpop.permute.xlu1 %2068  ;;  %v2075_v31 = vpop.permute.xlu0 %2074 }
 0x2aa   : > { %2142 = vst.msk [vmem:[#allocation4 + $0xb8] sm:$0xff] %vm2118_vm9, %v2069_v26  ;;  %2145 = vst.msk [vmem:[#allocation4 + $0xd0] sm:$0xff] %vm2118_vm9, %v2075_v31 }
 0x2ab   : > { %2443 = vrot.lane.b32.xlu1 %v2362_v48, %s5262_s13  ;;  %2449 = vrot.lane.b32.xlu0 %v2365_v30, %s5262_s13  ;;  %v2539_v48 = vld [vmem:[#allocation3 + $0xa] sm:$0xff]  ;;  %v6811_v30 = vld [vmem:[#allocation3 + $0x32] sm:$0xff] }
 0x2ad   : > { %v2073_v32 = vpop.permute.xlu1 %2072  ;;  %v2079_v38 = vpop.permute.xlu0 %2078 }
 0x2ae   : > { %2144 = vst.msk [vmem:[#allocation4 + $0xc8] sm:$0xff] %vm2118_vm9, %v2073_v32  ;;  %2147 = vst.msk [vmem:[#allocation4 + $0xe0] sm:$0xff] %vm2118_vm9, %v2079_v38 }
 0x2af   : > { %2447 = vrot.lane.b32.xlu1 %v2364_v46, %s5262_s13  ;;  %2453 = vrot.lane.b32.xlu0 %v2367_v39, %s5262_s13  ;;  %v6815_v46 = vld [vmem:[#allocation3 + $0x22] sm:$0xff]  ;;  %v6820_v39 = vld [vmem:[#allocation3 + $0x4a] sm:$0xff] }
 0x2b1   : > { %v2077_v40 = vpop.permute.xlu1 %2076  ;;  %v2083_v24 = vpop.permute.xlu0 %2082 }
 0x2b2   : > { %2146 = vst.msk [vmem:[#allocation4 + $0xd8] sm:$0xff] %vm2118_vm9, %v2077_v40  ;;  %2149 = vst.msk [vmem:[#allocation4 + $0xf0] sm:$0xff] %vm2118_vm9, %v2083_v24 }
 0x2b3   : > { %2451 = vrot.lane.b32.xlu1 %v2366_v49, %s5262_s13  ;;  %2457 = vrot.lane.b32.xlu0 %v2369_v36, %s5262_s13  ;;  %v6825_v49 = vld [vmem:[#allocation3 + $0x3a] sm:$0xff]  ;;  %v6830_v36 = vld [vmem:[#allocation3 + $0x62] sm:$0xff] }
 0x2b5   : > { %v2081_v45 = vpop.permute.xlu1 %2080  ;;  %v2217_v61 = vpop.permute.xlu0 %2216 }
 0x2b6   : > { %2148 = vst.msk [vmem:[#allocation4 + $0xe8] sm:$0xff] %vm2118_vm9, %v2081_v45 }
 0x2b7   : > { %2455 = vrot.lane.b32.xlu1 %v2368_v55, %s5262_s13  ;;  %2313 = vst.msk [vmem:[#allocation4] sm:$0xff] %vm2312_vm10, %v2217_v61  ;;  %2461 = vrot.lane.b32.xlu0 %v2371_v58, %s5262_s13  ;;  %v6835_v55 = vld [vmem:[#allocation3 + $0x52] sm:$0xff]  ;;  %v6840_v58 = vld [vmem:[#allocation3 + $0x7a] sm:$0xff] }
 0x2b9   : > { %v2085_v6 = vpop.permute.xlu1 %2084  ;;  %v2221_v18 = vpop.permute.xlu0 %2220 }
 0x2ba   : > { %2150 = vst.msk [vmem:[#allocation4 + $0xf8] sm:$0xff] %vm2118_vm9, %v2085_v6 }
 0x2bb   : > { %2459 = vrot.lane.b32.xlu1 %v2370_v2, %s5262_s13  ;;  %2315 = vst.msk [vmem:[#allocation4 + $0x10] sm:$0xff] %vm2312_vm10, %v2221_v18  ;;  %2465 = vrot.lane.b32.xlu0 %v2373_v10, %s5262_s13  ;;  %v6845_v2 = vld [vmem:[#allocation3 + $0x6a] sm:$0xff]  ;;  %v6850_v10 = vld [vmem:[#allocation3 + $0x92] sm:$0xff] }
 0x2bd   : > { %v2219_v44 = vpop.permute.xlu1 %2218  ;;  %v2225_v63 = vpop.permute.xlu0 %2224 }
 0x2be   : > { %2314 = vst.msk [vmem:[#allocation4 + $0x8] sm:$0xff] %vm2312_vm10, %v2219_v44  ;;  %2317 = vst.msk [vmem:[#allocation4 + $0x20] sm:$0xff] %vm2312_vm10, %v2225_v63 }
 0x2bf   : > { %2463 = vrot.lane.b32.xlu1 %v2372_v34, %s5262_s13  ;;  %2469 = vrot.lane.b32.xlu0 %v2375_v53, %s5262_s13  ;;  %v6855_v34 = vld [vmem:[#allocation3 + $0x82] sm:$0xff]  ;;  %v6860_v53 = vld [vmem:[#allocation3 + $0xaa] sm:$0xff] }
 0x2c1   : > { %v2223_v17 = vpop.permute.xlu1 %2222  ;;  %v2229_v37 = vpop.permute.xlu0 %2228 }
 0x2c2   : > { %2316 = vst.msk [vmem:[#allocation4 + $0x18] sm:$0xff] %vm2312_vm10, %v2223_v17  ;;  %2319 = vst.msk [vmem:[#allocation4 + $0x30] sm:$0xff] %vm2312_vm10, %v2229_v37 }
 0x2c3   : > { %2467 = vrot.lane.b32.xlu1 %v2374_v13, %s5262_s13  ;;  %2602 = vrot.lane.b32.xlu0 %v2538_v21, %s5263_s14  ;;  %v6865_v13 = vld [vmem:[#allocation3 + $0x9a] sm:$0xff]  ;;  %v6870_v21 = vld [vmem:[#allocation3 + $0xc2] sm:$0xff] }
 0x2c5   : > { %v2227_v29 = vpop.permute.xlu1 %2226  ;;  %v2233_v25 = vpop.permute.xlu0 %2232 }
 0x2c6   : > { %2318 = vst.msk [vmem:[#allocation4 + $0x28] sm:$0xff] %vm2312_vm10, %v2227_v29  ;;  %2321 = vst.msk [vmem:[#allocation4 + $0x40] sm:$0xff] %vm2312_vm10, %v2233_v25  ;;  %v6880_v25 = vld [vmem:[#allocation3 + $0xda] sm:$0xff] }
 0x2c7   : > { %2471 = vrot.lane.b32.xlu1 %v2376_v23, %s5262_s13  ;;  %2606 = vrot.lane.b32.xlu0 %v6804_v33, %s5263_s14  ;;  %v6875_v23 = vld [vmem:[#allocation3 + $0xb2] sm:$0xff] }
 0x2c9   : > { %v2231_v26 = vpop.permute.xlu1 %2230  ;;  %v2237_v31 = vpop.permute.xlu0 %2236 }
 0x2ca   : > { %2320 = vst.msk [vmem:[#allocation4 + $0x38] sm:$0xff] %vm2312_vm10, %v2231_v26  ;;  %2323 = vst.msk [vmem:[#allocation4 + $0x50] sm:$0xff] %vm2312_vm10, %v2237_v31  ;;  %v6885_v26 = vld [vmem:[#allocation3 + $0xca] sm:$0xff] }
 0x2cb   : > { %2604 = vrot.lane.b32.xlu1 %v2539_v48, %s5263_s14  ;;  %2610 = vrot.lane.b32.xlu0 %v6811_v30, %s5263_s14 }
 0x2cd   : > { %v2235_v32 = vpop.permute.xlu1 %2234  ;;  %v2241_v38 = vpop.permute.xlu0 %2240 }
 0x2ce   : > { %2322 = vst.msk [vmem:[#allocation4 + $0x48] sm:$0xff] %vm2312_vm10, %v2235_v32  ;;  %2325 = vst.msk [vmem:[#allocation4 + $0x60] sm:$0xff] %vm2312_vm10, %v2241_v38  ;;  %v2558_v32 = vld [vmem:[#allocation3 + $0xf2] sm:$0xff] }
 0x2cf   : > { %2608 = vrot.lane.b32.xlu1 %v6815_v46, %s5263_s14  ;;  %2614 = vrot.lane.b32.xlu0 %v6820_v39, %s5263_s14 }
 0x2d1   : > { %v2239_v40 = vpop.permute.xlu1 %2238  ;;  %v2245_v24 = vpop.permute.xlu0 %2244 }
 0x2d2   : > { %2324 = vst.msk [vmem:[#allocation4 + $0x58] sm:$0xff] %vm2312_vm10, %v2239_v40  ;;  %2327 = vst.msk [vmem:[#allocation4 + $0x70] sm:$0xff] %vm2312_vm10, %v2245_v24  ;;  %v6893_v40 = vld [vmem:[#allocation3 + $0xe2] sm:$0xff] }
 0x2d3   : > { %2612 = vrot.lane.b32.xlu1 %v6825_v49, %s5263_s14  ;;  %2618 = vrot.lane.b32.xlu0 %v6830_v36, %s5263_s14 }
 0x2d5   : > { %v2243_v45 = vpop.permute.xlu1 %2242  ;;  %v2249_v61 = vpop.permute.xlu0 %2248 }
 0x2d6   : > { %2326 = vst.msk [vmem:[#allocation4 + $0x68] sm:$0xff] %vm2312_vm10, %v2243_v45  ;;  %2329 = vst.msk [vmem:[#allocation4 + $0x80] sm:$0xff] %vm2312_vm10, %v2249_v61  ;;  %v2560_v45 = vld [vmem:[#allocation3 + $0x10a] sm:$0xff] }
 0x2d7   : > { %2616 = vrot.lane.b32.xlu1 %v6835_v55, %s5263_s14  ;;  %2622 = vrot.lane.b32.xlu0 %v6840_v58, %s5263_s14 }
 0x2d9   : > { %v2247_v6 = vpop.permute.xlu1 %2246  ;;  %v2253_v18 = vpop.permute.xlu0 %2252 }
 0x2da   : > { %2328 = vst.msk [vmem:[#allocation4 + $0x78] sm:$0xff] %vm2312_vm10, %v2247_v6  ;;  %2331 = vst.msk [vmem:[#allocation4 + $0x90] sm:$0xff] %vm2312_vm10, %v2253_v18  ;;  %v2559_v6 = vld [vmem:[#allocation3 + $0xfa] sm:$0xff] }
 0x2db   : > { %2620 = vrot.lane.b32.xlu1 %v6845_v2, %s5263_s14  ;;  %2626 = vrot.lane.b32.xlu0 %v6850_v10, %s5263_s14 }
 0x2dd   : > { %v2251_v44 = vpop.permute.xlu1 %2250  ;;  %v2257_v63 = vpop.permute.xlu0 %2256 }
 0x2de   : > { %2330 = vst.msk [vmem:[#allocation4 + $0x88] sm:$0xff] %vm2312_vm10, %v2251_v44  ;;  %2333 = vst.msk [vmem:[#allocation4 + $0xa0] sm:$0xff] %vm2312_vm10, %v2257_v63  ;;  %v2562_v44 = vld [vmem:[#allocation3 + $0x122] sm:$0xff] }
 0x2df   : > { %2624 = vrot.lane.b32.xlu1 %v6855_v34, %s5263_s14  ;;  %2630 = vrot.lane.b32.xlu0 %v6860_v53, %s5263_s14 }
 0x2e1   : > { %v2255_v17 = vpop.permute.xlu1 %2254  ;;  %v2261_v37 = vpop.permute.xlu0 %2260 }
 0x2e2   : > { %2332 = vst.msk [vmem:[#allocation4 + $0x98] sm:$0xff] %vm2312_vm10, %v2255_v17  ;;  %2335 = vst.msk [vmem:[#allocation4 + $0xb0] sm:$0xff] %vm2312_vm10, %v2261_v37  ;;  %v2561_v17 = vld [vmem:[#allocation3 + $0x112] sm:$0xff] }
 0x2e3   : > { %2628 = vrot.lane.b32.xlu1 %v6865_v13, %s5263_s14  ;;  %2634 = vrot.lane.b32.xlu0 %v6870_v21, %s5263_s14 }
 0x2e5   : > { %v2259_v29 = vpop.permute.xlu1 %2258  ;;  %v2265_v48 = vpop.permute.xlu0 %2264 }
 0x2e6   : > { %2334 = vst.msk [vmem:[#allocation4 + $0xa8] sm:$0xff] %vm2312_vm10, %v2259_v29  ;;  %2337 = vst.msk [vmem:[#allocation4 + $0xc0] sm:$0xff] %vm2312_vm10, %v2265_v48  ;;  %v2564_v29 = vld [vmem:[#allocation3 + $0x13a] sm:$0xff] }
 0x2e7   : > { %2632 = vrot.lane.b32.xlu1 %v6875_v23, %s5263_s14  ;;  %2638 = vrot.lane.b32.xlu0 %v6880_v25, %s5263_s14 }
 0x2e9   : > { %v2263_v31 = vpop.permute.xlu1 %2262  ;;  %v2269_v38 = vpop.permute.xlu0 %2268 }
 0x2ea   : > { %2336 = vst.msk [vmem:[#allocation4 + $0xb8] sm:$0xff] %vm2312_vm10, %v2263_v31  ;;  %2339 = vst.msk [vmem:[#allocation4 + $0xd0] sm:$0xff] %vm2312_vm10, %v2269_v38  ;;  %v2563_v31 = vld [vmem:[#allocation3 + $0x12a] sm:$0xff]  ;;  %v2566_v38 = vld [vmem:[#allocation3 + $0x152] sm:$0xff] }
 0x2eb   : > { %2636 = vrot.lane.b32.xlu1 %v6885_v26, %s5263_s14  ;;  %2642 = vrot.lane.b32.xlu0 %v2558_v32, %s5263_s14 }
 0x2ed   : > { %v2267_v24 = vpop.permute.xlu1 %2266  ;;  %v2273_v61 = vpop.permute.xlu0 %2272 }
 0x2ee   : > { %2338 = vst.msk [vmem:[#allocation4 + $0xc8] sm:$0xff] %vm2312_vm10, %v2267_v24  ;;  %2341 = vst.msk [vmem:[#allocation4 + $0xe0] sm:$0xff] %vm2312_vm10, %v2273_v61 }
 0x2ef   : > { %2640 = vrot.lane.b32.xlu1 %v6893_v40, %s5263_s14  ;;  %2646 = vrot.lane.b32.xlu0 %v2560_v45, %s5263_s14  ;;  %v2565_v45 = vld [vmem:[#allocation3 + $0x142] sm:$0xff] }
 0x2f1   : > { %v2271_v18 = vpop.permute.xlu1 %2270  ;;  %v2277_v63 = vpop.permute.xlu0 %2276 }
 0x2f2   : > { %2340 = vst.msk [vmem:[#allocation4 + $0xd8] sm:$0xff] %vm2312_vm10, %v2271_v18  ;;  %2343 = vst.msk [vmem:[#allocation4 + $0xf0] sm:$0xff] %vm2312_vm10, %v2277_v63 }
 0x2f3   : > { %2644 = vrot.lane.b32.xlu1 %v2559_v6, %s5263_s14  ;;  %2650 = vrot.lane.b32.xlu0 %v2562_v44, %s5263_s14  ;;  %v2568_v6 = vld [vmem:[#allocation3 + $0x16a] sm:$0xff]  ;;  %v2567_v44 = vld [vmem:[#allocation3 + $0x15a] sm:$0xff] }
 0x2f5   : > { %v2275_v37 = vpop.permute.xlu1 %2274  ;;  %v2410_v48 = vpop.permute.xlu0 %2409 }
 0x2f6   : > { %2342 = vst.msk [vmem:[#allocation4 + $0xe8] sm:$0xff] %vm2312_vm10, %v2275_v37  ;;  %v2569_v37 = vld [vmem:[#allocation3 + $0x172] sm:$0xff] }
 0x2f7   : > { %2648 = vrot.lane.b32.xlu1 %v2561_v17, %s5263_s14  ;;  %2506 = vst.msk [vmem:[#allocation4] sm:$0xff] %vm2505_vm11, %v2410_v48  ;;  %2654 = vrot.lane.b32.xlu0 %v2564_v29, %s5263_s14 }
 0x2f9   : > { %v2279_v32 = vpop.permute.xlu1 %2278  ;;  %v2414_v24 = vpop.permute.xlu0 %2413 }
 0x2fa   : > { %2344 = vst.msk [vmem:[#allocation4 + $0xf8] sm:$0xff] %vm2312_vm10, %v2279_v32 }
 0x2fb   : > { %2652 = vrot.lane.b32.xlu1 %v2563_v31, %s5263_s14  ;;  %2508 = vst.msk [vmem:[#allocation4 + $0x10] sm:$0xff] %vm2505_vm11, %v2414_v24  ;;  %2658 = vrot.lane.b32.xlu0 %v2566_v38, %s5263_s14 }
 0x2fd   : > { %v2412_v61 = vpop.permute.xlu1 %2411  ;;  %v2418_v18 = vpop.permute.xlu0 %2417 }
 0x2fe   : > { %2507 = vst.msk [vmem:[#allocation4 + $0x8] sm:$0xff] %vm2505_vm11, %v2412_v61  ;;  %2510 = vst.msk [vmem:[#allocation4 + $0x20] sm:$0xff] %vm2505_vm11, %v2418_v18  ;;  %v3927_v18 = vld [vmem:[%s7690_s2 + $0x20] sm:$0xff] }
 0x2ff   : > { %2656 = vrot.lane.b32.xlu1 %v2565_v45, %s5263_s14  ;;  %2662 = vrot.lane.b32.xlu0 %v2568_v6, %s5263_s14  ;;  %v4928_v6 = vld [vmem:[#allocation3 + $0x38] sm:$0xff] }
 0x301   : > { %v2416_v63 = vpop.permute.xlu1 %2415  ;;  %v2422_v17 = vpop.permute.xlu0 %2421 }
 0x302   : > { %2509 = vst.msk [vmem:[#allocation4 + $0x18] sm:$0xff] %vm2505_vm11, %v2416_v63  ;;  %2512 = vst.msk [vmem:[#allocation4 + $0x30] sm:$0xff] %vm2505_vm11, %v2422_v17  ;;  %v3925_v17 = vld [vmem:[%s7690_s2 + $0x10] sm:$0xff] }
 0x303   : > { %2660 = vrot.lane.b32.xlu1 %v2567_v44, %s5263_s14  ;;  %2796 = vrot.lane.b32.xlu0 %v6580_v52, %s5264_s15 }
 0x305   : > { %v2420_v29 = vpop.permute.xlu1 %2419  ;;  %v2426_v48 = vpop.permute.xlu0 %2425 }
 0x306   : > { %2511 = vst.msk [vmem:[#allocation4 + $0x28] sm:$0xff] %vm2505_vm11, %v2420_v29  ;;  %2514 = vst.msk [vmem:[#allocation4 + $0x40] sm:$0xff] %vm2505_vm11, %v2426_v48  ;;  %v3924_v29 = vld [vmem:[%s7690_s2 + $0x8] sm:$0xff] }
 0x307   : > { %2664 = vrot.lane.b32.xlu1 %v2569_v37, %s5263_s14  ;;  %2800 = vrot.lane.b32.xlu0 %v6587_v57, %s5264_s15 }
 0x309   : > { %v2424_v31 = vpop.permute.xlu1 %2423  ;;  %v2430_v32 = vpop.permute.xlu0 %2429 }
 0x30a   : > { %2513 = vst.msk [vmem:[#allocation4 + $0x38] sm:$0xff] %vm2505_vm11, %v2424_v31  ;;  %2516 = vst.msk [vmem:[#allocation4 + $0x50] sm:$0xff] %vm2505_vm11, %v2430_v32  ;;  %v3923_v31 = vld [vmem:[%s7690_s2] sm:$0xff] }
 0x30b   : > { %2798 = vrot.lane.b32.xlu1 %v6591_v27, %s5264_s15  ;;  %2804 = vrot.lane.b32.xlu0 %v6596_v60, %s5264_s15 }
 0x30d   : > { %v2428_v52 = vpop.permute.xlu1 %2427  ;;  %v2434_v38 = vpop.permute.xlu0 %2433 }
 0x30e   : > { %2515 = vst.msk [vmem:[#allocation4 + $0x48] sm:$0xff] %vm2505_vm11, %v2428_v52  ;;  %2518 = vst.msk [vmem:[#allocation4 + $0x60] sm:$0xff] %vm2505_vm11, %v2434_v38 }
 0x30f   : > { %2802 = vrot.lane.b32.xlu1 %v6601_v62, %s5264_s15  ;;  %2808 = vrot.lane.b32.xlu0 %v6606_v1, %s5264_s15 }
 0x311   : > { %v2432_v57 = vpop.permute.xlu1 %2431  ;;  %v2438_v27 = vpop.permute.xlu0 %2437 }
 0x312   : > { %2517 = vst.msk [vmem:[#allocation4 + $0x58] sm:$0xff] %vm2505_vm11, %v2432_v57  ;;  %2520 = vst.msk [vmem:[#allocation4 + $0x70] sm:$0xff] %vm2505_vm11, %v2438_v27 }
 0x313   : > { %2806 = vrot.lane.b32.xlu1 %v6611_v3, %s5264_s15  ;;  %2812 = vrot.lane.b32.xlu0 %v6616_v5, %s5264_s15 }
 0x315   : > { %v2436_v60 = vpop.permute.xlu1 %2435  ;;  %v2442_v62 = vpop.permute.xlu0 %2441 }
 0x316   : > { %2519 = vst.msk [vmem:[#allocation4 + $0x68] sm:$0xff] %vm2505_vm11, %v2436_v60  ;;  %2522 = vst.msk [vmem:[#allocation4 + $0x80] sm:$0xff] %vm2505_vm11, %v2442_v62  ;;  %v4930_v60 = vld [vmem:[#allocation3 + $0x50] sm:$0xff] }
 0x317   : > { %2810 = vrot.lane.b32.xlu1 %v6621_v7, %s5264_s15  ;;  %2816 = vrot.lane.b32.xlu0 %v6626_v9, %s5264_s15 }
 0x319   : > { %v2440_v1 = vpop.permute.xlu1 %2439  ;;  %v2446_v3 = vpop.permute.xlu0 %2445 }
 0x31a   : > { %2521 = vst.msk [vmem:[#allocation4 + $0x78] sm:$0xff] %vm2505_vm11, %v2440_v1  ;;  %2524 = vst.msk [vmem:[#allocation4 + $0x90] sm:$0xff] %vm2505_vm11, %v2446_v3 }
 0x31b   : > { %2814 = vrot.lane.b32.xlu1 %v6631_v12, %s5264_s15  ;;  %2820 = vrot.lane.b32.xlu0 %v6636_v16, %s5264_s15 }
 0x31d   : > { %v2444_v5 = vpop.permute.xlu1 %2443  ;;  %v2450_v7 = vpop.permute.xlu0 %2449 }
 0x31e   : > { %2523 = vst.msk [vmem:[#allocation4 + $0x88] sm:$0xff] %vm2505_vm11, %v2444_v5  ;;  %2526 = vst.msk [vmem:[#allocation4 + $0xa0] sm:$0xff] %vm2505_vm11, %v2450_v7 }
 0x31f   : > { %2818 = vrot.lane.b32.xlu1 %v6641_v41, %s5264_s15  ;;  %2824 = vrot.lane.b32.xlu0 %v6646_v22, %s5264_s15 }
 0x321   : > { %v2448_v9 = vpop.permute.xlu1 %2447  ;;  %v2454_v12 = vpop.permute.xlu0 %2453 }
 0x322   : > { %2525 = vst.msk [vmem:[#allocation4 + $0x98] sm:$0xff] %vm2505_vm11, %v2448_v9  ;;  %2528 = vst.msk [vmem:[#allocation4 + $0xb0] sm:$0xff] %vm2505_vm11, %v2454_v12 }
 0x323   : > { %2822 = vrot.lane.b32.xlu1 %v6651_v28, %s5264_s15  ;;  %2828 = vrot.lane.b32.xlu0 %v6656_v43, %s5264_s15  ;;  %v3931_v43 = vld [vmem:[%s7690_s2 + $0x40] sm:$0xff] }
 0x324   : > { %5102 = vmatprep.subr.mxu0 %v3931_v43  ;;  %5168 = vmatprep.subr.mxu1 %v3931_v43 }
 0x325   : > { %v2452_v16 = vpop.permute.xlu1 %2451  ;;  %v2458_v41 = vpop.permute.xlu0 %2457  ;;  %5103 = vmatpush3.msra.mxu0 %v3931_v43  ;;  %5177 = vmatpush3.msra.mxu1 %v3931_v43 }
 0x326   : > { %2527 = vst.msk [vmem:[#allocation4 + $0xa8] sm:$0xff] %vm2505_vm11, %v2452_v16  ;;  %2530 = vst.msk [vmem:[#allocation4 + $0xc0] sm:$0xff] %vm2505_vm11, %v2458_v41  ;;  %v4932_v16 = vld [vmem:[#allocation3 + $0x68] sm:$0xff] }
 0x327   : > { %2826 = vrot.lane.b32.xlu1 %v6661_v47, %s5264_s15  ;;  %2989 = vrot.lane.b32.xlu0 %v6698_v54, %s5265_s16  ;;  %v4927_v54 = vld [vmem:[#allocation3 + $0x30] sm:$0xff] }
 0x329   : > { %v2456_v22 = vpop.permute.xlu1 %2455  ;;  %v2462_v28 = vpop.permute.xlu0 %2461 }
 0x32a   : > { %2529 = vst.msk [vmem:[#allocation4 + $0xb8] sm:$0xff] %vm2505_vm11, %v2456_v22  ;;  %2532 = vst.msk [vmem:[#allocation4 + $0xd0] sm:$0xff] %vm2505_vm11, %v2462_v28 }
 0x32b   : > { %2830 = vrot.lane.b32.xlu1 %v6669_v56, %s5264_s15  ;;  %3182 = vrot.lane.b32.xlu0 %v6804_v33, %s5266_s24  ;;  %v3930_v56 = vld [vmem:[%s7690_s2 + $0x38] sm:$0xff]  ;;  %v3929_v33 = vld [vmem:[%s7690_s2 + $0x30] sm:$0xff] }
 0x32c   : > { %5104 = vmatprep.subr.mxu0 %v3930_v56  ;;  %5169 = vmatprep.subr.mxu1 %v3930_v56 }
 0x32d   : > { %v2460_v47 = vpop.permute.xlu1 %2459  ;;  %v2466_v24 = vpop.permute.xlu0 %2465  ;;  %5105 = vmatpush3.msra.mxu0 %v3930_v56  ;;  %5178 = vmatpush3.msra.mxu1 %v3930_v56 }
 0x32e   : > { %2531 = vst.msk [vmem:[#allocation4 + $0xc8] sm:$0xff] %vm2505_vm11, %v2460_v47  ;;  %2534 = vst.msk [vmem:[#allocation4 + $0xe0] sm:$0xff] %vm2505_vm11, %v2466_v24  ;;  %5106 = vmatprep.subr.mxu0 %v3929_v33  ;;  %5170 = vmatprep.subr.mxu1 %v3929_v33  ;;  %v4934_v24 = vld [vmem:[#allocation3 + $0x80] sm:$0xff] }
 0x32f   : > { %2991 = vrot.lane.b32.xlu1 %v6709_v0, %s5265_s16  ;;  %3376 = vrot.lane.b32.xlu0 %v4927_v54, %s5267_s29  ;;  %v3928_v0 = vld [vmem:[%s7690_s2 + $0x28] sm:$0xff] }
 0x330   : > { %5107 = vmatpush3.msra.mxu0 %v3929_v33  ;;  %5179 = vmatpush3.msra.mxu1 %v3929_v33 }
 0x331   : > { %v2464_v45 = vpop.permute.xlu1 %2463  ;;  %v2470_v61 = vpop.permute.xlu0 %2469  ;;  %5108 = vmatprep.subr.mxu0 %v3928_v0  ;;  %5171 = vmatprep.subr.mxu1 %v3928_v0 }
 0x332   : > { %2533 = vst.msk [vmem:[#allocation4 + $0xd8] sm:$0xff] %vm2505_vm11, %v2464_v45  ;;  %2536 = vst.msk [vmem:[#allocation4 + $0xf0] sm:$0xff] %vm2505_vm11, %v2470_v61  ;;  %5109 = vmatpush3.msra.mxu0 %v3928_v0  ;;  %5180 = vmatpush3.msra.mxu1 %v3928_v0 }
 0x333   : > { %3184 = vrot.lane.b32.xlu1 %v6815_v46, %s5266_s24  ;;  %3569 = vrot.lane.b32.xlu0 %v6705_v59, %s5268_s10  ;;  %v3926_v46 = vld [vmem:[%s7690_s2 + $0x18] sm:$0xff] }
 0x334   : > { %5110 = vmatprep.subr.mxu0 %v3927_v18  ;;  %5172 = vmatprep.subr.mxu1 %v3927_v18 }
 0x335   : > { %v2468_v44 = vpop.permute.xlu1 %2467  ;;  %5111 = vmatpush3.msra.mxu0 %v3927_v18  ;;  %v2603_v63 = vpop.permute.xlu0 %2602  ;;  %5181 = vmatpush3.msra.mxu1 %v3927_v18 }
 0x336   : > { %2535 = vst.msk [vmem:[#allocation4 + $0xe8] sm:$0xff] %vm2505_vm11, %v2468_v44  ;;  %5112 = vmatprep.subr.mxu0 %v3926_v46  ;;  %5173 = vmatprep.subr.mxu1 %v3926_v46 }
 0x337   : > { %3378 = vrot.lane.b32.xlu1 %v4928_v6, %s5267_s29  ;;  %2699 = vst.msk [vmem:[#allocation4] sm:$0xff] %vm2698_vm12, %v2603_v63  ;;  %5113 = vmatpush3.msra.mxu0 %v3926_v46 }
 0x338   : > { %3571 = vrot.lane.b32.xlu0 %v6719_v8, %s5268_s10  ;;  %5114 = vmatprep.subr.mxu0 %v3925_v17 }
 0x339   : > { %v2472_v37 = vpop.permute.xlu1 %2471  ;;  %5115 = vmatpush3.msra.mxu0 %v3925_v17  ;;  %v2607_v48 = vpop.permute.xlu0 %2606  ;;  %5182 = vmatpush3.msra.mxu1 %v3926_v46  ;;  %v4936_v46 = vld [vmem:[#allocation3 + $0x98] sm:$0xff] }
 0x33a   : > { %2537 = vst.msk [vmem:[#allocation4 + $0xf8] sm:$0xff] %vm2505_vm11, %v2472_v37  ;;  %5116 = vmatprep.subr.mxu0 %v3924_v29  ;;  %5174 = vmatprep.subr.mxu1 %v3925_v17 }
 0x33b   : > { %2993 = vrot.lane.b32.xlu1 %v6705_v59, %s5265_s16  ;;  %2701 = vst.msk [vmem:[#allocation4 + $0x10] sm:$0xff] %vm2698_vm12, %v2607_v48  ;;  %5117 = vmatpush3.msra.mxu0 %v3924_v29 }
 0x33c   : > { %2995 = vrot.lane.b32.xlu0 %v6719_v8, %s5265_s16  ;;  %5118 = vmatprep.subr.mxu0 %v3923_v31  ;;  %v4929_v8 = vld [vmem:[#allocation3 + $0x48] sm:$0xff] }
 0x33d   : > { %v2605_v32 = vpop.permute.xlu1 %2604  ;;  %5119 = vmatpush3.msra.mxu0 %v3923_v31  ;;  %v2611_v52 = vpop.permute.xlu0 %2610  ;;  %5183 = vmatpush3.msra.mxu1 %v3925_v17 }
 0x33e   : > { %2700 = vst.msk [vmem:[#allocation4 + $0x8] sm:$0xff] %vm2698_vm12, %v2605_v32  ;;  %2703 = vst.msk [vmem:[#allocation4 + $0x20] sm:$0xff] %vm2698_vm12, %v2611_v52  ;;  %5175 = vmatprep.subr.mxu1 %v3924_v29  ;;  %v4938_v52 = vld [vmem:[#allocation3 + $0xb0] sm:$0xff] }
 0x33f   : > { %3762 = vrot.lane.b32.xlu1 %v6811_v30, %s5269_s27  ;;  %5184 = vmatpush3.msra.mxu1 %v3924_v29 }
 0x340   : > { %3764 = vrot.lane.b32.xlu0 %v6825_v49, %s5269_s27  ;;  %5176 = vmatprep.subr.mxu1 %v3923_v31 }
 0x341   : > { %v2609_v59 = vpop.permute.xlu1 %2608  ;;  %v2615_v38 = vpop.permute.xlu0 %2614  ;;  %5185 = vmatpush3.msra.mxu1 %v3923_v31 }
 0x342   : > { %2702 = vst.msk [vmem:[#allocation4 + $0x18] sm:$0xff] %vm2698_vm12, %v2609_v59  ;;  %2705 = vst.msk [vmem:[#allocation4 + $0x30] sm:$0xff] %vm2698_vm12, %v2615_v38 }
 0x343   : > { %3186 = vrot.lane.b32.xlu1 %v6811_v30, %s5266_s24 }
 0x344   : > { %3380 = vrot.lane.b32.xlu0 %v4929_v8, %s5267_s29  ;;  %v4875_v8 = vld [vmem:[#allocation3 + $0xa9] sm:$0xff] }
 0x345   : > { %v2613_v57 = vpop.permute.xlu1 %2612  ;;  %v2619_v27 = vpop.permute.xlu0 %2618 }
 0x346   : > { %2704 = vst.msk [vmem:[#allocation4 + $0x28] sm:$0xff] %vm2698_vm12, %v2613_v57  ;;  %2707 = vst.msk [vmem:[#allocation4 + $0x40] sm:$0xff] %vm2698_vm12, %v2619_v27 }
 0x347   : > { %3188 = vrot.lane.b32.xlu1 %v6825_v49, %s5266_s24 }
 0x348   : > { %3573 = vrot.lane.b32.xlu0 %v6714_v4, %s5268_s10 }
 0x349   : > { %v2617_v30 = vpop.permute.xlu1 %2616  ;;  %v2623_v62 = vpop.permute.xlu0 %2622 }
 0x34a   : > { %2706 = vst.msk [vmem:[#allocation4 + $0x38] sm:$0xff] %vm2698_vm12, %v2617_v30  ;;  %2709 = vst.msk [vmem:[#allocation4 + $0x50] sm:$0xff] %vm2698_vm12, %v2623_v62  ;;  %v4971_v62 = vld [vmem:[#allocation3 + $0xc1] sm:$0xff] }
 0x34b   : > { %3382 = vrot.lane.b32.xlu1 %v4930_v60, %s5267_s29  ;;  %v4939_v60 = vld [vmem:[#allocation3 + $0xc0] sm:$0xff] }
 0x34c   : > { %3575 = vrot.lane.b32.xlu0 %v6729_v20, %s5268_s10 }
 0x34d   : > { %v2621_v1 = vpop.permute.xlu1 %2620  ;;  %v2627_v49 = vpop.permute.xlu0 %2626 }
 0x34e   : > { %2708 = vst.msk [vmem:[#allocation4 + $0x48] sm:$0xff] %vm2698_vm12, %v2621_v1  ;;  %2711 = vst.msk [vmem:[#allocation4 + $0x60] sm:$0xff] %vm2698_vm12, %v2627_v49  ;;  %v4940_v49 = vld [vmem:[#allocation3 + $0xc8] sm:$0xff] }
 0x34f   : > { %2997 = vrot.lane.b32.xlu1 %v6714_v4, %s5265_s16  ;;  %v4931_v4 = vld [vmem:[#allocation3 + $0x60] sm:$0xff] }
 0x350   : > { %2999 = vrot.lane.b32.xlu0 %v6729_v20, %s5265_s16 }
 0x351   : > { %v2625_v3 = vpop.permute.xlu1 %2624  ;;  %v2631_v5 = vpop.permute.xlu0 %2630 }
 0x352   : > { %2710 = vst.msk [vmem:[#allocation4 + $0x58] sm:$0xff] %vm2698_vm12, %v2625_v3  ;;  %2713 = vst.msk [vmem:[#allocation4 + $0x70] sm:$0xff] %vm2698_vm12, %v2631_v5 }
 0x353   : > { %3766 = vrot.lane.b32.xlu1 %v6820_v39, %s5269_s27 }
 0x354   : > { %3768 = vrot.lane.b32.xlu0 %v6835_v55, %s5269_s27 }
 0x355   : > { %v2629_v7 = vpop.permute.xlu1 %2628  ;;  %v2635_v9 = vpop.permute.xlu0 %2634 }
 0x356   : > { %2712 = vst.msk [vmem:[#allocation4 + $0x68] sm:$0xff] %vm2698_vm12, %v2629_v7  ;;  %2715 = vst.msk [vmem:[#allocation4 + $0x80] sm:$0xff] %vm2698_vm12, %v2635_v9 }
 0x357   : > { %3190 = vrot.lane.b32.xlu1 %v6820_v39, %s5266_s24 }
 0x358   : > { %3384 = vrot.lane.b32.xlu0 %v4931_v4, %s5267_s29 }
 0x359   : > { %v2633_v20 = vpop.permute.xlu1 %2632  ;;  %v2639_v12 = vpop.permute.xlu0 %2638 }
 0x35a   : > { %2714 = vst.msk [vmem:[#allocation4 + $0x78] sm:$0xff] %vm2698_vm12, %v2633_v20  ;;  %2717 = vst.msk [vmem:[#allocation4 + $0x90] sm:$0xff] %vm2698_vm12, %v2639_v12 }
 0x35b   : > { %3192 = vrot.lane.b32.xlu1 %v6835_v55, %s5266_s24 }
 0x35c   : > { %3577 = vrot.lane.b32.xlu0 %v6724_v14, %s5268_s10 }
 0x35d   : > { %v2637_v41 = vpop.permute.xlu1 %2636  ;;  %v2643_v39 = vpop.permute.xlu0 %2642 }
 0x35e   : > { %2716 = vst.msk [vmem:[#allocation4 + $0x88] sm:$0xff] %vm2698_vm12, %v2637_v41  ;;  %2719 = vst.msk [vmem:[#allocation4 + $0xa0] sm:$0xff] %vm2698_vm12, %v2643_v39 }
 0x35f   : > { %3386 = vrot.lane.b32.xlu1 %v4932_v16, %s5267_s29  ;;  %v4941_v16 = vld [vmem:[#allocation3 + $0xd8] sm:$0xff] }
 0x360   : > { %3579 = vrot.lane.b32.xlu0 %v6739_v50, %s5268_s10 }
 0x361   : > { %v2641_v22 = vpop.permute.xlu1 %2640  ;;  %v2647_v55 = vpop.permute.xlu0 %2646 }
 0x362   : > { %2718 = vst.msk [vmem:[#allocation4 + $0x98] sm:$0xff] %vm2698_vm12, %v2641_v22  ;;  %2721 = vst.msk [vmem:[#allocation4 + $0xb0] sm:$0xff] %vm2698_vm12, %v2647_v55  ;;  %v4973_v55 = vld [vmem:[#allocation3 + $0xd9] sm:$0xff] }
 0x363   : > { %3001 = vrot.lane.b32.xlu1 %v6724_v14, %s5265_s16  ;;  %v4933_v14 = vld [vmem:[#allocation3 + $0x78] sm:$0xff] }
 0x364   : > { %3003 = vrot.lane.b32.xlu0 %v6739_v50, %s5265_s16 }
 0x365   : > { %v2645_v28 = vpop.permute.xlu1 %2644  ;;  %v2651_v43 = vpop.permute.xlu0 %2650 }
 0x366   : > { %2720 = vst.msk [vmem:[#allocation4 + $0xa8] sm:$0xff] %vm2698_vm12, %v2645_v28  ;;  %2723 = vst.msk [vmem:[#allocation4 + $0xc0] sm:$0xff] %vm2698_vm12, %v2651_v43  ;;  %v4942_v43 = vld [vmem:[#allocation3 + $0xe0] sm:$0xff] }
 0x367   : > { %3770 = vrot.lane.b32.xlu1 %v6830_v36, %s5269_s27 }
 0x368   : > { %3772 = vrot.lane.b32.xlu0 %v6845_v2, %s5269_s27 }
 0x369   : > { %v2649_v47 = vpop.permute.xlu1 %2648  ;;  %v2655_v54 = vpop.permute.xlu0 %2654 }
 0x36a   : > { %2722 = vst.msk [vmem:[#allocation4 + $0xb8] sm:$0xff] %vm2698_vm12, %v2649_v47  ;;  %2725 = vst.msk [vmem:[#allocation4 + $0xd0] sm:$0xff] %vm2698_vm12, %v2655_v54  ;;  %v4974_v47 = vld [vmem:[#allocation3 + $0xe1] sm:$0xff] }
 0x36b   : > { %3194 = vrot.lane.b32.xlu1 %v6830_v36, %s5266_s24 }
 0x36c   : > { %3388 = vrot.lane.b32.xlu0 %v4933_v14, %s5267_s29 }
 0x36d   : > { %v2653_v50 = vpop.permute.xlu1 %2652  ;;  %v2659_v56 = vpop.permute.xlu0 %2658 }
 0x36e   : > { %2724 = vst.msk [vmem:[#allocation4 + $0xc8] sm:$0xff] %vm2698_vm12, %v2653_v50  ;;  %2727 = vst.msk [vmem:[#allocation4 + $0xe0] sm:$0xff] %vm2698_vm12, %v2659_v56 }
 0x36f   : > { %3196 = vrot.lane.b32.xlu1 %v6845_v2, %s5266_s24 }
 0x370   : > { %3581 = vrot.lane.b32.xlu0 %v6734_v42, %s5268_s10 }
 0x371   : > { %v2657_v33 = vpop.permute.xlu1 %2656  ;;  %v2663_v36 = vpop.permute.xlu0 %2662 }
 0x372   : > { %2726 = vst.msk [vmem:[#allocation4 + $0xd8] sm:$0xff] %vm2698_vm12, %v2657_v33  ;;  %2729 = vst.msk [vmem:[#allocation4 + $0xf0] sm:$0xff] %vm2698_vm12, %v2663_v36  ;;  %v4943_v36 = vld [vmem:[#allocation3 + $0xf0] sm:$0xff] }
 0x373   : > { %3390 = vrot.lane.b32.xlu1 %v4934_v24, %s5267_s29 }
 0x374   : > { %3583 = vrot.lane.b32.xlu0 %v6749_v11, %s5268_s10 }
 0x375   : > { %v2661_v45 = vpop.permute.xlu1 %2660  ;;  %v2797_v2 = vpop.permute.xlu0 %2796 }
 0x376   : > { %2728 = vst.msk [vmem:[#allocation4 + $0xe8] sm:$0xff] %vm2698_vm12, %v2661_v45 }
 0x377   : > { %3005 = vrot.lane.b32.xlu1 %v6734_v42, %s5265_s16  ;;  %2893 = vst.msk [vmem:[#allocation4] sm:$0xff] %vm2892_vm13, %v2797_v2  ;;  %v4935_v42 = vld [vmem:[#allocation3 + $0x90] sm:$0xff] }
 0x378   : > { %3007 = vrot.lane.b32.xlu0 %v6749_v11, %s5265_s16 }
 0x379   : > { %v2665_v0 = vpop.permute.xlu1 %2664  ;;  %v2801_v61 = vpop.permute.xlu0 %2800 }
 0x37a   : > { %2730 = vst.msk [vmem:[#allocation4 + $0xf8] sm:$0xff] %vm2698_vm12, %v2665_v0 }
 0x37b   : > { %3774 = vrot.lane.b32.xlu1 %v6840_v58, %s5269_s27  ;;  %2895 = vst.msk [vmem:[#allocation4 + $0x10] sm:$0xff] %vm2892_vm13, %v2801_v61  ;;  %v4944_v61 = vld [vmem:[#allocation3 + $0xf8] sm:$0xff] }
 0x37c   : > { %3776 = vrot.lane.b32.xlu0 %v6855_v34, %s5269_s27 }
 0x37d   : > { %v2799_v6 = vpop.permute.xlu1 %2798  ;;  %v2805_v18 = vpop.permute.xlu0 %2804 }
 0x37e   : > { %2894 = vst.msk [vmem:[#allocation4 + $0x8] sm:$0xff] %vm2892_vm13, %v2799_v6  ;;  %2897 = vst.msk [vmem:[#allocation4 + $0x20] sm:$0xff] %vm2892_vm13, %v2805_v18  ;;  %v4975_v18 = vld [vmem:[#allocation3 + $0xf1] sm:$0xff] }
 0x37f   : > { %3198 = vrot.lane.b32.xlu1 %v6840_v58, %s5266_s24 }
 0x380   : > { %3392 = vrot.lane.b32.xlu0 %v4935_v42, %s5267_s29 }
 0x381   : > { %v2803_v11 = vpop.permute.xlu1 %2802  ;;  %v2809_v44 = vpop.permute.xlu0 %2808 }
 0x382   : > { %2896 = vst.msk [vmem:[#allocation4 + $0x18] sm:$0xff] %vm2892_vm13, %v2803_v11  ;;  %2899 = vst.msk [vmem:[#allocation4 + $0x30] sm:$0xff] %vm2892_vm13, %v2809_v44  ;;  %v498_v11 = vld [vmem:[%s6378_s9 + $0xf0] sm:$0xff] }
 0x383   : > { %3200 = vrot.lane.b32.xlu1 %v6855_v34, %s5266_s24  ;;  %531 = vst.msk [vmem:[#allocation3 + $0x181] sm:$0xff] %vm293_vm0, %v498_v11 }
 0x384   : > { %3585 = vrot.lane.b32.xlu0 %v6744_v35, %s5268_s10 }
 0x385   : > { %v2807_v63 = vpop.permute.xlu1 %2806  ;;  %v2813_v58 = vpop.permute.xlu0 %2812 }
 0x386   : > { %2898 = vst.msk [vmem:[#allocation4 + $0x28] sm:$0xff] %vm2892_vm13, %v2807_v63  ;;  %2901 = vst.msk [vmem:[#allocation4 + $0x40] sm:$0xff] %vm2892_vm13, %v2813_v58  ;;  %v499_v63 = vld [vmem:[%s6378_s9 + $0xf8] sm:$0xff] }
 0x387   : > { %3394 = vrot.lane.b32.xlu1 %v4936_v46, %s5267_s29  ;;  %532 = vst.msk [vmem:[#allocation3 + $0x189] sm:$0xff] %vm293_vm0, %v499_v63 }
 0x388   : > { %3587 = vrot.lane.b32.xlu0 %v6759_v19, %s5268_s10 }
 0x389   : > { %v2811_v17 = vpop.permute.xlu1 %2810  ;;  %v2817_v34 = vpop.permute.xlu0 %2816 }
 0x38a   : > { %2900 = vst.msk [vmem:[#allocation4 + $0x38] sm:$0xff] %vm2892_vm13, %v2811_v17  ;;  %2903 = vst.msk [vmem:[#allocation4 + $0x50] sm:$0xff] %vm2892_vm13, %v2817_v34  ;;  %v5007_v34 = vld [vmem:[#allocation3 + $0xf2] sm:$0xff] }
 0x38b   : > { %3009 = vrot.lane.b32.xlu1 %v6744_v35, %s5265_s16  ;;  %v4937_v35 = vld [vmem:[#allocation3 + $0xa8] sm:$0xff] }
 0x38c   : > { %3011 = vrot.lane.b32.xlu0 %v6759_v19, %s5265_s16 }
 0x38d   : > { %v2815_v37 = vpop.permute.xlu1 %2814  ;;  %v2821_v29 = vpop.permute.xlu0 %2820 }
 0x38e   : > { %2902 = vst.msk [vmem:[#allocation4 + $0x48] sm:$0xff] %vm2892_vm13, %v2815_v37  ;;  %2905 = vst.msk [vmem:[#allocation4 + $0x60] sm:$0xff] %vm2892_vm13, %v2821_v29 }
 0x38f   : > { %3778 = vrot.lane.b32.xlu1 %v6850_v10, %s5269_s27 }
 0x390   : > { %3780 = vrot.lane.b32.xlu0 %v6865_v13, %s5269_s27 }
 0x391   : > { %v2819_v48 = vpop.permute.xlu1 %2818  ;;  %v2825_v31 = vpop.permute.xlu0 %2824 }
 0x392   : > { %2904 = vst.msk [vmem:[#allocation4 + $0x58] sm:$0xff] %vm2892_vm13, %v2819_v48  ;;  %2907 = vst.msk [vmem:[#allocation4 + $0x70] sm:$0xff] %vm2892_vm13, %v2825_v31  ;;  %v5008_v48 = vld [vmem:[#allocation3 + $0xfa] sm:$0xff] }
 0x393   : > { %3202 = vrot.lane.b32.xlu1 %v6850_v10, %s5266_s24 }
 0x394   : > { %3396 = vrot.lane.b32.xlu0 %v4937_v35, %s5267_s29 }
 0x395   : > { %v2823_v19 = vpop.permute.xlu1 %2822  ;;  %v2829_v32 = vpop.permute.xlu0 %2828 }
 0x396   : > { %2906 = vst.msk [vmem:[#allocation4 + $0x68] sm:$0xff] %vm2892_vm13, %v2823_v19  ;;  %2909 = vst.msk [vmem:[#allocation4 + $0x80] sm:$0xff] %vm2892_vm13, %v2829_v32  ;;  %v4945_v32 = vld [vmem:[#allocation3 + $0x108] sm:$0xff] }
 0x397   : > { %3204 = vrot.lane.b32.xlu1 %v6865_v13, %s5266_s24 }
 0x398   : > { %3589 = vrot.lane.b32.xlu0 %v6754_v15, %s5268_s10 }
 0x399   : > { %v2827_v59 = vpop.permute.xlu1 %2826  ;;  %v2990_v10 = vpop.permute.xlu0 %2989 }
 0x39a   : > { %2908 = vst.msk [vmem:[#allocation4 + $0x78] sm:$0xff] %vm2892_vm13, %v2827_v59 }
 0x39b   : > { %3398 = vrot.lane.b32.xlu1 %v4938_v52, %s5267_s29  ;;  %3086 = vst.msk [vmem:[#allocation4] sm:$0xff] %vm3085_vm14, %v2990_v10  ;;  %v4946_v10 = vld [vmem:[#allocation3 + $0x110] sm:$0xff] }
 0x39c   : > { %3591 = vrot.lane.b32.xlu0 %v6767_v51, %s5268_s10 }
 0x39d   : > { %v2831_v13 = vpop.permute.xlu1 %2830  ;;  %v3183_v38 = vpop.permute.xlu0 %3182 }
 0x39e   : > { %2910 = vst.msk [vmem:[#allocation4 + $0x88] sm:$0xff] %vm2892_vm13, %v2831_v13 }
 0x39f   : > { %3013 = vrot.lane.b32.xlu1 %v4875_v8, %s5265_s16  ;;  %3279 = vst.msk [vmem:[#allocation4] sm:$0xff] %vm3278_vm15, %v3183_v38 }
 0x3a0   : > { %3015 = vrot.lane.b32.xlu0 %v6767_v51, %s5265_s16 }
 0x3a1   : > { %v2992_v15 = vpop.permute.xlu1 %2991  ;;  %v3377_v57 = vpop.permute.xlu0 %3376 }
 0x3a2   : > { %3087 = vst.msk [vmem:[#allocation4 + $0x8] sm:$0xff] %vm3085_vm14, %v2992_v15  ;;  %v4977_v15 = vld [vmem:[#allocation3 + $0x109] sm:$0xff] }
 0x3a3   : > { %3782 = vrot.lane.b32.xlu1 %v6860_v53, %s5269_s27  ;;  %3473 = vst.msk [vmem:[#allocation4] sm:$0xff] %vm3472_vm2, %v3377_v57 }
 0x3a4   : > { %3784 = vrot.lane.b32.xlu0 %v6875_v23, %s5269_s27 }
 0x3a5   : > { %v3185_v27 = vpop.permute.xlu1 %3184  ;;  %v3570_v30 = vpop.permute.xlu0 %3569 }
 0x3a6   : > { %3280 = vst.msk [vmem:[#allocation4 + $0x8] sm:$0xff] %vm3278_vm15, %v3185_v27  ;;  %v4978_v27 = vld [vmem:[#allocation3 + $0x111] sm:$0xff] }
 0x3a7   : > { %3206 = vrot.lane.b32.xlu1 %v6860_v53, %s5266_s24  ;;  %3666 = vst.msk [vmem:[#allocation4] sm:$0xff] %vm3665_vm3, %v3570_v30  ;;  %v4972_v53 = vld [vmem:[#allocation3 + $0xc9] sm:$0xff] }
 0x3a8   : > { %3400 = vrot.lane.b32.xlu0 %v4939_v60, %s5267_s29 }
 0x3a9   : > { %v3379_v51 = vpop.permute.xlu1 %3378 }
 0x3aa   : > { %3474 = vst.msk [vmem:[#allocation4 + $0x8] sm:$0xff] %vm3472_vm2, %v3379_v51  ;;  %v3572_v1 = vpop.permute.xlu0 %3571 }
 0x3ab   : > { %3208 = vrot.lane.b32.xlu1 %v6875_v23, %s5266_s24  ;;  %3667 = vst.msk [vmem:[#allocation4 + $0x8] sm:$0xff] %vm3665_vm3, %v3572_v1 }
 0x3ac   : > { %3593 = vrot.lane.b32.xlu0 %v4971_v62, %s5268_s10 }
 0x3ad   : > { %v2994_v3 = vpop.permute.xlu1 %2993 }
 0x3ae   : > { %3088 = vst.msk [vmem:[#allocation4 + $0x10] sm:$0xff] %vm3085_vm14, %v2994_v3  ;;  %v2996_v5 = vpop.permute.xlu0 %2995 }
 0x3af   : > { %3402 = vrot.lane.b32.xlu1 %v4940_v49, %s5267_s29  ;;  %3089 = vst.msk [vmem:[#allocation4 + $0x18] sm:$0xff] %vm3085_vm14, %v2996_v5  ;;  %v5009_v49 = vld [vmem:[#allocation3 + $0x10a] sm:$0xff] }
 0x3b0   : > { %3595 = vrot.lane.b32.xlu0 %v4972_v53, %s5268_s10 }
 0x3b1   : > { %v3763_v7 = vpop.permute.xlu1 %3762 }
 0x3b2   : > { %3859 = vst.msk [vmem:[#allocation4] sm:$0xff] %vm3858_vm4, %v3763_v7  ;;  %v3765_v23 = vpop.permute.xlu0 %3764 }
 0x3b3   : > { %3017 = vrot.lane.b32.xlu1 %v4971_v62, %s5265_s16  ;;  %3860 = vst.msk [vmem:[#allocation4 + $0x8] sm:$0xff] %vm3858_vm4, %v3765_v23  ;;  %v4947_v23 = vld [vmem:[#allocation3 + $0x120] sm:$0xff] }
 0x3b4   : > { %3019 = vrot.lane.b32.xlu0 %v4972_v53, %s5265_s16  ;;  %v5010_v53 = vld [vmem:[#allocation3 + $0x112] sm:$0xff] }
 0x3b5   : > { %v3187_v4 = vpop.permute.xlu1 %3186 }
 0x3b6   : > { %3281 = vst.msk [vmem:[#allocation4 + $0x10] sm:$0xff] %vm3278_vm15, %v3187_v4  ;;  %v3381_v9 = vpop.permute.xlu0 %3380 }
 0x3b7   : > { %3786 = vrot.lane.b32.xlu1 %v6870_v21, %s5269_s27  ;;  %3475 = vst.msk [vmem:[#allocation4 + $0x10] sm:$0xff] %vm3472_vm2, %v3381_v9 }
 0x3b8   : > { %3788 = vrot.lane.b32.xlu0 %v6885_v26, %s5269_s27 }
 0x3b9   : > { %v3189_v20 = vpop.permute.xlu1 %3188  ;;  %v3891_v12 = vld [vmem:[#allocation4] sm:$0xff] }
 0x3ba   : > { %3282 = vst.msk [vmem:[#allocation4 + $0x18] sm:$0xff] %vm3278_vm15, %v3189_v20  ;;  %5120 = vmatprep.mubr.msk.f32.mxu0 %vm3939_vm5, %v3891_v12  ;;  %v3574_v41 = vpop.permute.xlu0 %3573  ;;  %v3892_v39 = vld [vmem:[#allocation4 + $0x8] sm:$0xff]  ;;  %v4948_v20 = vld [vmem:[#allocation3 + $0x128] sm:$0xff] }
 0x3bb   : > { %3210 = vrot.lane.b32.xlu1 %v6870_v21, %s5266_s24  ;;  %3668 = vst.msk [vmem:[#allocation4 + $0x10] sm:$0xff] %vm3665_vm3, %v3574_v41  ;;  %5121 = vmatmul.mubr.msk.f32.vlgmr.msra.gmra.mxu0 %vm3939_vm5, %v3892_v39  ;;  %v4979_v39 = vld [vmem:[#allocation3 + $0x121] sm:$0xff] }
 0x3bc   : > { %3404 = vrot.lane.b32.xlu0 %v4941_v16, %s5267_s29 }
 0x3bd   : > { %v3383_v22 = vpop.permute.xlu1 %3382 }
 0x3be   : > { %3476 = vst.msk [vmem:[#allocation4 + $0x18] sm:$0xff] %vm3472_vm2, %v3383_v22  ;;  %v3576_v28 = vpop.permute.xlu0 %3575 }
 0x3bf   : > { %3212 = vrot.lane.b32.xlu1 %v6885_v26, %s5266_s24  ;;  %3669 = vst.msk [vmem:[#allocation4 + $0x18] sm:$0xff] %vm3665_vm3, %v3576_v28  ;;  %v4980_v28 = vld [vmem:[#allocation3 + $0x129] sm:$0xff] }
 0x3c0   : > { %3597 = vrot.lane.b32.xlu0 %v4973_v55, %s5268_s10 }
 0x3c1   : > { %v2998_v21 = vpop.permute.xlu1 %2997 }
 0x3c2   : > { %3090 = vst.msk [vmem:[#allocation4 + $0x20] sm:$0xff] %vm3085_vm14, %v2998_v21  ;;  %v3000_v14 = vpop.permute.xlu0 %2999 }
 0x3c3   : > { %3406 = vrot.lane.b32.xlu1 %v4942_v43, %s5267_s29  ;;  %3091 = vst.msk [vmem:[#allocation4 + $0x28] sm:$0xff] %vm3085_vm14, %v3000_v14 }
 0x3c4   : > { %3599 = vrot.lane.b32.xlu0 %v4974_v47, %s5268_s10 }
 0x3c5   : > { %v3767_v54 = vpop.permute.xlu1 %3766 }
 0x3c6   : > { %3861 = vst.msk [vmem:[#allocation4 + $0x10] sm:$0xff] %vm3858_vm4, %v3767_v54  ;;  %v3769_v26 = vpop.permute.xlu0 %3768  ;;  %v5011_v54 = vld [vmem:[#allocation3 + $0x122] sm:$0xff] }
 0x3c7   : > { %3021 = vrot.lane.b32.xlu1 %v4973_v55, %s5265_s16  ;;  %3862 = vst.msk [vmem:[#allocation4 + $0x18] sm:$0xff] %vm3858_vm4, %v3769_v26 }
 0x3c8   : > { %3023 = vrot.lane.b32.xlu0 %v4974_v47, %s5265_s16 }
 0x3c9   : > { %v3191_v50 = vpop.permute.xlu1 %3190 }
 0x3ca   : > { %3283 = vst.msk [vmem:[#allocation4 + $0x20] sm:$0xff] %vm3278_vm15, %v3191_v50  ;;  %v3385_v56 = vpop.permute.xlu0 %3384  ;;  %v5012_v50 = vld [vmem:[#allocation3 + $0x12a] sm:$0xff] }
 0x3cb   : > { %3790 = vrot.lane.b32.xlu1 %v6880_v25, %s5269_s27  ;;  %3477 = vst.msk [vmem:[#allocation4 + $0x20] sm:$0xff] %vm3472_vm2, %v3385_v56 }
 0x3cc   : > { %3792 = vrot.lane.b32.xlu0 %v6893_v40, %s5269_s27 }
 0x3cd   : > { %v3193_v24 = vpop.permute.xlu1 %3192  ;;  %v3893_v33 = vld [vmem:[#allocation4 + $0x10] sm:$0xff] }
 0x3ce   : > { %3284 = vst.msk [vmem:[#allocation4 + $0x28] sm:$0xff] %vm3278_vm15, %v3193_v24  ;;  %5123 = vmatprep.mubr.msk.f32.mxu0 %vm3939_vm5, %v3893_v33  ;;  %v3578_v45 = vpop.permute.xlu0 %3577  ;;  %v3894_v2 = vld [vmem:[#allocation4 + $0x18] sm:$0xff]  ;;  %v4949_v33 = vld [vmem:[#allocation3 + $0x138] sm:$0xff] }
 0x3cf   : > { %3214 = vrot.lane.b32.xlu1 %v6880_v25, %s5266_s24  ;;  %3670 = vst.msk [vmem:[#allocation4 + $0x20] sm:$0xff] %vm3665_vm3, %v3578_v45  ;;  %5124 = vmatmul.mubr.msk.f32.gmra.mxu0 %vm3939_vm5, %v3894_v2  ;;  %v4950_v2 = vld [vmem:[#allocation3 + $0x140] sm:$0xff] }
 0x3d0   : > { %3408 = vrot.lane.b32.xlu0 %v4943_v36, %s5267_s29 }
 0x3d1   : > { %v3387_v0 = vpop.permute.xlu1 %3386 }
 0x3d2   : > { %3478 = vst.msk [vmem:[#allocation4 + $0x28] sm:$0xff] %vm3472_vm2, %v3387_v0  ;;  %v3580_v6 = vpop.permute.xlu0 %3579 }
 0x3d3   : > { %3216 = vrot.lane.b32.xlu1 %v6893_v40, %s5266_s24  ;;  %3671 = vst.msk [vmem:[#allocation4 + $0x28] sm:$0xff] %vm3665_vm3, %v3580_v6  ;;  %v4976_v40 = vld [vmem:[#allocation3 + $0xf9] sm:$0xff] }
 0x3d4   : > { %3410 = vrot.lane.b32.xlu0 %v4944_v61, %s5267_s29 }
 0x3d5   : > { %v3002_v25 = vpop.permute.xlu1 %3001 }
 0x3d6   : > { %3092 = vst.msk [vmem:[#allocation4 + $0x30] sm:$0xff] %vm3085_vm14, %v3002_v25  ;;  %v3004_v42 = vpop.permute.xlu0 %3003 }
 0x3d7   : > { %2832 = vrot.lane.b32.xlu1 %v4943_v36, %s5264_s15  ;;  %3093 = vst.msk [vmem:[#allocation4 + $0x38] sm:$0xff] %vm3085_vm14, %v3004_v42 }
 0x3d8   : > { %2834 = vrot.lane.b32.xlu0 %v4944_v61, %s5264_s15 }
 0x3d9   : > { %v3771_v44 = vpop.permute.xlu1 %3770 }
 0x3da   : > { %3863 = vst.msk [vmem:[#allocation4 + $0x20] sm:$0xff] %vm3858_vm4, %v3771_v44  ;;  %v3773_v46 = vpop.permute.xlu0 %3772  ;;  %v4982_v44 = vld [vmem:[#allocation3 + $0x141] sm:$0xff] }
 0x3db   : > { %3601 = vrot.lane.b32.xlu1 %v4975_v18, %s5268_s10  ;;  %3864 = vst.msk [vmem:[#allocation4 + $0x28] sm:$0xff] %vm3858_vm4, %v3773_v46 }
 0x3dc   : > { %3603 = vrot.lane.b32.xlu0 %v4976_v40, %s5268_s10 }
 0x3dd   : > { %v3195_v58 = vpop.permute.xlu1 %3194 }
 0x3de   : > { %3285 = vst.msk [vmem:[#allocation4 + $0x30] sm:$0xff] %vm3278_vm15, %v3195_v58  ;;  %v3389_v17 = vpop.permute.xlu0 %3388  ;;  %v5013_v58 = vld [vmem:[#allocation3 + $0x13a] sm:$0xff] }
 0x3df   : > { %3025 = vrot.lane.b32.xlu1 %v4975_v18, %s5265_s16  ;;  %3479 = vst.msk [vmem:[#allocation4 + $0x30] sm:$0xff] %vm3472_vm2, %v3389_v17  ;;  %v4981_v18 = vld [vmem:[#allocation3 + $0x139] sm:$0xff] }
 0x3e0   : > { %3027 = vrot.lane.b32.xlu0 %v4976_v40, %s5265_s16 }
 0x3e1   : > { %v3197_v37 = vpop.permute.xlu1 %3196  ;;  %v3895_v29 = vld [vmem:[#allocation4 + $0x20] sm:$0xff] }
 0x3e2   : > { %3286 = vst.msk [vmem:[#allocation4 + $0x38] sm:$0xff] %vm3278_vm15, %v3197_v37  ;;  %5126 = vmatprep.mubr.msk.f32.mxu0 %vm3939_vm5, %v3895_v29  ;;  %v3582_v35 = vpop.permute.xlu0 %3581  ;;  %v3896_v31 = vld [vmem:[#allocation4 + $0x28] sm:$0xff] }
 0x3e3   : > { %3794 = vrot.lane.b32.xlu1 %v5007_v34, %s5269_s27  ;;  %3672 = vst.msk [vmem:[#allocation4 + $0x30] sm:$0xff] %vm3665_vm3, %v3582_v35  ;;  %5127 = vmatmul.mubr.msk.f32.gmra.mxu0 %vm3939_vm5, %v3896_v31 }
 0x3e4   : > { %3796 = vrot.lane.b32.xlu0 %v5008_v48, %s5269_s27 }
 0x3e5   : > { %v3391_v19 = vpop.permute.xlu1 %3390 }
 0x3e6   : > { %3480 = vst.msk [vmem:[#allocation4 + $0x38] sm:$0xff] %vm3472_vm2, %v3391_v19  ;;  %v3584_v52 = vpop.permute.xlu0 %3583 }
 0x3e7   : > { %3218 = vrot.lane.b32.xlu1 %v5007_v34, %s5266_s24  ;;  %3673 = vst.msk [vmem:[#allocation4 + $0x38] sm:$0xff] %vm3665_vm3, %v3584_v52  ;;  %v5014_v34 = vld [vmem:[#allocation3 + $0x142] sm:$0xff] }
 0x3e8   : > { %3412 = vrot.lane.b32.xlu0 %v4945_v32, %s5267_s29 }
 0x3e9   : > { %v3006_v59 = vpop.permute.xlu1 %3005 }
 0x3ea   : > { %3094 = vst.msk [vmem:[#allocation4 + $0x40] sm:$0xff] %vm3085_vm14, %v3006_v59  ;;  %v3008_v8 = vpop.permute.xlu0 %3007 }
 0x3eb   : > { %3220 = vrot.lane.b32.xlu1 %v5008_v48, %s5266_s24  ;;  %3095 = vst.msk [vmem:[#allocation4 + $0x48] sm:$0xff] %vm3085_vm14, %v3008_v8  ;;  %v4951_v48 = vld [vmem:[#allocation3 + $0x150] sm:$0xff] }
 0x3ec   : > { %3414 = vrot.lane.b32.xlu0 %v4946_v10, %s5267_s29 }
 0x3ed   : > { %v3775_v13 = vpop.permute.xlu1 %3774 }
 0x3ee   : > { %3865 = vst.msk [vmem:[#allocation4 + $0x30] sm:$0xff] %vm3858_vm4, %v3775_v13  ;;  %v3777_v38 = vpop.permute.xlu0 %3776  ;;  %v4983_v13 = vld [vmem:[#allocation3 + $0x151] sm:$0xff] }
 0x3ef   : > { %2836 = vrot.lane.b32.xlu1 %v4945_v32, %s5264_s15  ;;  %3866 = vst.msk [vmem:[#allocation4 + $0x38] sm:$0xff] %vm3858_vm4, %v3777_v38  ;;  %v4952_v32 = vld [vmem:[#allocation3 + $0x158] sm:$0xff] }
 0x3f0   : > { %2838 = vrot.lane.b32.xlu0 %v4946_v10, %s5264_s15 }
 0x3f1   : > { %v3199_v57 = vpop.permute.xlu1 %3198 }
 0x3f2   : > { %3287 = vst.msk [vmem:[#allocation4 + $0x40] sm:$0xff] %vm3278_vm15, %v3199_v57  ;;  %v3393_v60 = vpop.permute.xlu0 %3392 }
 0x3f3   : > { %3605 = vrot.lane.b32.xlu1 %v4977_v15, %s5268_s10  ;;  %3481 = vst.msk [vmem:[#allocation4 + $0x40] sm:$0xff] %vm3472_vm2, %v3393_v60 }
 0x3f4   : > { %3607 = vrot.lane.b32.xlu0 %v4978_v27, %s5268_s10 }
 0x3f5   : > { %v3201_v30 = vpop.permute.xlu1 %3200  ;;  %v3897_v51 = vld [vmem:[#allocation4 + $0x30] sm:$0xff] }
 0x3f6   : > { %3288 = vst.msk [vmem:[#allocation4 + $0x48] sm:$0xff] %vm3278_vm15, %v3201_v30  ;;  %5129 = vmatprep.mubr.msk.f32.mxu0 %vm3939_vm5, %v3897_v51  ;;  %v3586_v62 = vpop.permute.xlu0 %3585  ;;  %v3898_v1 = vld [vmem:[#allocation4 + $0x38] sm:$0xff]  ;;  %v5015_v30 = vld [vmem:[#allocation3 + $0x152] sm:$0xff] }
 0x3f7   : > { %3029 = vrot.lane.b32.xlu1 %v4977_v15, %s5265_s16  ;;  %3674 = vst.msk [vmem:[#allocation4 + $0x40] sm:$0xff] %vm3665_vm3, %v3586_v62  ;;  %5130 = vmatmul.mubr.msk.f32.gmra.mxu0 %vm3939_vm5, %v3898_v1  ;;  %v4984_v15 = vld [vmem:[#allocation3 + $0x159] sm:$0xff] }
 0x3f8   : > { %3031 = vrot.lane.b32.xlu0 %v4978_v27, %s5265_s16  ;;  %v5016_v62 = vld [vmem:[#allocation3 + $0x15a] sm:$0xff] }
 0x3f9   : > { %v3395_v3 = vpop.permute.xlu1 %3394 }
 0x3fa   : > { %3482 = vst.msk [vmem:[#allocation4 + $0x48] sm:$0xff] %vm3472_vm2, %v3395_v3  ;;  %v3588_v5 = vpop.permute.xlu0 %3587 }
 0x3fb   : > { %3798 = vrot.lane.b32.xlu1 %v5009_v49, %s5269_s27  ;;  %3675 = vst.msk [vmem:[#allocation4 + $0x48] sm:$0xff] %vm3665_vm3, %v3588_v5 }
 0x3fc   : > { %3800 = vrot.lane.b32.xlu0 %v5010_v53, %s5269_s27 }
 0x3fd   : > { %v3010_v7 = vpop.permute.xlu1 %3009 }
 0x3fe   : > { %3096 = vst.msk [vmem:[#allocation4 + $0x50] sm:$0xff] %vm3085_vm14, %v3010_v7  ;;  %v3012_v4 = vpop.permute.xlu0 %3011 }
 0x3ff   : > { %3222 = vrot.lane.b32.xlu1 %v5009_v49, %s5266_s24  ;;  %3097 = vst.msk [vmem:[#allocation4 + $0x58] sm:$0xff] %vm3085_vm14, %v3012_v4  ;;  %v4954_v4 = vld [vmem:[#allocation3 + $0x170] sm:$0xff] }
 0x400   : > { %3416 = vrot.lane.b32.xlu0 %v4947_v23, %s5267_s29 }
 0x401   : > { %v3779_v9 = vpop.permute.xlu1 %3778 }
 0x402   : > { %3867 = vst.msk [vmem:[#allocation4 + $0x40] sm:$0xff] %vm3858_vm4, %v3779_v9  ;;  %v3781_v12 = vpop.permute.xlu0 %3780 }
 0x403   : > { %3224 = vrot.lane.b32.xlu1 %v5010_v53, %s5266_s24  ;;  %3868 = vst.msk [vmem:[#allocation4 + $0x48] sm:$0xff] %vm3858_vm4, %v3781_v12  ;;  %v4953_v53 = vld [vmem:[#allocation3 + $0x168] sm:$0xff] }
 0x404   : > { %3418 = vrot.lane.b32.xlu0 %v4948_v20, %s5267_s29 }
 0x405   : > { %v3203_v16 = vpop.permute.xlu1 %3202 }
 0x406   : > { %3289 = vst.msk [vmem:[#allocation4 + $0x50] sm:$0xff] %vm3278_vm15, %v3203_v16  ;;  %v3397_v41 = vpop.permute.xlu0 %3396  ;;  %v4985_v16 = vld [vmem:[#allocation3 + $0x169] sm:$0xff] }
 0x407   : > { %2840 = vrot.lane.b32.xlu1 %v4947_v23, %s5264_s15  ;;  %3483 = vst.msk [vmem:[#allocation4 + $0x50] sm:$0xff] %vm3472_vm2, %v3397_v41 }
 0x408   : > { %2842 = vrot.lane.b32.xlu0 %v4948_v20, %s5264_s15 }
 0x409   : > { %v3205_v22 = vpop.permute.xlu1 %3204  ;;  %v3899_v55 = vld [vmem:[#allocation4 + $0x40] sm:$0xff] }
 0x40a   : > { %3290 = vst.msk [vmem:[#allocation4 + $0x58] sm:$0xff] %vm3278_vm15, %v3205_v22  ;;  %5132 = vmatprep.mubr.msk.f32.mxu0 %vm3939_vm5, %v3899_v55  ;;  %v3590_v43 = vpop.permute.xlu0 %3589  ;;  %v3900_v21 = vld [vmem:[#allocation4 + $0x48] sm:$0xff] }
 0x40b   : > { %3609 = vrot.lane.b32.xlu1 %v4979_v39, %s5268_s10  ;;  %3676 = vst.msk [vmem:[#allocation4 + $0x50] sm:$0xff] %vm3665_vm3, %v3590_v43  ;;  %5133 = vmatmul.mubr.msk.f32.gmra.mxu0 %vm3939_vm5, %v3900_v21  ;;  %v5017_v43 = vld [vmem:[#allocation3 + $0x16a] sm:$0xff] }
 0x40c   : > { %3611 = vrot.lane.b32.xlu0 %v4980_v28, %s5268_s10 }
 0x40d   : > { %v3399_v47 = vpop.permute.xlu1 %3398 }
 0x40e   : > { %3484 = vst.msk [vmem:[#allocation4 + $0x58] sm:$0xff] %vm3472_vm2, %v3399_v47  ;;  %v3592_v14 = vpop.permute.xlu0 %3591  ;;  %v5018_v47 = vld [vmem:[#allocation3 + $0x172] sm:$0xff] }
 0x40f   : > { %3033 = vrot.lane.b32.xlu1 %v4979_v39, %s5265_s16  ;;  %3677 = vst.msk [vmem:[#allocation4 + $0x58] sm:$0xff] %vm3665_vm3, %v3592_v14  ;;  %v4986_v39 = vld [vmem:[#allocation3 + $0x171] sm:$0xff] }
 0x410   : > { %3035 = vrot.lane.b32.xlu0 %v4980_v28, %s5265_s16 }
 0x411   : > { %v3014_v26 = vpop.permute.xlu1 %3013 }
 0x412   : > { %3098 = vst.msk [vmem:[#allocation4 + $0x60] sm:$0xff] %vm3085_vm14, %v3014_v26  ;;  %v3016_v56 = vpop.permute.xlu0 %3015 }
 0x413   : > { %3802 = vrot.lane.b32.xlu1 %v5011_v54, %s5269_s27  ;;  %3099 = vst.msk [vmem:[#allocation4 + $0x68] sm:$0xff] %vm3085_vm14, %v3016_v56 }
 0x414   : > { %3804 = vrot.lane.b32.xlu0 %v5012_v50, %s5269_s27 }
 0x415   : > { %v3783_v24 = vpop.permute.xlu1 %3782 }
 0x416   : > { %3869 = vst.msk [vmem:[#allocation4 + $0x50] sm:$0xff] %vm3858_vm4, %v3783_v24  ;;  %v3785_v36 = vpop.permute.xlu0 %3784 }
 0x417   : > { %3226 = vrot.lane.b32.xlu1 %v5011_v54, %s5266_s24  ;;  %3870 = vst.msk [vmem:[#allocation4 + $0x58] sm:$0xff] %vm3858_vm4, %v3785_v36  ;;  %v4956_v36 = vld [vmem:[#allocation3 + $0x188] sm:$0xff] }
 0x418   : > { %3420 = vrot.lane.b32.xlu0 %v4949_v33, %s5267_s29 }
 0x419   : > { %v3207_v45 = vpop.permute.xlu1 %3206 }
 0x41a   : > { %3291 = vst.msk [vmem:[#allocation4 + $0x60] sm:$0xff] %vm3278_vm15, %v3207_v45  ;;  %v3401_v0 = vpop.permute.xlu0 %3400 }
 0x41b   : > { %3228 = vrot.lane.b32.xlu1 %v5012_v50, %s5266_s24  ;;  %3485 = vst.msk [vmem:[#allocation4 + $0x60] sm:$0xff] %vm3472_vm2, %v3401_v0  ;;  %v4955_v50 = vld [vmem:[#allocation3 + $0x180] sm:$0xff] }
 0x41c   : > { %3422 = vrot.lane.b32.xlu0 %v4950_v2, %s5267_s29 }
 0x41d   : > { %v3209_v61 = vpop.permute.xlu1 %3208  ;;  %v3901_v6 = vld [vmem:[#allocation4 + $0x50] sm:$0xff] }
 0x41e   : > { %3292 = vst.msk [vmem:[#allocation4 + $0x68] sm:$0xff] %vm3278_vm15, %v3209_v61  ;;  %5135 = vmatprep.mubr.msk.f32.mxu0 %vm3939_vm5, %v3901_v6  ;;  %v3594_v25 = vpop.permute.xlu0 %3593  ;;  %v3902_v42 = vld [vmem:[#allocation4 + $0x58] sm:$0xff] }
 0x41f   : > { %2844 = vrot.lane.b32.xlu1 %v4949_v33, %s5264_s15  ;;  %3678 = vst.msk [vmem:[#allocation4 + $0x60] sm:$0xff] %vm3665_vm3, %v3594_v25  ;;  %5136 = vmatmul.mubr.msk.f32.gmra.mxu0 %vm3939_vm5, %v3902_v42  ;;  %v4987_v61 = vld [vmem:[#allocation3 + $0x181] sm:$0xff]  ;;  %v4988_v25 = vld [vmem:[#allocation3 + $0x189] sm:$0xff] }
 0x420   : > { %2846 = vrot.lane.b32.xlu0 %v4950_v2, %s5264_s15 }
 0x421   : > { %v3403_v11 = vpop.permute.xlu1 %3402 }
 0x422   : > { %3486 = vst.msk [vmem:[#allocation4 + $0x68] sm:$0xff] %vm3472_vm2, %v3403_v11  ;;  %v3596_v40 = vpop.permute.xlu0 %3595 }
 0x423   : > { %3613 = vrot.lane.b32.xlu1 %v4981_v18, %s5268_s10  ;;  %3679 = vst.msk [vmem:[#allocation4 + $0x68] sm:$0xff] %vm3665_vm3, %v3596_v40 }
 0x424   : > { %3615 = vrot.lane.b32.xlu0 %v4982_v44, %s5268_s10 }
 0x425   : > { %v3018_v46 = vpop.permute.xlu1 %3017 }
 0x426   : > { %3100 = vst.msk [vmem:[#allocation4 + $0x70] sm:$0xff] %vm3085_vm14, %v3018_v46  ;;  %v3020_v63 = vpop.permute.xlu0 %3019  ;;  %v5020_v46 = vld [vmem:[#allocation3 + $0x18a] sm:$0xff] }
 0x427   : > { %3037 = vrot.lane.b32.xlu1 %v4981_v18, %s5265_s16  ;;  %3101 = vst.msk [vmem:[#allocation4 + $0x78] sm:$0xff] %vm3085_vm14, %v3020_v63 }
 0x428   : > { %3039 = vrot.lane.b32.xlu0 %v4982_v44, %s5265_s16  ;;  %v5019_v44 = vld [vmem:[#allocation3 + $0x182] sm:$0xff] }
 0x429   : > { %v3787_v17 = vpop.permute.xlu1 %3786 }
 0x42a   : > { %3871 = vst.msk [vmem:[#allocation4 + $0x60] sm:$0xff] %vm3858_vm4, %v3787_v17  ;;  %v3789_v37 = vpop.permute.xlu0 %3788 }
 0x42b   : > { %3806 = vrot.lane.b32.xlu1 %v5013_v58, %s5269_s27  ;;  %3872 = vst.msk [vmem:[#allocation4 + $0x68] sm:$0xff] %vm3858_vm4, %v3789_v37 }
 0x42c   : > { %3808 = vrot.lane.b32.xlu0 %v5014_v34, %s5269_s27 }
 0x42d   : > { %v3211_v29 = vpop.permute.xlu1 %3210 }
 0x42e   : > { %3293 = vst.msk [vmem:[#allocation4 + $0x70] sm:$0xff] %vm3278_vm15, %v3211_v29  ;;  %v3405_v35 = vpop.permute.xlu0 %3404 }
 0x42f   : > { %3230 = vrot.lane.b32.xlu1 %v5013_v58, %s5266_s24  ;;  %3487 = vst.msk [vmem:[#allocation4 + $0x70] sm:$0xff] %vm3472_vm2, %v3405_v35  ;;  %v7425_v35 = vld [vmem:[%s7691_s3] ss:$0 sm:$0xff] }
 0x430   : > { %3424 = vrot.lane.b32.xlu0 %v4951_v48, %s5267_s29 }
 0x431   : > { %v3213_v31 = vpop.permute.xlu1 %3212  ;;  %v3903_v19 = vld [vmem:[#allocation4 + $0x60] sm:$0xff] }
 0x432   : > { %3294 = vst.msk [vmem:[#allocation4 + $0x78] sm:$0xff] %vm3278_vm15, %v3213_v31  ;;  %5138 = vmatprep.mubr.msk.f32.mxu0 %vm3939_vm5, %v3903_v19  ;;  %v3598_v52 = vpop.permute.xlu0 %3597  ;;  %v3904_v59 = vld [vmem:[#allocation4 + $0x68] sm:$0xff] }
 0x433   : > { %3232 = vrot.lane.b32.xlu1 %v5014_v34, %s5266_s24  ;;  %3680 = vst.msk [vmem:[#allocation4 + $0x70] sm:$0xff] %vm3665_vm3, %v3598_v52  ;;  %5139 = vmatmul.mubr.msk.f32.gmra.mxu0 %vm3939_vm5, %v3904_v59  ;;  %v4957_v34 = vld [vmem:[#allocation3 + $0x198] sm:$0xff]  ;;  %v4958_v52 = vld [vmem:[#allocation3 + $0x1a0] sm:$0xff] }
 0x434   : > { %3426 = vrot.lane.b32.xlu0 %v4952_v32, %s5267_s29  ;;  %v4989_v31 = vld [vmem:[#allocation3 + $0x199] sm:$0xff] }
 0x435   : > { %v3407_v10 = vpop.permute.xlu1 %3406 }
 0x436   : > { %3488 = vst.msk [vmem:[#allocation4 + $0x78] sm:$0xff] %vm3472_vm2, %v3407_v10  ;;  %v3600_v8 = vpop.permute.xlu0 %3599 }
 0x437   : > { %2848 = vrot.lane.b32.xlu1 %v4951_v48, %s5264_s15  ;;  %3681 = vst.msk [vmem:[#allocation4 + $0x78] sm:$0xff] %vm3665_vm3, %v3600_v8 }
 0x438   : > { %2850 = vrot.lane.b32.xlu0 %v4952_v32, %s5264_s15 }
 0x439   : > { %v3022_v38 = vpop.permute.xlu1 %3021 }
 0x43a   : > { %3102 = vst.msk [vmem:[#allocation4 + $0x80] sm:$0xff] %vm3085_vm14, %v3022_v38  ;;  %v3024_v57 = vpop.permute.xlu0 %3023 }
 0x43b   : > { %3617 = vrot.lane.b32.xlu1 %v4983_v13, %s5268_s10  ;;  %3103 = vst.msk [vmem:[#allocation4 + $0x88] sm:$0xff] %vm3085_vm14, %v3024_v57 }
 0x43c   : > { %3619 = vrot.lane.b32.xlu0 %v4984_v15, %s5268_s10 }
 0x43d   : > { %v3791_v27 = vpop.permute.xlu1 %3790 }
 0x43e   : > { %3873 = vst.msk [vmem:[#allocation4 + $0x70] sm:$0xff] %vm3858_vm4, %v3791_v27  ;;  %v3793_v60 = vpop.permute.xlu0 %3792 }
 0x43f   : > { %3041 = vrot.lane.b32.xlu1 %v4983_v13, %s5265_s16  ;;  %3874 = vst.msk [vmem:[#allocation4 + $0x78] sm:$0xff] %vm3858_vm4, %v3793_v60  ;;  %v5021_v13 = vld [vmem:[#allocation3 + $0x19a] sm:$0xff] }
 0x440   : > { %3043 = vrot.lane.b32.xlu0 %v4984_v15, %s5265_s16  ;;  %v4990_v60 = vld [vmem:[#allocation3 + $0x1a1] sm:$0xff] }
 0x441   : > { %v3215_v51 = vpop.permute.xlu1 %3214 }
 0x442   : > { %3295 = vst.msk [vmem:[#allocation4 + $0x80] sm:$0xff] %vm3278_vm15, %v3215_v51  ;;  %v3409_v1 = vpop.permute.xlu0 %3408 }
 0x443   : > { %3810 = vrot.lane.b32.xlu1 %v5015_v30, %s5269_s27  ;;  %3489 = vst.msk [vmem:[#allocation4 + $0x80] sm:$0xff] %vm3472_vm2, %v3409_v1 }
 0x444   : > { %3812 = vrot.lane.b32.xlu0 %v5016_v62, %s5269_s27 }
 0x445   : > { %v3217_v49 = vpop.permute.xlu1 %3216  ;;  %v3905_v3 = vld [vmem:[#allocation4 + $0x70] sm:$0xff] }
 0x446   : > { %3296 = vst.msk [vmem:[#allocation4 + $0x88] sm:$0xff] %vm3278_vm15, %v3217_v49  ;;  %5141 = vmatprep.mubr.msk.f32.mxu0 %vm3939_vm5, %v3905_v3  ;;  %v3411_v5 = vpop.permute.xlu0 %3410  ;;  %v3906_v7 = vld [vmem:[#allocation4 + $0x78] sm:$0xff] }
 0x447   : > { %3234 = vrot.lane.b32.xlu1 %v5015_v30, %s5266_s24  ;;  %3490 = vst.msk [vmem:[#allocation4 + $0x88] sm:$0xff] %vm3472_vm2, %v3411_v5  ;;  %5142 = vmatmul.mubr.msk.f32.gmra.mxu0 %vm3939_vm5, %v3906_v7  ;;  %v5022_v7 = vld [vmem:[#allocation3 + $0x1a2] sm:$0xff] }
 0x448   : > { %3428 = vrot.lane.b32.xlu0 %v4953_v53, %s5267_s29 }
 0x449   : > { %v2833_v23 = vpop.permute.xlu1 %2832 }
 0x44a   : > { %2911 = vst.msk [vmem:[#allocation4 + $0x90] sm:$0xff] %vm2892_vm13, %v2833_v23  ;;  %v2835_v9 = vpop.permute.xlu0 %2834 }
 0x44b   : > { %3236 = vrot.lane.b32.xlu1 %v5016_v62, %s5266_s24  ;;  %2912 = vst.msk [vmem:[#allocation4 + $0x98] sm:$0xff] %vm2892_vm13, %v2835_v9 }
 0x44c   : > { %3430 = vrot.lane.b32.xlu0 %v4954_v4, %s5267_s29 }
 0x44d   : > { %v3602_v20 = vpop.permute.xlu1 %3601 }
 0x44e   : > { %3682 = vst.msk [vmem:[#allocation4 + $0x80] sm:$0xff] %vm3665_vm3, %v3602_v20  ;;  %v3604_v12 = vpop.permute.xlu0 %3603 }
 0x44f   : > { %2852 = vrot.lane.b32.xlu1 %v4953_v53, %s5264_s15  ;;  %3683 = vst.msk [vmem:[#allocation4 + $0x88] sm:$0xff] %vm3665_vm3, %v3604_v12 }
 0x450   : > { %2854 = vrot.lane.b32.xlu0 %v4954_v4, %s5264_s15 }
 0x451   : > { %v3026_v41 = vpop.permute.xlu1 %3025 }
 0x452   : > { %3104 = vst.msk [vmem:[#allocation4 + $0x90] sm:$0xff] %vm3085_vm14, %v3026_v41  ;;  %v3028_v22 = vpop.permute.xlu0 %3027 }
 0x453   : > { %3621 = vrot.lane.b32.xlu1 %v4985_v16, %s5268_s10  ;;  %3105 = vst.msk [vmem:[#allocation4 + $0x98] sm:$0xff] %vm3085_vm14, %v3028_v22 }
 0x454   : > { %3623 = vrot.lane.b32.xlu0 %v4986_v39, %s5268_s10 }
 0x455   : > { %v3795_v55 = vpop.permute.xlu1 %3794 }
 0x456   : > { %3875 = vst.msk [vmem:[#allocation4 + $0x80] sm:$0xff] %vm3858_vm4, %v3795_v55  ;;  %v3797_v28 = vpop.permute.xlu0 %3796 }
 0x457   : > { %3045 = vrot.lane.b32.xlu1 %v4985_v16, %s5265_s16  ;;  %3876 = vst.msk [vmem:[#allocation4 + $0x88] sm:$0xff] %vm3858_vm4, %v3797_v28 }
 0x458   : > { %3047 = vrot.lane.b32.xlu0 %v4986_v39, %s5265_s16 }
 0x459   : > { %v3219_v21 = vpop.permute.xlu1 %3218 }
 0x45a   : > { %3297 = vst.msk [vmem:[#allocation4 + $0x90] sm:$0xff] %vm3278_vm15, %v3219_v21  ;;  %v3413_v14 = vpop.permute.xlu0 %3412 }
 0x45b   : > { %3814 = vrot.lane.b32.xlu1 %v5017_v43, %s5269_s27  ;;  %3491 = vst.msk [vmem:[#allocation4 + $0x90] sm:$0xff] %vm3472_vm2, %v3413_v14 }
 0x45c   : > { %3816 = vrot.lane.b32.xlu0 %v5018_v47, %s5269_s27 }
 0x45d   : > { %v3221_v54 = vpop.permute.xlu1 %3220  ;;  %v3907_v26 = vld [vmem:[#allocation4 + $0x80] sm:$0xff] }
 0x45e   : > { %3298 = vst.msk [vmem:[#allocation4 + $0x98] sm:$0xff] %vm3278_vm15, %v3221_v54  ;;  %5144 = vmatprep.mubr.msk.f32.mxu1 %vm3939_vm5, %v3907_v26  ;;  %v3415_v56 = vpop.permute.xlu0 %3414  ;;  %v3908_v24 = vld [vmem:[#allocation4 + $0x88] sm:$0xff] }
 0x45f   : > { %3238 = vrot.lane.b32.xlu1 %v5017_v43, %s5266_s24  ;;  %3492 = vst.msk [vmem:[#allocation4 + $0x98] sm:$0xff] %vm3472_vm2, %v3415_v56  ;;  %5145 = vmatmul.mubr.msk.f32.vlgmr.msra.gmra.mxu1 %vm3939_vm5, %v3908_v24 }
 0x460   : > { %3432 = vrot.lane.b32.xlu0 %v4955_v50, %s5267_s29 }
 0x461   : > { %v2837_v33 = vpop.permute.xlu1 %2836 }
 0x462   : > { %2913 = vst.msk [vmem:[#allocation4 + $0xa0] sm:$0xff] %vm2892_vm13, %v2837_v33  ;;  %v2839_v45 = vpop.permute.xlu0 %2838 }
 0x463   : > { %3240 = vrot.lane.b32.xlu1 %v5018_v47, %s5266_s24  ;;  %2914 = vst.msk [vmem:[#allocation4 + $0xa8] sm:$0xff] %vm2892_vm13, %v2839_v45 }
 0x464   : > { %3434 = vrot.lane.b32.xlu0 %v4956_v36, %s5267_s29 }
 0x465   : > { %v3606_v2 = vpop.permute.xlu1 %3605 }
 0x466   : > { %3684 = vst.msk [vmem:[#allocation4 + $0x90] sm:$0xff] %vm3665_vm3, %v3606_v2  ;;  %v3608_v0 = vpop.permute.xlu0 %3607 }
 0x467   : > { %2856 = vrot.lane.b32.xlu1 %v4955_v50, %s5264_s15  ;;  %3685 = vst.msk [vmem:[#allocation4 + $0x98] sm:$0xff] %vm3665_vm3, %v3608_v0 }
 0x468   : > { %2858 = vrot.lane.b32.xlu0 %v4956_v36, %s5264_s15 }
 0x469   : > { %v3030_v6 = vpop.permute.xlu1 %3029 }
 0x46a   : > { %3106 = vst.msk [vmem:[#allocation4 + $0xa0] sm:$0xff] %vm3085_vm14, %v3030_v6  ;;  %v3032_v42 = vpop.permute.xlu0 %3031 }
 0x46b   : > { %3625 = vrot.lane.b32.xlu1 %v4987_v61, %s5268_s10  ;;  %3107 = vst.msk [vmem:[#allocation4 + $0xa8] sm:$0xff] %vm3085_vm14, %v3032_v42 }
 0x46c   : > { %3627 = vrot.lane.b32.xlu0 %v4988_v25, %s5268_s10 }
 0x46d   : > { %v3799_v18 = vpop.permute.xlu1 %3798 }
 0x46e   : > { %3877 = vst.msk [vmem:[#allocation4 + $0x90] sm:$0xff] %vm3858_vm4, %v3799_v18  ;;  %v3801_v11 = vpop.permute.xlu0 %3800 }
 0x46f   : > { %3049 = vrot.lane.b32.xlu1 %v4987_v61, %s5265_s16  ;;  %3878 = vst.msk [vmem:[#allocation4 + $0x98] sm:$0xff] %vm3858_vm4, %v3801_v11 }
 0x470   : > { %3051 = vrot.lane.b32.xlu0 %v4988_v25, %s5265_s16 }
 0x471   : > { %v3223_v40 = vpop.permute.xlu1 %3222 }
 0x472   : > { %3299 = vst.msk [vmem:[#allocation4 + $0xa0] sm:$0xff] %vm3278_vm15, %v3223_v40  ;;  %v3417_v63 = vpop.permute.xlu0 %3416 }
 0x473   : > { %3818 = vrot.lane.b32.xlu1 %v5019_v44, %s5269_s27  ;;  %3493 = vst.msk [vmem:[#allocation4 + $0xa0] sm:$0xff] %vm3472_vm2, %v3417_v63 }
 0x474   : > { %3820 = vrot.lane.b32.xlu0 %v5020_v46, %s5269_s27 }
 0x475   : > { %v3225_v58 = vpop.permute.xlu1 %3224  ;;  %v3909_v17 = vld [vmem:[#allocation4 + $0x90] sm:$0xff] }
 0x476   : > { %3300 = vst.msk [vmem:[#allocation4 + $0xa8] sm:$0xff] %vm3278_vm15, %v3225_v58  ;;  %5147 = vmatprep.mubr.msk.f32.mxu1 %vm3939_vm5, %v3909_v17  ;;  %v3419_v37 = vpop.permute.xlu0 %3418  ;;  %v3910_v29 = vld [vmem:[#allocation4 + $0x98] sm:$0xff] }
 0x477   : > { %3242 = vrot.lane.b32.xlu1 %v5019_v44, %s5266_s24  ;;  %3494 = vst.msk [vmem:[#allocation4 + $0xa8] sm:$0xff] %vm3472_vm2, %v3419_v37  ;;  %5148 = vmatmul.mubr.msk.f32.gmra.mxu1 %vm3939_vm5, %v3910_v29 }
 0x478   : > { %3436 = vrot.lane.b32.xlu0 %v4957_v34, %s5267_s29 }
 0x479   : > { %v2841_v48 = vpop.permute.xlu1 %2840 }
 0x47a   : > { %2915 = vst.msk [vmem:[#allocation4 + $0xb0] sm:$0xff] %vm2892_vm13, %v2841_v48  ;;  %v2843_v19 = vpop.permute.xlu0 %2842 }
 0x47b   : > { %3244 = vrot.lane.b32.xlu1 %v5020_v46, %s5266_s24  ;;  %2916 = vst.msk [vmem:[#allocation4 + $0xb8] sm:$0xff] %vm2892_vm13, %v2843_v19  ;;  %v5122_v32 = vpop.f32.mrf.mxu0 }
 0x47c   : > { %v4108_v10 = vadd.f32 %v5122_v32, %v7425_v35  ;;  %3629 = vrot.lane.b32.xlu0 %v4989_v31, %s5268_s10 }
 0x47d   : > { %v3610_v59 = vpop.permute.xlu1 %3609  ;;  %v4102_v8 = vpop.f32.mrf.mxu0 }
 0x47e   : > { %3686 = vst.msk [vmem:[#allocation4 + $0xa0] sm:$0xff] %vm3665_vm3, %v3610_v59  ;;  %v3612_v38 = vpop.permute.xlu0 %3611  ;;  %v4294_v15 = vsel %vm293_vm0, %v4108_v10, 0.0  ;;  %v4363_v57 = vmul.f32 %v4108_v10, %v4108_v10  ;;  %v4103_v27 = vadd.f32 %v7425_v35, %v4102_v8 }
 0x47f   : > { %4262 = vst.msk [vmem:[%s7433_s30 + $0x8] sm:$0xff] %vm293_vm0, %v4108_v10  ;;  %3438 = vrot.lane.b32.xlu1 %v4958_v52, %s5267_s29 }
 0x480   : > { %3687 = vst.msk [vmem:[#allocation4 + $0xa8] sm:$0xff] %vm3665_vm3, %v3612_v38  ;;  %v4395_v30 = vsel %vm293_vm0, %v4363_v57, 0.0  ;;  %v4293_v51 = vsel %vm293_vm0, %v4103_v27, 0.0  ;;  %v4362_v62 = vmul.f32 %v4103_v27, %v4103_v27  ;;  %3822 = vrot.lane.b32.xlu0 %v5021_v13, %s5269_s27 }
 0x481   : > { %4261 = vst.msk [vmem:[%s7433_s30] sm:$0xff] %vm293_vm0, %v4103_v27  ;;  %v3034_v1 = vpop.permute.xlu1 %3033  ;;  %v4295_v49 = vadd.f32 %v4294_v15, %v4293_v51 }
 0x482   : > { %3108 = vst.msk [vmem:[#allocation4 + $0xb0] sm:$0xff] %vm3085_vm14, %v3034_v1  ;;  %v4394_v3 = vsel %vm293_vm0, %v4362_v62, 0.0  ;;  %v3036_v53 = vpop.permute.xlu0 %3035 }
 0x483   : > { %3631 = vrot.lane.b32.xlu1 %v4990_v60, %s5268_s10  ;;  %v4396_v5 = vadd.f32 %v4395_v30, %v4394_v3  ;;  %3109 = vst.msk [vmem:[#allocation4 + $0xb8] sm:$0xff] %vm3085_vm14, %v3036_v53 }
 0x485   : > { %v3803_v23 = vpop.permute.xlu1 %3802 }
 0x486   : > { %3879 = vst.msk [vmem:[#allocation4 + $0xa0] sm:$0xff] %vm3858_vm4, %v3803_v23  ;;  %v3805_v4 = vpop.permute.xlu0 %3804 }
 0x487   : > { %3824 = vrot.lane.b32.xlu1 %v5022_v7, %s5269_s27  ;;  %3880 = vst.msk [vmem:[#allocation4 + $0xa8] sm:$0xff] %vm3858_vm4, %v3805_v4 }
 0x489   : > { %v3227_v9 = vpop.permute.xlu1 %3226 }
 0x48a   : > { %3301 = vst.msk [vmem:[#allocation4 + $0xb0] sm:$0xff] %vm3278_vm15, %v3227_v9  ;;  %v3421_v20 = vpop.permute.xlu0 %3420 }
 0x48b   : > { %3495 = vst.msk [vmem:[#allocation4 + $0xb0] sm:$0xff] %vm3472_vm2, %v3421_v20 }
 0x48d   : > { %v3229_v12 = vpop.permute.xlu1 %3228  ;;  %v3911_v16 = vld [vmem:[#allocation4 + $0xa0] sm:$0xff] }
 0x48e   : > { %3302 = vst.msk [vmem:[#allocation4 + $0xb8] sm:$0xff] %vm3278_vm15, %v3229_v12  ;;  %5150 = vmatprep.mubr.msk.f32.mxu1 %vm3939_vm5, %v3911_v16  ;;  %v3423_v41 = vpop.permute.xlu0 %3422  ;;  %v3912_v39 = vld [vmem:[#allocation4 + $0xa8] sm:$0xff] }
 0x48f   : > { %3496 = vst.msk [vmem:[#allocation4 + $0xb8] sm:$0xff] %vm3472_vm2, %v3423_v41  ;;  %v5125_v22 = vpop.f32.mrf.mxu0  ;;  %5151 = vmatmul.mubr.msk.f32.gmra.mxu1 %vm3939_vm5, %v3912_v39 }
 0x490   : > { %v4118_v55 = vadd.f32 %v5125_v22, %v7425_v35 }
 0x491   : > { %v2845_v28 = vpop.permute.xlu1 %2844  ;;  %v4112_v43 = vpop.f32.mrf.mxu0 }
 0x492   : > { %2917 = vst.msk [vmem:[#allocation4 + $0xc0] sm:$0xff] %vm2892_vm13, %v2845_v28  ;;  %v4365_v21 = vmul.f32 %v4118_v55, %v4118_v55  ;;  %v4113_v47 = vadd.f32 %v7425_v35, %v4112_v43  ;;  %v2847_v14 = vpop.permute.xlu0 %2846  ;;  %v4298_v54 = vsel %vm293_vm0, %v4118_v55, 0.0 }
 0x493   : > { %4264 = vst.msk [vmem:[%s7433_s30 + $0x18] sm:$0xff] %vm293_vm0, %v4118_v55 }
 0x494   : > { %2918 = vst.msk [vmem:[#allocation4 + $0xc8] sm:$0xff] %vm2892_vm13, %v2847_v14  ;;  %v4296_v26 = vsel %vm293_vm0, %v4113_v47, 0.0  ;;  %v4364_v50 = vmul.f32 %v4113_v47, %v4113_v47  ;;  %v4399_v33 = vsel %vm293_vm0, %v4365_v21, 0.0 }
 0x495   : > { %4263 = vst.msk [vmem:[%s7433_s30 + $0x10] sm:$0xff] %vm293_vm0, %v4113_v47  ;;  %v3614_v56 = vpop.permute.xlu1 %3613  ;;  %v4297_v24 = vadd.f32 %v4296_v26, %v4295_v49 }
 0x496   : > { %3688 = vst.msk [vmem:[#allocation4 + $0xb0] sm:$0xff] %vm3665_vm3, %v3614_v56  ;;  %v4397_v36 = vsel %vm293_vm0, %v4364_v50, 0.0  ;;  %v3616_v45 = vpop.permute.xlu0 %3615 }
 0x497   : > { %v4398_v2 = vadd.f32 %v4397_v36, %v4396_v5  ;;  %3689 = vst.msk [vmem:[#allocation4 + $0xb8] sm:$0xff] %vm3665_vm3, %v3616_v45  ;;  %v4299_v0 = vadd.f32 %v4298_v54, %v4297_v24 }
 0x499   : > { %v3038_v61 = vpop.permute.xlu1 %3037  ;;  %v4400_v6 = vadd.f32 %v4399_v33, %v4398_v2 }
 0x49a   : > { %3110 = vst.msk [vmem:[#allocation4 + $0xc0] sm:$0xff] %vm3085_vm14, %v3038_v61  ;;  %v3040_v25 = vpop.permute.xlu0 %3039 }
 0x49b   : > { %3111 = vst.msk [vmem:[#allocation4 + $0xc8] sm:$0xff] %vm3085_vm14, %v3040_v25 }
 0x49d   : > { %v3807_v42 = vpop.permute.xlu1 %3806 }
 0x49e   : > { %3881 = vst.msk [vmem:[#allocation4 + $0xb0] sm:$0xff] %vm3858_vm4, %v3807_v42  ;;  %v3809_v18 = vpop.permute.xlu0 %3808 }
 0x49f   : > { %3882 = vst.msk [vmem:[#allocation4 + $0xb8] sm:$0xff] %vm3858_vm4, %v3809_v18 }
 0x4a1   : > { %v3231_v11 = vpop.permute.xlu1 %3230 }
 0x4a2   : > { %3303 = vst.msk [vmem:[#allocation4 + $0xc0] sm:$0xff] %vm3278_vm15, %v3231_v11  ;;  %v3425_v44 = vpop.permute.xlu0 %3424 }
 0x4a3   : > { %3497 = vst.msk [vmem:[#allocation4 + $0xc0] sm:$0xff] %vm3472_vm2, %v3425_v44  ;;  %v5128_v40 = vpop.f32.mrf.mxu0 }
 0x4a4   : > { %v4128_v46 = vadd.f32 %v5128_v40, %v7425_v35 }
 0x4a5   : > { %v3233_v63 = vpop.permute.xlu1 %3232  ;;  %v3913_v58 = vld [vmem:[#allocation4 + $0xb0] sm:$0xff]  ;;  %v4122_v17 = vpop.f32.mrf.mxu0 }
 0x4a6   : > { %3304 = vst.msk [vmem:[#allocation4 + $0xc8] sm:$0xff] %vm3278_vm15, %v3233_v63  ;;  %5153 = vmatprep.mubr.msk.f32.mxu1 %vm3939_vm5, %v3913_v58  ;;  %v4367_v34 = vmul.f32 %v4128_v46, %v4128_v46  ;;  %v4123_v37 = vadd.f32 %v7425_v35, %v4122_v17  ;;  %v3427_v29 = vpop.permute.xlu0 %3426  ;;  %v3914_v48 = vld [vmem:[#allocation4 + $0xb8] sm:$0xff]  ;;  %v4302_v31 = vsel %vm293_vm0, %v4128_v46, 0.0 }
 0x4a7   : > { %4266 = vst.msk [vmem:[%s7433_s30 + $0x28] sm:$0xff] %vm293_vm0, %v4128_v46  ;;  %5154 = vmatmul.mubr.msk.f32.gmra.mxu1 %vm3939_vm5, %v3914_v48 }
 0x4a8   : > { %3498 = vst.msk [vmem:[#allocation4 + $0xc8] sm:$0xff] %vm3472_vm2, %v3427_v29  ;;  %v4300_v19 = vsel %vm293_vm0, %v4123_v37, 0.0  ;;  %v4366_v32 = vmul.f32 %v4123_v37, %v4123_v37  ;;  %v4403_v10 = vsel %vm293_vm0, %v4367_v34, 0.0 }
 0x4a9   : > { %4265 = vst.msk [vmem:[%s7433_s30 + $0x20] sm:$0xff] %vm293_vm0, %v4123_v37  ;;  %v2849_v52 = vpop.permute.xlu1 %2848  ;;  %v4301_v59 = vadd.f32 %v4300_v19, %v4299_v0 }
 0x4aa   : > { %2919 = vst.msk [vmem:[#allocation4 + $0xd0] sm:$0xff] %vm2892_vm13, %v2849_v52  ;;  %v4401_v8 = vsel %vm293_vm0, %v4366_v32, 0.0  ;;  %v2851_v13 = vpop.permute.xlu0 %2850 }
 0x4ab   : > { %v4402_v38 = vadd.f32 %v4401_v8, %v4400_v6  ;;  %2920 = vst.msk [vmem:[#allocation4 + $0xd8] sm:$0xff] %vm2892_vm13, %v2851_v13  ;;  %v4303_v15 = vadd.f32 %v4302_v31, %v4301_v59 }
 0x4ad   : > { %v3618_v57 = vpop.permute.xlu1 %3617  ;;  %v4404_v27 = vadd.f32 %v4403_v10, %v4402_v38 }
 0x4ae   : > { %3690 = vst.msk [vmem:[#allocation4 + $0xc0] sm:$0xff] %vm3665_vm3, %v3618_v57  ;;  %v3620_v60 = vpop.permute.xlu0 %3619 }
 0x4af   : > { %3691 = vst.msk [vmem:[#allocation4 + $0xc8] sm:$0xff] %vm3665_vm3, %v3620_v60 }
 0x4b1   : > { %v3042_v30 = vpop.permute.xlu1 %3041 }
 0x4b2   : > { %3112 = vst.msk [vmem:[#allocation4 + $0xd0] sm:$0xff] %vm3085_vm14, %v3042_v30  ;;  %v3044_v51 = vpop.permute.xlu0 %3043 }
 0x4b3   : > { %3113 = vst.msk [vmem:[#allocation4 + $0xd8] sm:$0xff] %vm3085_vm14, %v3044_v51 }
 0x4b5   : > { %v3811_v62 = vpop.permute.xlu1 %3810 }
 0x4b6   : > { %3883 = vst.msk [vmem:[#allocation4 + $0xc0] sm:$0xff] %vm3858_vm4, %v3811_v62  ;;  %v3813_v1 = vpop.permute.xlu0 %3812 }
 0x4b7   : > { %3884 = vst.msk [vmem:[#allocation4 + $0xc8] sm:$0xff] %vm3858_vm4, %v3813_v1  ;;  %v5131_v49 = vpop.f32.mrf.mxu0 }
 0x4b8   : > { %v4138_v3 = vadd.f32 %v5131_v49, %v7425_v35 }
 0x4b9   : > { %v3235_v53 = vpop.permute.xlu1 %3234  ;;  %v4132_v5 = vpop.f32.mrf.mxu0 }
 0x4ba   : > { %3305 = vst.msk [vmem:[#allocation4 + $0xd0] sm:$0xff] %vm3278_vm15, %v3235_v53  ;;  %v4369_v7 = vmul.f32 %v4138_v3, %v4138_v3  ;;  %v4133_v23 = vadd.f32 %v7425_v35, %v4132_v5  ;;  %v3429_v4 = vpop.permute.xlu0 %3428  ;;  %v4306_v9 = vsel %vm293_vm0, %v4138_v3, 0.0 }
 0x4bb   : > { %4268 = vst.msk [vmem:[%s7433_s30 + $0x38] sm:$0xff] %vm293_vm0, %v4138_v3 }
 0x4bc   : > { %3499 = vst.msk [vmem:[#allocation4 + $0xd0] sm:$0xff] %vm3472_vm2, %v3429_v4  ;;  %v4304_v20 = vsel %vm293_vm0, %v4133_v23, 0.0  ;;  %v4368_v12 = vmul.f32 %v4133_v23, %v4133_v23  ;;  %v4407_v22 = vsel %vm293_vm0, %v4369_v7, 0.0 }
 0x4bd   : > { %4267 = vst.msk [vmem:[%s7433_s30 + $0x30] sm:$0xff] %vm293_vm0, %v4133_v23  ;;  %v3237_v16 = vpop.permute.xlu1 %3236  ;;  %v3915_v41 = vld [vmem:[#allocation4 + $0xc0] sm:$0xff]  ;;  %v4305_v39 = vadd.f32 %v4304_v20, %v4303_v15 }
 0x4be   : > { %3306 = vst.msk [vmem:[#allocation4 + $0xd8] sm:$0xff] %vm3278_vm15, %v3237_v16  ;;  %5156 = vmatprep.mubr.msk.f32.mxu1 %vm3939_vm5, %v3915_v41  ;;  %v4405_v55 = vsel %vm293_vm0, %v4368_v12, 0.0  ;;  %v3431_v28 = vpop.permute.xlu0 %3430  ;;  %v3916_v43 = vld [vmem:[#allocation4 + $0xc8] sm:$0xff] }
 0x4bf   : > { %v4406_v21 = vadd.f32 %v4405_v55, %v4404_v27  ;;  %3500 = vst.msk [vmem:[#allocation4 + $0xd8] sm:$0xff] %vm3472_vm2, %v3431_v28  ;;  %5157 = vmatmul.mubr.msk.f32.gmra.mxu1 %vm3939_vm5, %v3916_v43  ;;  %v4307_v47 = vadd.f32 %v4306_v9, %v4305_v39 }
 0x4c1   : > { %v2853_v14 = vpop.permute.xlu1 %2852  ;;  %v4408_v54 = vadd.f32 %v4407_v22, %v4406_v21 }
 0x4c2   : > { %2921 = vst.msk [vmem:[#allocation4 + $0xe0] sm:$0xff] %vm2892_vm13, %v2853_v14  ;;  %v2855_v26 = vpop.permute.xlu0 %2854 }
 0x4c3   : > { %2922 = vst.msk [vmem:[#allocation4 + $0xe8] sm:$0xff] %vm2892_vm13, %v2855_v26 }
 0x4c5   : > { %v3622_v50 = vpop.permute.xlu1 %3621 }
 0x4c6   : > { %3692 = vst.msk [vmem:[#allocation4 + $0xd0] sm:$0xff] %vm3665_vm3, %v3622_v50  ;;  %v3624_v56 = vpop.permute.xlu0 %3623 }
 0x4c7   : > { %3693 = vst.msk [vmem:[#allocation4 + $0xd8] sm:$0xff] %vm3665_vm3, %v3624_v56 }
 0x4c9   : > { %v3046_v24 = vpop.permute.xlu1 %3045 }
 0x4ca   : > { %3114 = vst.msk [vmem:[#allocation4 + $0xe0] sm:$0xff] %vm3085_vm14, %v3046_v24  ;;  %v3048_v33 = vpop.permute.xlu0 %3047 }
 0x4cb   : > { %3115 = vst.msk [vmem:[#allocation4 + $0xe8] sm:$0xff] %vm3085_vm14, %v3048_v33  ;;  %v5134_v36 = vpop.f32.mrf.mxu0 }
 0x4cc   : > { %v4148_v45 = vadd.f32 %v5134_v36, %v7425_v35 }
 0x4cd   : > { %v3815_v2 = vpop.permute.xlu1 %3814  ;;  %v4142_v0 = vpop.f32.mrf.mxu0 }
 0x4ce   : > { %3885 = vst.msk [vmem:[#allocation4 + $0xd0] sm:$0xff] %vm3858_vm4, %v3815_v2  ;;  %v4371_v61 = vmul.f32 %v4148_v45, %v4148_v45  ;;  %v4143_v6 = vadd.f32 %v7425_v35, %v4142_v0  ;;  %v3817_v25 = vpop.permute.xlu0 %3816  ;;  %v4310_v42 = vsel %vm293_vm0, %v4148_v45, 0.0 }
 0x4cf   : > { %4270 = vst.msk [vmem:[%s7433_s30 + $0x48] sm:$0xff] %vm293_vm0, %v4148_v45 }
 0x4d0   : > { %3886 = vst.msk [vmem:[#allocation4 + $0xd8] sm:$0xff] %vm3858_vm4, %v3817_v25  ;;  %v4308_v18 = vsel %vm293_vm0, %v4143_v6, 0.0  ;;  %v4370_v11 = vmul.f32 %v4143_v6, %v4143_v6  ;;  %v4411_v46 = vsel %vm293_vm0, %v4371_v61, 0.0 }
 0x4d1   : > { %4269 = vst.msk [vmem:[%s7433_s30 + $0x40] sm:$0xff] %vm293_vm0, %v4143_v6  ;;  %v3239_v44 = vpop.permute.xlu1 %3238  ;;  %v4309_v40 = vadd.f32 %v4308_v18, %v4307_v47 }
 0x4d2   : > { %3307 = vst.msk [vmem:[#allocation4 + $0xe0] sm:$0xff] %vm3278_vm15, %v3239_v44  ;;  %v4409_v63 = vsel %vm293_vm0, %v4370_v11, 0.0  ;;  %v3433_v58 = vpop.permute.xlu0 %3432 }
 0x4d3   : > { %v4410_v17 = vadd.f32 %v4409_v63, %v4408_v54  ;;  %3501 = vst.msk [vmem:[#allocation4 + $0xe0] sm:$0xff] %vm3472_vm2, %v3433_v58  ;;  %v4311_v34 = vadd.f32 %v4310_v42, %v4309_v40 }
 0x4d5   : > { %v3241_v37 = vpop.permute.xlu1 %3240  ;;  %v3917_v29 = vld [vmem:[#allocation4 + $0xd0] sm:$0xff]  ;;  %v4412_v48 = vadd.f32 %v4411_v46, %v4410_v17 }
 0x4d6   : > { %3308 = vst.msk [vmem:[#allocation4 + $0xe8] sm:$0xff] %vm3278_vm15, %v3241_v37  ;;  %5159 = vmatprep.mubr.msk.f32.mxu1 %vm3939_vm5, %v3917_v29  ;;  %v3435_v31 = vpop.permute.xlu0 %3434 }
 0x4d7   : > { %v3918_v19 = vld [vmem:[#allocation4 + $0xd8] sm:$0xff]  ;;  %3502 = vst.msk [vmem:[#allocation4 + $0xe8] sm:$0xff] %vm3472_vm2, %v3435_v31 }
 0x4d8   : > { %5160 = vmatmul.mubr.msk.f32.gmra.mxu1 %vm3939_vm5, %v3918_v19 }
 0x4d9   : > { %v2857_v32 = vpop.permute.xlu1 %2856 }
 0x4da   : > { %2923 = vst.msk [vmem:[#allocation4 + $0xf0] sm:$0xff] %vm2892_vm13, %v2857_v32  ;;  %v2859_v52 = vpop.permute.xlu0 %2858 }
 0x4db   : > { %2924 = vst.msk [vmem:[#allocation4 + $0xf8] sm:$0xff] %vm2892_vm13, %v2859_v52 }
 0x4dd   : > { %v3626_v59 = vpop.permute.xlu1 %3625 }
 0x4de   : > { %3694 = vst.msk [vmem:[#allocation4 + $0xe0] sm:$0xff] %vm3665_vm3, %v3626_v59  ;;  %v3628_v10 = vpop.permute.xlu0 %3627 }
 0x4df   : > { %3695 = vst.msk [vmem:[#allocation4 + $0xe8] sm:$0xff] %vm3665_vm3, %v3628_v10  ;;  %v5137_v8 = vpop.f32.mrf.mxu0 }
 0x4e0   : > { %v4158_v13 = vadd.f32 %v5137_v8, %v7425_v35 }
 0x4e1   : > { %v3050_v38 = vpop.permute.xlu1 %3049  ;;  %v4152_v15 = vpop.f32.mrf.mxu0 }
 0x4e2   : > { %3116 = vst.msk [vmem:[#allocation4 + $0xf0] sm:$0xff] %vm3085_vm14, %v3050_v38  ;;  %v4373_v57 = vmul.f32 %v4158_v13, %v4158_v13  ;;  %v4153_v27 = vadd.f32 %v7425_v35, %v4152_v15  ;;  %v3052_v60 = vpop.permute.xlu0 %3051  ;;  %v4314_v30 = vsel %vm293_vm0, %v4158_v13, 0.0 }
 0x4e3   : > { %4272 = vst.msk [vmem:[%s7433_s30 + $0x58] sm:$0xff] %vm293_vm0, %v4158_v13 }
 0x4e4   : > { %3117 = vst.msk [vmem:[#allocation4 + $0xf8] sm:$0xff] %vm3085_vm14, %v3052_v60  ;;  %v4312_v51 = vsel %vm293_vm0, %v4153_v27, 0.0  ;;  %v4372_v62 = vmul.f32 %v4153_v27, %v4153_v27  ;;  %v4415_v3 = vsel %vm293_vm0, %v4373_v57, 0.0 }
 0x4e5   : > { %4271 = vst.msk [vmem:[%s7433_s30 + $0x50] sm:$0xff] %vm293_vm0, %v4153_v27  ;;  %v3819_v1 = vpop.permute.xlu1 %3818  ;;  %v4313_v49 = vadd.f32 %v4312_v51, %v4311_v34 }
 0x4e6   : > { %3887 = vst.msk [vmem:[#allocation4 + $0xe0] sm:$0xff] %vm3858_vm4, %v3819_v1  ;;  %v4413_v53 = vsel %vm293_vm0, %v4372_v62, 0.0  ;;  %v3821_v5 = vpop.permute.xlu0 %3820 }
 0x4e7   : > { %v4414_v7 = vadd.f32 %v4413_v53, %v4412_v48  ;;  %3888 = vst.msk [vmem:[#allocation4 + $0xe8] sm:$0xff] %vm3858_vm4, %v3821_v5  ;;  %v4315_v23 = vadd.f32 %v4314_v30, %v4313_v49 }
 0x4e9   : > { %v3243_v4 = vpop.permute.xlu1 %3242  ;;  %v4416_v9 = vadd.f32 %v4415_v3, %v4414_v7 }
 0x4ea   : > { %3309 = vst.msk [vmem:[#allocation4 + $0xf0] sm:$0xff] %vm3278_vm15, %v3243_v4  ;;  %v3437_v20 = vpop.permute.xlu0 %3436 }
 0x4eb   : > { %3503 = vst.msk [vmem:[#allocation4 + $0xf0] sm:$0xff] %vm3472_vm2, %v3437_v20 }
 0x4ed   : > { %v3245_v12 = vpop.permute.xlu1 %3244  ;;  %v3919_v16 = vld [vmem:[#allocation4 + $0xe0] sm:$0xff] }
 0x4ee   : > { %3310 = vst.msk [vmem:[#allocation4 + $0xf8] sm:$0xff] %vm3278_vm15, %v3245_v12  ;;  %5162 = vmatprep.mubr.msk.f32.mxu1 %vm3939_vm5, %v3919_v16  ;;  %v3920_v41 = vld [vmem:[#allocation4 + $0xe8] sm:$0xff]  ;;  %v3630_v39 = vpop.permute.xlu0 %3629 }
 0x4ef   : > { %5163 = vmatmul.mubr.msk.f32.gmra.mxu1 %vm3939_vm5, %v3920_v41  ;;  %3696 = vst.msk [vmem:[#allocation4 + $0xf0] sm:$0xff] %vm3665_vm3, %v3630_v39 }
 0x4f1   : > { %v3439_v22 = vpop.permute.xlu1 %3438 }
 0x4f2   : > { %3504 = vst.msk [vmem:[#allocation4 + $0xf8] sm:$0xff] %vm3472_vm2, %v3439_v22  ;;  %v3823_v55 = vpop.permute.xlu0 %3822 }
 0x4f3   : > { %v5140_v28 = vpop.f32.mrf.mxu0  ;;  %3889 = vst.msk [vmem:[#allocation4 + $0xf0] sm:$0xff] %vm3858_vm4, %v3823_v55 }
 0x4f4   : > { %v4168_v43 = vadd.f32 %v5140_v28, %v7425_v35 }
 0x4f5   : > { %v3632_v21 = vpop.permute.xlu1 %3631  ;;  %v4162_v47 = vpop.f32.mrf.mxu0 }
 0x4f6   : > { %3697 = vst.msk [vmem:[#allocation4 + $0xf8] sm:$0xff] %vm3665_vm3, %v3632_v21  ;;  %v4375_v14 = vmul.f32 %v4168_v43, %v4168_v43  ;;  %v4163_v54 = vadd.f32 %v7425_v35, %v4162_v47  ;;  %v4318_v26 = vsel %vm293_vm0, %v4168_v43, 0.0 }
 0x4f7   : > { %4274 = vst.msk [vmem:[%s7433_s30 + $0x68] sm:$0xff] %vm293_vm0, %v4168_v43 }
 0x4f8   : > { %4273 = vst.msk [vmem:[%s7433_s30 + $0x60] sm:$0xff] %vm293_vm0, %v4163_v54  ;;  %v4316_v50 = vsel %vm293_vm0, %v4163_v54, 0.0  ;;  %v4374_v56 = vmul.f32 %v4163_v54, %v4163_v54  ;;  %v4419_v36 = vsel %vm293_vm0, %v4375_v14, 0.0 }
 0x4f9   : > { %v3825_v24 = vpop.permute.xlu1 %3824  ;;  %v4317_v33 = vadd.f32 %v4316_v50, %v4315_v23 }
 0x4fa   : > { %3890 = vst.msk [vmem:[#allocation4 + $0xf8] sm:$0xff] %vm3858_vm4, %v3825_v24  ;;  %v4417_v45 = vsel %vm293_vm0, %v4374_v56, 0.0  ;;  %v3921_v2 = vld [vmem:[#allocation4 + $0xf0] sm:$0xff] }
 0x4fb   : > { %v4418_v0 = vadd.f32 %v4417_v45, %v4416_v9  ;;  %5165 = vmatprep.mubr.msk.f32.mxu1 %vm3939_vm5, %v3921_v2  ;;  %v4319_v61 = vadd.f32 %v4318_v26, %v4317_v33 }
 0x4fd   : > { %v4420_v6 = vadd.f32 %v4419_v36, %v4418_v0 }
 0x501   : > { %v3922_v25 = vld [vmem:[#allocation4 + $0xf8] sm:$0xff] }
 0x502   : > { %5166 = vmatmul.mubr.msk.f32.gmra.mxu1 %vm3939_vm5, %v3922_v25 }
 0x507   : > { %v5143_v42 = vpop.f32.mrf.mxu0 }
 0x508   : > { %v4178_v18 = vadd.f32 %v5143_v42, %v7425_v35 }
 0x509   : > { %v4172_v11 = vpop.f32.mrf.mxu0 }
 0x50a   : > { %4276 = vst.msk [vmem:[%s7433_s30 + $0x78] sm:$0xff] %vm293_vm0, %v4178_v18  ;;  %v4377_v44 = vmul.f32 %v4178_v18, %v4178_v18  ;;  %v4173_v40 = vadd.f32 %v7425_v35, %v4172_v11  ;;  %v4322_v46 = vsel %vm293_vm0, %v4178_v18, 0.0 }
 0x50c   : > { %4275 = vst.msk [vmem:[%s7433_s30 + $0x70] sm:$0xff] %vm293_vm0, %v4173_v40  ;;  %v4320_v63 = vsel %vm293_vm0, %v4173_v40, 0.0  ;;  %v4376_v58 = vmul.f32 %v4173_v40, %v4173_v40  ;;  %v4423_v34 = vsel %vm293_vm0, %v4377_v44, 0.0 }
 0x50d   : > { %v4321_v17 = vadd.f32 %v4320_v63, %v4319_v61 }
 0x50e   : > { %v4421_v37 = vsel %vm293_vm0, %v4376_v58, 0.0 }
 0x50f   : > { %v4422_v29 = vadd.f32 %v4421_v37, %v4420_v6  ;;  %v4323_v48 = vadd.f32 %v4322_v46, %v4321_v17 }
 0x511   : > { %v4424_v31 = vadd.f32 %v4423_v34, %v4422_v29 }
 0x51f   : > { %v5146_v19 = vpop.f32.mrf.mxu1 }
 0x520   : > { %v4188_v32 = vadd.f32 %v5146_v19, %v7425_v35 }
 0x521   : > { %v4182_v52 = vpop.f32.mrf.mxu1 }
 0x522   : > { %4278 = vst.msk [vmem:[%s7433_s30 + $0x88] sm:$0xff] %vm293_vm0, %v4188_v32  ;;  %v4379_v59 = vmul.f32 %v4188_v32, %v4188_v32  ;;  %v4183_v10 = vadd.f32 %v7425_v35, %v4182_v52  ;;  %v4326_v8 = vsel %vm293_vm0, %v4188_v32, 0.0 }
 0x524   : > { %4277 = vst.msk [vmem:[%s7433_s30 + $0x80] sm:$0xff] %vm293_vm0, %v4183_v10  ;;  %v4324_v13 = vsel %vm293_vm0, %v4183_v10, 0.0  ;;  %v4378_v38 = vmul.f32 %v4183_v10, %v4183_v10  ;;  %v4427_v57 = vsel %vm293_vm0, %v4379_v59, 0.0 }
 0x525   : > { %v4325_v15 = vadd.f32 %v4324_v13, %v4323_v48 }
 0x526   : > { %v4425_v27 = vsel %vm293_vm0, %v4378_v38, 0.0 }
 0x527   : > { %v4426_v60 = vadd.f32 %v4425_v27, %v4424_v31  ;;  %v4327_v30 = vadd.f32 %v4326_v8, %v4325_v15 }
 0x529   : > { %v4428_v51 = vadd.f32 %v4427_v57, %v4426_v60 }
 0x537   : > { %v5149_v62 = vpop.f32.mrf.mxu1 }
 0x538   : > { %v4198_v1 = vadd.f32 %v5149_v62, %v7425_v35 }
 0x539   : > { %v4192_v49 = vpop.f32.mrf.mxu1 }
 0x53a   : > { %4280 = vst.msk [vmem:[%s7433_s30 + $0x98] sm:$0xff] %vm293_vm0, %v4198_v1  ;;  %v4381_v3 = vmul.f32 %v4198_v1, %v4198_v1  ;;  %v4193_v53 = vadd.f32 %v7425_v35, %v4192_v49  ;;  %v4330_v5 = vsel %vm293_vm0, %v4198_v1, 0.0 }
 0x53c   : > { %4279 = vst.msk [vmem:[%s7433_s30 + $0x90] sm:$0xff] %vm293_vm0, %v4193_v53  ;;  %v4328_v7 = vsel %vm293_vm0, %v4193_v53, 0.0  ;;  %v4380_v23 = vmul.f32 %v4193_v53, %v4193_v53  ;;  %v4431_v9 = vsel %vm293_vm0, %v4381_v3, 0.0 }
 0x53d   : > { %v4329_v4 = vadd.f32 %v4328_v7, %v4327_v30 }
 0x53e   : > { %v4429_v20 = vsel %vm293_vm0, %v4380_v23, 0.0 }
 0x53f   : > { %v4430_v12 = vadd.f32 %v4429_v20, %v4428_v51  ;;  %v4331_v16 = vadd.f32 %v4330_v5, %v4329_v4 }
 0x541   : > { %v4432_v41 = vadd.f32 %v4431_v9, %v4430_v12 }
 0x54f   : > { %v5152_v39 = vpop.f32.mrf.mxu1 }
 0x550   : > { %v4208_v22 = vadd.f32 %v5152_v39, %v7425_v35 }
 0x551   : > { %v4202_v55 = vpop.f32.mrf.mxu1 }
 0x552   : > { %4282 = vst.msk [vmem:[%s7433_s30 + $0xa8] sm:$0xff] %vm293_vm0, %v4208_v22  ;;  %v4383_v28 = vmul.f32 %v4208_v22, %v4208_v22  ;;  %v4203_v43 = vadd.f32 %v7425_v35, %v4202_v55  ;;  %v4334_v21 = vsel %vm293_vm0, %v4208_v22, 0.0 }
 0x554   : > { %4281 = vst.msk [vmem:[%s7433_s30 + $0xa0] sm:$0xff] %vm293_vm0, %v4203_v43  ;;  %v4332_v47 = vsel %vm293_vm0, %v4203_v43, 0.0  ;;  %v4382_v14 = vmul.f32 %v4203_v43, %v4203_v43  ;;  %v4435_v26 = vsel %vm293_vm0, %v4383_v28, 0.0 }
 0x555   : > { %v4333_v54 = vadd.f32 %v4332_v47, %v4331_v16 }
 0x556   : > { %v4433_v50 = vsel %vm293_vm0, %v4382_v14, 0.0 }
 0x557   : > { %v4434_v56 = vadd.f32 %v4433_v50, %v4432_v41  ;;  %v4335_v24 = vadd.f32 %v4334_v21, %v4333_v54 }
 0x559   : > { %v4436_v33 = vadd.f32 %v4435_v26, %v4434_v56 }
 0x567   : > { %v5155_v36 = vpop.f32.mrf.mxu1 }
 0x568   : > { %v4218_v45 = vadd.f32 %v5155_v36, %v7425_v35 }
 0x569   : > { %v4212_v2 = vpop.f32.mrf.mxu1 }
 0x56a   : > { %4284 = vst.msk [vmem:[%s7433_s30 + $0xb8] sm:$0xff] %vm293_vm0, %v4218_v45  ;;  %v4385_v0 = vmul.f32 %v4218_v45, %v4218_v45  ;;  %v4213_v61 = vadd.f32 %v7425_v35, %v4212_v2  ;;  %v4338_v6 = vsel %vm293_vm0, %v4218_v45, 0.0 }
 0x56c   : > { %4283 = vst.msk [vmem:[%s7433_s30 + $0xb0] sm:$0xff] %vm293_vm0, %v4213_v61  ;;  %v4336_v25 = vsel %vm293_vm0, %v4213_v61, 0.0  ;;  %v4384_v42 = vmul.f32 %v4213_v61, %v4213_v61  ;;  %v4439_v11 = vsel %vm293_vm0, %v4385_v0, 0.0 }
 0x56d   : > { %v4337_v18 = vadd.f32 %v4336_v25, %v4335_v24 }
 0x56e   : > { %v4437_v44 = vsel %vm293_vm0, %v4384_v42, 0.0 }
 0x56f   : > { %v4438_v40 = vadd.f32 %v4437_v44, %v4436_v33  ;;  %v4339_v46 = vadd.f32 %v4338_v6, %v4337_v18 }
 0x571   : > { %v4440_v63 = vadd.f32 %v4439_v11, %v4438_v40 }
 0x57f   : > { %v5158_v58 = vpop.f32.mrf.mxu1 }
 0x580   : > { %v4228_v17 = vadd.f32 %v5158_v58, %v7425_v35 }
 0x581   : > { %v4222_v34 = vpop.f32.mrf.mxu1 }
 0x582   : > { %4286 = vst.msk [vmem:[%s7433_s30 + $0xc8] sm:$0xff] %vm293_vm0, %v4228_v17  ;;  %v4223_v37 = vadd.f32 %v7425_v35, %v4222_v34  ;;  %v4387_v38 = vmul.f32 %v4228_v17, %v4228_v17  ;;  %v4342_v27 = vsel %vm293_vm0, %v4228_v17, 0.0 }
 0x584   : > { %4285 = vst.msk [vmem:[%s7433_s30 + $0xc0] sm:$0xff] %vm293_vm0, %v4223_v37  ;;  %v4386_v52 = vmul.f32 %v4223_v37, %v4223_v37  ;;  %v4340_v8 = vsel %vm293_vm0, %v4223_v37, 0.0  ;;  %v4443_v51 = vsel %vm293_vm0, %v4387_v38, 0.0 }
 0x585   : > { %v4341_v57 = vadd.f32 %v4340_v8, %v4339_v46 }
 0x586   : > { %v4441_v15 = vsel %vm293_vm0, %v4386_v52, 0.0 }
 0x587   : > { %v4442_v30 = vadd.f32 %v4441_v15, %v4440_v63  ;;  %v4343_v1 = vadd.f32 %v4342_v27, %v4341_v57 }
 0x589   : > { %v4444_v5 = vadd.f32 %v4443_v51, %v4442_v30 }
 0x598   : > { %v5161_v29 = vpop.f32.mrf.mxu1 }
 0x599   : > { %v4238_v48 = vadd.f32 %v5161_v29, %v7425_v35 }
 0x59a   : > { %v4232_v31 = vpop.f32.mrf.mxu1 }
 0x59b   : > { %4288 = vst.msk [vmem:[%s7433_s30 + $0xd8] sm:$0xff] %vm293_vm0, %v4238_v48  ;;  %v4233_v19 = vadd.f32 %v7425_v35, %v4232_v31  ;;  %v4389_v49 = vmul.f32 %v4238_v48, %v4238_v48  ;;  %v4346_v7 = vsel %vm293_vm0, %v4238_v48, 0.0 }
 0x59d   : > { %4287 = vst.msk [vmem:[%s7433_s30 + $0xd0] sm:$0xff] %vm293_vm0, %v4233_v19  ;;  %v4388_v60 = vmul.f32 %v4233_v19, %v4233_v19  ;;  %v4344_v62 = vsel %vm293_vm0, %v4233_v19, 0.0  ;;  %v4447_v9 = vsel %vm293_vm0, %v4389_v49, 0.0 }
 0x59e   : > { %v4345_v53 = vadd.f32 %v4344_v62, %v4343_v1 }
 0x59f   : > { %v4445_v3 = vsel %vm293_vm0, %v4388_v60, 0.0 }
 0x5a0   : > { %v4446_v4 = vadd.f32 %v4445_v3, %v4444_v5  ;;  %v4347_v12 = vadd.f32 %v4346_v7, %v4345_v53 }
 0x5a2   : > { %v4448_v22 = vadd.f32 %v4447_v9, %v4446_v4 }
 0x5af   : > { %v5164_v32 = vpop.f32.mrf.mxu1 }
 0x5b0   : > { %v4248_v59 = vadd.f32 %v5164_v32, %v7425_v35 }
 0x5b1   : > { %v4242_v10 = vpop.f32.mrf.mxu1 }
 0x5b2   : > { %4290 = vst.msk [vmem:[%s7433_s30 + $0xe8] sm:$0xff] %vm293_vm0, %v4248_v59  ;;  %v4243_v13 = vadd.f32 %v7425_v35, %v4242_v10  ;;  %v4391_v16 = vmul.f32 %v4248_v59, %v4248_v59  ;;  %v4350_v28 = vsel %vm293_vm0, %v4248_v59, 0.0 }
 0x5b4   : > { %4289 = vst.msk [vmem:[%s7433_s30 + $0xe0] sm:$0xff] %vm293_vm0, %v4243_v13  ;;  %v4390_v23 = vmul.f32 %v4243_v13, %v4243_v13  ;;  %v4348_v20 = vsel %vm293_vm0, %v4243_v13, 0.0  ;;  %v4451_v14 = vsel %vm293_vm0, %v4391_v16, 0.0 }
 0x5b5   : > { %v4349_v39 = vadd.f32 %v4348_v20, %v4347_v12 }
 0x5b6   : > { %v4449_v41 = vsel %vm293_vm0, %v4390_v23, 0.0 }
 0x5b7   : > { %v4450_v21 = vadd.f32 %v4449_v41, %v4448_v22  ;;  %v4351_v26 = vadd.f32 %v4350_v28, %v4349_v39 }
 0x5b9   : > { %v4452_v36 = vadd.f32 %v4451_v14, %v4450_v21 }
 0x5c2   : > { %v5167_v55 = vpop.f32.mrf.mxu1 }
 0x5c3   : > { %v4258_v43 = vadd.f32 %v5167_v55, %v7425_v35 }
 0x5c4   : > { %v4252_v47 = vpop.f32.mrf.mxu1 }
 0x5c5   : > { %4292 = vst.msk [vmem:[%s7433_s30 + $0xf8] sm:$0xff] %vm293_vm0, %v4258_v43  ;;  %v4253_v54 = vadd.f32 %v7425_v35, %v4252_v47  ;;  %v4393_v50 = vmul.f32 %v4258_v43, %v4258_v43  ;;  %v4354_v45 = vsel %vm293_vm0, %v4258_v43, 0.0 }
 0x5c7   : > { %4291 = vst.msk [vmem:[%s7433_s30 + $0xf0] sm:$0xff] %vm293_vm0, %v4253_v54  ;;  %v4352_v56 = vsel %vm293_vm0, %v4253_v54, 0.0  ;;  %v4392_v24 = vmul.f32 %v4253_v54, %v4253_v54  ;;  %v4455_v6 = vsel %vm293_vm0, %v4393_v50, 0.0 }
 0x5c8   : > { %v4353_v33 = vadd.f32 %v4352_v56, %v4351_v26 }
 0x5c9   : > { %v4453_v2 = vsel %vm293_vm0, %v4392_v24, 0.0 }
 0x5ca   : > { %v4355_v0 = vadd.f32 %v4354_v45, %v4353_v33  ;;  %v4454_v61 = vadd.f32 %v4453_v2, %v4452_v36 }
 0x5cc   : > { %v4356_v25 = vrot.slane %v4355_v0, 4  ;;  %v4456_v35 = vadd.f32 %v4455_v6, %v4454_v61 }
 0x5ce   : > { %v4357_v42 = vadd.f32 %v4356_v25, %v4355_v0  ;;  %v4457_v18 = vrot.slane %v4456_v35, 4 }
 0x5d0   : > { %v4358_v11 = vrot.slane %v4357_v42, 2  ;;  %v4458_v44 = vadd.f32 %v4457_v18, %v4456_v35 }
 0x5d2   : > { %v4359_v40 = vadd.f32 %v4358_v11, %v4357_v42  ;;  %v4459_v46 = vrot.slane %v4458_v44, 2 }
 0x5d4   : > { %v4360_v63 = vrot.slane %v4359_v40, 1  ;;  %v4460_v58 = vadd.f32 %v4459_v46, %v4458_v44 }
 0x5d6   : > { %v4461_v17 = vrot.slane %v4460_v58, 1  ;;  %v4361_v34 = vadd.f32 %v4360_v63, %v4359_v40 }
 0x5d8   : > { %v4462_v37 = vadd.f32 %v4461_v17, %v4460_v58 }
 0x5da   : > { %v4464_v29 = vsel %vm4463_vm6, %v4361_v34, %v4462_v37 }
 0x5db   : > { %4466 = vst.msk [vmem:[%s288_s6] sm:$0x3] %vm296_vm1, %v4464_v29 }
 0x5dc PF: > { %s16_s20 = sadd.s32 1, %s5250_s20   ;;  %s7784_s18 = smov %s5246_s19 }
 0x5dd   : > { %p13_p5 = scmp.ge.s32.totalorder %s16_s20, 4   ;;  %s7785_s19 = smov %s7787_s21 }
 0x5df   :  { %15 = sbr.rel (!%p13_p5) target bundleno = 2 (0x2), region = 93 }

</bundles_post_ra>
